<compile_context>
chip_gen: v7x
topology: tpu7x:2x2x1
jax: 0.10.0
libtpu: 0.0.40
codegen_flags: <defaults>
</compile_context>

<pallas_src>
import functools

import jax
import jax.numpy as jnp
from jax.experimental import pallas as pl
from jax.experimental.pallas import tpu as pltpu

LANE = 128


def gru_ae_kernel(x_ref,
                  w_ih_e_ref, b_fold_e_ref, w_hh_e_ref, b_hn_e_ref,
                  w_ih_d_ref, b_ih_d_ref, w_fused_d_ref, b_fused_d_ref,
                  out_ref,
                  *, seq_len, hidden, training, n_chains):
    H = hidden
    T = seq_len

    # ---- one-time, loop-invariant loads (already lane-broadcast in the wrapper) ----
    w_ih_e = w_ih_e_ref[...]            # (3H, 128)
    b_fold_e = b_fold_e_ref[...]        # (3H, 128)  b_ih_e (+ b_hh_e folded for r,z)
    b_hn_e = b_hn_e_ref[...]            # (H, 128)
    w_ih_d = w_ih_d_ref[...]            # (3H, 128)
    b_ih_d = b_ih_d_ref[...]            # (3H, 128)
    b_fused_d = b_fused_d_ref[...]      # (3H+pad, 128)  [b_hh_d ; b_lin ; 0]
    # MXU operands cast to bf16 once (f32 MXU matmuls are multi-pass on all gens);
    # elementwise math stays f32 (no bf16 VPU/EUP on v5e).
    w_hh_e = w_hh_e_ref[...].astype(jnp.bfloat16)        # (3H, H)
    w_fused_d = w_fused_d_ref[...].astype(jnp.bfloat16)  # (3H+pad, H)

    def sigmoid(v):
        # tanh form: one EUP push instead of two (exp + reciprocal)
        return 0.5 * jnp.tanh(0.5 * v) + 0.5

    def enc_step(h, x_row):
        gi = w_ih_e * x_row + b_fold_e                                   # (3H, 128)
        gh = jnp.dot(w_hh_e, h.astype(jnp.bfloat16),
                     preferred_element_type=jnp.float32)                 # (3H, 128)
        r = sigmoid(gi[0:H] + gh[0:H])
        z = sigmoid(gi[H:2 * H] + gh[H:2 * H])
        n = jnp.tanh(gi[2 * H:3 * H] + r * (gh[2 * H:3 * H] + b_hn_e))
        return n + z * (h - n)                                           # (1-z)*n+z*h

    def fused(h):
        # single matmul producing both gh (with b_hh_d) and y = W_lin@h + b_lin
        o = jnp.dot(w_fused_d, h.astype(jnp.bfloat16),
                    preferred_element_type=jnp.float32) + b_fused_d
        return o[0:3 * H], o[3 * H:3 * H + 1]

    def dec_step(h, gh, gi):
        r = sigmoid(gi[0:H] + gh[0:H])
        z = sigmoid(gi[H:2 * H] + gh[H:2 * H])
        n = jnp.tanh(gi[2 * H:3 * H] + r * gh[2 * H:3 * H])
        return n + z * (h - n)

    lane_sl = [slice(c * LANE, (c + 1) * LANE) for c in range(n_chains)]

    # -------- encoder: n_chains independent recurrences, interleaved per step --------
    hs = [jnp.zeros((H, LANE), jnp.float32) for _ in range(n_chains)]
    for t in range(T):                                  # fully unrolled (small static T)
        hs = [enc_step(hs[c], x_ref[t:t + 1, lane_sl[c]]) for c in range(n_chains)]

    # -------- decoder (fused W_hh_d + W_lin matmul per step, chains interleaved) -----
    ghy = [fused(hs[c]) for c in range(n_chains)]       # gh for step 0, y0 = lin(h_T)
    pend = [[] for _ in range(n_chains)]                # <=8 pending output rows/chain
    blk = 0
    for s in range(T):                                  # fully unrolled
        for c in range(n_chains):
            gh, y = ghy[c]
            if training and s > 0:                      # teacher forcing: input x[T-s]
                gi = w_ih_d * x_ref[T - s:T - s + 1, lane_sl[c]] + b_ih_d
            else:                                       # autoregressive: prev output
                gi = w_ih_d * y + b_ih_d
            hs[c] = dec_step(hs[c], gh, gi)
            ghy[c] = fused(hs[c])
            pend[c].append(ghy[c][1])                   # output row s for this chain
        if len(pend[0]) == 8:                           # aligned dense (8,128) store
            for c in range(n_chains):
                out_ref[blk * 8:(blk + 1) * 8, lane_sl[c]] = jnp.concatenate(
                    pend[c], axis=0)
                pend[c] = []
            blk += 1
    if pend[0]:                                         # flush final partial block
        k = len(pend[0])
        zero_row = jnp.zeros((1, LANE), jnp.float32)
        for c in range(n_chains):
            rows = pend[c] + [zero_row] * (8 - k)
            out_ref[blk * 8:(blk + 1) * 8, lane_sl[c]] = jnp.concatenate(rows, axis=0)


def gru_ae_forward(x, params, sequence_length, encoding_size, training=False,
                   n_chains=2):
    """Pallas equivalent of GRU_AE_separate.forward (single combination).

    x: (B, L) float32 with L >= sequence_length. Returns (B, sequence_length).
    """
    B, L = x.shape
    T = sequence_length
    H = encoding_size
    assert H % 8 == 0, "encoding_size must be a multiple of 8 for aligned gate slices"
    assert L >= T

    b_tile = n_chains * LANE                             # interleaved 128-lane chains
    b_pad = max(b_tile, ((B + b_tile - 1) // b_tile) * b_tile)
    T_pad = ((T + 7) // 8) * 8                           # 8-row-aligned output stores

    # lane-dense, time-major input: (T, b_pad)
    x_tb = jnp.transpose(x[:, :T]).astype(jnp.float32)
    x_tb = jnp.pad(x_tb, ((0, 0), (0, b_pad - B)))

    f32 = lambda a: jnp.asarray(a, jnp.float32)
    w_ih_e, w_hh_e = f32(params['w_ih_e']), f32(params['w_hh_e'])
    b_ih_e, b_hh_e = f32(params['b_ih_e']), f32(params['b_hh_e'])
    w_ih_d, w_hh_d = f32(params['w_ih_d']), f32(params['w_hh_d'])
    b_ih_d, b_hh_d = f32(params['b_ih_d']), f32(params['b_hh_d'])
    w_lin, b_lin = f32(params['w_lin']), f32(params['b_lin'])

    # encoder: fold the r/z slices of b_hh_e into the input-side bias; keep b_hn apart
    b_fold_e = b_ih_e + jnp.concatenate(
        [b_hh_e[:2 * H], jnp.zeros((H, 1), jnp.float32)], axis=0)
    b_hn_e = b_hh_e[2 * H:3 * H]

    # decoder: fuse W_hh_d and the output Linear into one matmul (rows padded to x8),
    # with b_hh_d / b_lin folded into the fused bias
    fused_rows = ((3 * H + 1 + 7) // 8) * 8
    pad_rows = fused_rows - (3 * H + 1)
    w_fused_d = jnp.concatenate(
        [w_hh_d, w_lin, jnp.zeros((pad_rows, H), jnp.float32)], axis=0)
    b_fused_d = jnp.concatenate(
        [b_hh_d, b_lin, jnp.zeros((pad_rows, 1), jnp.float32)], axis=0)

    # hoist 1-lane -> 128-lane broadcasts out of the kernel (done once, not per tile)
    bcast = lambda a: jnp.broadcast_to(a, (a.shape[0], LANE))
    w_ih_e_b, b_fold_e_b, b_hn_e_b = bcast(w_ih_e), bcast(b_fold_e), bcast(b_hn_e)
    w_ih_d_b, b_ih_d_b, b_fused_d_b = bcast(w_ih_d), bcast(b_ih_d), bcast(b_fused_d)

    kernel = functools.partial(gru_ae_kernel, seq_len=T, hidden=H,
                               training=training, n_chains=n_chains)

    full = lambda arr: pl.BlockSpec(arr.shape, lambda i: (0, 0))
    n_btiles = b_pad // b_tile
    # NOTE(v7x): for B <= b_tile there is a single grid step and the second
    # TensorCore idles; co-schedule multiple combinations per launch in that regime.

    # explicit VMEM budget: double-buffered x/out tiles + params, never below default
    tile_bytes = (T * b_tile + T_pad * b_tile) * 4
    param_arrays = (w_ih_e_b, b_fold_e_b, w_hh_e, b_hn_e_b,
                    w_ih_d_b, b_ih_d_b, w_fused_d, b_fused_d_b)
    param_bytes = sum(a.size * 4 for a in param_arrays)
    vmem_limit = int(max(2 * (tile_bytes + param_bytes) + (8 << 20), 32 << 20))

    flops = int(2 * (T * 3 * H + (T + 1) * fused_rows) * H * b_pad)
    transcendentals = int(3 * 2 * T * H * b_pad)
    bytes_accessed = int((x_tb.size + T_pad * b_pad) * 4 + param_bytes)

    out_tb = pl.pallas_call(
        kernel,
        out_shape=jax.ShapeDtypeStruct((T_pad, b_pad), jnp.float32),
        grid=(n_btiles,),
        in_specs=[
            pl.BlockSpec((T, b_tile), lambda i: (0, i)),          # x (batch-tiled)
            full(w_ih_e_b), full(b_fold_e_b), full(w_hh_e), full(b_hn_e_b),
            full(w_ih_d_b), full(b_ih_d_b), full(w_fused_d), full(b_fused_d_b),
        ],
        out_specs=pl.BlockSpec((T_pad, b_tile), lambda i: (0, i)),
        compiler_params=pltpu.CompilerParams(
            dimension_semantics=("parallel",),
            vmem_limit_bytes=vmem_limit),
        cost_estimate=pl.CostEstimate(flops=flops,
                                      transcendentals=transcendentals,
                                      bytes_accessed=bytes_accessed),
    )(x_tb, w_ih_e_b, b_fold_e_b, w_hh_e, b_hn_e_b,
      w_ih_d_b, b_ih_d_b, w_fused_d, b_fused_d_b)

    # (T_pad, b_pad) -> (B, T) -> flip along time (matches torch.flip(x, [1]))
    return jnp.flip(jnp.transpose(out_tb[:T, :B]), axis=1)


# ----------------------------- pure-JAX reference -----------------------------
def _gru_cell_ref(x_col, h, w_ih, w_hh, b_ih, b_hh, H):
    gi = x_col @ w_ih.T + b_ih[:, 0]
    gh = h @ w_hh.T + b_hh[:, 0]
    r = jax.nn.sigmoid(gi[:, :H] + gh[:, :H])
    z = jax.nn.sigmoid(gi[:, H:2 * H] + gh[:, H:2 * H])
    n = jnp.tanh(gi[:, 2 * H:] + r * gh[:, 2 * H:])
    return (1.0 - z) * n + z * h


def gru_ae_reference(x, params, T, H, training=False):
    xt = x[:, :T].astype(jnp.float32)
    B = x.shape[0]
    h = jnp.zeros((B, H), jnp.float32)
    for t in range(T):
        h = _gru_cell_ref(xt[:, t:t + 1], h, params['w_ih_e'], params['w_hh_e'],
                          params['b_ih_e'], params['b_hh_e'], H)
    y = h @ params['w_lin'].T + params['b_lin'][:, 0]
    outs = []
    for s in range(T):
        if training and s > 0:
            y_in = xt[:, T - s:T - s + 1]
        else:
            y_in = y
        h = _gru_cell_ref(y_in, h, params['w_ih_d'], params['w_hh_d'],
                          params['b_ih_d'], params['b_hh_d'], H)
        y = h @ params['w_lin'].T + params['b_lin'][:, 0]
        outs.append(y)
    out = jnp.concatenate(outs, axis=1)
    return jnp.flip(out, axis=1)


def init_params(key, encoding_size):
    """Deterministic parameter init matching PyTorch default U(-1/sqrt(H), 1/sqrt(H))."""
    H = encoding_size
    k = 1.0 / float(H) ** 0.5
    keys = jax.random.split(key, 10)

    def unif(kk, shape):
        return jax.random.uniform(kk, shape, jnp.float32, -k, k)

    return {
        'w_ih_e': unif(keys[0], (3 * H, 1)),
        'w_hh_e': unif(keys[1], (3 * H, H)),
        'b_ih_e': unif(keys[2], (3 * H, 1)),
        'b_hh_e': unif(keys[3], (3 * H, 1)),
        'w_ih_d': unif(keys[4], (3 * H, 1)),
        'w_hh_d': unif(keys[5], (3 * H, H)),
        'b_ih_d': unif(keys[6], (3 * H, 1)),
        'b_hh_d': unif(keys[7], (3 * H, 1)),
        'w_lin': unif(keys[8], (1, H)),
        'b_lin': unif(keys[9], (1, 1)),
    }


if __name__ == "__main__":
    B = 2                # batch
    L = 12               # raw input length (>= sequence_length)
    T = 8                # sequence_length
    H = 32               # encoding_size

    root = jax.random.PRNGKey(0)
    k_params, k_x = jax.random.split(root)
    params = init_params(k_params, H)
    x = jax.random.normal(k_x, (B, L), jnp.float32)

    for training in (False, True):           # eval (autoregressive) + teacher forcing
        out = gru_ae_forward(x, params, sequence_length=T, encoding_size=H,
                             training=training)
        out = jax.block_until_ready(out)
        assert out.shape == (B, T), out.shape
        assert jnp.all(jnp.isfinite(out))
        ref = gru_ae_reference(x, params, T, H, training=training)
        max_diff = float(jnp.max(jnp.abs(out - ref)))
        # loose band: covers bf16 MXU operand rounding accumulated over 2T recurrent
        # steps plus MXU-vs-XLA matmul ordering differences
        assert max_diff < 5e-2, f"mismatch vs reference: {max_diff}"
    print("KERNEL_OK")
</pallas_src>

<mosaic_0001>
module attributes {stable_mosaic.version = 11 : i64} {
  func.func @gru_ae_kernel(%arg0: i32, %arg1: memref<8x256xf32, #tpu.memory_space<vmem>>, %arg2: memref<96x128xf32, #tpu.memory_space<vmem>>, %arg3: memref<96x128xf32, #tpu.memory_space<vmem>>, %arg4: memref<96x32xf32, #tpu.memory_space<vmem>>, %arg5: memref<32x128xf32, #tpu.memory_space<vmem>>, %arg6: memref<96x128xf32, #tpu.memory_space<vmem>>, %arg7: memref<96x128xf32, #tpu.memory_space<vmem>>, %arg8: memref<104x32xf32, #tpu.memory_space<vmem>>, %arg9: memref<104x128xf32, #tpu.memory_space<vmem>>, %arg10: memref<8x256xf32, #tpu.memory_space<vmem>>) attributes {dimension_semantics = [#tpu.dimension_semantics<parallel>], iteration_bounds = array<i64: 1>, scalar_prefetch = 0 : i64, scratch_operands = 0 : i64, tpu.core_type = #tpu.core_type<tc>, window_params = [{transform_indices = @transform_0, window_bounds = array<i64: 8, 256>}, {pipeline_mode = #tpu.pipeline_mode<synchronous>, transform_indices = @transform_1, window_bounds = array<i64: 96, 128>}, {pipeline_mode = #tpu.pipeline_mode<synchronous>, transform_indices = @transform_2, window_bounds = array<i64: 96, 128>}, {pipeline_mode = #tpu.pipeline_mode<synchronous>, transform_indices = @transform_3, window_bounds = array<i64: 96, 32>}, {pipeline_mode = #tpu.pipeline_mode<synchronous>, transform_indices = @transform_4, window_bounds = array<i64: 32, 128>}, {pipeline_mode = #tpu.pipeline_mode<synchronous>, transform_indices = @transform_5, window_bounds = array<i64: 96, 128>}, {pipeline_mode = #tpu.pipeline_mode<synchronous>, transform_indices = @transform_6, window_bounds = array<i64: 96, 128>}, {pipeline_mode = #tpu.pipeline_mode<synchronous>, transform_indices = @transform_7, window_bounds = array<i64: 104, 32>}, {pipeline_mode = #tpu.pipeline_mode<synchronous>, transform_indices = @transform_8, window_bounds = array<i64: 104, 128>}, {transform_indices = @transform_9, window_bounds = array<i64: 8, 256>}]} {
    %c0 = arith.constant 0 : index
    %c0_0 = arith.constant 0 : index
    %0 = vector.load %arg2[%c0, %c0_0] : memref<96x128xf32, #tpu.memory_space<vmem>>, vector<96x128xf32>
    %c0_1 = arith.constant 0 : index
    %c0_2 = arith.constant 0 : index
    %1 = vector.load %arg3[%c0_1, %c0_2] : memref<96x128xf32, #tpu.memory_space<vmem>>, vector<96x128xf32>
    %c0_3 = arith.constant 0 : index
    %c0_4 = arith.constant 0 : index
    %2 = vector.load %arg5[%c0_3, %c0_4] : memref<32x128xf32, #tpu.memory_space<vmem>>, vector<32x128xf32>
    %c0_5 = arith.constant 0 : index
    %c0_6 = arith.constant 0 : index
    %3 = vector.load %arg6[%c0_5, %c0_6] : memref<96x128xf32, #tpu.memory_space<vmem>>, vector<96x128xf32>
    %c0_7 = arith.constant 0 : index
    %c0_8 = arith.constant 0 : index
    %4 = vector.load %arg7[%c0_7, %c0_8] : memref<96x128xf32, #tpu.memory_space<vmem>>, vector<96x128xf32>
    %c0_9 = arith.constant 0 : index
    %c0_10 = arith.constant 0 : index
    %5 = vector.load %arg9[%c0_9, %c0_10] : memref<104x128xf32, #tpu.memory_space<vmem>>, vector<104x128xf32>
    %c0_11 = arith.constant 0 : index
    %c0_12 = arith.constant 0 : index
    %6 = vector.load %arg4[%c0_11, %c0_12] : memref<96x32xf32, #tpu.memory_space<vmem>>, vector<96x32xf32>
    %7 = arith.truncf %6 : vector<96x32xf32> to vector<96x32xbf16>
    %c0_13 = arith.constant 0 : index
    %c0_14 = arith.constant 0 : index
    %8 = vector.load %arg8[%c0_13, %c0_14] : memref<104x32xf32, #tpu.memory_space<vmem>>, vector<104x32xf32>
    %9 = arith.truncf %8 : vector<104x32xf32> to vector<104x32xbf16>
    %cst = arith.constant 0.000000e+00 : f32
    %10 = vector.broadcast %cst : f32 to vector<32x128xf32>
    %cst_15 = arith.constant 0.000000e+00 : f32
    %11 = vector.broadcast %cst_15 : f32 to vector<32x128xf32>
    %c0_16 = arith.constant 0 : index
    %c0_17 = arith.constant 0 : index
    %12 = vector.load %arg1[%c0_16, %c0_17] : memref<8x256xf32, #tpu.memory_space<vmem>>, vector<1x128xf32>
    %13 = vector.broadcast %12 : vector<1x128xf32> to vector<96x128xf32>
    %14 = arith.mulf %0, %13 : vector<96x128xf32>
    %15 = arith.addf %14, %1 : vector<96x128xf32>
    %16 = arith.truncf %10 : vector<32x128xf32> to vector<32x128xbf16>
    %cst_18 = arith.constant dense<0.000000e+00> : vector<96x128xf32>
    %17 = tpu.matmul %7, %16, %cst_18 {dimension_numbers = #tpu.dot_dimension_numbers<[1], [0], [0], [1], [0, 0, 1, 1], [], []>} : vector<96x32xbf16>, vector<32x128xbf16>, vector<96x128xf32> -> vector<96x128xf32>
    %18 = vector.extract_strided_slice %15 {offsets = [0, 0], sizes = [32, 128], strides = [1, 1]} : vector<96x128xf32> to vector<32x128xf32>
    %19 = vector.extract_strided_slice %17 {offsets = [0, 0], sizes = [32, 128], strides = [1, 1]} : vector<96x128xf32> to vector<32x128xf32>
    %20 = arith.addf %18, %19 : vector<32x128xf32>
    %cst_19 = arith.constant 5.000000e-01 : f32
    %21 = vector.broadcast %cst_19 : f32 to vector<32x128xf32>
    %22 = arith.mulf %21, %20 : vector<32x128xf32>
    %23 = math.tanh %22 : vector<32x128xf32>
    %cst_20 = arith.constant 5.000000e-01 : f32
    %24 = vector.broadcast %cst_20 : f32 to vector<32x128xf32>
    %25 = arith.mulf %24, %23 : vector<32x128xf32>
    %cst_21 = arith.constant 5.000000e-01 : f32
    %26 = vector.broadcast %cst_21 : f32 to vector<32x128xf32>
    %27 = arith.addf %25, %26 : vector<32x128xf32>
    %28 = vector.extract_strided_slice %15 {offsets = [32, 0], sizes = [32, 128], strides = [1, 1]} : vector<96x128xf32> to vector<32x128xf32>
    %29 = vector.extract_strided_slice %17 {offsets = [32, 0], sizes = [32, 128], strides = [1, 1]} : vector<96x128xf32> to vector<32x128xf32>
    %30 = arith.addf %28, %29 : vector<32x128xf32>
    %cst_22 = arith.constant 5.000000e-01 : f32
    %31 = vector.broadcast %cst_22 : f32 to vector<32x128xf32>
    %32 = arith.mulf %31, %30 : vector<32x128xf32>
    %33 = math.tanh %32 : vector<32x128xf32>
    %cst_23 = arith.constant 5.000000e-01 : f32
    %34 = vector.broadcast %cst_23 : f32 to vector<32x128xf32>
    %35 = arith.mulf %34, %33 : vector<32x128xf32>
    %cst_24 = arith.constant 5.000000e-01 : f32
    %36 = vector.broadcast %cst_24 : f32 to vector<32x128xf32>
    %37 = arith.addf %35, %36 : vector<32x128xf32>
    %38 = vector.extract_strided_slice %15 {offsets = [64, 0], sizes = [32, 128], strides = [1, 1]} : vector<96x128xf32> to vector<32x128xf32>
    %39 = vector.extract_strided_slice %17 {offsets = [64, 0], sizes = [32, 128], strides = [1, 1]} : vector<96x128xf32> to vector<32x128xf32>
    %40 = arith.addf %39, %2 : vector<32x128xf32>
    %41 = arith.mulf %27, %40 : vector<32x128xf32>
    %42 = arith.addf %38, %41 : vector<32x128xf32>
    %43 = math.tanh %42 : vector<32x128xf32>
    %44 = arith.subf %10, %43 : vector<32x128xf32>
    %45 = arith.mulf %37, %44 : vector<32x128xf32>
    %46 = arith.addf %43, %45 : vector<32x128xf32>
    %c0_25 = arith.constant 0 : index
    %c128 = arith.constant 128 : index
    %47 = vector.load %arg1[%c0_25, %c128] : memref<8x256xf32, #tpu.memory_space<vmem>>, vector<1x128xf32>
    %48 = vector.broadcast %47 : vector<1x128xf32> to vector<96x128xf32>
    %49 = arith.mulf %0, %48 : vector<96x128xf32>
    %50 = arith.addf %49, %1 : vector<96x128xf32>
    %51 = arith.truncf %11 : vector<32x128xf32> to vector<32x128xbf16>
    %cst_26 = arith.constant dense<0.000000e+00> : vector<96x128xf32>
    %52 = tpu.matmul %7, %51, %cst_26 {dimension_numbers = #tpu.dot_dimension_numbers<[1], [0], [0], [1], [0, 0, 1, 1], [], []>} : vector<96x32xbf16>, vector<32x128xbf16>, vector<96x128xf32> -> vector<96x128xf32>
    %53 = vector.extract_strided_slice %50 {offsets = [0, 0], sizes = [32, 128], strides = [1, 1]} : vector<96x128xf32> to vector<32x128xf32>
    %54 = vector.extract_strided_slice %52 {offsets = [0, 0], sizes = [32, 128], strides = [1, 1]} : vector<96x128xf32> to vector<32x128xf32>
    %55 = arith.addf %53, %54 : vector<32x128xf32>
    %cst_27 = arith.constant 5.000000e-01 : f32
    %56 = vector.broadcast %cst_27 : f32 to vector<32x128xf32>
    %57 = arith.mulf %56, %55 : vector<32x128xf32>
    %58 = math.tanh %57 : vector<32x128xf32>
    %cst_28 = arith.constant 5.000000e-01 : f32
    %59 = vector.broadcast %cst_28 : f32 to vector<32x128xf32>
    %60 = arith.mulf %59, %58 : vector<32x128xf32>
    %cst_29 = arith.constant 5.000000e-01 : f32
    %61 = vector.broadcast %cst_29 : f32 to vector<32x128xf32>
    %62 = arith.addf %60, %61 : vector<32x128xf32>
    %63 = vector.extract_strided_slice %50 {offsets = [32, 0], sizes = [32, 128], strides = [1, 1]} : vector<96x128xf32> to vector<32x128xf32>
    %64 = vector.extract_strided_slice %52 {offsets = [32, 0], sizes = [32, 128], strides = [1, 1]} : vector<96x128xf32> to vector<32x128xf32>
    %65 = arith.addf %63, %64 : vector<32x128xf32>
    %cst_30 = arith.constant 5.000000e-01 : f32
    %66 = vector.broadcast %cst_30 : f32 to vector<32x128xf32>
    %67 = arith.mulf %66, %65 : vector<32x128xf32>
    %68 = math.tanh %67 : vector<32x128xf32>
    %cst_31 = arith.constant 5.000000e-01 : f32
    %69 = vector.broadcast %cst_31 : f32 to vector<32x128xf32>
    %70 = arith.mulf %69, %68 : vector<32x128xf32>
    %cst_32 = arith.constant 5.000000e-01 : f32
    %71 = vector.broadcast %cst_32 : f32 to vector<32x128xf32>
    %72 = arith.addf %70, %71 : vector<32x128xf32>
    %73 = vector.extract_strided_slice %50 {offsets = [64, 0], sizes = [32, 128], strides = [1, 1]} : vector<96x128xf32> to vector<32x128xf32>
    %74 = vector.extract_strided_slice %52 {offsets = [64, 0], sizes = [32, 128], strides = [1, 1]} : vector<96x128xf32> to vector<32x128xf32>
    %75 = arith.addf %74, %2 : vector<32x128xf32>
    %76 = arith.mulf %62, %75 : vector<32x128xf32>
    %77 = arith.addf %73, %76 : vector<32x128xf32>
    %78 = math.tanh %77 : vector<32x128xf32>
    %79 = arith.subf %11, %78 : vector<32x128xf32>
    %80 = arith.mulf %72, %79 : vector<32x128xf32>
    %81 = arith.addf %78, %80 : vector<32x128xf32>
    %c1 = arith.constant 1 : index
    %c0_33 = arith.constant 0 : index
    %82 = vector.load %arg1[%c1, %c0_33] : memref<8x256xf32, #tpu.memory_space<vmem>>, vector<1x128xf32>
    %83 = vector.broadcast %82 : vector<1x128xf32> to vector<96x128xf32>
    %84 = arith.mulf %0, %83 : vector<96x128xf32>
    %85 = arith.addf %84, %1 : vector<96x128xf32>
    %86 = arith.truncf %46 : vector<32x128xf32> to vector<32x128xbf16>
    %cst_34 = arith.constant dense<0.000000e+00> : vector<96x128xf32>
    %87 = tpu.matmul %7, %86, %cst_34 {dimension_numbers = #tpu.dot_dimension_numbers<[1], [0], [0], [1], [0, 0, 1, 1], [], []>} : vector<96x32xbf16>, vector<32x128xbf16>, vector<96x128xf32> -> vector<96x128xf32>
    %88 = vector.extract_strided_slice %85 {offsets = [0, 0], sizes = [32, 128], strides = [1, 1]} : vector<96x128xf32> to vector<32x128xf32>
    %89 = vector.extract_strided_slice %87 {offsets = [0, 0], sizes = [32, 128], strides = [1, 1]} : vector<96x128xf32> to vector<32x128xf32>
    %90 = arith.addf %88, %89 : vector<32x128xf32>
    %cst_35 = arith.constant 5.000000e-01 : f32
    %91 = vector.broadcast %cst_35 : f32 to vector<32x128xf32>
    %92 = arith.mulf %91, %90 : vector<32x128xf32>
    %93 = math.tanh %92 : vector<32x128xf32>
    %cst_36 = arith.constant 5.000000e-01 : f32
    %94 = vector.broadcast %cst_36 : f32 to vector<32x128xf32>
    %95 = arith.mulf %94, %93 : vector<32x128xf32>
    %cst_37 = arith.constant 5.000000e-01 : f32
    %96 = vector.broadcast %cst_37 : f32 to vector<32x128xf32>
    %97 = arith.addf %95, %96 : vector<32x128xf32>
    %98 = vector.extract_strided_slice %85 {offsets = [32, 0], sizes = [32, 128], strides = [1, 1]} : vector<96x128xf32> to vector<32x128xf32>
    %99 = vector.extract_strided_slice %87 {offsets = [32, 0], sizes = [32, 128], strides = [1, 1]} : vector<96x128xf32> to vector<32x128xf32>
    %100 = arith.addf %98, %99 : vector<32x128xf32>
    %cst_38 = arith.constant 5.000000e-01 : f32
    %101 = vector.broadcast %cst_38 : f32 to vector<32x128xf32>
    %102 = arith.mulf %101, %100 : vector<32x128xf32>
    %103 = math.tanh %102 : vector<32x128xf32>
    %cst_39 = arith.constant 5.000000e-01 : f32
    %104 = vector.broadcast %cst_39 : f32 to vector<32x128xf32>
    %105 = arith.mulf %104, %103 : vector<32x128xf32>
    %cst_40 = arith.constant 5.000000e-01 : f32
    %106 = vector.broadcast %cst_40 : f32 to vector<32x128xf32>
    %107 = arith.addf %105, %106 : vector<32x128xf32>
    %108 = vector.extract_strided_slice %85 {offsets = [64, 0], sizes = [32, 128], strides = [1, 1]} : vector<96x128xf32> to vector<32x128xf32>
    %109 = vector.extract_strided_slice %87 {offsets = [64, 0], sizes = [32, 128], strides = [1, 1]} : vector<96x128xf32> to vector<32x128xf32>
    %110 = arith.addf %109, %2 : vector<32x128xf32>
    %111 = arith.mulf %97, %110 : vector<32x128xf32>
    %112 = arith.addf %108, %111 : vector<32x128xf32>
    %113 = math.tanh %112 : vector<32x128xf32>
    %114 = arith.subf %46, %113 : vector<32x128xf32>
    %115 = arith.mulf %107, %114 : vector<32x128xf32>
    %116 = arith.addf %113, %115 : vector<32x128xf32>
    %c1_41 = arith.constant 1 : index
    %c128_42 = arith.constant 128 : index
    %117 = vector.load %arg1[%c1_41, %c128_42] : memref<8x256xf32, #tpu.memory_space<vmem>>, vector<1x128xf32>
    %118 = vector.broadcast %117 : vector<1x128xf32> to vector<96x128xf32>
    %119 = arith.mulf %0, %118 : vector<96x128xf32>
    %120 = arith.addf %119, %1 : vector<96x128xf32>
    %121 = arith.truncf %81 : vector<32x128xf32> to vector<32x128xbf16>
    %cst_43 = arith.constant dense<0.000000e+00> : vector<96x128xf32>
    %122 = tpu.matmul %7, %121, %cst_43 {dimension_numbers = #tpu.dot_dimension_numbers<[1], [0], [0], [1], [0, 0, 1, 1], [], []>} : vector<96x32xbf16>, vector<32x128xbf16>, vector<96x128xf32> -> vector<96x128xf32>
    %123 = vector.extract_strided_slice %120 {offsets = [0, 0], sizes = [32, 128], strides = [1, 1]} : vector<96x128xf32> to vector<32x128xf32>
    %124 = vector.extract_strided_slice %122 {offsets = [0, 0], sizes = [32, 128], strides = [1, 1]} : vector<96x128xf32> to vector<32x128xf32>
    %125 = arith.addf %123, %124 : vector<32x128xf32>
    %cst_44 = arith.constant 5.000000e-01 : f32
    %126 = vector.broadcast %cst_44 : f32 to vector<32x128xf32>
    %127 = arith.mulf %126, %125 : vector<32x128xf32>
    %128 = math.tanh %127 : vector<32x128xf32>
    %cst_45 = arith.constant 5.000000e-01 : f32
    %129 = vector.broadcast %cst_45 : f32 to vector<32x128xf32>
    %130 = arith.mulf %129, %128 : vector<32x128xf32>
    %cst_46 = arith.constant 5.000000e-01 : f32
    %131 = vector.broadcast %cst_46 : f32 to vector<32x128xf32>
    %132 = arith.addf %130, %131 : vector<32x128xf32>
    %133 = vector.extract_strided_slice %120 {offsets = [32, 0], sizes = [32, 128], strides = [1, 1]} : vector<96x128xf32> to vector<32x128xf32>
    %134 = vector.extract_strided_slice %122 {offsets = [32, 0], sizes = [32, 128], strides = [1, 1]} : vector<96x128xf32> to vector<32x128xf32>
    %135 = arith.addf %133, %134 : vector<32x128xf32>
    %cst_47 = arith.constant 5.000000e-01 : f32
    %136 = vector.broadcast %cst_47 : f32 to vector<32x128xf32>
    %137 = arith.mulf %136, %135 : vector<32x128xf32>
    %138 = math.tanh %137 : vector<32x128xf32>
    %cst_48 = arith.constant 5.000000e-01 : f32
    %139 = vector.broadcast %cst_48 : f32 to vector<32x128xf32>
    %140 = arith.mulf %139, %138 : vector<32x128xf32>
    %cst_49 = arith.constant 5.000000e-01 : f32
    %141 = vector.broadcast %cst_49 : f32 to vector<32x128xf32>
    %142 = arith.addf %140, %141 : vector<32x128xf32>
    %143 = vector.extract_strided_slice %120 {offsets = [64, 0], sizes = [32, 128], strides = [1, 1]} : vector<96x128xf32> to vector<32x128xf32>
    %144 = vector.extract_strided_slice %122 {offsets = [64, 0], sizes = [32, 128], strides = [1, 1]} : vector<96x128xf32> to vector<32x128xf32>
    %145 = arith.addf %144, %2 : vector<32x128xf32>
    %146 = arith.mulf %132, %145 : vector<32x128xf32>
    %147 = arith.addf %143, %146 : vector<32x128xf32>
    %148 = math.tanh %147 : vector<32x128xf32>
    %149 = arith.subf %81, %148 : vector<32x128xf32>
    %150 = arith.mulf %142, %149 : vector<32x128xf32>
    %151 = arith.addf %148, %150 : vector<32x128xf32>
    %c2 = arith.constant 2 : index
    %c0_50 = arith.constant 0 : index
    %152 = vector.load %arg1[%c2, %c0_50] : memref<8x256xf32, #tpu.memory_space<vmem>>, vector<1x128xf32>
    %153 = vector.broadcast %152 : vector<1x128xf32> to vector<96x128xf32>
    %154 = arith.mulf %0, %153 : vector<96x128xf32>
    %155 = arith.addf %154, %1 : vector<96x128xf32>
    %156 = arith.truncf %116 : vector<32x128xf32> to vector<32x128xbf16>
    %cst_51 = arith.constant dense<0.000000e+00> : vector<96x128xf32>
    %157 = tpu.matmul %7, %156, %cst_51 {dimension_numbers = #tpu.dot_dimension_numbers<[1], [0], [0], [1], [0, 0, 1, 1], [], []>} : vector<96x32xbf16>, vector<32x128xbf16>, vector<96x128xf32> -> vector<96x128xf32>
    %158 = vector.extract_strided_slice %155 {offsets = [0, 0], sizes = [32, 128], strides = [1, 1]} : vector<96x128xf32> to vector<32x128xf32>
    %159 = vector.extract_strided_slice %157 {offsets = [0, 0], sizes = [32, 128], strides = [1, 1]} : vector<96x128xf32> to vector<32x128xf32>
    %160 = arith.addf %158, %159 : vector<32x128xf32>
    %cst_52 = arith.constant 5.000000e-01 : f32
    %161 = vector.broadcast %cst_52 : f32 to vector<32x128xf32>
    %162 = arith.mulf %161, %160 : vector<32x128xf32>
    %163 = math.tanh %162 : vector<32x128xf32>
    %cst_53 = arith.constant 5.000000e-01 : f32
    %164 = vector.broadcast %cst_53 : f32 to vector<32x128xf32>
    %165 = arith.mulf %164, %163 : vector<32x128xf32>
    %cst_54 = arith.constant 5.000000e-01 : f32
    %166 = vector.broadcast %cst_54 : f32 to vector<32x128xf32>
    %167 = arith.addf %165, %166 : vector<32x128xf32>
    %168 = vector.extract_strided_slice %155 {offsets = [32, 0], sizes = [32, 128], strides = [1, 1]} : vector<96x128xf32> to vector<32x128xf32>
    %169 = vector.extract_strided_slice %157 {offsets = [32, 0], sizes = [32, 128], strides = [1, 1]} : vector<96x128xf32> to vector<32x128xf32>
    %170 = arith.addf %168, %169 : vector<32x128xf32>
    %cst_55 = arith.constant 5.000000e-01 : f32
    %171 = vector.broadcast %cst_55 : f32 to vector<32x128xf32>
    %172 = arith.mulf %171, %170 : vector<32x128xf32>
    %173 = math.tanh %172 : vector<32x128xf32>
    %cst_56 = arith.constant 5.000000e-01 : f32
    %174 = vector.broadcast %cst_56 : f32 to vector<32x128xf32>
    %175 = arith.mulf %174, %173 : vector<32x128xf32>
    %cst_57 = arith.constant 5.000000e-01 : f32
    %176 = vector.broadcast %cst_57 : f32 to vector<32x128xf32>
    %177 = arith.addf %175, %176 : vector<32x128xf32>
    %178 = vector.extract_strided_slice %155 {offsets = [64, 0], sizes = [32, 128], strides = [1, 1]} : vector<96x128xf32> to vector<32x128xf32>
    %179 = vector.extract_strided_slice %157 {offsets = [64, 0], sizes = [32, 128], strides = [1, 1]} : vector<96x128xf32> to vector<32x128xf32>
    %180 = arith.addf %179, %2 : vector<32x128xf32>
    %181 = arith.mulf %167, %180 : vector<32x128xf32>
    %182 = arith.addf %178, %181 : vector<32x128xf32>
    %183 = math.tanh %182 : vector<32x128xf32>
    %184 = arith.subf %116, %183 : vector<32x128xf32>
    %185 = arith.mulf %177, %184 : vector<32x128xf32>
    %186 = arith.addf %183, %185 : vector<32x128xf32>
    %c2_58 = arith.constant 2 : index
    %c128_59 = arith.constant 128 : index
    %187 = vector.load %arg1[%c2_58, %c128_59] : memref<8x256xf32, #tpu.memory_space<vmem>>, vector<1x128xf32>
    %188 = vector.broadcast %187 : vector<1x128xf32> to vector<96x128xf32>
    %189 = arith.mulf %0, %188 : vector<96x128xf32>
    %190 = arith.addf %189, %1 : vector<96x128xf32>
    %191 = arith.truncf %151 : vector<32x128xf32> to vector<32x128xbf16>
    %cst_60 = arith.constant dense<0.000000e+00> : vector<96x128xf32>
    %192 = tpu.matmul %7, %191, %cst_60 {dimension_numbers = #tpu.dot_dimension_numbers<[1], [0], [0], [1], [0, 0, 1, 1], [], []>} : vector<96x32xbf16>, vector<32x128xbf16>, vector<96x128xf32> -> vector<96x128xf32>
    %193 = vector.extract_strided_slice %190 {offsets = [0, 0], sizes = [32, 128], strides = [1, 1]} : vector<96x128xf32> to vector<32x128xf32>
    %194 = vector.extract_strided_slice %192 {offsets = [0, 0], sizes = [32, 128], strides = [1, 1]} : vector<96x128xf32> to vector<32x128xf32>
    %195 = arith.addf %193, %194 : vector<32x128xf32>
    %cst_61 = arith.constant 5.000000e-01 : f32
    %196 = vector.broadcast %cst_61 : f32 to vector<32x128xf32>
    %197 = arith.mulf %196, %195 : vector<32x128xf32>
    %198 = math.tanh %197 : vector<32x128xf32>
    %cst_62 = arith.constant 5.000000e-01 : f32
    %199 = vector.broadcast %cst_62 : f32 to vector<32x128xf32>
    %200 = arith.mulf %199, %198 : vector<32x128xf32>
    %cst_63 = arith.constant 5.000000e-01 : f32
    %201 = vector.broadcast %cst_63 : f32 to vector<32x128xf32>
    %202 = arith.addf %200, %201 : vector<32x128xf32>
    %203 = vector.extract_strided_slice %190 {offsets = [32, 0], sizes = [32, 128], strides = [1, 1]} : vector<96x128xf32> to vector<32x128xf32>
    %204 = vector.extract_strided_slice %192 {offsets = [32, 0], sizes = [32, 128], strides = [1, 1]} : vector<96x128xf32> to vector<32x128xf32>
    %205 = arith.addf %203, %204 : vector<32x128xf32>
    %cst_64 = arith.constant 5.000000e-01 : f32
    %206 = vector.broadcast %cst_64 : f32 to vector<32x128xf32>
    %207 = arith.mulf %206, %205 : vector<32x128xf32>
    %208 = math.tanh %207 : vector<32x128xf32>
    %cst_65 = arith.constant 5.000000e-01 : f32
    %209 = vector.broadcast %cst_65 : f32 to vector<32x128xf32>
    %210 = arith.mulf %209, %208 : vector<32x128xf32>
    %cst_66 = arith.constant 5.000000e-01 : f32
    %211 = vector.broadcast %cst_66 : f32 to vector<32x128xf32>
    %212 = arith.addf %210, %211 : vector<32x128xf32>
    %213 = vector.extract_strided_slice %190 {offsets = [64, 0], sizes = [32, 128], strides = [1, 1]} : vector<96x128xf32> to vector<32x128xf32>
    %214 = vector.extract_strided_slice %192 {offsets = [64, 0], sizes = [32, 128], strides = [1, 1]} : vector<96x128xf32> to vector<32x128xf32>
    %215 = arith.addf %214, %2 : vector<32x128xf32>
    %216 = arith.mulf %202, %215 : vector<32x128xf32>
    %217 = arith.addf %213, %216 : vector<32x128xf32>
    %218 = math.tanh %217 : vector<32x128xf32>
    %219 = arith.subf %151, %218 : vector<32x128xf32>
    %220 = arith.mulf %212, %219 : vector<32x128xf32>
    %221 = arith.addf %218, %220 : vector<32x128xf32>
    %c3 = arith.constant 3 : index
    %c0_67 = arith.constant 0 : index
    %222 = vector.load %arg1[%c3, %c0_67] : memref<8x256xf32, #tpu.memory_space<vmem>>, vector<1x128xf32>
    %223 = vector.broadcast %222 : vector<1x128xf32> to vector<96x128xf32>
    %224 = arith.mulf %0, %223 : vector<96x128xf32>
    %225 = arith.addf %224, %1 : vector<96x128xf32>
    %226 = arith.truncf %186 : vector<32x128xf32> to vector<32x128xbf16>
    %cst_68 = arith.constant dense<0.000000e+00> : vector<96x128xf32>
    %227 = tpu.matmul %7, %226, %cst_68 {dimension_numbers = #tpu.dot_dimension_numbers<[1], [0], [0], [1], [0, 0, 1, 1], [], []>} : vector<96x32xbf16>, vector<32x128xbf16>, vector<96x128xf32> -> vector<96x128xf32>
    %228 = vector.extract_strided_slice %225 {offsets = [0, 0], sizes = [32, 128], strides = [1, 1]} : vector<96x128xf32> to vector<32x128xf32>
    %229 = vector.extract_strided_slice %227 {offsets = [0, 0], sizes = [32, 128], strides = [1, 1]} : vector<96x128xf32> to vector<32x128xf32>
    %230 = arith.addf %228, %229 : vector<32x128xf32>
    %cst_69 = arith.constant 5.000000e-01 : f32
    %231 = vector.broadcast %cst_69 : f32 to vector<32x128xf32>
    %232 = arith.mulf %231, %230 : vector<32x128xf32>
    %233 = math.tanh %232 : vector<32x128xf32>
    %cst_70 = arith.constant 5.000000e-01 : f32
    %234 = vector.broadcast %cst_70 : f32 to vector<32x128xf32>
    %235 = arith.mulf %234, %233 : vector<32x128xf32>
    %cst_71 = arith.constant 5.000000e-01 : f32
    %236 = vector.broadcast %cst_71 : f32 to vector<32x128xf32>
    %237 = arith.addf %235, %236 : vector<32x128xf32>
    %238 = vector.extract_strided_slice %225 {offsets = [32, 0], sizes = [32, 128], strides = [1, 1]} : vector<96x128xf32> to vector<32x128xf32>
    %239 = vector.extract_strided_slice %227 {offsets = [32, 0], sizes = [32, 128], strides = [1, 1]} : vector<96x128xf32> to vector<32x128xf32>
    %240 = arith.addf %238, %239 : vector<32x128xf32>
    %cst_72 = arith.constant 5.000000e-01 : f32
    %241 = vector.broadcast %cst_72 : f32 to vector<32x128xf32>
    %242 = arith.mulf %241, %240 : vector<32x128xf32>
    %243 = math.tanh %242 : vector<32x128xf32>
    %cst_73 = arith.constant 5.000000e-01 : f32
    %244 = vector.broadcast %cst_73 : f32 to vector<32x128xf32>
    %245 = arith.mulf %244, %243 : vector<32x128xf32>
    %cst_74 = arith.constant 5.000000e-01 : f32
    %246 = vector.broadcast %cst_74 : f32 to vector<32x128xf32>
    %247 = arith.addf %245, %246 : vector<32x128xf32>
    %248 = vector.extract_strided_slice %225 {offsets = [64, 0], sizes = [32, 128], strides = [1, 1]} : vector<96x128xf32> to vector<32x128xf32>
    %249 = vector.extract_strided_slice %227 {offsets = [64, 0], sizes = [32, 128], strides = [1, 1]} : vector<96x128xf32> to vector<32x128xf32>
    %250 = arith.addf %249, %2 : vector<32x128xf32>
    %251 = arith.mulf %237, %250 : vector<32x128xf32>
    %252 = arith.addf %248, %251 : vector<32x128xf32>
    %253 = math.tanh %252 : vector<32x128xf32>
    %254 = arith.subf %186, %253 : vector<32x128xf32>
    %255 = arith.mulf %247, %254 : vector<32x128xf32>
    %256 = arith.addf %253, %255 : vector<32x128xf32>
    %c3_75 = arith.constant 3 : index
    %c128_76 = arith.constant 128 : index
    %257 = vector.load %arg1[%c3_75, %c128_76] : memref<8x256xf32, #tpu.memory_space<vmem>>, vector<1x128xf32>
    %258 = vector.broadcast %257 : vector<1x128xf32> to vector<96x128xf32>
    %259 = arith.mulf %0, %258 : vector<96x128xf32>
    %260 = arith.addf %259, %1 : vector<96x128xf32>
    %261 = arith.truncf %221 : vector<32x128xf32> to vector<32x128xbf16>
    %cst_77 = arith.constant dense<0.000000e+00> : vector<96x128xf32>
    %262 = tpu.matmul %7, %261, %cst_77 {dimension_numbers = #tpu.dot_dimension_numbers<[1], [0], [0], [1], [0, 0, 1, 1], [], []>} : vector<96x32xbf16>, vector<32x128xbf16>, vector<96x128xf32> -> vector<96x128xf32>
    %263 = vector.extract_strided_slice %260 {offsets = [0, 0], sizes = [32, 128], strides = [1, 1]} : vector<96x128xf32> to vector<32x128xf32>
    %264 = vector.extract_strided_slice %262 {offsets = [0, 0], sizes = [32, 128], strides = [1, 1]} : vector<96x128xf32> to vector<32x128xf32>
    %265 = arith.addf %263, %264 : vector<32x128xf32>
    %cst_78 = arith.constant 5.000000e-01 : f32
    %266 = vector.broadcast %cst_78 : f32 to vector<32x128xf32>
    %267 = arith.mulf %266, %265 : vector<32x128xf32>
    %268 = math.tanh %267 : vector<32x128xf32>
    %cst_79 = arith.constant 5.000000e-01 : f32
    %269 = vector.broadcast %cst_79 : f32 to vector<32x128xf32>
    %270 = arith.mulf %269, %268 : vector<32x128xf32>
    %cst_80 = arith.constant 5.000000e-01 : f32
    %271 = vector.broadcast %cst_80 : f32 to vector<32x128xf32>
    %272 = arith.addf %270, %271 : vector<32x128xf32>
    %273 = vector.extract_strided_slice %260 {offsets = [32, 0], sizes = [32, 128], strides = [1, 1]} : vector<96x128xf32> to vector<32x128xf32>
    %274 = vector.extract_strided_slice %262 {offsets = [32, 0], sizes = [32, 128], strides = [1, 1]} : vector<96x128xf32> to vector<32x128xf32>
    %275 = arith.addf %273, %274 : vector<32x128xf32>
    %cst_81 = arith.constant 5.000000e-01 : f32
    %276 = vector.broadcast %cst_81 : f32 to vector<32x128xf32>
    %277 = arith.mulf %276, %275 : vector<32x128xf32>
    %278 = math.tanh %277 : vector<32x128xf32>
    %cst_82 = arith.constant 5.000000e-01 : f32
    %279 = vector.broadcast %cst_82 : f32 to vector<32x128xf32>
    %280 = arith.mulf %279, %278 : vector<32x128xf32>
    %cst_83 = arith.constant 5.000000e-01 : f32
    %281 = vector.broadcast %cst_83 : f32 to vector<32x128xf32>
    %282 = arith.addf %280, %281 : vector<32x128xf32>
    %283 = vector.extract_strided_slice %260 {offsets = [64, 0], sizes = [32, 128], strides = [1, 1]} : vector<96x128xf32> to vector<32x128xf32>
    %284 = vector.extract_strided_slice %262 {offsets = [64, 0], sizes = [32, 128], strides = [1, 1]} : vector<96x128xf32> to vector<32x128xf32>
    %285 = arith.addf %284, %2 : vector<32x128xf32>
    %286 = arith.mulf %272, %285 : vector<32x128xf32>
    %287 = arith.addf %283, %286 : vector<32x128xf32>
    %288 = math.tanh %287 : vector<32x128xf32>
    %289 = arith.subf %221, %288 : vector<32x128xf32>
    %290 = arith.mulf %282, %289 : vector<32x128xf32>
    %291 = arith.addf %288, %290 : vector<32x128xf32>
    %c4 = arith.constant 4 : index
    %c0_84 = arith.constant 0 : index
    %292 = vector.load %arg1[%c4, %c0_84] : memref<8x256xf32, #tpu.memory_space<vmem>>, vector<1x128xf32>
    %293 = vector.broadcast %292 : vector<1x128xf32> to vector<96x128xf32>
    %294 = arith.mulf %0, %293 : vector<96x128xf32>
    %295 = arith.addf %294, %1 : vector<96x128xf32>
    %296 = arith.truncf %256 : vector<32x128xf32> to vector<32x128xbf16>
    %cst_85 = arith.constant dense<0.000000e+00> : vector<96x128xf32>
    %297 = tpu.matmul %7, %296, %cst_85 {dimension_numbers = #tpu.dot_dimension_numbers<[1], [0], [0], [1], [0, 0, 1, 1], [], []>} : vector<96x32xbf16>, vector<32x128xbf16>, vector<96x128xf32> -> vector<96x128xf32>
    %298 = vector.extract_strided_slice %295 {offsets = [0, 0], sizes = [32, 128], strides = [1, 1]} : vector<96x128xf32> to vector<32x128xf32>
    %299 = vector.extract_strided_slice %297 {offsets = [0, 0], sizes = [32, 128], strides = [1, 1]} : vector<96x128xf32> to vector<32x128xf32>
    %300 = arith.addf %298, %299 : vector<32x128xf32>
    %cst_86 = arith.constant 5.000000e-01 : f32
    %301 = vector.broadcast %cst_86 : f32 to vector<32x128xf32>
    %302 = arith.mulf %301, %300 : vector<32x128xf32>
    %303 = math.tanh %302 : vector<32x128xf32>
    %cst_87 = arith.constant 5.000000e-01 : f32
    %304 = vector.broadcast %cst_87 : f32 to vector<32x128xf32>
    %305 = arith.mulf %304, %303 : vector<32x128xf32>
    %cst_88 = arith.constant 5.000000e-01 : f32
    %306 = vector.broadcast %cst_88 : f32 to vector<32x128xf32>
    %307 = arith.addf %305, %306 : vector<32x128xf32>
    %308 = vector.extract_strided_slice %295 {offsets = [32, 0], sizes = [32, 128], strides = [1, 1]} : vector<96x128xf32> to vector<32x128xf32>
    %309 = vector.extract_strided_slice %297 {offsets = [32, 0], sizes = [32, 128], strides = [1, 1]} : vector<96x128xf32> to vector<32x128xf32>
    %310 = arith.addf %308, %309 : vector<32x128xf32>
    %cst_89 = arith.constant 5.000000e-01 : f32
    %311 = vector.broadcast %cst_89 : f32 to vector<32x128xf32>
    %312 = arith.mulf %311, %310 : vector<32x128xf32>
    %313 = math.tanh %312 : vector<32x128xf32>
    %cst_90 = arith.constant 5.000000e-01 : f32
    %314 = vector.broadcast %cst_90 : f32 to vector<32x128xf32>
    %315 = arith.mulf %314, %313 : vector<32x128xf32>
    %cst_91 = arith.constant 5.000000e-01 : f32
    %316 = vector.broadcast %cst_91 : f32 to vector<32x128xf32>
    %317 = arith.addf %315, %316 : vector<32x128xf32>
    %318 = vector.extract_strided_slice %295 {offsets = [64, 0], sizes = [32, 128], strides = [1, 1]} : vector<96x128xf32> to vector<32x128xf32>
    %319 = vector.extract_strided_slice %297 {offsets = [64, 0], sizes = [32, 128], strides = [1, 1]} : vector<96x128xf32> to vector<32x128xf32>
    %320 = arith.addf %319, %2 : vector<32x128xf32>
    %321 = arith.mulf %307, %320 : vector<32x128xf32>
    %322 = arith.addf %318, %321 : vector<32x128xf32>
    %323 = math.tanh %322 : vector<32x128xf32>
    %324 = arith.subf %256, %323 : vector<32x128xf32>
    %325 = arith.mulf %317, %324 : vector<32x128xf32>
    %326 = arith.addf %323, %325 : vector<32x128xf32>
    %c4_92 = arith.constant 4 : index
    %c128_93 = arith.constant 128 : index
    %327 = vector.load %arg1[%c4_92, %c128_93] : memref<8x256xf32, #tpu.memory_space<vmem>>, vector<1x128xf32>
    %328 = vector.broadcast %327 : vector<1x128xf32> to vector<96x128xf32>
    %329 = arith.mulf %0, %328 : vector<96x128xf32>
    %330 = arith.addf %329, %1 : vector<96x128xf32>
    %331 = arith.truncf %291 : vector<32x128xf32> to vector<32x128xbf16>
    %cst_94 = arith.constant dense<0.000000e+00> : vector<96x128xf32>
    %332 = tpu.matmul %7, %331, %cst_94 {dimension_numbers = #tpu.dot_dimension_numbers<[1], [0], [0], [1], [0, 0, 1, 1], [], []>} : vector<96x32xbf16>, vector<32x128xbf16>, vector<96x128xf32> -> vector<96x128xf32>
    %333 = vector.extract_strided_slice %330 {offsets = [0, 0], sizes = [32, 128], strides = [1, 1]} : vector<96x128xf32> to vector<32x128xf32>
    %334 = vector.extract_strided_slice %332 {offsets = [0, 0], sizes = [32, 128], strides = [1, 1]} : vector<96x128xf32> to vector<32x128xf32>
    %335 = arith.addf %333, %334 : vector<32x128xf32>
    %cst_95 = arith.constant 5.000000e-01 : f32
    %336 = vector.broadcast %cst_95 : f32 to vector<32x128xf32>
    %337 = arith.mulf %336, %335 : vector<32x128xf32>
    %338 = math.tanh %337 : vector<32x128xf32>
    %cst_96 = arith.constant 5.000000e-01 : f32
    %339 = vector.broadcast %cst_96 : f32 to vector<32x128xf32>
    %340 = arith.mulf %339, %338 : vector<32x128xf32>
    %cst_97 = arith.constant 5.000000e-01 : f32
    %341 = vector.broadcast %cst_97 : f32 to vector<32x128xf32>
    %342 = arith.addf %340, %341 : vector<32x128xf32>
    %343 = vector.extract_strided_slice %330 {offsets = [32, 0], sizes = [32, 128], strides = [1, 1]} : vector<96x128xf32> to vector<32x128xf32>
    %344 = vector.extract_strided_slice %332 {offsets = [32, 0], sizes = [32, 128], strides = [1, 1]} : vector<96x128xf32> to vector<32x128xf32>
    %345 = arith.addf %343, %344 : vector<32x128xf32>
    %cst_98 = arith.constant 5.000000e-01 : f32
    %346 = vector.broadcast %cst_98 : f32 to vector<32x128xf32>
    %347 = arith.mulf %346, %345 : vector<32x128xf32>
    %348 = math.tanh %347 : vector<32x128xf32>
    %cst_99 = arith.constant 5.000000e-01 : f32
    %349 = vector.broadcast %cst_99 : f32 to vector<32x128xf32>
    %350 = arith.mulf %349, %348 : vector<32x128xf32>
    %cst_100 = arith.constant 5.000000e-01 : f32
    %351 = vector.broadcast %cst_100 : f32 to vector<32x128xf32>
    %352 = arith.addf %350, %351 : vector<32x128xf32>
    %353 = vector.extract_strided_slice %330 {offsets = [64, 0], sizes = [32, 128], strides = [1, 1]} : vector<96x128xf32> to vector<32x128xf32>
    %354 = vector.extract_strided_slice %332 {offsets = [64, 0], sizes = [32, 128], strides = [1, 1]} : vector<96x128xf32> to vector<32x128xf32>
    %355 = arith.addf %354, %2 : vector<32x128xf32>
    %356 = arith.mulf %342, %355 : vector<32x128xf32>
    %357 = arith.addf %353, %356 : vector<32x128xf32>
    %358 = math.tanh %357 : vector<32x128xf32>
    %359 = arith.subf %291, %358 : vector<32x128xf32>
    %360 = arith.mulf %352, %359 : vector<32x128xf32>
    %361 = arith.addf %358, %360 : vector<32x128xf32>
    %c5 = arith.constant 5 : index
    %c0_101 = arith.constant 0 : index
    %362 = vector.load %arg1[%c5, %c0_101] : memref<8x256xf32, #tpu.memory_space<vmem>>, vector<1x128xf32>
    %363 = vector.broadcast %362 : vector<1x128xf32> to vector<96x128xf32>
    %364 = arith.mulf %0, %363 : vector<96x128xf32>
    %365 = arith.addf %364, %1 : vector<96x128xf32>
    %366 = arith.truncf %326 : vector<32x128xf32> to vector<32x128xbf16>
    %cst_102 = arith.constant dense<0.000000e+00> : vector<96x128xf32>
    %367 = tpu.matmul %7, %366, %cst_102 {dimension_numbers = #tpu.dot_dimension_numbers<[1], [0], [0], [1], [0, 0, 1, 1], [], []>} : vector<96x32xbf16>, vector<32x128xbf16>, vector<96x128xf32> -> vector<96x128xf32>
    %368 = vector.extract_strided_slice %365 {offsets = [0, 0], sizes = [32, 128], strides = [1, 1]} : vector<96x128xf32> to vector<32x128xf32>
    %369 = vector.extract_strided_slice %367 {offsets = [0, 0], sizes = [32, 128], strides = [1, 1]} : vector<96x128xf32> to vector<32x128xf32>
    %370 = arith.addf %368, %369 : vector<32x128xf32>
    %cst_103 = arith.constant 5.000000e-01 : f32
    %371 = vector.broadcast %cst_103 : f32 to vector<32x128xf32>
    %372 = arith.mulf %371, %370 : vector<32x128xf32>
    %373 = math.tanh %372 : vector<32x128xf32>
    %cst_104 = arith.constant 5.000000e-01 : f32
    %374 = vector.broadcast %cst_104 : f32 to vector<32x128xf32>
    %375 = arith.mulf %374, %373 : vector<32x128xf32>
    %cst_105 = arith.constant 5.000000e-01 : f32
    %376 = vector.broadcast %cst_105 : f32 to vector<32x128xf32>
    %377 = arith.addf %375, %376 : vector<32x128xf32>
    %378 = vector.extract_strided_slice %365 {offsets = [32, 0], sizes = [32, 128], strides = [1, 1]} : vector<96x128xf32> to vector<32x128xf32>
    %379 = vector.extract_strided_slice %367 {offsets = [32, 0], sizes = [32, 128], strides = [1, 1]} : vector<96x128xf32> to vector<32x128xf32>
    %380 = arith.addf %378, %379 : vector<32x128xf32>
    %cst_106 = arith.constant 5.000000e-01 : f32
    %381 = vector.broadcast %cst_106 : f32 to vector<32x128xf32>
    %382 = arith.mulf %381, %380 : vector<32x128xf32>
    %383 = math.tanh %382 : vector<32x128xf32>
    %cst_107 = arith.constant 5.000000e-01 : f32
    %384 = vector.broadcast %cst_107 : f32 to vector<32x128xf32>
    %385 = arith.mulf %384, %383 : vector<32x128xf32>
    %cst_108 = arith.constant 5.000000e-01 : f32
    %386 = vector.broadcast %cst_108 : f32 to vector<32x128xf32>
    %387 = arith.addf %385, %386 : vector<32x128xf32>
    %388 = vector.extract_strided_slice %365 {offsets = [64, 0], sizes = [32, 128], strides = [1, 1]} : vector<96x128xf32> to vector<32x128xf32>
    %389 = vector.extract_strided_slice %367 {offsets = [64, 0], sizes = [32, 128], strides = [1, 1]} : vector<96x128xf32> to vector<32x128xf32>
    %390 = arith.addf %389, %2 : vector<32x128xf32>
    %391 = arith.mulf %377, %390 : vector<32x128xf32>
    %392 = arith.addf %388, %391 : vector<32x128xf32>
    %393 = math.tanh %392 : vector<32x128xf32>
    %394 = arith.subf %326, %393 : vector<32x128xf32>
    %395 = arith.mulf %387, %394 : vector<32x128xf32>
    %396 = arith.addf %393, %395 : vector<32x128xf32>
    %c5_109 = arith.constant 5 : index
    %c128_110 = arith.constant 128 : index
    %397 = vector.load %arg1[%c5_109, %c128_110] : memref<8x256xf32, #tpu.memory_space<vmem>>, vector<1x128xf32>
    %398 = vector.broadcast %397 : vector<1x128xf32> to vector<96x128xf32>
    %399 = arith.mulf %0, %398 : vector<96x128xf32>
    %400 = arith.addf %399, %1 : vector<96x128xf32>
    %401 = arith.truncf %361 : vector<32x128xf32> to vector<32x128xbf16>
    %cst_111 = arith.constant dense<0.000000e+00> : vector<96x128xf32>
    %402 = tpu.matmul %7, %401, %cst_111 {dimension_numbers = #tpu.dot_dimension_numbers<[1], [0], [0], [1], [0, 0, 1, 1], [], []>} : vector<96x32xbf16>, vector<32x128xbf16>, vector<96x128xf32> -> vector<96x128xf32>
    %403 = vector.extract_strided_slice %400 {offsets = [0, 0], sizes = [32, 128], strides = [1, 1]} : vector<96x128xf32> to vector<32x128xf32>
    %404 = vector.extract_strided_slice %402 {offsets = [0, 0], sizes = [32, 128], strides = [1, 1]} : vector<96x128xf32> to vector<32x128xf32>
    %405 = arith.addf %403, %404 : vector<32x128xf32>
    %cst_112 = arith.constant 5.000000e-01 : f32
    %406 = vector.broadcast %cst_112 : f32 to vector<32x128xf32>
    %407 = arith.mulf %406, %405 : vector<32x128xf32>
    %408 = math.tanh %407 : vector<32x128xf32>
    %cst_113 = arith.constant 5.000000e-01 : f32
    %409 = vector.broadcast %cst_113 : f32 to vector<32x128xf32>
    %410 = arith.mulf %409, %408 : vector<32x128xf32>
    %cst_114 = arith.constant 5.000000e-01 : f32
    %411 = vector.broadcast %cst_114 : f32 to vector<32x128xf32>
    %412 = arith.addf %410, %411 : vector<32x128xf32>
    %413 = vector.extract_strided_slice %400 {offsets = [32, 0], sizes = [32, 128], strides = [1, 1]} : vector<96x128xf32> to vector<32x128xf32>
    %414 = vector.extract_strided_slice %402 {offsets = [32, 0], sizes = [32, 128], strides = [1, 1]} : vector<96x128xf32> to vector<32x128xf32>
    %415 = arith.addf %413, %414 : vector<32x128xf32>
    %cst_115 = arith.constant 5.000000e-01 : f32
    %416 = vector.broadcast %cst_115 : f32 to vector<32x128xf32>
    %417 = arith.mulf %416, %415 : vector<32x128xf32>
    %418 = math.tanh %417 : vector<32x128xf32>
    %cst_116 = arith.constant 5.000000e-01 : f32
    %419 = vector.broadcast %cst_116 : f32 to vector<32x128xf32>
    %420 = arith.mulf %419, %418 : vector<32x128xf32>
    %cst_117 = arith.constant 5.000000e-01 : f32
    %421 = vector.broadcast %cst_117 : f32 to vector<32x128xf32>
    %422 = arith.addf %420, %421 : vector<32x128xf32>
    %423 = vector.extract_strided_slice %400 {offsets = [64, 0], sizes = [32, 128], strides = [1, 1]} : vector<96x128xf32> to vector<32x128xf32>
    %424 = vector.extract_strided_slice %402 {offsets = [64, 0], sizes = [32, 128], strides = [1, 1]} : vector<96x128xf32> to vector<32x128xf32>
    %425 = arith.addf %424, %2 : vector<32x128xf32>
    %426 = arith.mulf %412, %425 : vector<32x128xf32>
    %427 = arith.addf %423, %426 : vector<32x128xf32>
    %428 = math.tanh %427 : vector<32x128xf32>
    %429 = arith.subf %361, %428 : vector<32x128xf32>
    %430 = arith.mulf %422, %429 : vector<32x128xf32>
    %431 = arith.addf %428, %430 : vector<32x128xf32>
    %c6 = arith.constant 6 : index
    %c0_118 = arith.constant 0 : index
    %432 = vector.load %arg1[%c6, %c0_118] : memref<8x256xf32, #tpu.memory_space<vmem>>, vector<1x128xf32>
    %433 = vector.broadcast %432 : vector<1x128xf32> to vector<96x128xf32>
    %434 = arith.mulf %0, %433 : vector<96x128xf32>
    %435 = arith.addf %434, %1 : vector<96x128xf32>
    %436 = arith.truncf %396 : vector<32x128xf32> to vector<32x128xbf16>
    %cst_119 = arith.constant dense<0.000000e+00> : vector<96x128xf32>
    %437 = tpu.matmul %7, %436, %cst_119 {dimension_numbers = #tpu.dot_dimension_numbers<[1], [0], [0], [1], [0, 0, 1, 1], [], []>} : vector<96x32xbf16>, vector<32x128xbf16>, vector<96x128xf32> -> vector<96x128xf32>
    %438 = vector.extract_strided_slice %435 {offsets = [0, 0], sizes = [32, 128], strides = [1, 1]} : vector<96x128xf32> to vector<32x128xf32>
    %439 = vector.extract_strided_slice %437 {offsets = [0, 0], sizes = [32, 128], strides = [1, 1]} : vector<96x128xf32> to vector<32x128xf32>
    %440 = arith.addf %438, %439 : vector<32x128xf32>
    %cst_120 = arith.constant 5.000000e-01 : f32
    %441 = vector.broadcast %cst_120 : f32 to vector<32x128xf32>
    %442 = arith.mulf %441, %440 : vector<32x128xf32>
    %443 = math.tanh %442 : vector<32x128xf32>
    %cst_121 = arith.constant 5.000000e-01 : f32
    %444 = vector.broadcast %cst_121 : f32 to vector<32x128xf32>
    %445 = arith.mulf %444, %443 : vector<32x128xf32>
    %cst_122 = arith.constant 5.000000e-01 : f32
    %446 = vector.broadcast %cst_122 : f32 to vector<32x128xf32>
    %447 = arith.addf %445, %446 : vector<32x128xf32>
    %448 = vector.extract_strided_slice %435 {offsets = [32, 0], sizes = [32, 128], strides = [1, 1]} : vector<96x128xf32> to vector<32x128xf32>
    %449 = vector.extract_strided_slice %437 {offsets = [32, 0], sizes = [32, 128], strides = [1, 1]} : vector<96x128xf32> to vector<32x128xf32>
    %450 = arith.addf %448, %449 : vector<32x128xf32>
    %cst_123 = arith.constant 5.000000e-01 : f32
    %451 = vector.broadcast %cst_123 : f32 to vector<32x128xf32>
    %452 = arith.mulf %451, %450 : vector<32x128xf32>
    %453 = math.tanh %452 : vector<32x128xf32>
    %cst_124 = arith.constant 5.000000e-01 : f32
    %454 = vector.broadcast %cst_124 : f32 to vector<32x128xf32>
    %455 = arith.mulf %454, %453 : vector<32x128xf32>
    %cst_125 = arith.constant 5.000000e-01 : f32
    %456 = vector.broadcast %cst_125 : f32 to vector<32x128xf32>
    %457 = arith.addf %455, %456 : vector<32x128xf32>
    %458 = vector.extract_strided_slice %435 {offsets = [64, 0], sizes = [32, 128], strides = [1, 1]} : vector<96x128xf32> to vector<32x128xf32>
    %459 = vector.extract_strided_slice %437 {offsets = [64, 0], sizes = [32, 128], strides = [1, 1]} : vector<96x128xf32> to vector<32x128xf32>
    %460 = arith.addf %459, %2 : vector<32x128xf32>
    %461 = arith.mulf %447, %460 : vector<32x128xf32>
    %462 = arith.addf %458, %461 : vector<32x128xf32>
    %463 = math.tanh %462 : vector<32x128xf32>
    %464 = arith.subf %396, %463 : vector<32x128xf32>
    %465 = arith.mulf %457, %464 : vector<32x128xf32>
    %466 = arith.addf %463, %465 : vector<32x128xf32>
    %c6_126 = arith.constant 6 : index
    %c128_127 = arith.constant 128 : index
    %467 = vector.load %arg1[%c6_126, %c128_127] : memref<8x256xf32, #tpu.memory_space<vmem>>, vector<1x128xf32>
    %468 = vector.broadcast %467 : vector<1x128xf32> to vector<96x128xf32>
    %469 = arith.mulf %0, %468 : vector<96x128xf32>
    %470 = arith.addf %469, %1 : vector<96x128xf32>
    %471 = arith.truncf %431 : vector<32x128xf32> to vector<32x128xbf16>
    %cst_128 = arith.constant dense<0.000000e+00> : vector<96x128xf32>
    %472 = tpu.matmul %7, %471, %cst_128 {dimension_numbers = #tpu.dot_dimension_numbers<[1], [0], [0], [1], [0, 0, 1, 1], [], []>} : vector<96x32xbf16>, vector<32x128xbf16>, vector<96x128xf32> -> vector<96x128xf32>
    %473 = vector.extract_strided_slice %470 {offsets = [0, 0], sizes = [32, 128], strides = [1, 1]} : vector<96x128xf32> to vector<32x128xf32>
    %474 = vector.extract_strided_slice %472 {offsets = [0, 0], sizes = [32, 128], strides = [1, 1]} : vector<96x128xf32> to vector<32x128xf32>
    %475 = arith.addf %473, %474 : vector<32x128xf32>
    %cst_129 = arith.constant 5.000000e-01 : f32
    %476 = vector.broadcast %cst_129 : f32 to vector<32x128xf32>
    %477 = arith.mulf %476, %475 : vector<32x128xf32>
    %478 = math.tanh %477 : vector<32x128xf32>
    %cst_130 = arith.constant 5.000000e-01 : f32
    %479 = vector.broadcast %cst_130 : f32 to vector<32x128xf32>
    %480 = arith.mulf %479, %478 : vector<32x128xf32>
    %cst_131 = arith.constant 5.000000e-01 : f32
    %481 = vector.broadcast %cst_131 : f32 to vector<32x128xf32>
    %482 = arith.addf %480, %481 : vector<32x128xf32>
    %483 = vector.extract_strided_slice %470 {offsets = [32, 0], sizes = [32, 128], strides = [1, 1]} : vector<96x128xf32> to vector<32x128xf32>
    %484 = vector.extract_strided_slice %472 {offsets = [32, 0], sizes = [32, 128], strides = [1, 1]} : vector<96x128xf32> to vector<32x128xf32>
    %485 = arith.addf %483, %484 : vector<32x128xf32>
    %cst_132 = arith.constant 5.000000e-01 : f32
    %486 = vector.broadcast %cst_132 : f32 to vector<32x128xf32>
    %487 = arith.mulf %486, %485 : vector<32x128xf32>
    %488 = math.tanh %487 : vector<32x128xf32>
    %cst_133 = arith.constant 5.000000e-01 : f32
    %489 = vector.broadcast %cst_133 : f32 to vector<32x128xf32>
    %490 = arith.mulf %489, %488 : vector<32x128xf32>
    %cst_134 = arith.constant 5.000000e-01 : f32
    %491 = vector.broadcast %cst_134 : f32 to vector<32x128xf32>
    %492 = arith.addf %490, %491 : vector<32x128xf32>
    %493 = vector.extract_strided_slice %470 {offsets = [64, 0], sizes = [32, 128], strides = [1, 1]} : vector<96x128xf32> to vector<32x128xf32>
    %494 = vector.extract_strided_slice %472 {offsets = [64, 0], sizes = [32, 128], strides = [1, 1]} : vector<96x128xf32> to vector<32x128xf32>
    %495 = arith.addf %494, %2 : vector<32x128xf32>
    %496 = arith.mulf %482, %495 : vector<32x128xf32>
    %497 = arith.addf %493, %496 : vector<32x128xf32>
    %498 = math.tanh %497 : vector<32x128xf32>
    %499 = arith.subf %431, %498 : vector<32x128xf32>
    %500 = arith.mulf %492, %499 : vector<32x128xf32>
    %501 = arith.addf %498, %500 : vector<32x128xf32>
    %c7 = arith.constant 7 : index
    %c0_135 = arith.constant 0 : index
    %502 = vector.load %arg1[%c7, %c0_135] : memref<8x256xf32, #tpu.memory_space<vmem>>, vector<1x128xf32>
    %503 = vector.broadcast %502 : vector<1x128xf32> to vector<96x128xf32>
    %504 = arith.mulf %0, %503 : vector<96x128xf32>
    %505 = arith.addf %504, %1 : vector<96x128xf32>
    %506 = arith.truncf %466 : vector<32x128xf32> to vector<32x128xbf16>
    %cst_136 = arith.constant dense<0.000000e+00> : vector<96x128xf32>
    %507 = tpu.matmul %7, %506, %cst_136 {dimension_numbers = #tpu.dot_dimension_numbers<[1], [0], [0], [1], [0, 0, 1, 1], [], []>} : vector<96x32xbf16>, vector<32x128xbf16>, vector<96x128xf32> -> vector<96x128xf32>
    %508 = vector.extract_strided_slice %505 {offsets = [0, 0], sizes = [32, 128], strides = [1, 1]} : vector<96x128xf32> to vector<32x128xf32>
    %509 = vector.extract_strided_slice %507 {offsets = [0, 0], sizes = [32, 128], strides = [1, 1]} : vector<96x128xf32> to vector<32x128xf32>
    %510 = arith.addf %508, %509 : vector<32x128xf32>
    %cst_137 = arith.constant 5.000000e-01 : f32
    %511 = vector.broadcast %cst_137 : f32 to vector<32x128xf32>
    %512 = arith.mulf %511, %510 : vector<32x128xf32>
    %513 = math.tanh %512 : vector<32x128xf32>
    %cst_138 = arith.constant 5.000000e-01 : f32
    %514 = vector.broadcast %cst_138 : f32 to vector<32x128xf32>
    %515 = arith.mulf %514, %513 : vector<32x128xf32>
    %cst_139 = arith.constant 5.000000e-01 : f32
    %516 = vector.broadcast %cst_139 : f32 to vector<32x128xf32>
    %517 = arith.addf %515, %516 : vector<32x128xf32>
    %518 = vector.extract_strided_slice %505 {offsets = [32, 0], sizes = [32, 128], strides = [1, 1]} : vector<96x128xf32> to vector<32x128xf32>
    %519 = vector.extract_strided_slice %507 {offsets = [32, 0], sizes = [32, 128], strides = [1, 1]} : vector<96x128xf32> to vector<32x128xf32>
    %520 = arith.addf %518, %519 : vector<32x128xf32>
    %cst_140 = arith.constant 5.000000e-01 : f32
    %521 = vector.broadcast %cst_140 : f32 to vector<32x128xf32>
    %522 = arith.mulf %521, %520 : vector<32x128xf32>
    %523 = math.tanh %522 : vector<32x128xf32>
    %cst_141 = arith.constant 5.000000e-01 : f32
    %524 = vector.broadcast %cst_141 : f32 to vector<32x128xf32>
    %525 = arith.mulf %524, %523 : vector<32x128xf32>
    %cst_142 = arith.constant 5.000000e-01 : f32
    %526 = vector.broadcast %cst_142 : f32 to vector<32x128xf32>
    %527 = arith.addf %525, %526 : vector<32x128xf32>
    %528 = vector.extract_strided_slice %505 {offsets = [64, 0], sizes = [32, 128], strides = [1, 1]} : vector<96x128xf32> to vector<32x128xf32>
    %529 = vector.extract_strided_slice %507 {offsets = [64, 0], sizes = [32, 128], strides = [1, 1]} : vector<96x128xf32> to vector<32x128xf32>
    %530 = arith.addf %529, %2 : vector<32x128xf32>
    %531 = arith.mulf %517, %530 : vector<32x128xf32>
    %532 = arith.addf %528, %531 : vector<32x128xf32>
    %533 = math.tanh %532 : vector<32x128xf32>
    %534 = arith.subf %466, %533 : vector<32x128xf32>
    %535 = arith.mulf %527, %534 : vector<32x128xf32>
    %536 = arith.addf %533, %535 : vector<32x128xf32>
    %c7_143 = arith.constant 7 : index
    %c128_144 = arith.constant 128 : index
    %537 = vector.load %arg1[%c7_143, %c128_144] : memref<8x256xf32, #tpu.memory_space<vmem>>, vector<1x128xf32>
    %538 = vector.broadcast %537 : vector<1x128xf32> to vector<96x128xf32>
    %539 = arith.mulf %0, %538 : vector<96x128xf32>
    %540 = arith.addf %539, %1 : vector<96x128xf32>
    %541 = arith.truncf %501 : vector<32x128xf32> to vector<32x128xbf16>
    %cst_145 = arith.constant dense<0.000000e+00> : vector<96x128xf32>
    %542 = tpu.matmul %7, %541, %cst_145 {dimension_numbers = #tpu.dot_dimension_numbers<[1], [0], [0], [1], [0, 0, 1, 1], [], []>} : vector<96x32xbf16>, vector<32x128xbf16>, vector<96x128xf32> -> vector<96x128xf32>
    %543 = vector.extract_strided_slice %540 {offsets = [0, 0], sizes = [32, 128], strides = [1, 1]} : vector<96x128xf32> to vector<32x128xf32>
    %544 = vector.extract_strided_slice %542 {offsets = [0, 0], sizes = [32, 128], strides = [1, 1]} : vector<96x128xf32> to vector<32x128xf32>
    %545 = arith.addf %543, %544 : vector<32x128xf32>
    %cst_146 = arith.constant 5.000000e-01 : f32
    %546 = vector.broadcast %cst_146 : f32 to vector<32x128xf32>
    %547 = arith.mulf %546, %545 : vector<32x128xf32>
    %548 = math.tanh %547 : vector<32x128xf32>
    %cst_147 = arith.constant 5.000000e-01 : f32
    %549 = vector.broadcast %cst_147 : f32 to vector<32x128xf32>
    %550 = arith.mulf %549, %548 : vector<32x128xf32>
    %cst_148 = arith.constant 5.000000e-01 : f32
    %551 = vector.broadcast %cst_148 : f32 to vector<32x128xf32>
    %552 = arith.addf %550, %551 : vector<32x128xf32>
    %553 = vector.extract_strided_slice %540 {offsets = [32, 0], sizes = [32, 128], strides = [1, 1]} : vector<96x128xf32> to vector<32x128xf32>
    %554 = vector.extract_strided_slice %542 {offsets = [32, 0], sizes = [32, 128], strides = [1, 1]} : vector<96x128xf32> to vector<32x128xf32>
    %555 = arith.addf %553, %554 : vector<32x128xf32>
    %cst_149 = arith.constant 5.000000e-01 : f32
    %556 = vector.broadcast %cst_149 : f32 to vector<32x128xf32>
    %557 = arith.mulf %556, %555 : vector<32x128xf32>
    %558 = math.tanh %557 : vector<32x128xf32>
    %cst_150 = arith.constant 5.000000e-01 : f32
    %559 = vector.broadcast %cst_150 : f32 to vector<32x128xf32>
    %560 = arith.mulf %559, %558 : vector<32x128xf32>
    %cst_151 = arith.constant 5.000000e-01 : f32
    %561 = vector.broadcast %cst_151 : f32 to vector<32x128xf32>
    %562 = arith.addf %560, %561 : vector<32x128xf32>
    %563 = vector.extract_strided_slice %540 {offsets = [64, 0], sizes = [32, 128], strides = [1, 1]} : vector<96x128xf32> to vector<32x128xf32>
    %564 = vector.extract_strided_slice %542 {offsets = [64, 0], sizes = [32, 128], strides = [1, 1]} : vector<96x128xf32> to vector<32x128xf32>
    %565 = arith.addf %564, %2 : vector<32x128xf32>
    %566 = arith.mulf %552, %565 : vector<32x128xf32>
    %567 = arith.addf %563, %566 : vector<32x128xf32>
    %568 = math.tanh %567 : vector<32x128xf32>
    %569 = arith.subf %501, %568 : vector<32x128xf32>
    %570 = arith.mulf %562, %569 : vector<32x128xf32>
    %571 = arith.addf %568, %570 : vector<32x128xf32>
    %572 = arith.truncf %536 : vector<32x128xf32> to vector<32x128xbf16>
    %cst_152 = arith.constant dense<0.000000e+00> : vector<104x128xf32>
    %573 = tpu.matmul %9, %572, %cst_152 {dimension_numbers = #tpu.dot_dimension_numbers<[1], [0], [0], [1], [0, 0, 1, 1], [], []>} : vector<104x32xbf16>, vector<32x128xbf16>, vector<104x128xf32> -> vector<104x128xf32>
    %574 = arith.addf %573, %5 : vector<104x128xf32>
    %575 = vector.extract_strided_slice %574 {offsets = [0, 0], sizes = [96, 128], strides = [1, 1]} : vector<104x128xf32> to vector<96x128xf32>
    %576 = vector.extract_strided_slice %574 {offsets = [96, 0], sizes = [1, 128], strides = [1, 1]} : vector<104x128xf32> to vector<1x128xf32>
    %577 = arith.truncf %571 : vector<32x128xf32> to vector<32x128xbf16>
    %cst_153 = arith.constant dense<0.000000e+00> : vector<104x128xf32>
    %578 = tpu.matmul %9, %577, %cst_153 {dimension_numbers = #tpu.dot_dimension_numbers<[1], [0], [0], [1], [0, 0, 1, 1], [], []>} : vector<104x32xbf16>, vector<32x128xbf16>, vector<104x128xf32> -> vector<104x128xf32>
    %579 = arith.addf %578, %5 : vector<104x128xf32>
    %580 = vector.extract_strided_slice %579 {offsets = [0, 0], sizes = [96, 128], strides = [1, 1]} : vector<104x128xf32> to vector<96x128xf32>
    %581 = vector.extract_strided_slice %579 {offsets = [96, 0], sizes = [1, 128], strides = [1, 1]} : vector<104x128xf32> to vector<1x128xf32>
    %582 = vector.broadcast %576 : vector<1x128xf32> to vector<96x128xf32>
    %583 = arith.mulf %3, %582 : vector<96x128xf32>
    %584 = arith.addf %583, %4 : vector<96x128xf32>
    %585 = vector.extract_strided_slice %584 {offsets = [0, 0], sizes = [32, 128], strides = [1, 1]} : vector<96x128xf32> to vector<32x128xf32>
    %586 = vector.extract_strided_slice %575 {offsets = [0, 0], sizes = [32, 128], strides = [1, 1]} : vector<96x128xf32> to vector<32x128xf32>
    %587 = arith.addf %585, %586 : vector<32x128xf32>
    %cst_154 = arith.constant 5.000000e-01 : f32
    %588 = vector.broadcast %cst_154 : f32 to vector<32x128xf32>
    %589 = arith.mulf %588, %587 : vector<32x128xf32>
    %590 = math.tanh %589 : vector<32x128xf32>
    %cst_155 = arith.constant 5.000000e-01 : f32
    %591 = vector.broadcast %cst_155 : f32 to vector<32x128xf32>
    %592 = arith.mulf %591, %590 : vector<32x128xf32>
    %cst_156 = arith.constant 5.000000e-01 : f32
    %593 = vector.broadcast %cst_156 : f32 to vector<32x128xf32>
    %594 = arith.addf %592, %593 : vector<32x128xf32>
    %595 = vector.extract_strided_slice %584 {offsets = [32, 0], sizes = [32, 128], strides = [1, 1]} : vector<96x128xf32> to vector<32x128xf32>
    %596 = vector.extract_strided_slice %575 {offsets = [32, 0], sizes = [32, 128], strides = [1, 1]} : vector<96x128xf32> to vector<32x128xf32>
    %597 = arith.addf %595, %596 : vector<32x128xf32>
    %cst_157 = arith.constant 5.000000e-01 : f32
    %598 = vector.broadcast %cst_157 : f32 to vector<32x128xf32>
    %599 = arith.mulf %598, %597 : vector<32x128xf32>
    %600 = math.tanh %599 : vector<32x128xf32>
    %cst_158 = arith.constant 5.000000e-01 : f32
    %601 = vector.broadcast %cst_158 : f32 to vector<32x128xf32>
    %602 = arith.mulf %601, %600 : vector<32x128xf32>
    %cst_159 = arith.constant 5.000000e-01 : f32
    %603 = vector.broadcast %cst_159 : f32 to vector<32x128xf32>
    %604 = arith.addf %602, %603 : vector<32x128xf32>
    %605 = vector.extract_strided_slice %584 {offsets = [64, 0], sizes = [32, 128], strides = [1, 1]} : vector<96x128xf32> to vector<32x128xf32>
    %606 = vector.extract_strided_slice %575 {offsets = [64, 0], sizes = [32, 128], strides = [1, 1]} : vector<96x128xf32> to vector<32x128xf32>
    %607 = arith.mulf %594, %606 : vector<32x128xf32>
    %608 = arith.addf %605, %607 : vector<32x128xf32>
    %609 = math.tanh %608 : vector<32x128xf32>
    %610 = arith.subf %536, %609 : vector<32x128xf32>
    %611 = arith.mulf %604, %610 : vector<32x128xf32>
    %612 = arith.addf %609, %611 : vector<32x128xf32>
    %613 = arith.truncf %612 : vector<32x128xf32> to vector<32x128xbf16>
    %cst_160 = arith.constant dense<0.000000e+00> : vector<104x128xf32>
    %614 = tpu.matmul %9, %613, %cst_160 {dimension_numbers = #tpu.dot_dimension_numbers<[1], [0], [0], [1], [0, 0, 1, 1], [], []>} : vector<104x32xbf16>, vector<32x128xbf16>, vector<104x128xf32> -> vector<104x128xf32>
    %615 = arith.addf %614, %5 : vector<104x128xf32>
    %616 = vector.extract_strided_slice %615 {offsets = [0, 0], sizes = [96, 128], strides = [1, 1]} : vector<104x128xf32> to vector<96x128xf32>
    %617 = vector.extract_strided_slice %615 {offsets = [96, 0], sizes = [1, 128], strides = [1, 1]} : vector<104x128xf32> to vector<1x128xf32>
    %618 = vector.broadcast %581 : vector<1x128xf32> to vector<96x128xf32>
    %619 = arith.mulf %3, %618 : vector<96x128xf32>
    %620 = arith.addf %619, %4 : vector<96x128xf32>
    %621 = vector.extract_strided_slice %620 {offsets = [0, 0], sizes = [32, 128], strides = [1, 1]} : vector<96x128xf32> to vector<32x128xf32>
    %622 = vector.extract_strided_slice %580 {offsets = [0, 0], sizes = [32, 128], strides = [1, 1]} : vector<96x128xf32> to vector<32x128xf32>
    %623 = arith.addf %621, %622 : vector<32x128xf32>
    %cst_161 = arith.constant 5.000000e-01 : f32
    %624 = vector.broadcast %cst_161 : f32 to vector<32x128xf32>
    %625 = arith.mulf %624, %623 : vector<32x128xf32>
    %626 = math.tanh %625 : vector<32x128xf32>
    %cst_162 = arith.constant 5.000000e-01 : f32
    %627 = vector.broadcast %cst_162 : f32 to vector<32x128xf32>
    %628 = arith.mulf %627, %626 : vector<32x128xf32>
    %cst_163 = arith.constant 5.000000e-01 : f32
    %629 = vector.broadcast %cst_163 : f32 to vector<32x128xf32>
    %630 = arith.addf %628, %629 : vector<32x128xf32>
    %631 = vector.extract_strided_slice %620 {offsets = [32, 0], sizes = [32, 128], strides = [1, 1]} : vector<96x128xf32> to vector<32x128xf32>
    %632 = vector.extract_strided_slice %580 {offsets = [32, 0], sizes = [32, 128], strides = [1, 1]} : vector<96x128xf32> to vector<32x128xf32>
    %633 = arith.addf %631, %632 : vector<32x128xf32>
    %cst_164 = arith.constant 5.000000e-01 : f32
    %634 = vector.broadcast %cst_164 : f32 to vector<32x128xf32>
    %635 = arith.mulf %634, %633 : vector<32x128xf32>
    %636 = math.tanh %635 : vector<32x128xf32>
    %cst_165 = arith.constant 5.000000e-01 : f32
    %637 = vector.broadcast %cst_165 : f32 to vector<32x128xf32>
    %638 = arith.mulf %637, %636 : vector<32x128xf32>
    %cst_166 = arith.constant 5.000000e-01 : f32
    %639 = vector.broadcast %cst_166 : f32 to vector<32x128xf32>
    %640 = arith.addf %638, %639 : vector<32x128xf32>
    %641 = vector.extract_strided_slice %620 {offsets = [64, 0], sizes = [32, 128], strides = [1, 1]} : vector<96x128xf32> to vector<32x128xf32>
    %642 = vector.extract_strided_slice %580 {offsets = [64, 0], sizes = [32, 128], strides = [1, 1]} : vector<96x128xf32> to vector<32x128xf32>
    %643 = arith.mulf %630, %642 : vector<32x128xf32>
    %644 = arith.addf %641, %643 : vector<32x128xf32>
    %645 = math.tanh %644 : vector<32x128xf32>
    %646 = arith.subf %571, %645 : vector<32x128xf32>
    %647 = arith.mulf %640, %646 : vector<32x128xf32>
    %648 = arith.addf %645, %647 : vector<32x128xf32>
    %649 = arith.truncf %648 : vector<32x128xf32> to vector<32x128xbf16>
    %cst_167 = arith.constant dense<0.000000e+00> : vector<104x128xf32>
    %650 = tpu.matmul %9, %649, %cst_167 {dimension_numbers = #tpu.dot_dimension_numbers<[1], [0], [0], [1], [0, 0, 1, 1], [], []>} : vector<104x32xbf16>, vector<32x128xbf16>, vector<104x128xf32> -> vector<104x128xf32>
    %651 = arith.addf %650, %5 : vector<104x128xf32>
    %652 = vector.extract_strided_slice %651 {offsets = [0, 0], sizes = [96, 128], strides = [1, 1]} : vector<104x128xf32> to vector<96x128xf32>
    %653 = vector.extract_strided_slice %651 {offsets = [96, 0], sizes = [1, 128], strides = [1, 1]} : vector<104x128xf32> to vector<1x128xf32>
    %654 = vector.broadcast %617 : vector<1x128xf32> to vector<96x128xf32>
    %655 = arith.mulf %3, %654 : vector<96x128xf32>
    %656 = arith.addf %655, %4 : vector<96x128xf32>
    %657 = vector.extract_strided_slice %656 {offsets = [0, 0], sizes = [32, 128], strides = [1, 1]} : vector<96x128xf32> to vector<32x128xf32>
    %658 = vector.extract_strided_slice %616 {offsets = [0, 0], sizes = [32, 128], strides = [1, 1]} : vector<96x128xf32> to vector<32x128xf32>
    %659 = arith.addf %657, %658 : vector<32x128xf32>
    %cst_168 = arith.constant 5.000000e-01 : f32
    %660 = vector.broadcast %cst_168 : f32 to vector<32x128xf32>
    %661 = arith.mulf %660, %659 : vector<32x128xf32>
    %662 = math.tanh %661 : vector<32x128xf32>
    %cst_169 = arith.constant 5.000000e-01 : f32
    %663 = vector.broadcast %cst_169 : f32 to vector<32x128xf32>
    %664 = arith.mulf %663, %662 : vector<32x128xf32>
    %cst_170 = arith.constant 5.000000e-01 : f32
    %665 = vector.broadcast %cst_170 : f32 to vector<32x128xf32>
    %666 = arith.addf %664, %665 : vector<32x128xf32>
    %667 = vector.extract_strided_slice %656 {offsets = [32, 0], sizes = [32, 128], strides = [1, 1]} : vector<96x128xf32> to vector<32x128xf32>
    %668 = vector.extract_strided_slice %616 {offsets = [32, 0], sizes = [32, 128], strides = [1, 1]} : vector<96x128xf32> to vector<32x128xf32>
    %669 = arith.addf %667, %668 : vector<32x128xf32>
    %cst_171 = arith.constant 5.000000e-01 : f32
    %670 = vector.broadcast %cst_171 : f32 to vector<32x128xf32>
    %671 = arith.mulf %670, %669 : vector<32x128xf32>
    %672 = math.tanh %671 : vector<32x128xf32>
    %cst_172 = arith.constant 5.000000e-01 : f32
    %673 = vector.broadcast %cst_172 : f32 to vector<32x128xf32>
    %674 = arith.mulf %673, %672 : vector<32x128xf32>
    %cst_173 = arith.constant 5.000000e-01 : f32
    %675 = vector.broadcast %cst_173 : f32 to vector<32x128xf32>
    %676 = arith.addf %674, %675 : vector<32x128xf32>
    %677 = vector.extract_strided_slice %656 {offsets = [64, 0], sizes = [32, 128], strides = [1, 1]} : vector<96x128xf32> to vector<32x128xf32>
    %678 = vector.extract_strided_slice %616 {offsets = [64, 0], sizes = [32, 128], strides = [1, 1]} : vector<96x128xf32> to vector<32x128xf32>
    %679 = arith.mulf %666, %678 : vector<32x128xf32>
    %680 = arith.addf %677, %679 : vector<32x128xf32>
    %681 = math.tanh %680 : vector<32x128xf32>
    %682 = arith.subf %612, %681 : vector<32x128xf32>
    %683 = arith.mulf %676, %682 : vector<32x128xf32>
    %684 = arith.addf %681, %683 : vector<32x128xf32>
    %685 = arith.truncf %684 : vector<32x128xf32> to vector<32x128xbf16>
    %cst_174 = arith.constant dense<0.000000e+00> : vector<104x128xf32>
    %686 = tpu.matmul %9, %685, %cst_174 {dimension_numbers = #tpu.dot_dimension_numbers<[1], [0], [0], [1], [0, 0, 1, 1], [], []>} : vector<104x32xbf16>, vector<32x128xbf16>, vector<104x128xf32> -> vector<104x128xf32>
    %687 = arith.addf %686, %5 : vector<104x128xf32>
    %688 = vector.extract_strided_slice %687 {offsets = [0, 0], sizes = [96, 128], strides = [1, 1]} : vector<104x128xf32> to vector<96x128xf32>
    %689 = vector.extract_strided_slice %687 {offsets = [96, 0], sizes = [1, 128], strides = [1, 1]} : vector<104x128xf32> to vector<1x128xf32>
    %690 = vector.broadcast %653 : vector<1x128xf32> to vector<96x128xf32>
    %691 = arith.mulf %3, %690 : vector<96x128xf32>
    %692 = arith.addf %691, %4 : vector<96x128xf32>
    %693 = vector.extract_strided_slice %692 {offsets = [0, 0], sizes = [32, 128], strides = [1, 1]} : vector<96x128xf32> to vector<32x128xf32>
    %694 = vector.extract_strided_slice %652 {offsets = [0, 0], sizes = [32, 128], strides = [1, 1]} : vector<96x128xf32> to vector<32x128xf32>
    %695 = arith.addf %693, %694 : vector<32x128xf32>
    %cst_175 = arith.constant 5.000000e-01 : f32
    %696 = vector.broadcast %cst_175 : f32 to vector<32x128xf32>
    %697 = arith.mulf %696, %695 : vector<32x128xf32>
    %698 = math.tanh %697 : vector<32x128xf32>
    %cst_176 = arith.constant 5.000000e-01 : f32
    %699 = vector.broadcast %cst_176 : f32 to vector<32x128xf32>
    %700 = arith.mulf %699, %698 : vector<32x128xf32>
    %cst_177 = arith.constant 5.000000e-01 : f32
    %701 = vector.broadcast %cst_177 : f32 to vector<32x128xf32>
    %702 = arith.addf %700, %701 : vector<32x128xf32>
    %703 = vector.extract_strided_slice %692 {offsets = [32, 0], sizes = [32, 128], strides = [1, 1]} : vector<96x128xf32> to vector<32x128xf32>
    %704 = vector.extract_strided_slice %652 {offsets = [32, 0], sizes = [32, 128], strides = [1, 1]} : vector<96x128xf32> to vector<32x128xf32>
    %705 = arith.addf %703, %704 : vector<32x128xf32>
    %cst_178 = arith.constant 5.000000e-01 : f32
    %706 = vector.broadcast %cst_178 : f32 to vector<32x128xf32>
    %707 = arith.mulf %706, %705 : vector<32x128xf32>
    %708 = math.tanh %707 : vector<32x128xf32>
    %cst_179 = arith.constant 5.000000e-01 : f32
    %709 = vector.broadcast %cst_179 : f32 to vector<32x128xf32>
    %710 = arith.mulf %709, %708 : vector<32x128xf32>
    %cst_180 = arith.constant 5.000000e-01 : f32
    %711 = vector.broadcast %cst_180 : f32 to vector<32x128xf32>
    %712 = arith.addf %710, %711 : vector<32x128xf32>
    %713 = vector.extract_strided_slice %692 {offsets = [64, 0], sizes = [32, 128], strides = [1, 1]} : vector<96x128xf32> to vector<32x128xf32>
    %714 = vector.extract_strided_slice %652 {offsets = [64, 0], sizes = [32, 128], strides = [1, 1]} : vector<96x128xf32> to vector<32x128xf32>
    %715 = arith.mulf %702, %714 : vector<32x128xf32>
    %716 = arith.addf %713, %715 : vector<32x128xf32>
    %717 = math.tanh %716 : vector<32x128xf32>
    %718 = arith.subf %648, %717 : vector<32x128xf32>
    %719 = arith.mulf %712, %718 : vector<32x128xf32>
    %720 = arith.addf %717, %719 : vector<32x128xf32>
    %721 = arith.truncf %720 : vector<32x128xf32> to vector<32x128xbf16>
    %cst_181 = arith.constant dense<0.000000e+00> : vector<104x128xf32>
    %722 = tpu.matmul %9, %721, %cst_181 {dimension_numbers = #tpu.dot_dimension_numbers<[1], [0], [0], [1], [0, 0, 1, 1], [], []>} : vector<104x32xbf16>, vector<32x128xbf16>, vector<104x128xf32> -> vector<104x128xf32>
    %723 = arith.addf %722, %5 : vector<104x128xf32>
    %724 = vector.extract_strided_slice %723 {offsets = [0, 0], sizes = [96, 128], strides = [1, 1]} : vector<104x128xf32> to vector<96x128xf32>
    %725 = vector.extract_strided_slice %723 {offsets = [96, 0], sizes = [1, 128], strides = [1, 1]} : vector<104x128xf32> to vector<1x128xf32>
    %726 = vector.broadcast %689 : vector<1x128xf32> to vector<96x128xf32>
    %727 = arith.mulf %3, %726 : vector<96x128xf32>
    %728 = arith.addf %727, %4 : vector<96x128xf32>
    %729 = vector.extract_strided_slice %728 {offsets = [0, 0], sizes = [32, 128], strides = [1, 1]} : vector<96x128xf32> to vector<32x128xf32>
    %730 = vector.extract_strided_slice %688 {offsets = [0, 0], sizes = [32, 128], strides = [1, 1]} : vector<96x128xf32> to vector<32x128xf32>
    %731 = arith.addf %729, %730 : vector<32x128xf32>
    %cst_182 = arith.constant 5.000000e-01 : f32
    %732 = vector.broadcast %cst_182 : f32 to vector<32x128xf32>
    %733 = arith.mulf %732, %731 : vector<32x128xf32>
    %734 = math.tanh %733 : vector<32x128xf32>
    %cst_183 = arith.constant 5.000000e-01 : f32
    %735 = vector.broadcast %cst_183 : f32 to vector<32x128xf32>
    %736 = arith.mulf %735, %734 : vector<32x128xf32>
    %cst_184 = arith.constant 5.000000e-01 : f32
    %737 = vector.broadcast %cst_184 : f32 to vector<32x128xf32>
    %738 = arith.addf %736, %737 : vector<32x128xf32>
    %739 = vector.extract_strided_slice %728 {offsets = [32, 0], sizes = [32, 128], strides = [1, 1]} : vector<96x128xf32> to vector<32x128xf32>
    %740 = vector.extract_strided_slice %688 {offsets = [32, 0], sizes = [32, 128], strides = [1, 1]} : vector<96x128xf32> to vector<32x128xf32>
    %741 = arith.addf %739, %740 : vector<32x128xf32>
    %cst_185 = arith.constant 5.000000e-01 : f32
    %742 = vector.broadcast %cst_185 : f32 to vector<32x128xf32>
    %743 = arith.mulf %742, %741 : vector<32x128xf32>
    %744 = math.tanh %743 : vector<32x128xf32>
    %cst_186 = arith.constant 5.000000e-01 : f32
    %745 = vector.broadcast %cst_186 : f32 to vector<32x128xf32>
    %746 = arith.mulf %745, %744 : vector<32x128xf32>
    %cst_187 = arith.constant 5.000000e-01 : f32
    %747 = vector.broadcast %cst_187 : f32 to vector<32x128xf32>
    %748 = arith.addf %746, %747 : vector<32x128xf32>
    %749 = vector.extract_strided_slice %728 {offsets = [64, 0], sizes = [32, 128], strides = [1, 1]} : vector<96x128xf32> to vector<32x128xf32>
    %750 = vector.extract_strided_slice %688 {offsets = [64, 0], sizes = [32, 128], strides = [1, 1]} : vector<96x128xf32> to vector<32x128xf32>
    %751 = arith.mulf %738, %750 : vector<32x128xf32>
    %752 = arith.addf %749, %751 : vector<32x128xf32>
    %753 = math.tanh %752 : vector<32x128xf32>
    %754 = arith.subf %684, %753 : vector<32x128xf32>
    %755 = arith.mulf %748, %754 : vector<32x128xf32>
    %756 = arith.addf %753, %755 : vector<32x128xf32>
    %757 = arith.truncf %756 : vector<32x128xf32> to vector<32x128xbf16>
    %cst_188 = arith.constant dense<0.000000e+00> : vector<104x128xf32>
    %758 = tpu.matmul %9, %757, %cst_188 {dimension_numbers = #tpu.dot_dimension_numbers<[1], [0], [0], [1], [0, 0, 1, 1], [], []>} : vector<104x32xbf16>, vector<32x128xbf16>, vector<104x128xf32> -> vector<104x128xf32>
    %759 = arith.addf %758, %5 : vector<104x128xf32>
    %760 = vector.extract_strided_slice %759 {offsets = [0, 0], sizes = [96, 128], strides = [1, 1]} : vector<104x128xf32> to vector<96x128xf32>
    %761 = vector.extract_strided_slice %759 {offsets = [96, 0], sizes = [1, 128], strides = [1, 1]} : vector<104x128xf32> to vector<1x128xf32>
    %762 = vector.broadcast %725 : vector<1x128xf32> to vector<96x128xf32>
    %763 = arith.mulf %3, %762 : vector<96x128xf32>
    %764 = arith.addf %763, %4 : vector<96x128xf32>
    %765 = vector.extract_strided_slice %764 {offsets = [0, 0], sizes = [32, 128], strides = [1, 1]} : vector<96x128xf32> to vector<32x128xf32>
    %766 = vector.extract_strided_slice %724 {offsets = [0, 0], sizes = [32, 128], strides = [1, 1]} : vector<96x128xf32> to vector<32x128xf32>
    %767 = arith.addf %765, %766 : vector<32x128xf32>
    %cst_189 = arith.constant 5.000000e-01 : f32
    %768 = vector.broadcast %cst_189 : f32 to vector<32x128xf32>
    %769 = arith.mulf %768, %767 : vector<32x128xf32>
    %770 = math.tanh %769 : vector<32x128xf32>
    %cst_190 = arith.constant 5.000000e-01 : f32
    %771 = vector.broadcast %cst_190 : f32 to vector<32x128xf32>
    %772 = arith.mulf %771, %770 : vector<32x128xf32>
    %cst_191 = arith.constant 5.000000e-01 : f32
    %773 = vector.broadcast %cst_191 : f32 to vector<32x128xf32>
    %774 = arith.addf %772, %773 : vector<32x128xf32>
    %775 = vector.extract_strided_slice %764 {offsets = [32, 0], sizes = [32, 128], strides = [1, 1]} : vector<96x128xf32> to vector<32x128xf32>
    %776 = vector.extract_strided_slice %724 {offsets = [32, 0], sizes = [32, 128], strides = [1, 1]} : vector<96x128xf32> to vector<32x128xf32>
    %777 = arith.addf %775, %776 : vector<32x128xf32>
    %cst_192 = arith.constant 5.000000e-01 : f32
    %778 = vector.broadcast %cst_192 : f32 to vector<32x128xf32>
    %779 = arith.mulf %778, %777 : vector<32x128xf32>
    %780 = math.tanh %779 : vector<32x128xf32>
    %cst_193 = arith.constant 5.000000e-01 : f32
    %781 = vector.broadcast %cst_193 : f32 to vector<32x128xf32>
    %782 = arith.mulf %781, %780 : vector<32x128xf32>
    %cst_194 = arith.constant 5.000000e-01 : f32
    %783 = vector.broadcast %cst_194 : f32 to vector<32x128xf32>
    %784 = arith.addf %782, %783 : vector<32x128xf32>
    %785 = vector.extract_strided_slice %764 {offsets = [64, 0], sizes = [32, 128], strides = [1, 1]} : vector<96x128xf32> to vector<32x128xf32>
    %786 = vector.extract_strided_slice %724 {offsets = [64, 0], sizes = [32, 128], strides = [1, 1]} : vector<96x128xf32> to vector<32x128xf32>
    %787 = arith.mulf %774, %786 : vector<32x128xf32>
    %788 = arith.addf %785, %787 : vector<32x128xf32>
    %789 = math.tanh %788 : vector<32x128xf32>
    %790 = arith.subf %720, %789 : vector<32x128xf32>
    %791 = arith.mulf %784, %790 : vector<32x128xf32>
    %792 = arith.addf %789, %791 : vector<32x128xf32>
    %793 = arith.truncf %792 : vector<32x128xf32> to vector<32x128xbf16>
    %cst_195 = arith.constant dense<0.000000e+00> : vector<104x128xf32>
    %794 = tpu.matmul %9, %793, %cst_195 {dimension_numbers = #tpu.dot_dimension_numbers<[1], [0], [0], [1], [0, 0, 1, 1], [], []>} : vector<104x32xbf16>, vector<32x128xbf16>, vector<104x128xf32> -> vector<104x128xf32>
    %795 = arith.addf %794, %5 : vector<104x128xf32>
    %796 = vector.extract_strided_slice %795 {offsets = [0, 0], sizes = [96, 128], strides = [1, 1]} : vector<104x128xf32> to vector<96x128xf32>
    %797 = vector.extract_strided_slice %795 {offsets = [96, 0], sizes = [1, 128], strides = [1, 1]} : vector<104x128xf32> to vector<1x128xf32>
    %798 = vector.broadcast %761 : vector<1x128xf32> to vector<96x128xf32>
    %799 = arith.mulf %3, %798 : vector<96x128xf32>
    %800 = arith.addf %799, %4 : vector<96x128xf32>
    %801 = vector.extract_strided_slice %800 {offsets = [0, 0], sizes = [32, 128], strides = [1, 1]} : vector<96x128xf32> to vector<32x128xf32>
    %802 = vector.extract_strided_slice %760 {offsets = [0, 0], sizes = [32, 128], strides = [1, 1]} : vector<96x128xf32> to vector<32x128xf32>
    %803 = arith.addf %801, %802 : vector<32x128xf32>
    %cst_196 = arith.constant 5.000000e-01 : f32
    %804 = vector.broadcast %cst_196 : f32 to vector<32x128xf32>
    %805 = arith.mulf %804, %803 : vector<32x128xf32>
    %806 = math.tanh %805 : vector<32x128xf32>
    %cst_197 = arith.constant 5.000000e-01 : f32
    %807 = vector.broadcast %cst_197 : f32 to vector<32x128xf32>
    %808 = arith.mulf %807, %806 : vector<32x128xf32>
    %cst_198 = arith.constant 5.000000e-01 : f32
    %809 = vector.broadcast %cst_198 : f32 to vector<32x128xf32>
    %810 = arith.addf %808, %809 : vector<32x128xf32>
    %811 = vector.extract_strided_slice %800 {offsets = [32, 0], sizes = [32, 128], strides = [1, 1]} : vector<96x128xf32> to vector<32x128xf32>
    %812 = vector.extract_strided_slice %760 {offsets = [32, 0], sizes = [32, 128], strides = [1, 1]} : vector<96x128xf32> to vector<32x128xf32>
    %813 = arith.addf %811, %812 : vector<32x128xf32>
    %cst_199 = arith.constant 5.000000e-01 : f32
    %814 = vector.broadcast %cst_199 : f32 to vector<32x128xf32>
    %815 = arith.mulf %814, %813 : vector<32x128xf32>
    %816 = math.tanh %815 : vector<32x128xf32>
    %cst_200 = arith.constant 5.000000e-01 : f32
    %817 = vector.broadcast %cst_200 : f32 to vector<32x128xf32>
    %818 = arith.mulf %817, %816 : vector<32x128xf32>
    %cst_201 = arith.constant 5.000000e-01 : f32
    %819 = vector.broadcast %cst_201 : f32 to vector<32x128xf32>
    %820 = arith.addf %818, %819 : vector<32x128xf32>
    %821 = vector.extract_strided_slice %800 {offsets = [64, 0], sizes = [32, 128], strides = [1, 1]} : vector<96x128xf32> to vector<32x128xf32>
    %822 = vector.extract_strided_slice %760 {offsets = [64, 0], sizes = [32, 128], strides = [1, 1]} : vector<96x128xf32> to vector<32x128xf32>
    %823 = arith.mulf %810, %822 : vector<32x128xf32>
    %824 = arith.addf %821, %823 : vector<32x128xf32>
    %825 = math.tanh %824 : vector<32x128xf32>
    %826 = arith.subf %756, %825 : vector<32x128xf32>
    %827 = arith.mulf %820, %826 : vector<32x128xf32>
    %828 = arith.addf %825, %827 : vector<32x128xf32>
    %829 = arith.truncf %828 : vector<32x128xf32> to vector<32x128xbf16>
    %cst_202 = arith.constant dense<0.000000e+00> : vector<104x128xf32>
    %830 = tpu.matmul %9, %829, %cst_202 {dimension_numbers = #tpu.dot_dimension_numbers<[1], [0], [0], [1], [0, 0, 1, 1], [], []>} : vector<104x32xbf16>, vector<32x128xbf16>, vector<104x128xf32> -> vector<104x128xf32>
    %831 = arith.addf %830, %5 : vector<104x128xf32>
    %832 = vector.extract_strided_slice %831 {offsets = [0, 0], sizes = [96, 128], strides = [1, 1]} : vector<104x128xf32> to vector<96x128xf32>
    %833 = vector.extract_strided_slice %831 {offsets = [96, 0], sizes = [1, 128], strides = [1, 1]} : vector<104x128xf32> to vector<1x128xf32>
    %834 = vector.broadcast %797 : vector<1x128xf32> to vector<96x128xf32>
    %835 = arith.mulf %3, %834 : vector<96x128xf32>
    %836 = arith.addf %835, %4 : vector<96x128xf32>
    %837 = vector.extract_strided_slice %836 {offsets = [0, 0], sizes = [32, 128], strides = [1, 1]} : vector<96x128xf32> to vector<32x128xf32>
    %838 = vector.extract_strided_slice %796 {offsets = [0, 0], sizes = [32, 128], strides = [1, 1]} : vector<96x128xf32> to vector<32x128xf32>
    %839 = arith.addf %837, %838 : vector<32x128xf32>
    %cst_203 = arith.constant 5.000000e-01 : f32
    %840 = vector.broadcast %cst_203 : f32 to vector<32x128xf32>
    %841 = arith.mulf %840, %839 : vector<32x128xf32>
    %842 = math.tanh %841 : vector<32x128xf32>
    %cst_204 = arith.constant 5.000000e-01 : f32
    %843 = vector.broadcast %cst_204 : f32 to vector<32x128xf32>
    %844 = arith.mulf %843, %842 : vector<32x128xf32>
    %cst_205 = arith.constant 5.000000e-01 : f32
    %845 = vector.broadcast %cst_205 : f32 to vector<32x128xf32>
    %846 = arith.addf %844, %845 : vector<32x128xf32>
    %847 = vector.extract_strided_slice %836 {offsets = [32, 0], sizes = [32, 128], strides = [1, 1]} : vector<96x128xf32> to vector<32x128xf32>
    %848 = vector.extract_strided_slice %796 {offsets = [32, 0], sizes = [32, 128], strides = [1, 1]} : vector<96x128xf32> to vector<32x128xf32>
    %849 = arith.addf %847, %848 : vector<32x128xf32>
    %cst_206 = arith.constant 5.000000e-01 : f32
    %850 = vector.broadcast %cst_206 : f32 to vector<32x128xf32>
    %851 = arith.mulf %850, %849 : vector<32x128xf32>
    %852 = math.tanh %851 : vector<32x128xf32>
    %cst_207 = arith.constant 5.000000e-01 : f32
    %853 = vector.broadcast %cst_207 : f32 to vector<32x128xf32>
    %854 = arith.mulf %853, %852 : vector<32x128xf32>
    %cst_208 = arith.constant 5.000000e-01 : f32
    %855 = vector.broadcast %cst_208 : f32 to vector<32x128xf32>
    %856 = arith.addf %854, %855 : vector<32x128xf32>
    %857 = vector.extract_strided_slice %836 {offsets = [64, 0], sizes = [32, 128], strides = [1, 1]} : vector<96x128xf32> to vector<32x128xf32>
    %858 = vector.extract_strided_slice %796 {offsets = [64, 0], sizes = [32, 128], strides = [1, 1]} : vector<96x128xf32> to vector<32x128xf32>
    %859 = arith.mulf %846, %858 : vector<32x128xf32>
    %860 = arith.addf %857, %859 : vector<32x128xf32>
    %861 = math.tanh %860 : vector<32x128xf32>
    %862 = arith.subf %792, %861 : vector<32x128xf32>
    %863 = arith.mulf %856, %862 : vector<32x128xf32>
    %864 = arith.addf %861, %863 : vector<32x128xf32>
    %865 = arith.truncf %864 : vector<32x128xf32> to vector<32x128xbf16>
    %cst_209 = arith.constant dense<0.000000e+00> : vector<104x128xf32>
    %866 = tpu.matmul %9, %865, %cst_209 {dimension_numbers = #tpu.dot_dimension_numbers<[1], [0], [0], [1], [0, 0, 1, 1], [], []>} : vector<104x32xbf16>, vector<32x128xbf16>, vector<104x128xf32> -> vector<104x128xf32>
    %867 = arith.addf %866, %5 : vector<104x128xf32>
    %868 = vector.extract_strided_slice %867 {offsets = [0, 0], sizes = [96, 128], strides = [1, 1]} : vector<104x128xf32> to vector<96x128xf32>
    %869 = vector.extract_strided_slice %867 {offsets = [96, 0], sizes = [1, 128], strides = [1, 1]} : vector<104x128xf32> to vector<1x128xf32>
    %870 = vector.broadcast %833 : vector<1x128xf32> to vector<96x128xf32>
    %871 = arith.mulf %3, %870 : vector<96x128xf32>
    %872 = arith.addf %871, %4 : vector<96x128xf32>
    %873 = vector.extract_strided_slice %872 {offsets = [0, 0], sizes = [32, 128], strides = [1, 1]} : vector<96x128xf32> to vector<32x128xf32>
    %874 = vector.extract_strided_slice %832 {offsets = [0, 0], sizes = [32, 128], strides = [1, 1]} : vector<96x128xf32> to vector<32x128xf32>
    %875 = arith.addf %873, %874 : vector<32x128xf32>
    %cst_210 = arith.constant 5.000000e-01 : f32
    %876 = vector.broadcast %cst_210 : f32 to vector<32x128xf32>
    %877 = arith.mulf %876, %875 : vector<32x128xf32>
    %878 = math.tanh %877 : vector<32x128xf32>
    %cst_211 = arith.constant 5.000000e-01 : f32
    %879 = vector.broadcast %cst_211 : f32 to vector<32x128xf32>
    %880 = arith.mulf %879, %878 : vector<32x128xf32>
    %cst_212 = arith.constant 5.000000e-01 : f32
    %881 = vector.broadcast %cst_212 : f32 to vector<32x128xf32>
    %882 = arith.addf %880, %881 : vector<32x128xf32>
    %883 = vector.extract_strided_slice %872 {offsets = [32, 0], sizes = [32, 128], strides = [1, 1]} : vector<96x128xf32> to vector<32x128xf32>
    %884 = vector.extract_strided_slice %832 {offsets = [32, 0], sizes = [32, 128], strides = [1, 1]} : vector<96x128xf32> to vector<32x128xf32>
    %885 = arith.addf %883, %884 : vector<32x128xf32>
    %cst_213 = arith.constant 5.000000e-01 : f32
    %886 = vector.broadcast %cst_213 : f32 to vector<32x128xf32>
    %887 = arith.mulf %886, %885 : vector<32x128xf32>
    %888 = math.tanh %887 : vector<32x128xf32>
    %cst_214 = arith.constant 5.000000e-01 : f32
    %889 = vector.broadcast %cst_214 : f32 to vector<32x128xf32>
    %890 = arith.mulf %889, %888 : vector<32x128xf32>
    %cst_215 = arith.constant 5.000000e-01 : f32
    %891 = vector.broadcast %cst_215 : f32 to vector<32x128xf32>
    %892 = arith.addf %890, %891 : vector<32x128xf32>
    %893 = vector.extract_strided_slice %872 {offsets = [64, 0], sizes = [32, 128], strides = [1, 1]} : vector<96x128xf32> to vector<32x128xf32>
    %894 = vector.extract_strided_slice %832 {offsets = [64, 0], sizes = [32, 128], strides = [1, 1]} : vector<96x128xf32> to vector<32x128xf32>
    %895 = arith.mulf %882, %894 : vector<32x128xf32>
    %896 = arith.addf %893, %895 : vector<32x128xf32>
    %897 = math.tanh %896 : vector<32x128xf32>
    %898 = arith.subf %828, %897 : vector<32x128xf32>
    %899 = arith.mulf %892, %898 : vector<32x128xf32>
    %900 = arith.addf %897, %899 : vector<32x128xf32>
    %901 = arith.truncf %900 : vector<32x128xf32> to vector<32x128xbf16>
    %cst_216 = arith.constant dense<0.000000e+00> : vector<104x128xf32>
    %902 = tpu.matmul %9, %901, %cst_216 {dimension_numbers = #tpu.dot_dimension_numbers<[1], [0], [0], [1], [0, 0, 1, 1], [], []>} : vector<104x32xbf16>, vector<32x128xbf16>, vector<104x128xf32> -> vector<104x128xf32>
    %903 = arith.addf %902, %5 : vector<104x128xf32>
    %904 = vector.extract_strided_slice %903 {offsets = [0, 0], sizes = [96, 128], strides = [1, 1]} : vector<104x128xf32> to vector<96x128xf32>
    %905 = vector.extract_strided_slice %903 {offsets = [96, 0], sizes = [1, 128], strides = [1, 1]} : vector<104x128xf32> to vector<1x128xf32>
    %906 = vector.broadcast %869 : vector<1x128xf32> to vector<96x128xf32>
    %907 = arith.mulf %3, %906 : vector<96x128xf32>
    %908 = arith.addf %907, %4 : vector<96x128xf32>
    %909 = vector.extract_strided_slice %908 {offsets = [0, 0], sizes = [32, 128], strides = [1, 1]} : vector<96x128xf32> to vector<32x128xf32>
    %910 = vector.extract_strided_slice %868 {offsets = [0, 0], sizes = [32, 128], strides = [1, 1]} : vector<96x128xf32> to vector<32x128xf32>
    %911 = arith.addf %909, %910 : vector<32x128xf32>
    %cst_217 = arith.constant 5.000000e-01 : f32
    %912 = vector.broadcast %cst_217 : f32 to vector<32x128xf32>
    %913 = arith.mulf %912, %911 : vector<32x128xf32>
    %914 = math.tanh %913 : vector<32x128xf32>
    %cst_218 = arith.constant 5.000000e-01 : f32
    %915 = vector.broadcast %cst_218 : f32 to vector<32x128xf32>
    %916 = arith.mulf %915, %914 : vector<32x128xf32>
    %cst_219 = arith.constant 5.000000e-01 : f32
    %917 = vector.broadcast %cst_219 : f32 to vector<32x128xf32>
    %918 = arith.addf %916, %917 : vector<32x128xf32>
    %919 = vector.extract_strided_slice %908 {offsets = [32, 0], sizes = [32, 128], strides = [1, 1]} : vector<96x128xf32> to vector<32x128xf32>
    %920 = vector.extract_strided_slice %868 {offsets = [32, 0], sizes = [32, 128], strides = [1, 1]} : vector<96x128xf32> to vector<32x128xf32>
    %921 = arith.addf %919, %920 : vector<32x128xf32>
    %cst_220 = arith.constant 5.000000e-01 : f32
    %922 = vector.broadcast %cst_220 : f32 to vector<32x128xf32>
    %923 = arith.mulf %922, %921 : vector<32x128xf32>
    %924 = math.tanh %923 : vector<32x128xf32>
    %cst_221 = arith.constant 5.000000e-01 : f32
    %925 = vector.broadcast %cst_221 : f32 to vector<32x128xf32>
    %926 = arith.mulf %925, %924 : vector<32x128xf32>
    %cst_222 = arith.constant 5.000000e-01 : f32
    %927 = vector.broadcast %cst_222 : f32 to vector<32x128xf32>
    %928 = arith.addf %926, %927 : vector<32x128xf32>
    %929 = vector.extract_strided_slice %908 {offsets = [64, 0], sizes = [32, 128], strides = [1, 1]} : vector<96x128xf32> to vector<32x128xf32>
    %930 = vector.extract_strided_slice %868 {offsets = [64, 0], sizes = [32, 128], strides = [1, 1]} : vector<96x128xf32> to vector<32x128xf32>
    %931 = arith.mulf %918, %930 : vector<32x128xf32>
    %932 = arith.addf %929, %931 : vector<32x128xf32>
    %933 = math.tanh %932 : vector<32x128xf32>
    %934 = arith.subf %864, %933 : vector<32x128xf32>
    %935 = arith.mulf %928, %934 : vector<32x128xf32>
    %936 = arith.addf %933, %935 : vector<32x128xf32>
    %937 = arith.truncf %936 : vector<32x128xf32> to vector<32x128xbf16>
    %cst_223 = arith.constant dense<0.000000e+00> : vector<104x128xf32>
    %938 = tpu.matmul %9, %937, %cst_223 {dimension_numbers = #tpu.dot_dimension_numbers<[1], [0], [0], [1], [0, 0, 1, 1], [], []>} : vector<104x32xbf16>, vector<32x128xbf16>, vector<104x128xf32> -> vector<104x128xf32>
    %939 = arith.addf %938, %5 : vector<104x128xf32>
    %940 = vector.extract_strided_slice %939 {offsets = [0, 0], sizes = [96, 128], strides = [1, 1]} : vector<104x128xf32> to vector<96x128xf32>
    %941 = vector.extract_strided_slice %939 {offsets = [96, 0], sizes = [1, 128], strides = [1, 1]} : vector<104x128xf32> to vector<1x128xf32>
    %942 = vector.broadcast %905 : vector<1x128xf32> to vector<96x128xf32>
    %943 = arith.mulf %3, %942 : vector<96x128xf32>
    %944 = arith.addf %943, %4 : vector<96x128xf32>
    %945 = vector.extract_strided_slice %944 {offsets = [0, 0], sizes = [32, 128], strides = [1, 1]} : vector<96x128xf32> to vector<32x128xf32>
    %946 = vector.extract_strided_slice %904 {offsets = [0, 0], sizes = [32, 128], strides = [1, 1]} : vector<96x128xf32> to vector<32x128xf32>
    %947 = arith.addf %945, %946 : vector<32x128xf32>
    %cst_224 = arith.constant 5.000000e-01 : f32
    %948 = vector.broadcast %cst_224 : f32 to vector<32x128xf32>
    %949 = arith.mulf %948, %947 : vector<32x128xf32>
    %950 = math.tanh %949 : vector<32x128xf32>
    %cst_225 = arith.constant 5.000000e-01 : f32
    %951 = vector.broadcast %cst_225 : f32 to vector<32x128xf32>
    %952 = arith.mulf %951, %950 : vector<32x128xf32>
    %cst_226 = arith.constant 5.000000e-01 : f32
    %953 = vector.broadcast %cst_226 : f32 to vector<32x128xf32>
    %954 = arith.addf %952, %953 : vector<32x128xf32>
    %955 = vector.extract_strided_slice %944 {offsets = [32, 0], sizes = [32, 128], strides = [1, 1]} : vector<96x128xf32> to vector<32x128xf32>
    %956 = vector.extract_strided_slice %904 {offsets = [32, 0], sizes = [32, 128], strides = [1, 1]} : vector<96x128xf32> to vector<32x128xf32>
    %957 = arith.addf %955, %956 : vector<32x128xf32>
    %cst_227 = arith.constant 5.000000e-01 : f32
    %958 = vector.broadcast %cst_227 : f32 to vector<32x128xf32>
    %959 = arith.mulf %958, %957 : vector<32x128xf32>
    %960 = math.tanh %959 : vector<32x128xf32>
    %cst_228 = arith.constant 5.000000e-01 : f32
    %961 = vector.broadcast %cst_228 : f32 to vector<32x128xf32>
    %962 = arith.mulf %961, %960 : vector<32x128xf32>
    %cst_229 = arith.constant 5.000000e-01 : f32
    %963 = vector.broadcast %cst_229 : f32 to vector<32x128xf32>
    %964 = arith.addf %962, %963 : vector<32x128xf32>
    %965 = vector.extract_strided_slice %944 {offsets = [64, 0], sizes = [32, 128], strides = [1, 1]} : vector<96x128xf32> to vector<32x128xf32>
    %966 = vector.extract_strided_slice %904 {offsets = [64, 0], sizes = [32, 128], strides = [1, 1]} : vector<96x128xf32> to vector<32x128xf32>
    %967 = arith.mulf %954, %966 : vector<32x128xf32>
    %968 = arith.addf %965, %967 : vector<32x128xf32>
    %969 = math.tanh %968 : vector<32x128xf32>
    %970 = arith.subf %900, %969 : vector<32x128xf32>
    %971 = arith.mulf %964, %970 : vector<32x128xf32>
    %972 = arith.addf %969, %971 : vector<32x128xf32>
    %973 = arith.truncf %972 : vector<32x128xf32> to vector<32x128xbf16>
    %cst_230 = arith.constant dense<0.000000e+00> : vector<104x128xf32>
    %974 = tpu.matmul %9, %973, %cst_230 {dimension_numbers = #tpu.dot_dimension_numbers<[1], [0], [0], [1], [0, 0, 1, 1], [], []>} : vector<104x32xbf16>, vector<32x128xbf16>, vector<104x128xf32> -> vector<104x128xf32>
    %975 = arith.addf %974, %5 : vector<104x128xf32>
    %976 = vector.extract_strided_slice %975 {offsets = [0, 0], sizes = [96, 128], strides = [1, 1]} : vector<104x128xf32> to vector<96x128xf32>
    %977 = vector.extract_strided_slice %975 {offsets = [96, 0], sizes = [1, 128], strides = [1, 1]} : vector<104x128xf32> to vector<1x128xf32>
    %978 = vector.broadcast %941 : vector<1x128xf32> to vector<96x128xf32>
    %979 = arith.mulf %3, %978 : vector<96x128xf32>
    %980 = arith.addf %979, %4 : vector<96x128xf32>
    %981 = vector.extract_strided_slice %980 {offsets = [0, 0], sizes = [32, 128], strides = [1, 1]} : vector<96x128xf32> to vector<32x128xf32>
    %982 = vector.extract_strided_slice %940 {offsets = [0, 0], sizes = [32, 128], strides = [1, 1]} : vector<96x128xf32> to vector<32x128xf32>
    %983 = arith.addf %981, %982 : vector<32x128xf32>
    %cst_231 = arith.constant 5.000000e-01 : f32
    %984 = vector.broadcast %cst_231 : f32 to vector<32x128xf32>
    %985 = arith.mulf %984, %983 : vector<32x128xf32>
    %986 = math.tanh %985 : vector<32x128xf32>
    %cst_232 = arith.constant 5.000000e-01 : f32
    %987 = vector.broadcast %cst_232 : f32 to vector<32x128xf32>
    %988 = arith.mulf %987, %986 : vector<32x128xf32>
    %cst_233 = arith.constant 5.000000e-01 : f32
    %989 = vector.broadcast %cst_233 : f32 to vector<32x128xf32>
    %990 = arith.addf %988, %989 : vector<32x128xf32>
    %991 = vector.extract_strided_slice %980 {offsets = [32, 0], sizes = [32, 128], strides = [1, 1]} : vector<96x128xf32> to vector<32x128xf32>
    %992 = vector.extract_strided_slice %940 {offsets = [32, 0], sizes = [32, 128], strides = [1, 1]} : vector<96x128xf32> to vector<32x128xf32>
    %993 = arith.addf %991, %992 : vector<32x128xf32>
    %cst_234 = arith.constant 5.000000e-01 : f32
    %994 = vector.broadcast %cst_234 : f32 to vector<32x128xf32>
    %995 = arith.mulf %994, %993 : vector<32x128xf32>
    %996 = math.tanh %995 : vector<32x128xf32>
    %cst_235 = arith.constant 5.000000e-01 : f32
    %997 = vector.broadcast %cst_235 : f32 to vector<32x128xf32>
    %998 = arith.mulf %997, %996 : vector<32x128xf32>
    %cst_236 = arith.constant 5.000000e-01 : f32
    %999 = vector.broadcast %cst_236 : f32 to vector<32x128xf32>
    %1000 = arith.addf %998, %999 : vector<32x128xf32>
    %1001 = vector.extract_strided_slice %980 {offsets = [64, 0], sizes = [32, 128], strides = [1, 1]} : vector<96x128xf32> to vector<32x128xf32>
    %1002 = vector.extract_strided_slice %940 {offsets = [64, 0], sizes = [32, 128], strides = [1, 1]} : vector<96x128xf32> to vector<32x128xf32>
    %1003 = arith.mulf %990, %1002 : vector<32x128xf32>
    %1004 = arith.addf %1001, %1003 : vector<32x128xf32>
    %1005 = math.tanh %1004 : vector<32x128xf32>
    %1006 = arith.subf %936, %1005 : vector<32x128xf32>
    %1007 = arith.mulf %1000, %1006 : vector<32x128xf32>
    %1008 = arith.addf %1005, %1007 : vector<32x128xf32>
    %1009 = arith.truncf %1008 : vector<32x128xf32> to vector<32x128xbf16>
    %cst_237 = arith.constant dense<0.000000e+00> : vector<104x128xf32>
    %1010 = tpu.matmul %9, %1009, %cst_237 {dimension_numbers = #tpu.dot_dimension_numbers<[1], [0], [0], [1], [0, 0, 1, 1], [], []>} : vector<104x32xbf16>, vector<32x128xbf16>, vector<104x128xf32> -> vector<104x128xf32>
    %1011 = arith.addf %1010, %5 : vector<104x128xf32>
    %1012 = vector.extract_strided_slice %1011 {offsets = [0, 0], sizes = [96, 128], strides = [1, 1]} : vector<104x128xf32> to vector<96x128xf32>
    %1013 = vector.extract_strided_slice %1011 {offsets = [96, 0], sizes = [1, 128], strides = [1, 1]} : vector<104x128xf32> to vector<1x128xf32>
    %1014 = vector.broadcast %977 : vector<1x128xf32> to vector<96x128xf32>
    %1015 = arith.mulf %3, %1014 : vector<96x128xf32>
    %1016 = arith.addf %1015, %4 : vector<96x128xf32>
    %1017 = vector.extract_strided_slice %1016 {offsets = [0, 0], sizes = [32, 128], strides = [1, 1]} : vector<96x128xf32> to vector<32x128xf32>
    %1018 = vector.extract_strided_slice %976 {offsets = [0, 0], sizes = [32, 128], strides = [1, 1]} : vector<96x128xf32> to vector<32x128xf32>
    %1019 = arith.addf %1017, %1018 : vector<32x128xf32>
    %cst_238 = arith.constant 5.000000e-01 : f32
    %1020 = vector.broadcast %cst_238 : f32 to vector<32x128xf32>
    %1021 = arith.mulf %1020, %1019 : vector<32x128xf32>
    %1022 = math.tanh %1021 : vector<32x128xf32>
    %cst_239 = arith.constant 5.000000e-01 : f32
    %1023 = vector.broadcast %cst_239 : f32 to vector<32x128xf32>
    %1024 = arith.mulf %1023, %1022 : vector<32x128xf32>
    %cst_240 = arith.constant 5.000000e-01 : f32
    %1025 = vector.broadcast %cst_240 : f32 to vector<32x128xf32>
    %1026 = arith.addf %1024, %1025 : vector<32x128xf32>
    %1027 = vector.extract_strided_slice %1016 {offsets = [32, 0], sizes = [32, 128], strides = [1, 1]} : vector<96x128xf32> to vector<32x128xf32>
    %1028 = vector.extract_strided_slice %976 {offsets = [32, 0], sizes = [32, 128], strides = [1, 1]} : vector<96x128xf32> to vector<32x128xf32>
    %1029 = arith.addf %1027, %1028 : vector<32x128xf32>
    %cst_241 = arith.constant 5.000000e-01 : f32
    %1030 = vector.broadcast %cst_241 : f32 to vector<32x128xf32>
    %1031 = arith.mulf %1030, %1029 : vector<32x128xf32>
    %1032 = math.tanh %1031 : vector<32x128xf32>
    %cst_242 = arith.constant 5.000000e-01 : f32
    %1033 = vector.broadcast %cst_242 : f32 to vector<32x128xf32>
    %1034 = arith.mulf %1033, %1032 : vector<32x128xf32>
    %cst_243 = arith.constant 5.000000e-01 : f32
    %1035 = vector.broadcast %cst_243 : f32 to vector<32x128xf32>
    %1036 = arith.addf %1034, %1035 : vector<32x128xf32>
    %1037 = vector.extract_strided_slice %1016 {offsets = [64, 0], sizes = [32, 128], strides = [1, 1]} : vector<96x128xf32> to vector<32x128xf32>
    %1038 = vector.extract_strided_slice %976 {offsets = [64, 0], sizes = [32, 128], strides = [1, 1]} : vector<96x128xf32> to vector<32x128xf32>
    %1039 = arith.mulf %1026, %1038 : vector<32x128xf32>
    %1040 = arith.addf %1037, %1039 : vector<32x128xf32>
    %1041 = math.tanh %1040 : vector<32x128xf32>
    %1042 = arith.subf %972, %1041 : vector<32x128xf32>
    %1043 = arith.mulf %1036, %1042 : vector<32x128xf32>
    %1044 = arith.addf %1041, %1043 : vector<32x128xf32>
    %1045 = arith.truncf %1044 : vector<32x128xf32> to vector<32x128xbf16>
    %cst_244 = arith.constant dense<0.000000e+00> : vector<104x128xf32>
    %1046 = tpu.matmul %9, %1045, %cst_244 {dimension_numbers = #tpu.dot_dimension_numbers<[1], [0], [0], [1], [0, 0, 1, 1], [], []>} : vector<104x32xbf16>, vector<32x128xbf16>, vector<104x128xf32> -> vector<104x128xf32>
    %1047 = arith.addf %1046, %5 : vector<104x128xf32>
    %1048 = vector.extract_strided_slice %1047 {offsets = [0, 0], sizes = [96, 128], strides = [1, 1]} : vector<104x128xf32> to vector<96x128xf32>
    %1049 = vector.extract_strided_slice %1047 {offsets = [96, 0], sizes = [1, 128], strides = [1, 1]} : vector<104x128xf32> to vector<1x128xf32>
    %1050 = vector.broadcast %1013 : vector<1x128xf32> to vector<96x128xf32>
    %1051 = arith.mulf %3, %1050 : vector<96x128xf32>
    %1052 = arith.addf %1051, %4 : vector<96x128xf32>
    %1053 = vector.extract_strided_slice %1052 {offsets = [0, 0], sizes = [32, 128], strides = [1, 1]} : vector<96x128xf32> to vector<32x128xf32>
    %1054 = vector.extract_strided_slice %1012 {offsets = [0, 0], sizes = [32, 128], strides = [1, 1]} : vector<96x128xf32> to vector<32x128xf32>
    %1055 = arith.addf %1053, %1054 : vector<32x128xf32>
    %cst_245 = arith.constant 5.000000e-01 : f32
    %1056 = vector.broadcast %cst_245 : f32 to vector<32x128xf32>
    %1057 = arith.mulf %1056, %1055 : vector<32x128xf32>
    %1058 = math.tanh %1057 : vector<32x128xf32>
    %cst_246 = arith.constant 5.000000e-01 : f32
    %1059 = vector.broadcast %cst_246 : f32 to vector<32x128xf32>
    %1060 = arith.mulf %1059, %1058 : vector<32x128xf32>
    %cst_247 = arith.constant 5.000000e-01 : f32
    %1061 = vector.broadcast %cst_247 : f32 to vector<32x128xf32>
    %1062 = arith.addf %1060, %1061 : vector<32x128xf32>
    %1063 = vector.extract_strided_slice %1052 {offsets = [32, 0], sizes = [32, 128], strides = [1, 1]} : vector<96x128xf32> to vector<32x128xf32>
    %1064 = vector.extract_strided_slice %1012 {offsets = [32, 0], sizes = [32, 128], strides = [1, 1]} : vector<96x128xf32> to vector<32x128xf32>
    %1065 = arith.addf %1063, %1064 : vector<32x128xf32>
    %cst_248 = arith.constant 5.000000e-01 : f32
    %1066 = vector.broadcast %cst_248 : f32 to vector<32x128xf32>
    %1067 = arith.mulf %1066, %1065 : vector<32x128xf32>
    %1068 = math.tanh %1067 : vector<32x128xf32>
    %cst_249 = arith.constant 5.000000e-01 : f32
    %1069 = vector.broadcast %cst_249 : f32 to vector<32x128xf32>
    %1070 = arith.mulf %1069, %1068 : vector<32x128xf32>
    %cst_250 = arith.constant 5.000000e-01 : f32
    %1071 = vector.broadcast %cst_250 : f32 to vector<32x128xf32>
    %1072 = arith.addf %1070, %1071 : vector<32x128xf32>
    %1073 = vector.extract_strided_slice %1052 {offsets = [64, 0], sizes = [32, 128], strides = [1, 1]} : vector<96x128xf32> to vector<32x128xf32>
    %1074 = vector.extract_strided_slice %1012 {offsets = [64, 0], sizes = [32, 128], strides = [1, 1]} : vector<96x128xf32> to vector<32x128xf32>
    %1075 = arith.mulf %1062, %1074 : vector<32x128xf32>
    %1076 = arith.addf %1073, %1075 : vector<32x128xf32>
    %1077 = math.tanh %1076 : vector<32x128xf32>
    %1078 = arith.subf %1008, %1077 : vector<32x128xf32>
    %1079 = arith.mulf %1072, %1078 : vector<32x128xf32>
    %1080 = arith.addf %1077, %1079 : vector<32x128xf32>
    %1081 = arith.truncf %1080 : vector<32x128xf32> to vector<32x128xbf16>
    %cst_251 = arith.constant dense<0.000000e+00> : vector<104x128xf32>
    %1082 = tpu.matmul %9, %1081, %cst_251 {dimension_numbers = #tpu.dot_dimension_numbers<[1], [0], [0], [1], [0, 0, 1, 1], [], []>} : vector<104x32xbf16>, vector<32x128xbf16>, vector<104x128xf32> -> vector<104x128xf32>
    %1083 = arith.addf %1082, %5 : vector<104x128xf32>
    %1084 = vector.extract_strided_slice %1083 {offsets = [0, 0], sizes = [96, 128], strides = [1, 1]} : vector<104x128xf32> to vector<96x128xf32>
    %1085 = vector.extract_strided_slice %1083 {offsets = [96, 0], sizes = [1, 128], strides = [1, 1]} : vector<104x128xf32> to vector<1x128xf32>
    %1086 = vector.broadcast %1049 : vector<1x128xf32> to vector<96x128xf32>
    %1087 = arith.mulf %3, %1086 : vector<96x128xf32>
    %1088 = arith.addf %1087, %4 : vector<96x128xf32>
    %1089 = vector.extract_strided_slice %1088 {offsets = [0, 0], sizes = [32, 128], strides = [1, 1]} : vector<96x128xf32> to vector<32x128xf32>
    %1090 = vector.extract_strided_slice %1048 {offsets = [0, 0], sizes = [32, 128], strides = [1, 1]} : vector<96x128xf32> to vector<32x128xf32>
    %1091 = arith.addf %1089, %1090 : vector<32x128xf32>
    %cst_252 = arith.constant 5.000000e-01 : f32
    %1092 = vector.broadcast %cst_252 : f32 to vector<32x128xf32>
    %1093 = arith.mulf %1092, %1091 : vector<32x128xf32>
    %1094 = math.tanh %1093 : vector<32x128xf32>
    %cst_253 = arith.constant 5.000000e-01 : f32
    %1095 = vector.broadcast %cst_253 : f32 to vector<32x128xf32>
    %1096 = arith.mulf %1095, %1094 : vector<32x128xf32>
    %cst_254 = arith.constant 5.000000e-01 : f32
    %1097 = vector.broadcast %cst_254 : f32 to vector<32x128xf32>
    %1098 = arith.addf %1096, %1097 : vector<32x128xf32>
    %1099 = vector.extract_strided_slice %1088 {offsets = [32, 0], sizes = [32, 128], strides = [1, 1]} : vector<96x128xf32> to vector<32x128xf32>
    %1100 = vector.extract_strided_slice %1048 {offsets = [32, 0], sizes = [32, 128], strides = [1, 1]} : vector<96x128xf32> to vector<32x128xf32>
    %1101 = arith.addf %1099, %1100 : vector<32x128xf32>
    %cst_255 = arith.constant 5.000000e-01 : f32
    %1102 = vector.broadcast %cst_255 : f32 to vector<32x128xf32>
    %1103 = arith.mulf %1102, %1101 : vector<32x128xf32>
    %1104 = math.tanh %1103 : vector<32x128xf32>
    %cst_256 = arith.constant 5.000000e-01 : f32
    %1105 = vector.broadcast %cst_256 : f32 to vector<32x128xf32>
    %1106 = arith.mulf %1105, %1104 : vector<32x128xf32>
    %cst_257 = arith.constant 5.000000e-01 : f32
    %1107 = vector.broadcast %cst_257 : f32 to vector<32x128xf32>
    %1108 = arith.addf %1106, %1107 : vector<32x128xf32>
    %1109 = vector.extract_strided_slice %1088 {offsets = [64, 0], sizes = [32, 128], strides = [1, 1]} : vector<96x128xf32> to vector<32x128xf32>
    %1110 = vector.extract_strided_slice %1048 {offsets = [64, 0], sizes = [32, 128], strides = [1, 1]} : vector<96x128xf32> to vector<32x128xf32>
    %1111 = arith.mulf %1098, %1110 : vector<32x128xf32>
    %1112 = arith.addf %1109, %1111 : vector<32x128xf32>
    %1113 = math.tanh %1112 : vector<32x128xf32>
    %1114 = arith.subf %1044, %1113 : vector<32x128xf32>
    %1115 = arith.mulf %1108, %1114 : vector<32x128xf32>
    %1116 = arith.addf %1113, %1115 : vector<32x128xf32>
    %1117 = arith.truncf %1116 : vector<32x128xf32> to vector<32x128xbf16>
    %cst_258 = arith.constant dense<0.000000e+00> : vector<104x128xf32>
    %1118 = tpu.matmul %9, %1117, %cst_258 {dimension_numbers = #tpu.dot_dimension_numbers<[1], [0], [0], [1], [0, 0, 1, 1], [], []>} : vector<104x32xbf16>, vector<32x128xbf16>, vector<104x128xf32> -> vector<104x128xf32>
    %1119 = arith.addf %1118, %5 : vector<104x128xf32>
    %1120 = vector.extract_strided_slice %1119 {offsets = [96, 0], sizes = [1, 128], strides = [1, 1]} : vector<104x128xf32> to vector<1x128xf32>
    %1121 = vector.broadcast %1085 : vector<1x128xf32> to vector<96x128xf32>
    %1122 = arith.mulf %3, %1121 : vector<96x128xf32>
    %1123 = arith.addf %1122, %4 : vector<96x128xf32>
    %1124 = vector.extract_strided_slice %1123 {offsets = [0, 0], sizes = [32, 128], strides = [1, 1]} : vector<96x128xf32> to vector<32x128xf32>
    %1125 = vector.extract_strided_slice %1084 {offsets = [0, 0], sizes = [32, 128], strides = [1, 1]} : vector<96x128xf32> to vector<32x128xf32>
    %1126 = arith.addf %1124, %1125 : vector<32x128xf32>
    %cst_259 = arith.constant 5.000000e-01 : f32
    %1127 = vector.broadcast %cst_259 : f32 to vector<32x128xf32>
    %1128 = arith.mulf %1127, %1126 : vector<32x128xf32>
    %1129 = math.tanh %1128 : vector<32x128xf32>
    %cst_260 = arith.constant 5.000000e-01 : f32
    %1130 = vector.broadcast %cst_260 : f32 to vector<32x128xf32>
    %1131 = arith.mulf %1130, %1129 : vector<32x128xf32>
    %cst_261 = arith.constant 5.000000e-01 : f32
    %1132 = vector.broadcast %cst_261 : f32 to vector<32x128xf32>
    %1133 = arith.addf %1131, %1132 : vector<32x128xf32>
    %1134 = vector.extract_strided_slice %1123 {offsets = [32, 0], sizes = [32, 128], strides = [1, 1]} : vector<96x128xf32> to vector<32x128xf32>
    %1135 = vector.extract_strided_slice %1084 {offsets = [32, 0], sizes = [32, 128], strides = [1, 1]} : vector<96x128xf32> to vector<32x128xf32>
    %1136 = arith.addf %1134, %1135 : vector<32x128xf32>
    %cst_262 = arith.constant 5.000000e-01 : f32
    %1137 = vector.broadcast %cst_262 : f32 to vector<32x128xf32>
    %1138 = arith.mulf %1137, %1136 : vector<32x128xf32>
    %1139 = math.tanh %1138 : vector<32x128xf32>
    %cst_263 = arith.constant 5.000000e-01 : f32
    %1140 = vector.broadcast %cst_263 : f32 to vector<32x128xf32>
    %1141 = arith.mulf %1140, %1139 : vector<32x128xf32>
    %cst_264 = arith.constant 5.000000e-01 : f32
    %1142 = vector.broadcast %cst_264 : f32 to vector<32x128xf32>
    %1143 = arith.addf %1141, %1142 : vector<32x128xf32>
    %1144 = vector.extract_strided_slice %1123 {offsets = [64, 0], sizes = [32, 128], strides = [1, 1]} : vector<96x128xf32> to vector<32x128xf32>
    %1145 = vector.extract_strided_slice %1084 {offsets = [64, 0], sizes = [32, 128], strides = [1, 1]} : vector<96x128xf32> to vector<32x128xf32>
    %1146 = arith.mulf %1133, %1145 : vector<32x128xf32>
    %1147 = arith.addf %1144, %1146 : vector<32x128xf32>
    %1148 = math.tanh %1147 : vector<32x128xf32>
    %1149 = arith.subf %1080, %1148 : vector<32x128xf32>
    %1150 = arith.mulf %1143, %1149 : vector<32x128xf32>
    %1151 = arith.addf %1148, %1150 : vector<32x128xf32>
    %1152 = arith.truncf %1151 : vector<32x128xf32> to vector<32x128xbf16>
    %cst_265 = arith.constant dense<0.000000e+00> : vector<104x128xf32>
    %1153 = tpu.matmul %9, %1152, %cst_265 {dimension_numbers = #tpu.dot_dimension_numbers<[1], [0], [0], [1], [0, 0, 1, 1], [], []>} : vector<104x32xbf16>, vector<32x128xbf16>, vector<104x128xf32> -> vector<104x128xf32>
    %1154 = arith.addf %1153, %5 : vector<104x128xf32>
    %1155 = vector.extract_strided_slice %1154 {offsets = [96, 0], sizes = [1, 128], strides = [1, 1]} : vector<104x128xf32> to vector<1x128xf32>
    %1156 = tpu.concatenate %617, %689, %761, %833, %905, %977, %1049, %1120 in 0 : vector<1x128xf32>, vector<1x128xf32>, vector<1x128xf32>, vector<1x128xf32>, vector<1x128xf32>, vector<1x128xf32>, vector<1x128xf32>, vector<1x128xf32> -> vector<8x128xf32>
    %c0_266 = arith.constant 0 : index
    %c0_267 = arith.constant 0 : index
    %1157 = vector.load %arg10[%c0_266, %c0_267] : memref<8x256xf32, #tpu.memory_space<vmem>>, vector<8x128xf32>
    tpu.vector_store %arg10[%c0_266, %c0_267], %1156 {strides = array<i32>} : memref<8x256xf32, #tpu.memory_space<vmem>>, vector<8x128xf32>,
    %1158 = tpu.concatenate %653, %725, %797, %869, %941, %1013, %1085, %1155 in 0 : vector<1x128xf32>, vector<1x128xf32>, vector<1x128xf32>, vector<1x128xf32>, vector<1x128xf32>, vector<1x128xf32>, vector<1x128xf32>, vector<1x128xf32> -> vector<8x128xf32>
    %c0_268 = arith.constant 0 : index
    %c128_269 = arith.constant 128 : index
    %1159 = vector.load %arg10[%c0_268, %c128_269] : memref<8x256xf32, #tpu.memory_space<vmem>>, vector<8x128xf32>
    tpu.vector_store %arg10[%c0_268, %c128_269], %1158 {strides = array<i32>} : memref<8x256xf32, #tpu.memory_space<vmem>>, vector<8x128xf32>,
    return
  }
  func.func @transform_0(%arg0: i32) -> (i32, i32) {
    %c0_i32 = arith.constant 0 : i32
    %c0_i32_0 = arith.constant 0 : i32
    return %c0_i32, %arg0 : i32, i32
  }
  func.func @transform_1(%arg0: i32) -> (i32, i32) {
    %c0_i32 = arith.constant 0 : i32
    %c0_i32_0 = arith.constant 0 : i32
    %c0_i32_1 = arith.constant 0 : i32
    return %c0_i32, %c0_i32_0 : i32, i32
  }
  func.func @transform_2(%arg0: i32) -> (i32, i32) {
    %c0_i32 = arith.constant 0 : i32
    %c0_i32_0 = arith.constant 0 : i32
    %c0_i32_1 = arith.constant 0 : i32
    return %c0_i32, %c0_i32_0 : i32, i32
  }
  func.func @transform_3(%arg0: i32) -> (i32, i32) {
    %c0_i32 = arith.constant 0 : i32
    %c0_i32_0 = arith.constant 0 : i32
    %c0_i32_1 = arith.constant 0 : i32
    return %c0_i32, %c0_i32_0 : i32, i32
  }
  func.func @transform_4(%arg0: i32) -> (i32, i32) {
    %c0_i32 = arith.constant 0 : i32
    %c0_i32_0 = arith.constant 0 : i32
    %c0_i32_1 = arith.constant 0 : i32
    return %c0_i32, %c0_i32_0 : i32, i32
  }
  func.func @transform_5(%arg0: i32) -> (i32, i32) {
    %c0_i32 = arith.constant 0 : i32
    %c0_i32_0 = arith.constant 0 : i32
    %c0_i32_1 = arith.constant 0 : i32
    return %c0_i32, %c0_i32_0 : i32, i32
  }
  func.func @transform_6(%arg0: i32) -> (i32, i32) {
    %c0_i32 = arith.constant 0 : i32
    %c0_i32_0 = arith.constant 0 : i32
    %c0_i32_1 = arith.constant 0 : i32
    return %c0_i32, %c0_i32_0 : i32, i32
  }
  func.func @transform_7(%arg0: i32) -> (i32, i32) {
    %c0_i32 = arith.constant 0 : i32
    %c0_i32_0 = arith.constant 0 : i32
    %c0_i32_1 = arith.constant 0 : i32
    return %c0_i32, %c0_i32_0 : i32, i32
  }
  func.func @transform_8(%arg0: i32) -> (i32, i32) {
    %c0_i32 = arith.constant 0 : i32
    %c0_i32_0 = arith.constant 0 : i32
    %c0_i32_1 = arith.constant 0 : i32
    return %c0_i32, %c0_i32_0 : i32, i32
  }
  func.func @transform_9(%arg0: i32) -> (i32, i32) {
    %c0_i32 = arith.constant 0 : i32
    %c0_i32_0 = arith.constant 0 : i32
    return %c0_i32, %arg0 : i32, i32
  }
}

</mosaic_0001>

<bundles_post_ra>
// kernel: tpu_custom_call.1
= control target key start
LH: loop header
LB: loop body
LE: loop exit
PB: predicated region body
PF: predicated region fallthrough
CT: control target
= control target key end

     0   :  { %14 = vsyncpa [#allocation3], 0  ;;  %s12949_s0 = inlined_call_operand.hbm [shape: f32[8,256], index: 0, kind: input, shape index: {}]   ;;  %s12950_s1 = inlined_call_operand.vmem [shape: f32[96,128], index: 1, kind: input, shape index: {}]   ;;  %s12951_s2 = inlined_call_operand.hbm [shape: f32[96,128], index: 2, kind: input, shape index: {}]   ;;  %s12952_s3 = inlined_call_operand.vmem [shape: f32[96,32], index: 3, kind: input, shape index: {}]   ;;  %s12953_s4 = inlined_call_operand.vmem [shape: f32[32,128], index: 4, kind: input, shape index: {}]   ;;  %s12954_s5 = inlined_call_operand.hbm [shape: f32[96,128], index: 5, kind: input, shape index: {}]   ;;  %s12955_s6 = inlined_call_operand.hbm [shape: f32[96,128], index: 6, kind: input, shape index: {}]   ;;  %s12956_s7 = inlined_call_operand.vmem [shape: f32[104,32], index: 7, kind: input, shape index: {}]   ;;  %s12957_s8 = inlined_call_operand.vmem [shape: f32[104,128], index: 8, kind: input, shape index: {}]   ;;  %s12958_s9 = inlined_call_operand.hbm [shape: f32[8,256], index: 9, kind: output, shape index: {}]  }
   0x1   :  { %15 = vsyncpa [#allocation6], 0 }
   0x2   :  { %16 = vsyncpa [#allocation9], 0 }
   0x3   :  { %17 = vsyncpa [#allocation4], 0  ;;  %s8512_s30 = smov [#allocation5]   ;;  %s8394_s13 = scalar_lea.hbm %s12951_s2, 1536 }
   0x4   :  { %s35_s10 = sshll.u32 %s8512_s30, 4  ;;  %p8395_p0 = scmp.ne.s32.totalorder %s12951_s2, %s8394_s13  ;;  %s36_s10 = int_to_ptr.vmem [resolvable:$true] %s35_s10 }
   0x5   :  { %p8398_p1 = scmp.lt.u32.totalorder %s8394_s13, %s12951_s2 }
   0x7   :  { %p8400_p2 = pnand %p8398_p1, %p8395_p0 }
   0x9   :  { %8403 = shalt.err (!%p8400_p2)
}
   0xa   :  { %s8404_s18 = scalar_lea.vmem %s36_s10, 1536  ;;  %p8409_p4 = scmp.lt.s32.totalorder %s36_s10, %s36_s10 }
   0xb   :  { %p8405_p3 = scmp.ne.s32.totalorder %s36_s10, %s8404_s18  ;;  %p8410_p5 = scmp.lt.s32.totalorder %s8404_s18, %s8404_s18 }
   0xd   :  { %p8411_p6 = por %p8410_p5, %p8409_p4 }
   0xf   :  { %p8412_p7 = pnand %p8411_p6, %p8405_p3 }
  0x11   :  { %8415 = shalt.err (!%p8412_p7)
}
  0x12   :  { %s8513_s19 = smov 128   ;;  %s8514_s20 = smov 8  }
  0x13   :  { %41 = dma.hbm_to_vmem [thread:$0]  %s12951_s2, 1536, %s36_s10, [#allocation6], %s8513_s19, %s8513_s19, %s8514_s20  }
  0x14   :  { %s8515_s23 = smov [#allocation2]   ;;  %s8516_s25 = smov [#allocation7]  }
  0x15   :  { %s24_s24 = sshll.u32 %s8515_s23, 4  ;;  %s51_s26 = sshll.u32 %s8516_s25, 4  ;;  %s25_s24 = int_to_ptr.vmem [resolvable:$true] %s24_s24  ;;  %s52_s26 = int_to_ptr.vmem [resolvable:$true] %s51_s26 }
  0x16   :  { %s8416_s29 = scalar_lea.hbm %s12949_s0, 256 }
  0x17   :  { %p8417_p8 = scmp.ne.s32.totalorder %s12949_s0, %s8416_s29  ;;  %p8420_p9 = scmp.lt.u32.totalorder %s8416_s29, %s12949_s0 }
  0x19   :  { %p8422_p10 = pnand %p8420_p9, %p8417_p8 }
  0x1b   :  { %8425 = shalt.err (!%p8422_p10)
}
  0x1c   :  { %s8426_s2 = scalar_lea.vmem %s25_s24, 256  ;;  %p8431_p12 = scmp.lt.s32.totalorder %s25_s24, %s25_s24 }
  0x1d   :  { %p8427_p11 = scmp.ne.s32.totalorder %s25_s24, %s8426_s2  ;;  %p8432_p13 = scmp.lt.s32.totalorder %s8426_s2, %s8426_s2 }
  0x1f   :  { %p8433_p0 = por %p8432_p13, %p8431_p12 }
  0x21   :  { %p8434_p1 = pnand %p8433_p0, %p8427_p11 }
  0x23   :  { %8437 = shalt.err (!%p8434_p1)
}
  0x24   :  { %27 = dma.hbm_to_vmem [thread:$0]  %s12949_s0, 256, %s25_s24, [#allocation3]  }
  0x25   :  { %s8438_s17 = scalar_lea.hbm %s12954_s5, 1536 }
  0x26   :  { %p8439_p2 = scmp.ne.s32.totalorder %s12954_s5, %s8438_s17  ;;  %p8442_p3 = scmp.lt.u32.totalorder %s8438_s17, %s12954_s5 }
  0x28   :  { %p8444_p4 = pnand %p8442_p3, %p8439_p2 }
  0x2a   :  { %8447 = shalt.err (!%p8444_p4)
}
  0x2b   :  { %s8448_s25 = scalar_lea.vmem %s52_s26, 1536  ;;  %p8453_p6 = scmp.lt.s32.totalorder %s52_s26, %s52_s26 }
  0x2c   :  { %p8449_p5 = scmp.ne.s32.totalorder %s52_s26, %s8448_s25  ;;  %p8454_p7 = scmp.lt.s32.totalorder %s8448_s25, %s8448_s25 }
  0x2e   :  { %p8455_p8 = por %p8454_p7, %p8453_p6 }
  0x30   :  { %p8456_p9 = pnand %p8455_p8, %p8449_p5 }
  0x32   :  { %8459 = shalt.err (!%p8456_p9)
}
  0x33   :  { %57 = dma.hbm_to_vmem [thread:$0]  %s12954_s5, 1536, %s52_s26, [#allocation6], %s8513_s19, %s8513_s19, %s8514_s20  }
  0x34   :  { %s8517_s27 = smov [#allocation8]   ;;  %s8460_s11 = scalar_lea.hbm %s12955_s6, 1536 }
  0x35   :  { %s63_s28 = sshll.u32 %s8517_s27, 4  ;;  %p8461_p10 = scmp.ne.s32.totalorder %s12955_s6, %s8460_s11  ;;  %s64_s28 = int_to_ptr.vmem [resolvable:$true] %s63_s28 }
  0x36   :  { %p8464_p11 = scmp.lt.u32.totalorder %s8460_s11, %s12955_s6 }
  0x38   :  { %p8466_p12 = pnand %p8464_p11, %p8461_p10 }
  0x3a   :  { %8469 = shalt.err (!%p8466_p12)
}
  0x3b   :  { %s8470_s14 = scalar_lea.vmem %s64_s28, 1536  ;;  %p8475_p0 = scmp.lt.s32.totalorder %s64_s28, %s64_s28 }
  0x3c   :  { %p8471_p13 = scmp.ne.s32.totalorder %s64_s28, %s8470_s14  ;;  %p8476_p1 = scmp.lt.s32.totalorder %s8470_s14, %s8470_s14 }
  0x3e   :  { %p8477_p2 = por %p8476_p1, %p8475_p0 }
  0x40   :  { %p8478_p3 = pnand %p8477_p2, %p8471_p13 }
  0x42   :  { %8481 = shalt.err (!%p8478_p3)
}
  0x43   :  { %69 = dma.hbm_to_vmem [thread:$0]  %s12955_s6, 1536, %s64_s28, [#allocation9], %s8513_s19, %s8513_s19, %s8514_s20  }
  0x44   :  { %8504 = dma.done.wait [#allocation3], 256  }
  0x45   :  { %8505 = vsyncadd [#allocation3], 4294967040 }
  0x46   :  { %8506 = dma.done.wait [#allocation6], 3072  }
  0x47   :  { %8507 = vsyncadd [#allocation6], 4294964224 }
  0x48   :  { %8508 = dma.done.wait [#allocation9], 1536  }
  0x49   :  { %8509 = vsyncadd [#allocation9], 4294965760  ;;  %v8518_v0 = vmov 0   ;;  %v152_v1 = vld [vmem:[%s12952_s3] sm:$0xff]  ;;  %v153_v2 = vld [vmem:[%s12952_s3 + $0x8] sm:$0xff]  ;;  %vm215_vm0 = vcmask 261120  }
  0x4a   :  { %6604 = vmatprep.subr.bf16.mxu0 %v8518_v0  ;;  %7418 = vmatprep.subr.bf16.mxu1 %v8518_v0  ;;  %v154_v3 = vld [vmem:[%s12952_s3 + $0x10] sm:$0xff]  ;;  %v8638_v4 = vpack.c.bf16 %v153_v2, %v152_v1  ;;  %v155_v5 = vld [vmem:[%s12952_s3 + $0x18] sm:$0xff]  ;;  %v156_v6 = vld [vmem:[%s12952_s3 + $0x20] sm:$0xff]  ;;  %vm8520_vm1 = vmmov 0   ;;  %vm6046_vm2 = vcmask 1040384   ;;  %vm6048_vm3 = vcmask 1041408  }
  0x4b   :  { %6605 = vmatpush3.bf16.msra.mxu0 %v8518_v0  ;;  %7419 = vmatpush3.bf16.msra.mxu1 %v8518_v0  ;;  %v157_v7 = vld [vmem:[%s12952_s3 + $0x28] sm:$0xff]  ;;  %v8649_v8 = vpack.c.bf16 %v155_v5, %v154_v3  ;;  %v158_v10 = vld [vmem:[%s12952_s3 + $0x30] sm:$0xff]  ;;  %v159_v11 = vld [vmem:[%s12952_s3 + $0x38] sm:$0xff]  ;;  %vm6050_vm4 = vcmask 1042432   ;;  %vm6052_vm5 = vcmask 1043456   ;;  %vm6054_vm6 = vcmask 1044480  }
  0x4c   :  { %v8651_v9 = vpack.c.bf16 %v157_v7, %v156_v6  ;;  %v160_v12 = vld [vmem:[%s12952_s3 + $0x40] sm:$0xff]  ;;  %6606 = vmatprep.mubr.msk.bf16.mxu0 %vm215_vm0, %v8638_v4  ;;  %v8664_v13 = vpack.c.bf16 %v159_v11, %v158_v10  ;;  %v161_v14 = vld [vmem:[%s12952_s3 + $0x48] sm:$0xff]  ;;  %v162_v16 = vld [vmem:[%s12952_s3 + $0x50] sm:$0xff]  ;;  %vm6056_vm7 = vcmask 1045504   ;;  %vm6058_vm8 = vcmask 1046528  }
  0x4d   :  { %v8673_v15 = vpack.c.bf16 %v161_v14, %v160_v12  ;;  %v163_v17 = vld [vmem:[%s12952_s3 + $0x58] sm:$0xff]  ;;  %v8696_v19 = vld [vmem:[%s12950_s1 + $0x10] sm:$0xff]  ;;  %v8698_v20 = vld [vmem:[#allocation2] ss:$0 sm:$0xff] }
  0x4e   :  { %6607 = vmatmul.mubr.msk.bf16.vlgmr.msra.gmra.mrb[0].mxu0 %vm215_vm0, %v8649_v8  ;;  %6610 = vmatprep.mubr.msk.bf16.mxu1 %vm215_vm0, %v8651_v9  ;;  %v8687_v18 = vpack.c.bf16 %v163_v17, %v162_v16  ;;  %v8700_v21 = vld [vmem:[#allocation2 + $0x8] ss:$0 sm:$0xff]  ;;  %v8705_v22 = vld [vmem:[%s12950_s1] sm:$0xff]  ;;  %v8710_v23 = vld [vmem:[%s12950_s1 + $0x18] sm:$0xff]  ;;  %v193_v25 = vmul.f32 %v8698_v20, %v8696_v19 }
  0x4f   :  { %6611 = vmatmul.mubr.msk.bf16.vlgmr.msra.gmra.mrb[0].mxu1 %vm215_vm0, %v8664_v13  ;;  %6638 = vmatprep.mubr.msk.bf16.mxu0 %vm215_vm0, %v8638_v4  ;;  %v8715_v24 = vld [vmem:[%s12950_s1 + $0x8] sm:$0xff]  ;;  %v386_v26 = vmul.f32 %v8700_v21, %v8696_v19  ;;  %v8724_v27 = vld [vmem:[%s12950_s1 + $0x30] sm:$0xff]  ;;  %v8726_v28 = vld [vmem:[#allocation5 + $0x10] sm:$0xff]  ;;  %v191_v29 = vmul.f32 %v8698_v20, %v8705_v22  ;;  %v384_v30 = vmul.f32 %v8700_v21, %v8705_v22 }
  0x50   :  { %6614 = vmatprep.mubr.msk.bf16.mxu1 %vm215_vm0, %v8673_v15  ;;  %v8735_v31 = vld [vmem:[%s12950_s1 + $0x20] sm:$0xff]  ;;  %v8737_v32 = vld [vmem:[#allocation5] sm:$0xff]  ;;  %v194_v33 = vmul.f32 %v8698_v20, %v8710_v23  ;;  %v387_v34 = vmul.f32 %v8700_v21, %v8710_v23  ;;  %v192_v35 = vmul.f32 %v8698_v20, %v8715_v24  ;;  %v385_v36 = vmul.f32 %v8700_v21, %v8715_v24  ;;  %v8750_v37 = vld [vmem:[%s12950_s1 + $0x38] sm:$0xff] }
  0x51   :  { %v8752_v38 = vld [vmem:[#allocation5 + $0x18] sm:$0xff]  ;;  %v8754_v39 = vld [vmem:[#allocation5 + $0x8] sm:$0xff]  ;;  %v197_v40 = vmul.f32 %v8698_v20, %v8724_v27  ;;  %v205_v41 = vadd.f32 %v193_v25, %v8726_v28  ;;  %v398_v42 = vadd.f32 %v386_v26, %v8726_v28  ;;  %v8760_v43 = vld [vmem:[#allocation5 + $0x30] sm:$0xff]  ;;  %v390_v44 = vmul.f32 %v8700_v21, %v8724_v27 }
  0x52   :  { %v195_v45 = vmul.f32 %v8698_v20, %v8735_v31  ;;  %v8769_v46 = vld [vmem:[%s12950_s1 + $0x28] sm:$0xff]  ;;  %v203_v47 = vadd.f32 %v191_v29, %v8737_v32  ;;  %v396_v48 = vadd.f32 %v384_v30, %v8737_v32  ;;  %v8773_v49 = vld [vmem:[#allocation5 + $0x20] sm:$0xff]  ;;  %v388_v50 = vmul.f32 %v8700_v21, %v8735_v31  ;;  %v8796_v14 = vld [vmem:[#allocation5 + $0x28] sm:$0xff] }
  0x53   :  { %v198_v51 = vmul.f32 %v8698_v20, %v8750_v37  ;;  %v206_v52 = vadd.f32 %v194_v33, %v8752_v38  ;;  %v399_v53 = vadd.f32 %v387_v34, %v8752_v38  ;;  %v204_v54 = vadd.f32 %v192_v35, %v8754_v39  ;;  %v8783_v56 = vld [vmem:[#allocation5 + $0x38] sm:$0xff]  ;;  %v8801_v33 = vld [vmem:[%s12950_s1 + $0x50] sm:$0xff] }
  0x54   :  { %v397_v55 = vadd.f32 %v385_v36, %v8754_v39  ;;  %v209_v58 = vadd.f32 %v197_v40, %v8760_v43  ;;  %v391_v59 = vmul.f32 %v8700_v21, %v8750_v37  ;;  %v196_v60 = vmul.f32 %v8698_v20, %v8769_v46 }
  0x55   :  { %v389_v61 = vmul.f32 %v8700_v21, %v8769_v46  ;;  %v402_v2 = vadd.f32 %v390_v44, %v8760_v43  ;;  %v207_v3 = vadd.f32 %v195_v45, %v8773_v49  ;;  %v400_v11 = vadd.f32 %v388_v50, %v8773_v49 }
  0x56   :  { %v210_v12 = vadd.f32 %v198_v51, %v8783_v56  ;;  %v403_v44 = vadd.f32 %v391_v59, %v8783_v56  ;;  %v208_v45 = vadd.f32 %v196_v60, %v8796_v14  ;;  %v201_v50 = vmul.f32 %v8698_v20, %v8801_v33  ;;  %v8810_v51 = vld [vmem:[%s12950_s1 + $0x40] sm:$0xff]  ;;  %v8820_v60 = vld [vmem:[%s12950_s1 + $0x58] sm:$0xff] }
  0x57   :  { %6615 = vmatmul.mubr.msk.bf16.gmra.mrb[4].mxu1 %vm215_vm0, %v8687_v18 }
  0x58   :  { %6622 = vmatprep.mubr.msk.bf16.mxu1 %vm215_vm0, %v8638_v4 }
 0x121   :  { %v6608_v57 = vpop.f32.mrb[0].mxu0 }
 0x122   :  { %v317_v62 = vadd.f32 %v6608_v57, %v205_v41  ;;  %v410_v63 = vadd.f32 %v6608_v57, %v398_v42  ;;  %v268_v0 = vpop.f32.mrb[1].mxu0  ;;  %v6612_v1 = vpop.f32.mrb[0].mxu1 }
 0x123   :  { %v315_v5 = vadd.f32 %v268_v0, %v203_v47  ;;  %v408_v6 = vadd.f32 %v396_v48, %v268_v0  ;;  %v6609_v7 = vpop.f32.mrb[2].mxu0  ;;  %v284_v10 = vpop.f32.mrb[1].mxu1  ;;  %v337_v48 = vadd.f32 %v6612_v1, %v209_v58  ;;  %v394_v58 = vmul.f32 %v8700_v21, %v8801_v33 }
 0x124   :  { %v321_v16 = vmul.f32 0.5, %v317_v62  ;;  %v414_v17 = vmul.f32 0.5, %v410_v63  ;;  %v318_v25 = vadd.f32 %v6609_v7, %v206_v52  ;;  %v411_v26 = vadd.f32 %v6609_v7, %v399_v53  ;;  %v271_v29 = vpop.f32.mrb[3].mxu0  ;;  %v6613_v30 = vpop.f32.mrb[2].mxu1 }
 0x125   :  { %v319_v34 = vmul.f32 0.5, %v315_v5  ;;  %v412_v35 = vmul.f32 0.5, %v408_v6  ;;  %v316_v36 = vadd.f32 %v271_v29, %v204_v54  ;;  %v409_v40 = vadd.f32 %v397_v55, %v271_v29  ;;  %v287_v41 = vpop.f32.mrb[3].mxu1  ;;  %v8813_v55 = vld [vmem:[#allocation5 + $0x50] sm:$0xff]  ;;  %v8827_v5 = vld [vmem:[#allocation5 + $0x40] sm:$0xff]  ;;  %v8837_v29 = vld [vmem:[#allocation5 + $0x58] sm:$0xff] }
 0x126   :  { %7430 = vtanh.f32 %v321_v16  ;;  %v322_v42 = vmul.f32 0.5, %v318_v25  ;;  %v415_v47 = vmul.f32 0.5, %v411_v26  ;;  %v430_v53 = vadd.f32 %v6612_v1, %v402_v2  ;;  %13324 = vst [vmem:[#allocation16_spill] sm:$0xff] %v8837_v29 }
 0x127   :  { %7432 = vtanh.f32 %v414_v17  ;;  %v320_v52 = vmul.f32 0.5, %v316_v36  ;;  %v401_v54 = vadd.f32 %v389_v61, %v8796_v14  ;;  %v413_v57 = vmul.f32 0.5, %v409_v40  ;;  %v8834_v17 = vld [vmem:[%s12950_s1 + $0x48] sm:$0xff]  ;;  %v8844_v36 = vld [vmem:[%s12953_s4 + $0x10] sm:$0xff] }
 0x128   :  { %7434 = vtanh.f32 %v319_v34  ;;  %v335_v59 = vadd.f32 %v284_v10, %v207_v3  ;;  %v428_v62 = vadd.f32 %v400_v11, %v284_v10  ;;  %v199_v0 = vmul.f32 %v8698_v20, %v8810_v51  ;;  %13323 = vst [vmem:[#allocation15_spill] sm:$0xff] %v8834_v17  ;;  %13325 = vst [vmem:[#allocation17_spill] sm:$0xff] %v8844_v36 }
 0x129   :  { %7436 = vtanh.f32 %v412_v35  ;;  %v392_v61 = vmul.f32 %v8700_v21, %v8810_v51  ;;  %v341_v1 = vmul.f32 0.5, %v337_v48  ;;  %v338_v2 = vadd.f32 %v6613_v30, %v210_v12 }
 0x12a   :  { %7438 = vtanh.f32 %v322_v42  ;;  %v6616_v63 = vpop.f32.mrb[4].mxu1  ;;  %v213_v3 = vadd.f32 %v201_v50, %v8813_v55  ;;  %v434_v7 = vmul.f32 0.5, %v430_v53  ;;  %v431_v16 = vadd.f32 %v6613_v30, %v403_v44  ;;  %v8855_v50 = vld [vmem:[%s12953_s4] sm:$0xff] }
 0x12b   :  { %7440 = vtanh.f32 %v415_v47  ;;  %v300_v6 = vpop.f32.mrb[5].mxu1  ;;  %v202_v10 = vmul.f32 %v8698_v20, %v8820_v60  ;;  %v339_v25 = vmul.f32 0.5, %v335_v59  ;;  %v336_v12 = vadd.f32 %v287_v41, %v208_v45  ;;  %13326 = vst [vmem:[#allocation18_spill] sm:$0xff] %v8855_v50 }
 0x12c   :  { %7442 = vtanh.f32 %v320_v52  ;;  %v6617_v11 = vpop.f32.mrb[6].mxu1  ;;  %v406_v26 = vadd.f32 %v394_v58, %v8813_v55  ;;  %v432_v35 = vmul.f32 0.5, %v428_v62  ;;  %v429_v30 = vadd.f32 %v401_v54, %v287_v41 }
 0x12d   :  { %7444 = vtanh.f32 %v413_v57  ;;  %v8839_v34 = vpop.f32.mrb[7].mxu1  ;;  %v211_v40 = vadd.f32 %v199_v0, %v8827_v5  ;;  %v395_v42 = vmul.f32 %v8700_v21, %v8820_v60  ;;  %v342_v44 = vmul.f32 0.5, %v338_v2 }
 0x12e   :  { %7446 = vtanh.f32 %v341_v1  ;;  %v404_v45 = vadd.f32 %v392_v61, %v8827_v5  ;;  %v200_v47 = vmul.f32 %v8698_v20, %v8834_v17  ;;  %v435_v41 = vmul.f32 0.5, %v431_v16  ;;  %v8864_v20 = vld [vmem:[%s12953_s4 + $0x18] sm:$0xff] }
 0x12f   :  { %7448 = vtanh.f32 %v434_v7  ;;  %v214_v52 = vadd.f32 %v202_v10, %v8837_v29  ;;  %v393_v53 = vmul.f32 %v8700_v21, %v8834_v17  ;;  %v340_v57 = vmul.f32 0.5, %v336_v12 }
 0x130   :  { %v7431_v48 = vpop.eup %7430  ;;  %7450 = vtanh.f32 %v339_v25  ;;  %v357_v58 = vadd.f32 %v6616_v63, %v8844_v36  ;;  %v433_v0 = vmul.f32 0.5, %v429_v30  ;;  %v407_v1 = vadd.f32 %v395_v42, %v8837_v29 }
 0x131   :  { %v7433_v54 = vpop.eup %7432  ;;  %v329_v59 = vmul.f32 0.5, %v7431_v48  ;;  %7452 = vtanh.f32 %v432_v35  ;;  %v355_v16 = vadd.f32 %v300_v6, %v8855_v50  ;;  %v358_v12 = vadd.f32 %v6617_v11, %v8864_v20  ;;  %v8869_v50 = vld [vmem:[#allocation5 + $0x48] sm:$0xff] }
 0x132   :  { %v7435_v62 = vpop.eup %7434  ;;  %v422_v61 = vmul.f32 0.5, %v7433_v54  ;;  %7454 = vtanh.f32 %v342_v44 }
 0x133   :  { %v7437_v2 = vpop.eup %7436  ;;  %v333_v21 = vadd.f32 0.5, %v329_v59  ;;  %v327_v7 = vmul.f32 0.5, %v7435_v62  ;;  %7456 = vtanh.f32 %v435_v41 }
 0x134   :  { %v7439_v10 = vpop.eup %7438  ;;  %v426_v63 = vadd.f32 0.5, %v422_v61  ;;  %v420_v25 = vmul.f32 0.5, %v7437_v2  ;;  %7458 = vtanh.f32 %v340_v57  ;;  %v8874_v57 = vld [vmem:[%s12953_s4 + $0x8] sm:$0xff] }
 0x135   :  { %v7441_v48 = vpop.eup %7440  ;;  %v361_v17 = vmul.f32 %v357_v58, %v333_v21  ;;  %v331_v35 = vadd.f32 0.5, %v327_v7  ;;  %v330_v30 = vmul.f32 0.5, %v7439_v10  ;;  %7460 = vtanh.f32 %v433_v0 }
 0x136   :  { %v7443_v54 = vpop.eup %7442  ;;  %v450_v42 = vmul.f32 %v426_v63, %v357_v58  ;;  %v424_v36 = vadd.f32 0.5, %v420_v25  ;;  %v423_v44 = vmul.f32 0.5, %v7441_v48  ;;  %v212_v63 = vadd.f32 %v200_v47, %v8869_v50 }
 0x137   :  { %v7445_v59 = vpop.eup %7444  ;;  %v365_v62 = vadd.f32 %v361_v17, %v213_v3  ;;  %v359_v29 = vmul.f32 %v355_v16, %v331_v35  ;;  %v334_v6 = vadd.f32 0.5, %v330_v30  ;;  %v328_v41 = vmul.f32 0.5, %v7443_v54 }
 0x138   :  { %v454_v61 = vadd.f32 %v450_v42, %v406_v26  ;;  %v448_v2 = vmul.f32 %v424_v36, %v355_v16  ;;  %v427_v11 = vadd.f32 0.5, %v423_v44  ;;  %v421_v21 = vmul.f32 0.5, %v7445_v59  ;;  %v7447_v0 = vpop.eup %7446 }
 0x139   :  { %7462 = vtanh.f32 %v365_v62  ;;  %v363_v58 = vadd.f32 %v359_v29, %v211_v40  ;;  %v362_v7 = vmul.f32 %v358_v12, %v334_v6  ;;  %v7449_v10 = vpop.eup %7448  ;;  %v332_v36 = vadd.f32 0.5, %v328_v41 }
 0x13a   :  { %7464 = vtanh.f32 %v454_v61  ;;  %v452_v3 = vadd.f32 %v448_v2, %v404_v45  ;;  %v451_v17 = vmul.f32 %v427_v11, %v358_v12  ;;  %v7451_v25 = vpop.eup %7450  ;;  %v356_v16 = vadd.f32 %v8839_v34, %v8874_v57 }
 0x13b   :  { %7466 = vtanh.f32 %v363_v58  ;;  %v366_v26 = vadd.f32 %v362_v7, %v214_v52  ;;  %v7453_v48 = vpop.eup %7452  ;;  %v405_v30 = vadd.f32 %v393_v53, %v8869_v50  ;;  %v425_v29 = vadd.f32 0.5, %v421_v21 }
 0x13c   :  { %7468 = vtanh.f32 %v452_v3  ;;  %v455_v35 = vadd.f32 %v451_v17, %v407_v1  ;;  %v7455_v40 = vpop.eup %7454  ;;  %v360_v54 = vmul.f32 %v356_v16, %v332_v36  ;;  %v349_v52 = vmul.f32 0.5, %v7447_v0 }
 0x13d   :  { %7470 = vtanh.f32 %v366_v26  ;;  %v7457_v45 = vpop.eup %7456  ;;  %v449_v12 = vmul.f32 %v425_v29, %v356_v16  ;;  %v442_v62 = vmul.f32 0.5, %v7449_v10  ;;  %v347_v34 = vmul.f32 0.5, %v7451_v25 }
 0x13e   :  { %7472 = vtanh.f32 %v455_v35  ;;  %v7459_v47 = vpop.eup %7458  ;;  %v364_v42 = vadd.f32 %v360_v54, %v212_v63  ;;  %v440_v6 = vmul.f32 0.5, %v7453_v48  ;;  %v350_v41 = vmul.f32 0.5, %v7455_v40 }
 0x13f   :  { %v7461_v44 = vpop.eup %7460  ;;  %v453_v59 = vadd.f32 %v449_v12, %v405_v30  ;;  %v353_v61 = vadd.f32 0.5, %v349_v52  ;;  %v443_v21 = vmul.f32 0.5, %v7457_v45  ;;  %v446_v58 = vadd.f32 0.5, %v442_v62 }
 0x140   :  { %7474 = vtanh.f32 %v364_v42  ;;  %v351_v17 = vadd.f32 0.5, %v347_v34  ;;  %v444_v26 = vadd.f32 0.5, %v440_v6  ;;  %v348_v10 = vmul.f32 0.5, %v7459_v47 }
 0x141   :  { %7476 = vtanh.f32 %v453_v59  ;;  %v354_v25 = vadd.f32 0.5, %v350_v41  ;;  %v441_v30 = vmul.f32 0.5, %v7461_v44  ;;  %v447_v45 = vadd.f32 0.5, %v443_v21 }
 0x143   :  { %v7463_v1 = vpop.eup %7462 }
 0x144   :  { %v7465_v53 = vpop.eup %7464  ;;  %v373_v2 = vsub.f32 0.0, %v7463_v1 }
 0x145   :  { %v7467_v11 = vpop.eup %7466  ;;  %v462_v7 = vsub.f32 0.0, %v7465_v53 }
 0x146   :  { %v7469_v3 = vpop.eup %7468  ;;  %v371_v63 = vsub.f32 0.0, %v7467_v11  ;;  %v377_v0 = vmul.f32 %v373_v2, %v353_v61  ;;  %v352_v61 = vadd.f32 0.5, %v348_v10  ;;  %v8930_v10 = vld [vmem:[#allocation2 + $0x9] ss:$0 sm:$0xff] }
 0x147   :  { %v7471_v36 = vpop.eup %7470  ;;  %v460_v16 = vsub.f32 0.0, %v7469_v3  ;;  %v466_v48 = vmul.f32 %v462_v7, %v446_v58  ;;  %v445_v58 = vadd.f32 0.5, %v441_v30 }
 0x148   :  { %v7473_v35 = vpop.eup %7472  ;;  %v375_v29 = vmul.f32 %v371_v63, %v351_v17  ;;  %v374_v40 = vsub.f32 0.0, %v7471_v36  ;;  %v8880_v54 = vadd.f32 %v7463_v1, %v377_v0 }
 0x149   :  { %v464_v12 = vmul.f32 %v460_v16, %v444_v26  ;;  %v463_v42 = vsub.f32 0.0, %v7473_v35  ;;  %v8882_v52 = vadd.f32 %v7465_v53, %v466_v48 }
 0x14a   :  { %v8884_v59 = vadd.f32 %v7467_v11, %v375_v29  ;;  %v378_v62 = vmul.f32 %v374_v40, %v354_v25  ;;  %v7475_v34 = vpop.eup %7474  ;;  %v651_v25 = vmul.f32 %v8930_v10, %v8696_v19  ;;  %v652_v29 = vmul.f32 %v8930_v10, %v8710_v23 }
 0x14b   :  { %v8886_v6 = vadd.f32 %v7469_v3, %v464_v12  ;;  %v467_v47 = vmul.f32 %v463_v42, %v447_v45  ;;  %v7477_v41 = vpop.eup %7476  ;;  %v372_v2 = vsub.f32 0.0, %v7475_v34  ;;  %v650_v12 = vmul.f32 %v8930_v10, %v8715_v24 }
 0x14c   :  { %v8888_v44 = vadd.f32 %v7471_v36, %v378_v62  ;;  %v461_v1 = vsub.f32 0.0, %v7477_v41  ;;  %v8928_v36 = vld [vmem:[#allocation2 + $0x1] ss:$0 sm:$0xff]  ;;  %v663_v42 = vadd.f32 %v651_v25, %v8726_v28  ;;  %v655_v62 = vmul.f32 %v8930_v10, %v8724_v27 }
 0x14d   :  { %v8890_v7 = vadd.f32 %v7473_v35, %v467_v47  ;;  %v376_v21 = vmul.f32 %v372_v2, %v352_v61  ;;  %v475_v16 = vmul.f32 %v8928_v36, %v8696_v19  ;;  %v473_v48 = vmul.f32 %v8928_v36, %v8705_v22 }
 0x14e   :  { %v465_v17 = vmul.f32 %v461_v1, %v445_v58  ;;  %v498_v26 = vpack.c.bf16 %v8888_v44, %v8880_v54  ;;  %v649_v35 = vmul.f32 %v8930_v10, %v8705_v22  ;;  %v476_v30 = vmul.f32 %v8928_v36, %v8710_v23 }
 0x14f   :  { %v8892_v53 = vadd.f32 %v7475_v34, %v376_v21  ;;  %v674_v0 = vpack.c.bf16 %v8890_v7, %v8882_v52  ;;  %v474_v40 = vmul.f32 %v8928_v36, %v8715_v24  ;;  %v487_v19 = vadd.f32 %v475_v16, %v8726_v28 }
 0x150   :  { %v8894_v11 = vadd.f32 %v7477_v41, %v465_v17  ;;  %v479_v45 = vmul.f32 %v8928_v36, %v8724_v27  ;;  %v485_v22 = vadd.f32 %v473_v48, %v8737_v32  ;;  %v477_v23 = vmul.f32 %v8928_v36, %v8735_v31 }
 0x151   :  { %v497_v3 = vpack.c.bf16 %v8892_v53, %v8884_v59  ;;  %v661_v34 = vadd.f32 %v649_v35, %v8737_v32  ;;  %v488_v47 = vadd.f32 %v476_v30, %v8752_v38  ;;  %v664_v41 = vadd.f32 %v652_v29, %v8752_v38 }
 0x152   :  { %v673_v63 = vpack.c.bf16 %v8894_v11, %v8886_v6  ;;  %v486_v61 = vadd.f32 %v474_v40, %v8754_v39  ;;  %v662_v2 = vadd.f32 %v650_v12, %v8754_v39  ;;  %v653_v28 = vmul.f32 %v8930_v10, %v8735_v31 }
 0x153   :  { %6618 = vmatprep.subr.bf16.mxu1 %v497_v3  ;;  %v491_v21 = vadd.f32 %v479_v45, %v8760_v43  ;;  %v480_v32 = vmul.f32 %v8928_v36, %v8750_v37  ;;  %v656_v17 = vmul.f32 %v8930_v10, %v8750_v37  ;;  %v667_v39 = vadd.f32 %v655_v62, %v8760_v43 }
 0x154   :  { %6634 = vmatprep.subr.bf16.mxu0 %v673_v63  ;;  %6619 = vmatpush3.bf16.msra.mxu1 %v497_v3  ;;  %v478_v30 = vmul.f32 %v8928_v36, %v8769_v46  ;;  %v665_v62 = vadd.f32 %v653_v28, %v8773_v49 }
 0x155   :  { %6635 = vmatpush3.bf16.msra.mxu0 %v673_v63  ;;  %6620 = vmatprep.subr.bf16.mxu1 %v498_v26 }
 0x156   :  { %6636 = vmatprep.subr.bf16.mxu0 %v674_v0 }
 0x158   :  { %6621 = vmatpush3.bf16.msra.mxu1 %v498_v26 }
 0x159   :  { %6637 = vmatpush3.bf16.msra.mxu0 %v674_v0  ;;  %v489_v0 = vadd.f32 %v477_v23, %v8773_v49  ;;  %v492_v23 = vadd.f32 %v480_v32, %v8783_v56 }
 0x15b   :  { %6623 = vmatmul.mubr.msk.bf16.vlgmr.msra.gmra.mrb[8].mxu1 %vm215_vm0, %v8649_v8 }
 0x15c   :  { %6639 = vmatmul.mubr.msk.bf16.vlgmr.msra.gmra.mrb[4].mxu0 %vm215_vm0, %v8649_v8  ;;  %6626 = vmatprep.mubr.msk.bf16.mxu1 %vm215_vm0, %v8651_v9 }
 0x15d   :  { %6642 = vmatprep.mubr.msk.bf16.mxu0 %vm215_vm0, %v8651_v9 }
 0x163   :  { %6627 = vmatmul.mubr.msk.bf16.gmra.mrb[12].mxu1 %vm215_vm0, %v8664_v13 }
 0x164   :  { %6643 = vmatmul.mubr.msk.bf16.gmra.mrb[8].mxu0 %vm215_vm0, %v8664_v13  ;;  %6630 = vmatprep.mubr.msk.bf16.mxu1 %vm215_vm0, %v8673_v15 }
 0x165   :  { %6646 = vmatprep.mubr.msk.bf16.mxu0 %vm215_vm0, %v8673_v15 }
 0x16b   :  { %6631 = vmatmul.mubr.msk.bf16.gmra.mrb[16].mxu1 %vm215_vm0, %v8687_v18 }
 0x16c   :  { %6647 = vmatmul.mubr.msk.bf16.gmra.mrb[12].mxu0 %vm215_vm0, %v8687_v18  ;;  %6654 = vmatprep.mubr.msk.bf16.mxu1 %vm215_vm0, %v8638_v4 }
 0x16d   :  { %6670 = vmatprep.mubr.msk.bf16.mxu0 %vm215_vm0, %v8638_v4 }
 0x22e   :  { %v6624_v24 = vpop.f32.mrb[8].mxu1 }
 0x22f   :  { %v582_v58 = vadd.f32 %v6624_v24, %v487_v19  ;;  %v6640_v1 = vpop.f32.mrb[4].mxu0  ;;  %v533_v27 = vpop.f32.mrb[9].mxu1  ;;  %v654_v24 = vmul.f32 %v8930_v10, %v8769_v46 }
 0x230   :  { %v758_v3 = vadd.f32 %v6640_v1, %v663_v42  ;;  %v580_v38 = vadd.f32 %v533_v27, %v485_v22  ;;  %v709_v63 = vpop.f32.mrb[5].mxu0  ;;  %v6625_v26 = vpop.f32.mrb[10].mxu1 }
 0x231   :  { %v586_v31 = vmul.f32 0.5, %v582_v58  ;;  %v756_v16 = vadd.f32 %v709_v63, %v661_v34  ;;  %v583_v25 = vadd.f32 %v6625_v26, %v488_v47  ;;  %v6641_v48 = vpop.f32.mrb[6].mxu0  ;;  %v536_v35 = vpop.f32.mrb[11].mxu1  ;;  %v668_v47 = vadd.f32 %v656_v17, %v8783_v56 }
 0x232   :  { %v762_v29 = vmul.f32 0.5, %v758_v3  ;;  %v584_v40 = vmul.f32 0.5, %v580_v38  ;;  %v759_v12 = vadd.f32 %v6641_v48, %v664_v41  ;;  %v581_v37 = vadd.f32 %v536_v35, %v486_v61  ;;  %v712_v19 = vpop.f32.mrb[7].mxu0 }
 0x233   :  { %7478 = vtanh.f32 %v586_v31  ;;  %v760_v45 = vmul.f32 0.5, %v756_v16  ;;  %v587_v42 = vmul.f32 0.5, %v583_v25  ;;  %v757_v22 = vadd.f32 %v712_v19, %v662_v2  ;;  %v13327_v19 = vld [vmem:[#allocation16_spill] sm:$0xff] }
 0x234   :  { %7480 = vtanh.f32 %v762_v29  ;;  %v763_v43 = vmul.f32 0.5, %v759_v12  ;;  %v585_v34 = vmul.f32 0.5, %v581_v37  ;;  %v490_v61 = vadd.f32 %v478_v30, %v8796_v14 }
 0x235   :  { %7482 = vtanh.f32 %v584_v40  ;;  %v483_v2 = vmul.f32 %v8928_v36, %v8801_v33  ;;  %v659_v58 = vmul.f32 %v8930_v10, %v8801_v33  ;;  %v761_v49 = vmul.f32 0.5, %v757_v22 }
 0x236   :  { %7484 = vtanh.f32 %v760_v45  ;;  %v6628_v41 = vpop.f32.mrb[12].mxu1  ;;  %v481_v56 = vmul.f32 %v8928_v36, %v8810_v51  ;;  %v657_v38 = vmul.f32 %v8930_v10, %v8810_v51  ;;  %v660_v31 = vmul.f32 %v8930_v10, %v8820_v60 }
 0x237   :  { %7486 = vtanh.f32 %v587_v42  ;;  %v602_v28 = vadd.f32 %v6628_v41, %v491_v21  ;;  %v6644_v1 = vpop.f32.mrb[8].mxu0  ;;  %v549_v27 = vpop.f32.mrb[13].mxu1  ;;  %v484_v21 = vmul.f32 %v8928_v36, %v8820_v60  ;;  %v666_v35 = vadd.f32 %v654_v24, %v8796_v14 }
 0x238   :  { %7488 = vtanh.f32 %v763_v43  ;;  %v778_v46 = vadd.f32 %v6644_v1, %v667_v39  ;;  %v600_v32 = vadd.f32 %v549_v27, %v489_v0  ;;  %v725_v17 = vpop.f32.mrb[9].mxu0  ;;  %v6629_v3 = vpop.f32.mrb[14].mxu1  ;;  %v495_v51 = vadd.f32 %v483_v2, %v8813_v55 }
 0x239   :  { %7490 = vtanh.f32 %v585_v34  ;;  %v606_v63 = vmul.f32 0.5, %v602_v28  ;;  %v6645_v26 = vpop.f32.mrb[10].mxu0  ;;  %v552_v33 = vpop.f32.mrb[15].mxu1  ;;  %v776_v25 = vadd.f32 %v725_v17, %v665_v62  ;;  %v603_v48 = vadd.f32 %v6629_v3, %v492_v23 }
 0x23a   :  { %v782_v16 = vmul.f32 0.5, %v778_v46  ;;  %v728_v39 = vpop.f32.mrb[11].mxu0  ;;  %7492 = vtanh.f32 %v761_v49  ;;  %v779_v0 = vadd.f32 %v6645_v26, %v668_v47  ;;  %v604_v30 = vmul.f32 0.5, %v600_v32 }
 0x23b   :  { %v671_v29 = vadd.f32 %v659_v58, %v8813_v55  ;;  %v493_v40 = vadd.f32 %v481_v56, %v8827_v5  ;;  %v669_v12 = vadd.f32 %v657_v38, %v8827_v5  ;;  %7494 = vtanh.f32 %v606_v63  ;;  %v13328_v5 = vld [vmem:[#allocation17_spill] sm:$0xff]  ;;  %v13329_v38 = vld [vmem:[#allocation18_spill] sm:$0xff] }
 0x23c   :  { %v601_v60 = vadd.f32 %v552_v33, %v490_v61  ;;  %v8997_v45 = vadd.f32 %v484_v21, %v13327_v19  ;;  %v9000_v42 = vadd.f32 %v660_v31, %v13327_v19  ;;  %7496 = vtanh.f32 %v782_v16 }
 0x23d   :  { %v7479_v37 = vpop.eup %7478  ;;  %v780_v43 = vmul.f32 0.5, %v776_v25  ;;  %v607_v62 = vmul.f32 0.5, %v603_v48  ;;  %v783_v47 = vmul.f32 0.5, %v779_v0  ;;  %v777_v24 = vadd.f32 %v728_v39, %v666_v35 }
 0x23e   :  { %v7481_v22 = vpop.eup %7480  ;;  %v594_v14 = vmul.f32 0.5, %v7479_v37  ;;  %v6632_v23 = vpop.f32.mrb[16].mxu1  ;;  %7498 = vtanh.f32 %v604_v30  ;;  %v605_v17 = vmul.f32 0.5, %v601_v60 }
 0x23f   :  { %v7483_v55 = vpop.eup %7482  ;;  %v770_v34 = vmul.f32 0.5, %v7481_v22  ;;  %v622_v41 = vadd.f32 %v6632_v23, %v13328_v5  ;;  %v6648_v2 = vpop.f32.mrb[12].mxu0  ;;  %7500 = vtanh.f32 %v780_v43 }
 0x240   :  { %v565_v61 = vpop.f32.mrb[17].mxu1  ;;  %v7485_v58 = vpop.eup %7484  ;;  %v592_v49 = vmul.f32 0.5, %v7483_v55  ;;  %v598_v28 = vadd.f32 0.5, %v594_v14  ;;  %v798_v1 = vadd.f32 %v6648_v2, %v13328_v5  ;;  %7502 = vtanh.f32 %v607_v62 }
 0x241   :  { %v741_v27 = vpop.f32.mrb[13].mxu0  ;;  %v6633_v56 = vpop.f32.mrb[18].mxu1  ;;  %v768_v32 = vmul.f32 0.5, %v7485_v58  ;;  %v774_v3 = vadd.f32 0.5, %v770_v34  ;;  %v620_v63 = vadd.f32 %v565_v61, %v13329_v38  ;;  %7504 = vtanh.f32 %v783_v47 }
 0x242   :  { %v7487_v46 = vpop.eup %7486  ;;  %v6649_v26 = vpop.f32.mrb[14].mxu0  ;;  %v626_v16 = vmul.f32 %v622_v41, %v598_v28  ;;  %v596_v25 = vadd.f32 0.5, %v592_v49  ;;  %v796_v37 = vadd.f32 %v741_v27, %v13329_v38  ;;  %v623_v34 = vadd.f32 %v6633_v56, %v8864_v20  ;;  %v13330_v49 = vld [vmem:[#allocation15_spill] sm:$0xff] }
 0x243   :  { %v568_v33 = vpop.f32.mrb[19].mxu1  ;;  %v7489_v21 = vpop.eup %7488  ;;  %v595_v31 = vmul.f32 0.5, %v7487_v46  ;;  %v802_v35 = vmul.f32 %v798_v1, %v774_v3  ;;  %v772_v30 = vadd.f32 0.5, %v768_v32  ;;  %v482_v62 = vmul.f32 %v8928_v36, %v13330_v49 }
 0x244   :  { %v744_v48 = vpop.f32.mrb[15].mxu0  ;;  %v7491_v39 = vpop.eup %7490  ;;  %v771_v0 = vmul.f32 0.5, %v7489_v21  ;;  %v630_v19 = vadd.f32 %v626_v16, %v495_v51  ;;  %v624_v60 = vmul.f32 %v620_v63, %v596_v25  ;;  %v799_v47 = vadd.f32 %v6649_v26, %v8864_v20 }
 0x245   :  { %v599_v22 = vadd.f32 0.5, %v595_v31  ;;  %v7493_v14 = vpop.eup %7492  ;;  %v806_v23 = vadd.f32 %v802_v35, %v671_v29  ;;  %v800_v55 = vmul.f32 %v796_v37, %v772_v30  ;;  %v593_v43 = vmul.f32 0.5, %v7491_v39 }
 0x246   :  { %7506 = vtanh.f32 %v630_v19  ;;  %v628_v5 = vadd.f32 %v624_v60, %v493_v40  ;;  %v775_v41 = vadd.f32 0.5, %v771_v0  ;;  %v7495_v2 = vpop.eup %7494  ;;  %v769_v28 = vmul.f32 0.5, %v7493_v14 }
 0x247   :  { %7508 = vtanh.f32 %v806_v23  ;;  %v804_v61 = vadd.f32 %v800_v55, %v669_v12  ;;  %v627_v58 = vmul.f32 %v623_v34, %v599_v22  ;;  %v7497_v51 = vpop.eup %7496  ;;  %v658_v29 = vmul.f32 %v8930_v10, %v13330_v49 }
 0x248   :  { %7510 = vtanh.f32 %v628_v5  ;;  %v781_v1 = vmul.f32 0.5, %v777_v24  ;;  %v7499_v27 = vpop.eup %7498  ;;  %v803_v56 = vmul.f32 %v799_v47, %v775_v41  ;;  %v597_v12 = vadd.f32 0.5, %v593_v43 }
 0x249   :  { %7512 = vtanh.f32 %v804_v61  ;;  %v631_v40 = vadd.f32 %v627_v58, %v8997_v45  ;;  %v494_v46 = vadd.f32 %v482_v62, %v8869_v50  ;;  %v621_v36 = vadd.f32 %v568_v33, %v8874_v57  ;;  %v7501_v32 = vpop.eup %7500 }
 0x24a   :  { %7514 = vtanh.f32 %v605_v17  ;;  %v807_v3 = vadd.f32 %v803_v56, %v9000_v42  ;;  %v670_v20 = vadd.f32 %v658_v29, %v8869_v50  ;;  %v773_v38 = vadd.f32 0.5, %v769_v28  ;;  %v7503_v63 = vpop.eup %7502 }
 0x24b   :  { %7516 = vtanh.f32 %v631_v40  ;;  %v614_v10 = vmul.f32 0.5, %v7495_v2  ;;  %v625_v24 = vmul.f32 %v621_v36, %v597_v12  ;;  %v797_v45 = vadd.f32 %v744_v48, %v8874_v57  ;;  %v7505_v26 = vpop.eup %7504 }
 0x24c   :  { %7518 = vtanh.f32 %v781_v1  ;;  %v790_v17 = vmul.f32 0.5, %v7497_v51  ;;  %v612_v21 = vmul.f32 0.5, %v7499_v27  ;;  %v788_v33 = vmul.f32 0.5, %v7501_v32 }
 0x24d   :  { %7520 = vtanh.f32 %v807_v3  ;;  %v629_v31 = vadd.f32 %v625_v24, %v494_v46  ;;  %v801_v16 = vmul.f32 %v797_v45, %v773_v38  ;;  %v618_v0 = vadd.f32 0.5, %v614_v10 }
 0x24e   :  { %v794_v30 = vadd.f32 0.5, %v790_v17  ;;  %v615_v37 = vmul.f32 0.5, %v7503_v63  ;;  %v616_v19 = vadd.f32 0.5, %v612_v21  ;;  %v792_v23 = vadd.f32 0.5, %v788_v33  ;;  %v9074_v63 = vld [vmem:[#allocation2 + $0x2] ss:$0 sm:$0xff] }
 0x24f   :  { %7522 = vtanh.f32 %v629_v31  ;;  %v805_v42 = vadd.f32 %v801_v16, %v670_v20  ;;  %v791_v5 = vmul.f32 0.5, %v7505_v26  ;;  %v9076_v17 = vld [vmem:[#allocation2 + $0xa] ss:$0 sm:$0xff]  ;;  %v9081_v26 = vld [vmem:[%s12950_s1 + $0x10] sm:$0xff]  ;;  %v9088_v31 = vld [vmem:[%s12950_s1] sm:$0xff] }
 0x250   :  { %v7507_v25 = vpop.eup %7506  ;;  %v619_v2 = vadd.f32 0.5, %v615_v37  ;;  %v827_v21 = vmul.f32 %v9081_v26, %v9074_v63  ;;  %v825_v16 = vmul.f32 %v9088_v31, %v9074_v63  ;;  %v9097_v33 = vld [vmem:[%s12950_s1 + $0x18] sm:$0xff] }
 0x251   :  { %v7509_v39 = vpop.eup %7508  ;;  %v638_v50 = vsub.f32 %v8880_v54, %v7507_v25  ;;  %7524 = vtanh.f32 %v805_v42  ;;  %v795_v47 = vadd.f32 0.5, %v791_v5  ;;  %v1004_v42 = vmul.f32 %v9097_v33, %v9076_v17  ;;  %v9139_v5 = vld [vmem:[#allocation5 + $0x18] sm:$0xff] }
 0x252   :  { %v7511_v35 = vpop.eup %7510  ;;  %v814_v57 = vsub.f32 %v8882_v52, %v7509_v39  ;;  %13331 = vst [vmem:[#allocation16_spill] sm:$0xff] %v9139_v5 }
 0x253   :  { %v7513_v48 = vpop.eup %7512  ;;  %v636_v60 = vsub.f32 %v8884_v59, %v7511_v35  ;;  %v642_v22 = vmul.f32 %v638_v50, %v618_v0  ;;  %v1001_v0 = vmul.f32 %v9088_v31, %v9076_v17  ;;  %v9108_v50 = vld [vmem:[%s12950_s1 + $0x8] sm:$0xff] }
 0x254   :  { %v7515_v14 = vpop.eup %7514  ;;  %v812_v55 = vsub.f32 %v8886_v6, %v7513_v48  ;;  %v818_v34 = vmul.f32 %v814_v57, %v794_v30  ;;  %v9112_v30 = vld [vmem:[#allocation5 + $0x10] sm:$0xff]  ;;  %v1002_v57 = vmul.f32 %v9108_v50, %v9076_v17 }
 0x255   :  { %v7517_v43 = vpop.eup %7516  ;;  %v640_v41 = vmul.f32 %v636_v60, %v616_v19  ;;  %v9022_v54 = vadd.f32 %v7507_v25, %v642_v22  ;;  %v613_v51 = vmul.f32 0.5, %v7515_v14  ;;  %v1003_v25 = vmul.f32 %v9081_v26, %v9076_v17  ;;  %v9124_v60 = vld [vmem:[#allocation5] sm:$0xff] }
 0x256   :  { %v816_v61 = vmul.f32 %v812_v55, %v792_v23  ;;  %v639_v52 = vsub.f32 %v8888_v44, %v7517_v43  ;;  %v9025_v58 = vadd.f32 %v7509_v39, %v818_v34  ;;  %v7519_v49 = vpop.eup %7518  ;;  %v828_v39 = vmul.f32 %v9097_v33, %v9074_v63  ;;  %v9132_v23 = vld [vmem:[%s12950_s1 + $0x20] sm:$0xff] }
 0x257   :  { %v9027_v62 = vadd.f32 %v7511_v35, %v640_v41  ;;  %v7521_v59 = vpop.eup %7520  ;;  %v789_v1 = vmul.f32 0.5, %v7519_v49  ;;  %v617_v12 = vadd.f32 0.5, %v613_v51  ;;  %v826_v35 = vmul.f32 %v9108_v50, %v9074_v63  ;;  %v9151_v51 = vld [vmem:[#allocation5 + $0x8] sm:$0xff] }
 0x258   :  { %v9029_v28 = vadd.f32 %v7513_v48, %v816_v61  ;;  %v643_v6 = vmul.f32 %v639_v52, %v619_v2  ;;  %v815_v29 = vsub.f32 %v8890_v7, %v7521_v59  ;;  %v839_v37 = vadd.f32 %v9112_v30, %v827_v21  ;;  %v9120_v48 = vld [vmem:[%s12950_s1 + $0x30] sm:$0xff]  ;;  %v9145_v2 = vld [vmem:[%s12950_s1 + $0x38] sm:$0xff]  ;;  %13333 = vst [vmem:[#allocation18_spill] sm:$0xff] %v9151_v51 }
 0x259   :  { %v7523_v27 = vpop.eup %7522  ;;  %v793_v32 = vadd.f32 0.5, %v789_v1  ;;  %v831_v19 = vmul.f32 %v9120_v48, %v9074_v63  ;;  %v837_v22 = vadd.f32 %v9124_v60, %v825_v16  ;;  %v1007_v14 = vmul.f32 %v9120_v48, %v9076_v17  ;;  %13332 = vst [vmem:[#allocation17_spill] sm:$0xff] %v9145_v2 }
 0x25a   :  { %v9032_v40 = vadd.f32 %v7517_v43, %v643_v6  ;;  %v819_v56 = vmul.f32 %v815_v29, %v795_v47  ;;  %v637_v44 = vsub.f32 %v8892_v53, %v7523_v27  ;;  %v829_v55 = vmul.f32 %v9132_v23, %v9074_v63 }
 0x25b   :  { %v7525_v46 = vpop.eup %7524  ;;  %v1005_v34 = vmul.f32 %v9132_v23, %v9076_v17  ;;  %v1015_v43 = vadd.f32 %v9112_v30, %v1003_v25  ;;  %v840_v41 = vadd.f32 %v9139_v5, %v828_v39  ;;  %v832_v61 = vmul.f32 %v9145_v2, %v9074_v63  ;;  %v9165_v25 = vld [vmem:[#allocation5 + $0x38] sm:$0xff] }
 0x25c   :  { %v9035_v36 = vadd.f32 %v7521_v59, %v819_v56  ;;  %v641_v3 = vmul.f32 %v637_v44, %v617_v12  ;;  %v813_v20 = vsub.f32 %v8894_v11, %v7525_v46  ;;  %v850_v53 = vpack.c.bf16 %v9032_v40, %v9022_v54  ;;  %13336 = vst [vmem:[#allocation20_spill] sm:$0xff] %v9165_v25 }
 0x25d   :  { %v1013_v49 = vadd.f32 %v9124_v60, %v1001_v0  ;;  %v1016_v59 = vadd.f32 %v9139_v5, %v1004_v42  ;;  %v838_v6 = vadd.f32 %v9151_v51, %v826_v35  ;;  %v1014_v1 = vadd.f32 %v9151_v51, %v1002_v57  ;;  %v9171_v57 = vld [vmem:[%s12950_s1 + $0x28] sm:$0xff] }
 0x25e   :  { %v9038_v38 = vadd.f32 %v7523_v27, %v641_v3  ;;  %v817_v10 = vmul.f32 %v813_v20, %v793_v32  ;;  %v1026_v11 = vpack.c.bf16 %v9035_v36, %v9025_v58  ;;  %v9155_v27 = vld [vmem:[#allocation5 + $0x30] sm:$0xff]  ;;  %v1008_v12 = vmul.f32 %v9145_v2, %v9076_v17  ;;  %v9161_v20 = vld [vmem:[#allocation5 + $0x20] sm:$0xff]  ;;  %13337 = vst [vmem:[#allocation21_spill] sm:$0xff] %v9171_v57 }
 0x25f   :  { %13334 = vst [vmem:[#allocation15_spill] sm:$0xff] %v9155_v27  ;;  %v843_v56 = vadd.f32 %v9155_v27, %v831_v19  ;;  %v1019_v3 = vadd.f32 %v9155_v27, %v1007_v14  ;;  %13335 = vst [vmem:[#allocation19_spill] sm:$0xff] %v9161_v20  ;;  %v844_v39 = vadd.f32 %v9165_v25, %v832_v61 }
 0x260   :  { %v849_v7 = vpack.c.bf16 %v9038_v38, %v9027_v62  ;;  %v9042_v24 = vadd.f32 %v7525_v46, %v817_v10  ;;  %v841_v10 = vadd.f32 %v9161_v20, %v829_v55  ;;  %v830_v19 = vmul.f32 %v9171_v57, %v9074_v63 }
 0x261   :  { %v1020_v61 = vadd.f32 %v9165_v25, %v1008_v12 }
 0x262   :  { %6650 = vmatprep.subr.bf16.mxu1 %v849_v7  ;;  %v1025_v45 = vpack.c.bf16 %v9042_v24, %v9029_v28 }
 0x263   :  { %6651 = vmatpush3.bf16.msra.mxu1 %v849_v7  ;;  %v1017_v7 = vadd.f32 %v9161_v20, %v1005_v34 }
 0x264   :  { %6666 = vmatprep.subr.bf16.mxu0 %v1025_v45  ;;  %6652 = vmatprep.subr.bf16.mxu1 %v850_v53 }
 0x265   :  { %6667 = vmatpush3.bf16.msra.mxu0 %v1025_v45 }
 0x266   :  { %6668 = vmatprep.subr.bf16.mxu0 %v1026_v11 }
 0x267   :  { %6653 = vmatpush3.bf16.msra.mxu1 %v850_v53 }
 0x269   :  { %6669 = vmatpush3.bf16.msra.mxu0 %v1026_v11 }
 0x26a   :  { %6655 = vmatmul.mubr.msk.bf16.vlgmr.msra.gmra.mrb[20].mxu1 %vm215_vm0, %v8649_v8 }
 0x26b   :  { %6658 = vmatprep.mubr.msk.bf16.mxu1 %vm215_vm0, %v8651_v9 }
 0x26c   :  { %6671 = vmatmul.mubr.msk.bf16.vlgmr.msra.gmra.mrb[16].mxu0 %vm215_vm0, %v8649_v8 }
 0x26d   :  { %6674 = vmatprep.mubr.msk.bf16.mxu0 %vm215_vm0, %v8651_v9 }
 0x272   :  { %6659 = vmatmul.mubr.msk.bf16.gmra.mrb[24].mxu1 %vm215_vm0, %v8664_v13 }
 0x273   :  { %6662 = vmatprep.mubr.msk.bf16.mxu1 %vm215_vm0, %v8673_v15 }
 0x274   :  { %6675 = vmatmul.mubr.msk.bf16.gmra.mrb[20].mxu0 %vm215_vm0, %v8664_v13 }
 0x275   :  { %6678 = vmatprep.mubr.msk.bf16.mxu0 %vm215_vm0, %v8673_v15 }
 0x27a   :  { %6663 = vmatmul.mubr.msk.bf16.gmra.mrb[28].mxu1 %vm215_vm0, %v8687_v18 }
 0x27b   :  { %6686 = vmatprep.mubr.msk.bf16.mxu1 %vm215_vm0, %v8638_v4 }
 0x27c   :  { %6679 = vmatmul.mubr.msk.bf16.gmra.mrb[24].mxu0 %vm215_vm0, %v8687_v18 }
 0x27d   :  { %6702 = vmatprep.mubr.msk.bf16.mxu0 %vm215_vm0, %v8638_v4 }
 0x33d   :  { %v6656_v52 = vpop.f32.mrb[20].mxu1 }
 0x33e   :  { %v934_v47 = vadd.f32 %v6656_v52, %v839_v37  ;;  %v885_v29 = vpop.f32.mrb[21].mxu1 }
 0x33f   :  { %v6672_v44 = vpop.f32.mrb[16].mxu0  ;;  %v932_v46 = vadd.f32 %v885_v29, %v837_v22  ;;  %v6657_v32 = vpop.f32.mrb[22].mxu1  ;;  %v9178_v29 = vld [vmem:[#allocation5 + $0x28] sm:$0xff] }
 0x340   :  { %v938_v45 = vmul.f32 0.5, %v934_v47  ;;  %v1110_v53 = vadd.f32 %v6672_v44, %v1015_v43  ;;  %v1061_v11 = vpop.f32.mrb[17].mxu0  ;;  %v935_v21 = vadd.f32 %v6657_v32, %v840_v41  ;;  %v888_v16 = vpop.f32.mrb[23].mxu1  ;;  %13338 = vst [vmem:[#allocation22_spill] sm:$0xff] %v9178_v29  ;;  %v842_v44 = vadd.f32 %v9178_v29, %v830_v19 }
 0x341   :  { %v936_v0 = vmul.f32 0.5, %v932_v46  ;;  %v1108_v42 = vadd.f32 %v1061_v11, %v1013_v49  ;;  %v6673_v35 = vpop.f32.mrb[18].mxu0  ;;  %v933_v37 = vadd.f32 %v888_v16, %v838_v6  ;;  %v1006_v6 = vmul.f32 %v9171_v57, %v9076_v17 }
 0x342   :  { %7526 = vtanh.f32 %v938_v45  ;;  %v1114_v22 = vmul.f32 0.5, %v1110_v53  ;;  %v939_v14 = vmul.f32 0.5, %v935_v21  ;;  %v1111_v55 = vadd.f32 %v6673_v35, %v1016_v59  ;;  %v1064_v34 = vpop.f32.mrb[19].mxu0  ;;  %v9184_v59 = vld [vmem:[%s12950_s1 + $0x50] sm:$0xff]  ;;  %v9193_v53 = vld [vmem:[%s12950_s1 + $0x40] sm:$0xff] }
 0x343   :  { %7528 = vtanh.f32 %v936_v0  ;;  %v1112_v43 = vmul.f32 0.5, %v1108_v42  ;;  %v1109_v41 = vadd.f32 %v1064_v34, %v1014_v1  ;;  %v937_v49 = vmul.f32 0.5, %v933_v37  ;;  %13339 = vst [vmem:[#allocation23_spill] sm:$0xff] %v9184_v59  ;;  %13340 = vst [vmem:[#allocation24_spill] sm:$0xff] %v9193_v53 }
 0x344   :  { %7530 = vtanh.f32 %v1114_v22  ;;  %v1115_v52 = vmul.f32 0.5, %v1111_v55  ;;  %v835_v1 = vmul.f32 %v9184_v59, %v9074_v63  ;;  %v1011_v12 = vmul.f32 %v9184_v59, %v9076_v17 }
 0x345   :  { %7532 = vtanh.f32 %v1112_v43  ;;  %v6660_v47 = vpop.f32.mrb[24].mxu1  ;;  %v1113_v46 = vmul.f32 0.5, %v1109_v41  ;;  %v833_v11 = vmul.f32 %v9193_v53, %v9074_v63  ;;  %v1009_v42 = vmul.f32 %v9193_v53, %v9076_v17  ;;  %v9209_v53 = vld [vmem:[#allocation5 + $0x50] sm:$0xff] }
 0x346   :  { %7534 = vtanh.f32 %v939_v14  ;;  %v954_v32 = vadd.f32 %v6660_v47, %v843_v56  ;;  %v901_v45 = vpop.f32.mrb[25].mxu1  ;;  %v9202_v56 = vld [vmem:[%s12950_s1 + $0x58] sm:$0xff]  ;;  %v1018_v47 = vadd.f32 %v9178_v29, %v1006_v6  ;;  %13342 = vst [vmem:[#allocation26_spill] sm:$0xff] %v9209_v53 }
 0x347   :  { %7536 = vtanh.f32 %v1115_v52  ;;  %v6676_v21 = vpop.f32.mrb[20].mxu0  ;;  %v952_v16 = vadd.f32 %v901_v45, %v841_v10  ;;  %v6661_v0 = vpop.f32.mrb[26].mxu1  ;;  %13341 = vst [vmem:[#allocation25_spill] sm:$0xff] %v9202_v56  ;;  %v836_v35 = vmul.f32 %v9202_v56, %v9074_v63  ;;  %v1012_v10 = vmul.f32 %v9202_v56, %v9076_v17 }
 0x348   :  { %7538 = vtanh.f32 %v937_v49  ;;  %v958_v37 = vmul.f32 0.5, %v954_v32  ;;  %v1130_v19 = vadd.f32 %v6676_v21, %v1019_v3  ;;  %v1077_v22 = vpop.f32.mrb[21].mxu0  ;;  %v904_v14 = vpop.f32.mrb[27].mxu1  ;;  %v955_v43 = vadd.f32 %v6661_v0, %v844_v39  ;;  %v9213_v21 = vld [vmem:[#allocation5 + $0x40] sm:$0xff] }
 0x349   :  { %v956_v55 = vmul.f32 0.5, %v952_v16  ;;  %v1128_v34 = vadd.f32 %v1077_v22, %v1017_v7  ;;  %v6677_v41 = vpop.f32.mrb[22].mxu0  ;;  %7540 = vtanh.f32 %v1113_v46  ;;  %v953_v52 = vadd.f32 %v904_v14, %v842_v44  ;;  %13343 = vst [vmem:[#allocation27_spill] sm:$0xff] %v9213_v21  ;;  %v9219_v46 = vld [vmem:[#allocation5 + $0x58] sm:$0xff] }
 0x34a   :  { %v1080_v45 = vpop.f32.mrb[23].mxu0  ;;  %v847_v49 = vadd.f32 %v9209_v53, %v835_v1  ;;  %v1134_v32 = vmul.f32 0.5, %v1130_v19  ;;  %v1023_v3 = vadd.f32 %v9209_v53, %v1011_v12  ;;  %v845_v56 = vadd.f32 %v9213_v21, %v833_v11  ;;  %13344 = vst [vmem:[#allocation28_spill] sm:$0xff] %v9219_v46 }
 0x34b   :  { %v9217_v7 = vadd.f32 %v9213_v21, %v1009_v42  ;;  %7542 = vtanh.f32 %v958_v37  ;;  %v1131_v44 = vadd.f32 %v6677_v41, %v1020_v61  ;;  %v9222_v6 = vadd.f32 %v9219_v46, %v836_v35  ;;  %v9230_v61 = vld [vmem:[%s12953_s4 + $0x10] sm:$0xff] }
 0x34c   :  { %v7527_v39 = vpop.eup %7526  ;;  %v9225_v1 = vadd.f32 %v9219_v46, %v1012_v10  ;;  %7544 = vtanh.f32 %v956_v55  ;;  %v1132_v0 = vmul.f32 0.5, %v1128_v34  ;;  %v959_v19 = vmul.f32 0.5, %v955_v43  ;;  %13345 = vst [vmem:[#allocation29_spill] sm:$0xff] %v9230_v61  ;;  %v9236_v34 = vld [vmem:[%s12953_s4] sm:$0xff] }
 0x34d   :  { %v7529_v16 = vpop.eup %7528  ;;  %v946_v12 = vmul.f32 0.5, %v7527_v39  ;;  %v6664_v11 = vpop.f32.mrb[28].mxu1  ;;  %v957_v14 = vmul.f32 0.5, %v953_v52  ;;  %v1129_v21 = vadd.f32 %v1080_v45, %v1018_v47  ;;  %7546 = vtanh.f32 %v1134_v32 }
 0x34e   :  { %v7531_v22 = vpop.eup %7530  ;;  %v944_v42 = vmul.f32 0.5, %v7529_v16  ;;  %v974_v35 = vadd.f32 %v9230_v61, %v6664_v11  ;;  %v917_v37 = vpop.f32.mrb[29].mxu1  ;;  %v1135_v16 = vmul.f32 0.5, %v1131_v44  ;;  %7548 = vtanh.f32 %v1132_v0  ;;  %v9244_v0 = vld [vmem:[%s12953_s4 + $0x18] sm:$0xff] }
 0x34f   :  { %v7533_v10 = vpop.eup %7532  ;;  %v1122_v41 = vmul.f32 0.5, %v7531_v22  ;;  %v950_v39 = vadd.f32 0.5, %v946_v12  ;;  %v6680_v55 = vpop.f32.mrb[24].mxu0  ;;  %v972_v43 = vadd.f32 %v9236_v34, %v917_v37  ;;  %7550 = vtanh.f32 %v959_v19 }
 0x350   :  { %v6665_v52 = vpop.f32.mrb[30].mxu1  ;;  %v7535_v47 = vpop.eup %7534  ;;  %v1120_v45 = vmul.f32 0.5, %v7533_v10  ;;  %v1150_v46 = vadd.f32 %v9230_v61, %v6680_v55  ;;  %v948_v11 = vadd.f32 0.5, %v944_v42  ;;  %7552 = vtanh.f32 %v1135_v16 }
 0x351   :  { %v1093_v53 = vpop.f32.mrb[25].mxu0  ;;  %v920_v59 = vpop.f32.mrb[31].mxu1  ;;  %v947_v32 = vmul.f32 0.5, %v7535_v47  ;;  %v978_v12 = vmul.f32 %v974_v35, %v950_v39  ;;  %v1126_v29 = vadd.f32 0.5, %v1122_v41  ;;  %v975_v35 = vadd.f32 %v9244_v0, %v6665_v52  ;;  %v9259_v52 = vld [vmem:[#allocation5 + $0x48] sm:$0xff] }
 0x352   :  { %v7537_v22 = vpop.eup %7536  ;;  %v6681_v57 = vpop.f32.mrb[26].mxu0  ;;  %v976_v27 = vmul.f32 %v972_v43, %v948_v11  ;;  %v1124_v51 = vadd.f32 0.5, %v1120_v45  ;;  %v1148_v37 = vadd.f32 %v9236_v34, %v1093_v53 }
 0x353   :  { %v7539_v25 = vpop.eup %7538  ;;  %v1123_v20 = vmul.f32 0.5, %v7537_v22  ;;  %v1096_v2 = vpop.f32.mrb[27].mxu0  ;;  %v982_v44 = vadd.f32 %v978_v12, %v847_v49  ;;  %v1154_v10 = vmul.f32 %v1150_v46, %v1126_v29  ;;  %v951_v55 = vadd.f32 0.5, %v947_v32 }
 0x354   :  { %v7541_v42 = vpop.eup %7540  ;;  %v980_v61 = vadd.f32 %v976_v27, %v845_v56  ;;  %v1152_v5 = vmul.f32 %v1148_v37, %v1124_v51  ;;  %v945_v41 = vmul.f32 0.5, %v7539_v25  ;;  %v9251_v51 = vld [vmem:[%s12950_s1 + $0x48] sm:$0xff]  ;;  %v1151_v25 = vadd.f32 %v9244_v0, %v6681_v57 }
 0x355   :  { %7554 = vtanh.f32 %v982_v44  ;;  %v1158_v39 = vadd.f32 %v1154_v10, %v1023_v3  ;;  %v1127_v53 = vadd.f32 0.5, %v1123_v20  ;;  %v7543_v43 = vpop.eup %7542  ;;  %v979_v49 = vmul.f32 %v975_v35, %v951_v55  ;;  %v9265_v57 = vld [vmem:[%s12953_s4 + $0x8] sm:$0xff] }
 0x356   :  { %7556 = vtanh.f32 %v980_v61  ;;  %v1156_v29 = vadd.f32 %v1152_v5, %v9217_v7  ;;  %v834_v27 = vmul.f32 %v9251_v51, %v9074_v63  ;;  %v7545_v56 = vpop.eup %7544  ;;  %v1121_v46 = vmul.f32 0.5, %v7541_v42 }
 0x357   :  { %7558 = vtanh.f32 %v1158_v39  ;;  %v1010_v20 = vmul.f32 %v9251_v51, %v9076_v17  ;;  %v1133_v3 = vmul.f32 0.5, %v1129_v21  ;;  %v983_v5 = vadd.f32 %v979_v49, %v9222_v6  ;;  %v7547_v7 = vpop.eup %7546 }
 0x358   :  { %7560 = vtanh.f32 %v1156_v29  ;;  %v1155_v19 = vmul.f32 %v1151_v25, %v1127_v53  ;;  %v949_v61 = vadd.f32 0.5, %v945_v41  ;;  %v846_v63 = vadd.f32 %v9259_v52, %v834_v27  ;;  %v7549_v21 = vpop.eup %7548 }
 0x359   :  { %7562 = vtanh.f32 %v957_v14  ;;  %v973_v17 = vadd.f32 %v9265_v57, %v920_v59  ;;  %v1022_v6 = vadd.f32 %v9259_v52, %v1010_v20  ;;  %v1125_v14 = vadd.f32 0.5, %v1121_v46  ;;  %v7551_v22 = vpop.eup %7550 }
 0x35a   :  { %7564 = vtanh.f32 %v983_v5  ;;  %v1159_v47 = vadd.f32 %v1155_v19, %v9225_v1  ;;  %v966_v45 = vmul.f32 0.5, %v7543_v43  ;;  %v1149_v11 = vadd.f32 %v9265_v57, %v1096_v2  ;;  %v7553_v12 = vpop.eup %7552 }
 0x35b   :  { %7566 = vtanh.f32 %v1133_v3  ;;  %v977_v16 = vmul.f32 %v973_v17, %v949_v61  ;;  %v964_v32 = vmul.f32 0.5, %v7545_v56  ;;  %v1142_v37 = vmul.f32 0.5, %v7547_v7 }
 0x35c   :  { %7568 = vtanh.f32 %v1159_v47  ;;  %v1153_v10 = vmul.f32 %v1149_v11, %v1125_v14  ;;  %v1140_v59 = vmul.f32 0.5, %v7549_v21  ;;  %v970_v35 = vadd.f32 0.5, %v966_v45 }
 0x35d   :  { %v981_v44 = vadd.f32 %v977_v16, %v846_v63  ;;  %v968_v53 = vadd.f32 0.5, %v964_v32  ;;  %v967_v43 = vmul.f32 0.5, %v7551_v22  ;;  %v1146_v49 = vadd.f32 0.5, %v1142_v37 }
 0x35e   :  { %v1157_v1 = vadd.f32 %v1153_v10, %v1022_v6  ;;  %v1144_v25 = vadd.f32 0.5, %v1140_v59  ;;  %v1143_v7 = vmul.f32 0.5, %v7553_v12 }
 0x35f   :  { %v7555_v55 = vpop.eup %7554  ;;  %7570 = vtanh.f32 %v981_v44  ;;  %v971_v61 = vadd.f32 0.5, %v967_v43  ;;  %v9329_v43 = vld [vmem:[#allocation2 + $0xb] ss:$0 sm:$0xff] }
 0x360   :  { %v7557_v42 = vpop.eup %7556  ;;  %v990_v41 = vsub.f32 %v9022_v54, %v7555_v55  ;;  %7572 = vtanh.f32 %v1157_v1 }
 0x361   :  { %v7559_v39 = vpop.eup %7558  ;;  %v988_v2 = vsub.f32 %v9027_v62, %v7557_v42 }
 0x362   :  { %v7561_v29 = vpop.eup %7560  ;;  %v994_v27 = vmul.f32 %v990_v41, %v970_v35  ;;  %v1166_v56 = vsub.f32 %v9025_v58, %v7559_v39 }
 0x363   :  { %v7563_v46 = vpop.eup %7562  ;;  %v992_v20 = vmul.f32 %v988_v2, %v968_v53  ;;  %v1164_v3 = vsub.f32 %v9029_v28, %v7561_v29  ;;  %v1147_v28 = vadd.f32 0.5, %v1143_v7  ;;  %v9327_v53 = vld [vmem:[#allocation2 + $0x3] ss:$0 sm:$0xff]  ;;  %v1359_v7 = vmul.f32 %v9120_v48, %v9329_v43 }
 0x364   :  { %v7565_v5 = vpop.eup %7564  ;;  %v9275_v19 = vadd.f32 %v7555_v55, %v994_v27  ;;  %v1170_v54 = vmul.f32 %v1166_v56, %v1146_v49  ;;  %v965_v6 = vmul.f32 0.5, %v7563_v46  ;;  %v1179_v2 = vmul.f32 %v9081_v26, %v9327_v53 }
 0x365   :  { %v9277_v63 = vadd.f32 %v7557_v42, %v992_v20  ;;  %v1168_v62 = vmul.f32 %v1164_v3, %v1144_v25  ;;  %v991_v17 = vsub.f32 %v9032_v40, %v7565_v5  ;;  %v7567_v21 = vpop.eup %7566  ;;  %v1355_v49 = vmul.f32 %v9081_v26, %v9329_v43 }
 0x366   :  { %v9280_v47 = vadd.f32 %v7559_v39, %v1170_v54  ;;  %v7569_v58 = vpop.eup %7568  ;;  %v1141_v11 = vmul.f32 0.5, %v7567_v21  ;;  %v969_v37 = vadd.f32 0.5, %v965_v6  ;;  %v1180_v27 = vmul.f32 %v9097_v33, %v9327_v53 }
 0x367   :  { %v9282_v14 = vadd.f32 %v7561_v29, %v1168_v62  ;;  %v995_v45 = vmul.f32 %v991_v17, %v971_v61  ;;  %v1167_v16 = vsub.f32 %v9035_v36, %v7569_v58  ;;  %v1177_v29 = vmul.f32 %v9088_v31, %v9327_v53  ;;  %v13346_v61 = vld [vmem:[#allocation16_spill] sm:$0xff] }
 0x368   :  { %v1145_v55 = vadd.f32 0.5, %v1141_v11  ;;  %v1353_v56 = vmul.f32 %v9088_v31, %v9329_v43  ;;  %v1356_v46 = vmul.f32 %v9097_v33, %v9329_v43  ;;  %v1178_v25 = vmul.f32 %v9108_v50, %v9327_v53 }
 0x369   :  { %v9285_v22 = vadd.f32 %v7565_v5, %v995_v45  ;;  %v7571_v32 = vpop.eup %7570  ;;  %v1171_v12 = vmul.f32 %v1167_v16, %v1147_v28  ;;  %v1191_v20 = vadd.f32 %v9112_v30, %v1179_v2  ;;  %v1354_v3 = vmul.f32 %v9108_v50, %v9329_v43  ;;  %v13347_v50 = vld [vmem:[#allocation17_spill] sm:$0xff]  ;;  %v13348_v45 = vld [vmem:[#allocation18_spill] sm:$0xff] }
 0x36a   :  { %v989_v44 = vsub.f32 %v9038_v38, %v7571_v32  ;;  %v7573_v40 = vpop.eup %7572  ;;  %v1183_v26 = vmul.f32 %v9120_v48, %v9327_v53  ;;  %v1189_v5 = vadd.f32 %v9124_v60, %v1177_v29  ;;  %v1181_v31 = vmul.f32 %v9132_v23, %v9327_v53 }
 0x36b   :  { %v9288_v10 = vadd.f32 %v7569_v58, %v1171_v12  ;;  %v1165_v42 = vsub.f32 %v9042_v24, %v7573_v40  ;;  %v1202_v38 = vpack.c.bf16 %v9285_v22, %v9275_v19  ;;  %v1357_v33 = vmul.f32 %v9132_v23, %v9329_v43 }
 0x36c   :  { %v993_v59 = vmul.f32 %v989_v44, %v969_v37  ;;  %v1367_v54 = vadd.f32 %v9112_v30, %v1355_v49  ;;  %v1192_v62 = vadd.f32 %v13346_v61, %v1180_v27  ;;  %v1184_v17 = vmul.f32 %v13347_v50, %v9327_v53 }
 0x36d   :  { %v1169_v1 = vmul.f32 %v1165_v42, %v1145_v55  ;;  %v1378_v24 = vpack.c.bf16 %v9288_v10, %v9280_v47  ;;  %v1365_v58 = vadd.f32 %v9124_v60, %v1353_v56  ;;  %v1368_v6 = vadd.f32 %v13346_v61, %v1356_v46  ;;  %v13350_v55 = vld [vmem:[#allocation19_spill] sm:$0xff]  ;;  %v13352_v46 = vld [vmem:[#allocation21_spill] sm:$0xff] }
 0x36e   :  { %v9291_v35 = vadd.f32 %v7571_v32, %v993_v59  ;;  %v1190_v48 = vadd.f32 %v13348_v45, %v1178_v25  ;;  %v1366_v11 = vadd.f32 %v13348_v45, %v1354_v3  ;;  %v13349_v32 = vld [vmem:[#allocation15_spill] sm:$0xff]  ;;  %v1360_v30 = vmul.f32 %v13347_v50, %v9329_v43 }
 0x36f   :  { %v9295_v41 = vadd.f32 %v7573_v40, %v1169_v1  ;;  %v1195_v23 = vadd.f32 %v13349_v32, %v1183_v26  ;;  %v1371_v40 = vadd.f32 %v13349_v32, %v1359_v7  ;;  %v1193_v60 = vadd.f32 %v13350_v55, %v1181_v31 }
 0x370   :  { %v1201_v36 = vpack.c.bf16 %v9291_v35, %v9277_v63  ;;  %v1369_v59 = vadd.f32 %v13350_v55, %v1357_v33  ;;  %v1182_v25 = vmul.f32 %v13352_v46, %v9327_v53  ;;  %v13356_v55 = vld [vmem:[#allocation25_spill] sm:$0xff] }
 0x371   :  { %v1377_v39 = vpack.c.bf16 %v9295_v41, %v9282_v14 }
 0x372   :  { %6682 = vmatprep.subr.bf16.mxu1 %v1201_v36 }
 0x373   :  { %6683 = vmatpush3.bf16.msra.mxu1 %v1201_v36  ;;  %6698 = vmatprep.subr.bf16.mxu0 %v1377_v39 }
 0x374   :  { %6684 = vmatprep.subr.bf16.mxu1 %v1202_v38  ;;  %6699 = vmatpush3.bf16.msra.mxu0 %v1377_v39 }
 0x375   :  { %6700 = vmatprep.subr.bf16.mxu0 %v1378_v24 }
 0x377   :  { %6685 = vmatpush3.bf16.msra.mxu1 %v1202_v38 }
 0x378   :  { %6701 = vmatpush3.bf16.msra.mxu0 %v1378_v24  ;;  %v13351_v24 = vld [vmem:[#allocation20_spill] sm:$0xff] }
 0x379   :  { %v1196_v2 = vadd.f32 %v13351_v24, %v1184_v17  ;;  %v1372_v33 = vadd.f32 %v13351_v24, %v1360_v30  ;;  %v13353_v17 = vld [vmem:[#allocation22_spill] sm:$0xff] }
 0x37a   :  { %6687 = vmatmul.mubr.msk.bf16.vlgmr.msra.gmra.mrb[32].mxu1 %vm215_vm0, %v8649_v8 }
 0x37b   :  { %6690 = vmatprep.mubr.msk.bf16.mxu1 %vm215_vm0, %v8651_v9  ;;  %6703 = vmatmul.mubr.msk.bf16.vlgmr.msra.gmra.mrb[28].mxu0 %vm215_vm0, %v8649_v8 }
 0x37c   :  { %6706 = vmatprep.mubr.msk.bf16.mxu0 %vm215_vm0, %v8651_v9 }
 0x382   :  { %6691 = vmatmul.mubr.msk.bf16.gmra.mrb[36].mxu1 %vm215_vm0, %v8664_v13 }
 0x383   :  { %6694 = vmatprep.mubr.msk.bf16.mxu1 %vm215_vm0, %v8673_v15  ;;  %6707 = vmatmul.mubr.msk.bf16.gmra.mrb[32].mxu0 %vm215_vm0, %v8664_v13 }
 0x384   :  { %6710 = vmatprep.mubr.msk.bf16.mxu0 %vm215_vm0, %v8673_v15 }
 0x38a   :  { %6695 = vmatmul.mubr.msk.bf16.gmra.mrb[40].mxu1 %vm215_vm0, %v8687_v18 }
 0x38b   :  { %6718 = vmatprep.mubr.msk.bf16.mxu1 %vm215_vm0, %v8638_v4  ;;  %6711 = vmatmul.mubr.msk.bf16.gmra.mrb[36].mxu0 %vm215_vm0, %v8687_v18 }
 0x38c   :  { %6734 = vmatprep.mubr.msk.bf16.mxu0 %vm215_vm0, %v8638_v4 }
 0x44d   :  { %v6688_v21 = vpop.f32.mrb[32].mxu1 }
 0x44e   :  { %v1286_v28 = vadd.f32 %v6688_v21, %v1191_v20  ;;  %v1237_v16 = vpop.f32.mrb[33].mxu1  ;;  %v6704_v12 = vpop.f32.mrb[28].mxu0  ;;  %v1194_v21 = vadd.f32 %v13353_v17, %v1182_v25  ;;  %v13357_v25 = vld [vmem:[#allocation26_spill] sm:$0xff] }
 0x44f   :  { %v1284_v37 = vadd.f32 %v1237_v16, %v1189_v5  ;;  %v6689_v44 = vpop.f32.mrb[34].mxu1  ;;  %v1462_v1 = vadd.f32 %v6704_v12, %v1367_v54  ;;  %v1413_v36 = vpop.f32.mrb[29].mxu0 }
 0x450   :  { %v1290_v42 = vmul.f32 0.5, %v1286_v28  ;;  %v1287_v39 = vadd.f32 %v6689_v44, %v1192_v62  ;;  %v1240_v38 = vpop.f32.mrb[35].mxu1  ;;  %v1460_v49 = vadd.f32 %v1413_v36, %v1365_v58  ;;  %v6705_v27 = vpop.f32.mrb[30].mxu0  ;;  %v1358_v62 = vmul.f32 %v13352_v46, %v9329_v43  ;;  %v13354_v58 = vld [vmem:[#allocation23_spill] sm:$0xff] }
 0x451   :  { %v1288_v29 = vmul.f32 0.5, %v1284_v37  ;;  %v1285_v56 = vadd.f32 %v1240_v38, %v1190_v48  ;;  %v1466_v20 = vmul.f32 0.5, %v1462_v1  ;;  %v1463_v26 = vadd.f32 %v6705_v27, %v1368_v6  ;;  %v1416_v5 = vpop.f32.mrb[31].mxu0 }
 0x452   :  { %7574 = vtanh.f32 %v1290_v42  ;;  %v1291_v3 = vmul.f32 0.5, %v1287_v39  ;;  %v1464_v7 = vmul.f32 0.5, %v1460_v49  ;;  %v1461_v31 = vadd.f32 %v1416_v5, %v1366_v11  ;;  %v13355_v11 = vld [vmem:[#allocation24_spill] sm:$0xff] }
 0x453   :  { %7576 = vtanh.f32 %v1288_v29  ;;  %v1467_v54 = vmul.f32 0.5, %v1463_v26  ;;  %v1289_v61 = vmul.f32 0.5, %v1285_v56  ;;  %v1187_v45 = vmul.f32 %v13354_v58, %v9327_v53 }
 0x454   :  { %7578 = vtanh.f32 %v1466_v20  ;;  %v1363_v6 = vmul.f32 %v13354_v58, %v9329_v43  ;;  %v1465_v48 = vmul.f32 0.5, %v1461_v31  ;;  %v1185_v32 = vmul.f32 %v13355_v11, %v9327_v53 }
 0x455   :  { %7580 = vtanh.f32 %v1464_v7  ;;  %v6692_v50 = vpop.f32.mrb[36].mxu1  ;;  %v1361_v44 = vmul.f32 %v13355_v11, %v9329_v43  ;;  %v1188_v42 = vmul.f32 %v13356_v55, %v9327_v53  ;;  %v1370_v56 = vadd.f32 %v13353_v17, %v1358_v62 }
 0x456   :  { %7582 = vtanh.f32 %v1291_v3  ;;  %v1306_v28 = vadd.f32 %v6692_v50, %v1195_v23  ;;  %v1253_v16 = vpop.f32.mrb[37].mxu1  ;;  %v6708_v30 = vpop.f32.mrb[32].mxu0  ;;  %v1364_v23 = vmul.f32 %v13356_v55, %v9329_v43  ;;  %v1199_v20 = vadd.f32 %v13357_v25, %v1187_v45 }
 0x457   :  { %7584 = vtanh.f32 %v1467_v54  ;;  %v1304_v12 = vadd.f32 %v1253_v16, %v1193_v60  ;;  %v6693_v37 = vpop.f32.mrb[38].mxu1  ;;  %v1482_v36 = vadd.f32 %v6708_v30, %v1371_v40  ;;  %v1429_v39 = vpop.f32.mrb[33].mxu0  ;;  %v1375_v26 = vadd.f32 %v13357_v25, %v1363_v6  ;;  %v13358_v40 = vld [vmem:[#allocation27_spill] sm:$0xff]  ;;  %v13360_v16 = vld [vmem:[#allocation29_spill] sm:$0xff] }
 0x458   :  { %7586 = vtanh.f32 %v1289_v61  ;;  %v1310_v1 = vmul.f32 0.5, %v1306_v28  ;;  %v1256_v38 = vpop.f32.mrb[39].mxu1  ;;  %v1480_v29 = vadd.f32 %v1429_v39, %v1369_v59  ;;  %v1307_v49 = vadd.f32 %v6693_v37, %v1196_v2  ;;  %v6709_v27 = vpop.f32.mrb[34].mxu0  ;;  %v13359_v59 = vld [vmem:[#allocation28_spill] sm:$0xff] }
 0x459   :  { %v1308_v24 = vmul.f32 0.5, %v1304_v12  ;;  %7588 = vtanh.f32 %v1465_v48  ;;  %v1305_v60 = vadd.f32 %v1256_v38, %v1194_v21  ;;  %v1432_v46 = vpop.f32.mrb[35].mxu0  ;;  %v1486_v3 = vmul.f32 0.5, %v1482_v36 }
 0x45a   :  { %v1197_v5 = vadd.f32 %v13358_v40, %v1185_v32  ;;  %v1373_v7 = vadd.f32 %v13358_v40, %v1361_v44  ;;  %7590 = vtanh.f32 %v1310_v1  ;;  %v1483_v54 = vadd.f32 %v6709_v27, %v1372_v33 }
 0x45b   :  { %v9396_v2 = vadd.f32 %v13359_v59, %v1188_v42  ;;  %v9399_v61 = vadd.f32 %v13359_v59, %v1364_v23  ;;  %7592 = vtanh.f32 %v1308_v24  ;;  %v1484_v17 = vmul.f32 0.5, %v1480_v29 }
 0x45c   :  { %v7575_v31 = vpop.eup %7574  ;;  %v1311_v21 = vmul.f32 0.5, %v1307_v49  ;;  %v1309_v48 = vmul.f32 0.5, %v1305_v60  ;;  %v1481_v28 = vadd.f32 %v1432_v46, %v1370_v56  ;;  %7594 = vtanh.f32 %v1486_v3 }
 0x45d   :  { %v7577_v62 = vpop.eup %7576  ;;  %v1298_v50 = vmul.f32 0.5, %v7575_v31  ;;  %v6696_v58 = vpop.f32.mrb[40].mxu1  ;;  %v1487_v36 = vmul.f32 0.5, %v1483_v54  ;;  %7596 = vtanh.f32 %v1484_v17 }
 0x45e   :  { %v7579_v45 = vpop.eup %7578  ;;  %v1296_v6 = vmul.f32 0.5, %v7577_v62  ;;  %v1326_v11 = vadd.f32 %v13360_v16, %v6696_v58  ;;  %v1269_v32 = vpop.f32.mrb[41].mxu1  ;;  %7598 = vtanh.f32 %v1311_v21 }
 0x45f   :  { %v7581_v33 = vpop.eup %7580  ;;  %v1474_v30 = vmul.f32 0.5, %v7579_v45  ;;  %v1302_v12 = vadd.f32 0.5, %v1298_v50  ;;  %v6712_v37 = vpop.f32.mrb[36].mxu0  ;;  %v1324_v44 = vadd.f32 %v9236_v34, %v1269_v32  ;;  %7600 = vtanh.f32 %v1487_v36 }
 0x460   :  { %v6697_v55 = vpop.f32.mrb[42].mxu1  ;;  %v7583_v42 = vpop.eup %7582  ;;  %v1472_v1 = vmul.f32 0.5, %v7581_v33  ;;  %v1502_v39 = vadd.f32 %v13360_v16, %v6712_v37  ;;  %v1300_v38 = vadd.f32 0.5, %v1296_v6 }
 0x461   :  { %v1445_v23 = vpop.f32.mrb[37].mxu0  ;;  %v1272_v24 = vpop.f32.mrb[43].mxu1  ;;  %v1299_v49 = vmul.f32 0.5, %v7583_v42  ;;  %v1330_v27 = vmul.f32 %v1326_v11, %v1302_v12  ;;  %v1478_v60 = vadd.f32 0.5, %v1474_v30  ;;  %v1327_v17 = vadd.f32 %v9244_v0, %v6697_v55 }
 0x462   :  { %v7585_v29 = vpop.eup %7584  ;;  %v6713_v56 = vpop.f32.mrb[38].mxu0  ;;  %v1328_v3 = vmul.f32 %v1324_v44, %v1300_v38  ;;  %v1476_v40 = vadd.f32 0.5, %v1472_v1  ;;  %v1500_v31 = vadd.f32 %v9236_v34, %v1445_v23  ;;  %v1186_v34 = vmul.f32 %v9251_v51, %v9327_v53 }
 0x463   :  { %v7587_v46 = vpop.eup %7586  ;;  %v1475_v25 = vmul.f32 0.5, %v7585_v29  ;;  %v1448_v59 = vpop.f32.mrb[39].mxu0  ;;  %v1334_v54 = vadd.f32 %v1330_v27, %v1199_v20  ;;  %v1506_v62 = vmul.f32 %v1502_v39, %v1478_v60  ;;  %v1303_v50 = vadd.f32 0.5, %v1299_v49 }
 0x464   :  { %v7589_v58 = vpop.eup %7588  ;;  %v1332_v45 = vadd.f32 %v1328_v3, %v1197_v5  ;;  %v1504_v6 = vmul.f32 %v1500_v31, %v1476_v40  ;;  %v1297_v16 = vmul.f32 0.5, %v7587_v46  ;;  %v1503_v37 = vadd.f32 %v9244_v0, %v6713_v56 }
 0x465   :  { %7602 = vtanh.f32 %v1334_v54  ;;  %v1510_v11 = vadd.f32 %v1506_v62, %v1375_v26  ;;  %v1479_v32 = vadd.f32 0.5, %v1475_v25  ;;  %v7591_v33 = vpop.eup %7590  ;;  %v1331_v12 = vmul.f32 %v1327_v17, %v1303_v50 }
 0x466   :  { %7604 = vtanh.f32 %v1332_v45  ;;  %v1508_v30 = vadd.f32 %v1504_v6, %v1373_v7  ;;  %v7593_v20 = vpop.eup %7592  ;;  %v1473_v21 = vmul.f32 0.5, %v7589_v58  ;;  %v1362_v5 = vmul.f32 %v9251_v51, %v9329_v43 }
 0x467   :  { %7606 = vtanh.f32 %v1510_v11  ;;  %v1485_v44 = vmul.f32 0.5, %v1481_v28  ;;  %v1335_v26 = vadd.f32 %v1331_v12, %v9396_v2  ;;  %v7595_v55 = vpop.eup %7594  ;;  %v1507_v42 = vmul.f32 %v1503_v37, %v1479_v32 }
 0x468   :  { %7608 = vtanh.f32 %v1508_v30  ;;  %v1301_v7 = vadd.f32 0.5, %v1297_v16  ;;  %v1198_v1 = vadd.f32 %v9259_v52, %v1186_v34  ;;  %v1325_v53 = vadd.f32 %v9265_v57, %v1272_v24  ;;  %v7597_v36 = vpop.eup %7596 }
 0x469   :  { %7610 = vtanh.f32 %v1309_v48  ;;  %v1511_v39 = vadd.f32 %v1507_v42, %v9399_v61  ;;  %v1374_v0 = vadd.f32 %v9259_v52, %v1362_v5  ;;  %v1477_v38 = vadd.f32 0.5, %v1473_v21  ;;  %v7599_v28 = vpop.eup %7598 }
 0x46a   :  { %7612 = vtanh.f32 %v1335_v26  ;;  %v1318_v51 = vmul.f32 0.5, %v7591_v33  ;;  %v1329_v43 = vmul.f32 %v1325_v53, %v1301_v7  ;;  %v1501_v2 = vadd.f32 %v9265_v57, %v1448_v59  ;;  %v7601_v23 = vpop.eup %7600 }
 0x46b   :  { %7614 = vtanh.f32 %v1485_v44  ;;  %v1316_v48 = vmul.f32 0.5, %v7593_v20  ;;  %v1494_v29 = vmul.f32 0.5, %v7595_v55  ;;  %v1492_v24 = vmul.f32 0.5, %v7597_v36 }
 0x46c   :  { %7616 = vtanh.f32 %v1511_v39  ;;  %v1333_v49 = vadd.f32 %v1329_v43, %v1198_v1  ;;  %v1505_v27 = vmul.f32 %v1501_v2, %v1477_v38  ;;  %v1322_v46 = vadd.f32 0.5, %v1318_v51 }
 0x46d   :  { %v1320_v3 = vadd.f32 0.5, %v1316_v48  ;;  %v1319_v40 = vmul.f32 0.5, %v7599_v28  ;;  %v1498_v59 = vadd.f32 0.5, %v1494_v29  ;;  %v1496_v58 = vadd.f32 0.5, %v1492_v24  ;;  %v9473_v28 = vld [vmem:[#allocation2 + $0x4] ss:$0 sm:$0xff] }
 0x46e   :  { %7618 = vtanh.f32 %v1333_v49  ;;  %v1509_v61 = vadd.f32 %v1505_v27, %v1374_v0  ;;  %v1495_v16 = vmul.f32 0.5, %v7601_v23  ;;  %v9475_v48 = vld [vmem:[#allocation2 + $0xc] ss:$0 sm:$0xff]  ;;  %v9480_v23 = vld [vmem:[%s12950_s1 + $0x10] sm:$0xff]  ;;  %v9487_v49 = vld [vmem:[%s12950_s1] sm:$0xff] }
 0x46f   :  { %v7603_v60 = vpop.eup %7602  ;;  %v1323_v32 = vadd.f32 0.5, %v1319_v40  ;;  %v1531_v29 = vmul.f32 %v9480_v23, %v9473_v28  ;;  %v1529_v27 = vmul.f32 %v9487_v49, %v9473_v28  ;;  %v9496_v24 = vld [vmem:[%s12950_s1 + $0x18] sm:$0xff] }
 0x470   :  { %v7605_v56 = vpop.eup %7604  ;;  %v1342_v52 = vsub.f32 %v9275_v19, %v7603_v60  ;;  %7620 = vtanh.f32 %v1509_v61  ;;  %v1708_v61 = vmul.f32 %v9496_v24, %v9475_v48 }
 0x471   :  { %v7607_v25 = vpop.eup %7606  ;;  %v1340_v57 = vsub.f32 %v9277_v63, %v7605_v56 }
 0x472   :  { %v7609_v31 = vpop.eup %7608  ;;  %v1346_v54 = vmul.f32 %v1342_v52, %v1322_v46  ;;  %v1518_v62 = vsub.f32 %v9280_v47, %v7607_v25  ;;  %v1705_v46 = vmul.f32 %v9487_v49, %v9475_v48  ;;  %v9507_v52 = vld [vmem:[%s12950_s1 + $0x8] sm:$0xff] }
 0x473   :  { %v7611_v50 = vpop.eup %7610  ;;  %v1344_v45 = vmul.f32 %v1340_v57, %v1320_v3  ;;  %v1516_v6 = vsub.f32 %v9282_v14, %v7609_v31  ;;  %v1499_v14 = vadd.f32 0.5, %v1495_v16  ;;  %v9511_v3 = vld [vmem:[#allocation5 + $0x10] sm:$0xff]  ;;  %v1706_v57 = vmul.f32 %v9507_v52, %v9475_v48  ;;  %v9538_v16 = vld [vmem:[#allocation5 + $0x18] sm:$0xff] }
 0x474   :  { %v7613_v17 = vpop.eup %7612  ;;  %v9421_v11 = vadd.f32 %v7603_v60, %v1346_v54  ;;  %v1522_v19 = vmul.f32 %v1518_v62, %v1498_v59  ;;  %v1317_v20 = vmul.f32 0.5, %v7611_v50  ;;  %v1707_v60 = vmul.f32 %v9480_v23, %v9475_v48  ;;  %v9523_v54 = vld [vmem:[#allocation5] sm:$0xff]  ;;  %13361 = vst [vmem:[#allocation16_spill] sm:$0xff] %v9538_v16 }
 0x475   :  { %v9423_v33 = vadd.f32 %v7605_v56, %v1344_v45  ;;  %v1520_v63 = vmul.f32 %v1516_v6, %v1496_v58  ;;  %v1343_v30 = vsub.f32 %v9285_v22, %v7613_v17  ;;  %v7615_v12 = vpop.eup %7614  ;;  %v1532_v56 = vmul.f32 %v9496_v24, %v9473_v28  ;;  %v9531_v58 = vld [vmem:[%s12950_s1 + $0x20] sm:$0xff] }
 0x476   :  { %v9426_v34 = vadd.f32 %v7607_v25, %v1522_v19  ;;  %v7617_v47 = vpop.eup %7616  ;;  %v1493_v44 = vmul.f32 0.5, %v7615_v12  ;;  %v1321_v7 = vadd.f32 0.5, %v1317_v20  ;;  %v1530_v25 = vmul.f32 %v9507_v52, %v9473_v28  ;;  %v9550_v20 = vld [vmem:[#allocation5 + $0x8] sm:$0xff] }
 0x477   :  { %v9428_v21 = vadd.f32 %v7609_v31, %v1520_v63  ;;  %v1347_v37 = vmul.f32 %v1343_v30, %v1323_v32  ;;  %v1519_v5 = vsub.f32 %v9288_v10, %v7617_v47  ;;  %v1543_v40 = vadd.f32 %v9511_v3, %v1531_v29  ;;  %v9519_v31 = vld [vmem:[%s12950_s1 + $0x30] sm:$0xff]  ;;  %v9544_v32 = vld [vmem:[%s12950_s1 + $0x38] sm:$0xff]  ;;  %13363 = vst [vmem:[#allocation18_spill] sm:$0xff] %v9550_v20 }
 0x478   :  { %v7619_v55 = vpop.eup %7618  ;;  %v1497_v36 = vadd.f32 0.5, %v1493_v44  ;;  %v1535_v59 = vmul.f32 %v9519_v31, %v9473_v28  ;;  %v1541_v62 = vadd.f32 %v9523_v54, %v1529_v27  ;;  %v1711_v50 = vmul.f32 %v9519_v31, %v9475_v48  ;;  %13362 = vst [vmem:[#allocation17_spill] sm:$0xff] %v9544_v32 }
 0x479   :  { %v9431_v26 = vadd.f32 %v7613_v17, %v1347_v37  ;;  %v1523_v42 = vmul.f32 %v1519_v5, %v1499_v14  ;;  %v1341_v1 = vsub.f32 %v9291_v35, %v7619_v55  ;;  %v1533_v45 = vmul.f32 %v9531_v58, %v9473_v28 }
 0x47a   :  { %v7621_v22 = vpop.eup %7620  ;;  %v1709_v6 = vmul.f32 %v9531_v58, %v9475_v48  ;;  %v1719_v17 = vadd.f32 %v9511_v3, %v1707_v60  ;;  %v1544_v19 = vadd.f32 %v9538_v16, %v1532_v56  ;;  %v1536_v63 = vmul.f32 %v9544_v32, %v9473_v28  ;;  %v9564_v60 = vld [vmem:[#allocation5 + $0x38] sm:$0xff] }
 0x47b   :  { %v9434_v53 = vadd.f32 %v7617_v47, %v1523_v42  ;;  %v1345_v39 = vmul.f32 %v1341_v1, %v1321_v7  ;;  %v1517_v0 = vsub.f32 %v9295_v41, %v7621_v22  ;;  %v1554_v35 = vpack.c.bf16 %v9431_v26, %v9421_v11  ;;  %13366 = vst [vmem:[#allocation20_spill] sm:$0xff] %v9564_v60 }
 0x47c   :  { %v1717_v12 = vadd.f32 %v9523_v54, %v1705_v46  ;;  %v1720_v47 = vadd.f32 %v9538_v16, %v1708_v61  ;;  %v1542_v37 = vadd.f32 %v9550_v20, %v1530_v25  ;;  %v1718_v44 = vadd.f32 %v9550_v20, %v1706_v57  ;;  %v9570_v57 = vld [vmem:[%s12950_s1 + $0x28] sm:$0xff] }
 0x47d   :  { %v9437_v38 = vadd.f32 %v7619_v55, %v1345_v39  ;;  %v1521_v51 = vmul.f32 %v1517_v0, %v1497_v36  ;;  %v1730_v41 = vpack.c.bf16 %v9434_v53, %v9426_v34  ;;  %v9554_v55 = vld [vmem:[#allocation5 + $0x30] sm:$0xff]  ;;  %v1712_v7 = vmul.f32 %v9544_v32, %v9475_v48  ;;  %v9560_v0 = vld [vmem:[#allocation5 + $0x20] sm:$0xff]  ;;  %13367 = vst [vmem:[#allocation21_spill] sm:$0xff] %v9570_v57 }
 0x47e   :  { %13364 = vst [vmem:[#allocation15_spill] sm:$0xff] %v9554_v55  ;;  %v1547_v42 = vadd.f32 %v9554_v55, %v1535_v59  ;;  %v1723_v39 = vadd.f32 %v9554_v55, %v1711_v50  ;;  %13365 = vst [vmem:[#allocation19_spill] sm:$0xff] %v9560_v0  ;;  %v1548_v56 = vadd.f32 %v9564_v60, %v1536_v63 }
 0x47f   :  { %v1553_v10 = vpack.c.bf16 %v9437_v38, %v9423_v33  ;;  %v9441_v43 = vadd.f32 %v7621_v22, %v1521_v51  ;;  %v1545_v51 = vadd.f32 %v9560_v0, %v1533_v45  ;;  %v1534_v59 = vmul.f32 %v9570_v57, %v9473_v28 }
 0x480   :  { %v1724_v63 = vadd.f32 %v9564_v60, %v1712_v7 }
 0x481   :  { %6714 = vmatprep.subr.bf16.mxu1 %v1553_v10  ;;  %v1729_v2 = vpack.c.bf16 %v9441_v43, %v9428_v21 }
 0x482   :  { %6715 = vmatpush3.bf16.msra.mxu1 %v1553_v10  ;;  %v1721_v10 = vadd.f32 %v9560_v0, %v1709_v6 }
 0x483   :  { %6730 = vmatprep.subr.bf16.mxu0 %v1729_v2  ;;  %6716 = vmatprep.subr.bf16.mxu1 %v1554_v35 }
 0x484   :  { %6731 = vmatpush3.bf16.msra.mxu0 %v1729_v2 }
 0x485   :  { %6732 = vmatprep.subr.bf16.mxu0 %v1730_v41 }
 0x486   :  { %6717 = vmatpush3.bf16.msra.mxu1 %v1554_v35 }
 0x488   :  { %6733 = vmatpush3.bf16.msra.mxu0 %v1730_v41 }
 0x489   :  { %6719 = vmatmul.mubr.msk.bf16.vlgmr.msra.gmra.mrb[44].mxu1 %vm215_vm0, %v8649_v8 }
 0x48a   :  { %6722 = vmatprep.mubr.msk.bf16.mxu1 %vm215_vm0, %v8651_v9 }
 0x48b   :  { %6735 = vmatmul.mubr.msk.bf16.vlgmr.msra.gmra.mrb[40].mxu0 %vm215_vm0, %v8649_v8 }
 0x48c   :  { %6738 = vmatprep.mubr.msk.bf16.mxu0 %vm215_vm0, %v8651_v9 }
 0x491   :  { %6723 = vmatmul.mubr.msk.bf16.gmra.mrb[48].mxu1 %vm215_vm0, %v8664_v13 }
 0x492   :  { %6726 = vmatprep.mubr.msk.bf16.mxu1 %vm215_vm0, %v8673_v15 }
 0x493   :  { %6739 = vmatmul.mubr.msk.bf16.gmra.mrb[44].mxu0 %vm215_vm0, %v8664_v13 }
 0x494   :  { %6742 = vmatprep.mubr.msk.bf16.mxu0 %vm215_vm0, %v8673_v15 }
 0x499   :  { %6727 = vmatmul.mubr.msk.bf16.gmra.mrb[52].mxu1 %vm215_vm0, %v8687_v18 }
 0x49a   :  { %6750 = vmatprep.mubr.msk.bf16.mxu1 %vm215_vm0, %v8638_v4 }
 0x49b   :  { %6743 = vmatmul.mubr.msk.bf16.gmra.mrb[48].mxu0 %vm215_vm0, %v8687_v18 }
 0x49c   :  { %6766 = vmatprep.mubr.msk.bf16.mxu0 %vm215_vm0, %v8638_v4 }
 0x55c   :  { %v6720_v30 = vpop.f32.mrb[44].mxu1 }
 0x55d   :  { %v1638_v14 = vadd.f32 %v6720_v30, %v1543_v40  ;;  %v1589_v5 = vpop.f32.mrb[45].mxu1 }
 0x55e   :  { %v6736_v1 = vpop.f32.mrb[40].mxu0  ;;  %v1636_v22 = vadd.f32 %v1589_v5, %v1541_v62  ;;  %v6721_v36 = vpop.f32.mrb[46].mxu1  ;;  %v9577_v5 = vld [vmem:[#allocation5 + $0x28] sm:$0xff] }
 0x55f   :  { %v1642_v2 = vmul.f32 0.5, %v1638_v14  ;;  %v1814_v35 = vadd.f32 %v6736_v1, %v1719_v17  ;;  %v1765_v41 = vpop.f32.mrb[41].mxu0  ;;  %v1639_v29 = vadd.f32 %v6721_v36, %v1544_v19  ;;  %v1592_v27 = vpop.f32.mrb[47].mxu1  ;;  %13368 = vst [vmem:[#allocation22_spill] sm:$0xff] %v9577_v5  ;;  %v1546_v1 = vadd.f32 %v9577_v5, %v1534_v59 }
 0x560   :  { %v1640_v46 = vmul.f32 0.5, %v1636_v22  ;;  %v1812_v61 = vadd.f32 %v1765_v41, %v1717_v12  ;;  %v6737_v25 = vpop.f32.mrb[42].mxu0  ;;  %v1637_v40 = vadd.f32 %v1592_v27, %v1542_v37  ;;  %v1710_v37 = vmul.f32 %v9570_v57, %v9475_v48 }
 0x561   :  { %7622 = vtanh.f32 %v1642_v2  ;;  %v1818_v62 = vmul.f32 0.5, %v1814_v35  ;;  %v1643_v50 = vmul.f32 0.5, %v1639_v29  ;;  %v1815_v45 = vadd.f32 %v6737_v25, %v1720_v47  ;;  %v1768_v6 = vpop.f32.mrb[43].mxu0  ;;  %v9583_v47 = vld [vmem:[%s12950_s1 + $0x50] sm:$0xff]  ;;  %v9592_v35 = vld [vmem:[%s12950_s1 + $0x40] sm:$0xff] }
 0x562   :  { %7624 = vtanh.f32 %v1640_v46  ;;  %v1816_v17 = vmul.f32 0.5, %v1812_v61  ;;  %v1813_v19 = vadd.f32 %v1768_v6, %v1718_v44  ;;  %v1641_v12 = vmul.f32 0.5, %v1637_v40  ;;  %13369 = vst [vmem:[#allocation23_spill] sm:$0xff] %v9583_v47  ;;  %13370 = vst [vmem:[#allocation24_spill] sm:$0xff] %v9592_v35 }
 0x563   :  { %7626 = vtanh.f32 %v1818_v62  ;;  %v1819_v30 = vmul.f32 0.5, %v1815_v45  ;;  %v1539_v44 = vmul.f32 %v9583_v47, %v9473_v28  ;;  %v1715_v7 = vmul.f32 %v9583_v47, %v9475_v48 }
 0x564   :  { %7628 = vtanh.f32 %v1816_v17  ;;  %v6724_v14 = vpop.f32.mrb[48].mxu1  ;;  %v1817_v22 = vmul.f32 0.5, %v1813_v19  ;;  %v1537_v41 = vmul.f32 %v9592_v35, %v9473_v28  ;;  %v1713_v61 = vmul.f32 %v9592_v35, %v9475_v48  ;;  %v9608_v35 = vld [vmem:[#allocation5 + $0x50] sm:$0xff] }
 0x565   :  { %7630 = vtanh.f32 %v1643_v50  ;;  %v1658_v36 = vadd.f32 %v6724_v14, %v1547_v42  ;;  %v1605_v2 = vpop.f32.mrb[49].mxu1  ;;  %v9601_v42 = vld [vmem:[%s12950_s1 + $0x58] sm:$0xff]  ;;  %v1722_v14 = vadd.f32 %v9577_v5, %v1710_v37  ;;  %13372 = vst [vmem:[#allocation26_spill] sm:$0xff] %v9608_v35 }
 0x566   :  { %7632 = vtanh.f32 %v1819_v30  ;;  %v6740_v29 = vpop.f32.mrb[44].mxu0  ;;  %v1656_v27 = vadd.f32 %v1605_v2, %v1545_v51  ;;  %v6725_v46 = vpop.f32.mrb[50].mxu1  ;;  %13371 = vst [vmem:[#allocation25_spill] sm:$0xff] %v9601_v42  ;;  %v1540_v25 = vmul.f32 %v9601_v42, %v9473_v28  ;;  %v1716_v51 = vmul.f32 %v9601_v42, %v9475_v48 }
 0x567   :  { %7634 = vtanh.f32 %v1641_v12  ;;  %v1662_v40 = vmul.f32 0.5, %v1658_v36  ;;  %v1834_v59 = vadd.f32 %v6740_v29, %v1723_v39  ;;  %v1781_v62 = vpop.f32.mrb[45].mxu0  ;;  %v1608_v50 = vpop.f32.mrb[51].mxu1  ;;  %v1659_v17 = vadd.f32 %v6725_v46, %v1548_v56  ;;  %v9612_v29 = vld [vmem:[#allocation5 + $0x40] sm:$0xff] }
 0x568   :  { %v1660_v45 = vmul.f32 0.5, %v1656_v27  ;;  %v1832_v6 = vadd.f32 %v1781_v62, %v1721_v10  ;;  %v6741_v19 = vpop.f32.mrb[46].mxu0  ;;  %7636 = vtanh.f32 %v1817_v22  ;;  %v1657_v30 = vadd.f32 %v1608_v50, %v1546_v1  ;;  %13373 = vst [vmem:[#allocation27_spill] sm:$0xff] %v9612_v29  ;;  %v9618_v22 = vld [vmem:[#allocation5 + $0x58] sm:$0xff] }
 0x569   :  { %v1784_v2 = vpop.f32.mrb[47].mxu0  ;;  %v1551_v12 = vadd.f32 %v9608_v35, %v1539_v44  ;;  %v1838_v36 = vmul.f32 0.5, %v1834_v59  ;;  %v1727_v39 = vadd.f32 %v9608_v35, %v1715_v7  ;;  %v1549_v42 = vadd.f32 %v9612_v29, %v1537_v41  ;;  %13374 = vst [vmem:[#allocation28_spill] sm:$0xff] %v9618_v22 }
 0x56a   :  { %v9616_v10 = vadd.f32 %v9612_v29, %v1713_v61  ;;  %7638 = vtanh.f32 %v1662_v40  ;;  %v1835_v1 = vadd.f32 %v6741_v19, %v1724_v63  ;;  %v9621_v37 = vadd.f32 %v9618_v22, %v1540_v25  ;;  %v9629_v63 = vld [vmem:[%s12953_s4 + $0x10] sm:$0xff] }
 0x56b   :  { %v7623_v56 = vpop.eup %7622  ;;  %v9624_v44 = vadd.f32 %v9618_v22, %v1716_v51  ;;  %7640 = vtanh.f32 %v1660_v45  ;;  %v1836_v46 = vmul.f32 0.5, %v1832_v6  ;;  %v1663_v59 = vmul.f32 0.5, %v1659_v17  ;;  %13375 = vst [vmem:[#allocation29_spill] sm:$0xff] %v9629_v63  ;;  %v9635_v6 = vld [vmem:[%s12953_s4] sm:$0xff] }
 0x56c   :  { %v7625_v27 = vpop.eup %7624  ;;  %v1650_v7 = vmul.f32 0.5, %v7623_v56  ;;  %v6728_v41 = vpop.f32.mrb[52].mxu1  ;;  %v1661_v50 = vmul.f32 0.5, %v1657_v30  ;;  %v1833_v29 = vadd.f32 %v1784_v2, %v1722_v14  ;;  %7642 = vtanh.f32 %v1838_v36 }
 0x56d   :  { %v7627_v62 = vpop.eup %7626  ;;  %v1648_v61 = vmul.f32 0.5, %v7625_v27  ;;  %v1678_v25 = vadd.f32 %v9629_v63, %v6728_v41  ;;  %v1621_v40 = vpop.f32.mrb[53].mxu1  ;;  %v1839_v27 = vmul.f32 0.5, %v1835_v1  ;;  %7644 = vtanh.f32 %v1836_v46  ;;  %v9643_v46 = vld [vmem:[%s12953_s4 + $0x18] sm:$0xff] }
 0x56e   :  { %v7629_v51 = vpop.eup %7628  ;;  %v1826_v19 = vmul.f32 0.5, %v7627_v62  ;;  %v1654_v56 = vadd.f32 0.5, %v1650_v7  ;;  %v6744_v45 = vpop.f32.mrb[48].mxu0  ;;  %v1676_v17 = vadd.f32 %v9635_v6, %v1621_v40  ;;  %7646 = vtanh.f32 %v1663_v59 }
 0x56f   :  { %v6729_v30 = vpop.f32.mrb[54].mxu1  ;;  %v7631_v14 = vpop.eup %7630  ;;  %v1824_v2 = vmul.f32 0.5, %v7629_v51  ;;  %v1854_v22 = vadd.f32 %v9629_v63, %v6744_v45  ;;  %v1652_v41 = vadd.f32 0.5, %v1648_v61  ;;  %7648 = vtanh.f32 %v1839_v27 }
 0x570   :  { %v1797_v35 = vpop.f32.mrb[49].mxu0  ;;  %v1624_v47 = vpop.f32.mrb[55].mxu1  ;;  %v1651_v36 = vmul.f32 0.5, %v7631_v14  ;;  %v1682_v7 = vmul.f32 %v1678_v25, %v1654_v56  ;;  %v1830_v5 = vadd.f32 0.5, %v1826_v19  ;;  %v1679_v25 = vadd.f32 %v9643_v46, %v6729_v30  ;;  %v9658_v30 = vld [vmem:[#allocation5 + $0x48] sm:$0xff] }
 0x571   :  { %v7633_v62 = vpop.eup %7632  ;;  %v6745_v57 = vpop.f32.mrb[50].mxu0  ;;  %v1680_v55 = vmul.f32 %v1676_v17, %v1652_v41  ;;  %v1828_v20 = vadd.f32 0.5, %v1824_v2  ;;  %v1852_v40 = vadd.f32 %v9635_v6, %v1797_v35 }
 0x572   :  { %v7635_v60 = vpop.eup %7634  ;;  %v1827_v0 = vmul.f32 0.5, %v7633_v62  ;;  %v1800_v32 = vpop.f32.mrb[51].mxu0  ;;  %v1686_v1 = vadd.f32 %v1682_v7, %v1551_v12  ;;  %v1858_v51 = vmul.f32 %v1854_v22, %v1830_v5  ;;  %v1655_v45 = vadd.f32 0.5, %v1651_v36 }
 0x573   :  { %v7637_v61 = vpop.eup %7636  ;;  %v1684_v63 = vadd.f32 %v1680_v55, %v1549_v42  ;;  %v1856_v16 = vmul.f32 %v1852_v40, %v1828_v20  ;;  %v1649_v19 = vmul.f32 0.5, %v7635_v60  ;;  %v9650_v20 = vld [vmem:[%s12950_s1 + $0x48] sm:$0xff]  ;;  %v1855_v60 = vadd.f32 %v9643_v46, %v6745_v57 }
 0x574   :  { %7650 = vtanh.f32 %v1686_v1  ;;  %v1862_v56 = vadd.f32 %v1858_v51, %v1727_v39  ;;  %v1831_v35 = vadd.f32 0.5, %v1827_v0  ;;  %v7639_v17 = vpop.eup %7638  ;;  %v1683_v12 = vmul.f32 %v1679_v25, %v1655_v45  ;;  %v9664_v57 = vld [vmem:[%s12953_s4 + $0x8] sm:$0xff] }
 0x575   :  { %7652 = vtanh.f32 %v1684_v63  ;;  %v1860_v5 = vadd.f32 %v1856_v16, %v9616_v10  ;;  %v1538_v55 = vmul.f32 %v9650_v20, %v9473_v28  ;;  %v7641_v42 = vpop.eup %7640  ;;  %v1825_v22 = vmul.f32 0.5, %v7637_v61 }
 0x576   :  { %7654 = vtanh.f32 %v1862_v56  ;;  %v1714_v0 = vmul.f32 %v9650_v20, %v9475_v48  ;;  %v1837_v39 = vmul.f32 0.5, %v1833_v29  ;;  %v1687_v16 = vadd.f32 %v1683_v12, %v9621_v37  ;;  %v7643_v10 = vpop.eup %7642 }
 0x577   :  { %7656 = vtanh.f32 %v1860_v5  ;;  %v1859_v59 = vmul.f32 %v1855_v60, %v1831_v35  ;;  %v1653_v63 = vadd.f32 0.5, %v1649_v19  ;;  %v1550_v28 = vadd.f32 %v9658_v30, %v1538_v55  ;;  %v7645_v29 = vpop.eup %7644 }
 0x578   :  { %7658 = vtanh.f32 %v1661_v50  ;;  %v1677_v48 = vadd.f32 %v9664_v57, %v1624_v47  ;;  %v1726_v37 = vadd.f32 %v9658_v30, %v1714_v0  ;;  %v1829_v50 = vadd.f32 0.5, %v1825_v22  ;;  %v7647_v62 = vpop.eup %7646 }
 0x579   :  { %7660 = vtanh.f32 %v1687_v16  ;;  %v1863_v14 = vadd.f32 %v1859_v59, %v9624_v44  ;;  %v1670_v2 = vmul.f32 0.5, %v7639_v17  ;;  %v1853_v41 = vadd.f32 %v9664_v57, %v1800_v32  ;;  %v7649_v7 = vpop.eup %7648 }
 0x57a   :  { %7662 = vtanh.f32 %v1837_v39  ;;  %v1681_v27 = vmul.f32 %v1677_v48, %v1653_v63  ;;  %v1668_v36 = vmul.f32 0.5, %v7641_v42  ;;  %v1846_v40 = vmul.f32 0.5, %v7643_v10 }
 0x57b   :  { %7664 = vtanh.f32 %v1863_v14  ;;  %v1857_v51 = vmul.f32 %v1853_v41, %v1829_v50  ;;  %v1844_v47 = vmul.f32 0.5, %v7645_v29  ;;  %v1674_v25 = vadd.f32 0.5, %v1670_v2 }
 0x57c   :  { %v1685_v1 = vadd.f32 %v1681_v27, %v1550_v28  ;;  %v1672_v35 = vadd.f32 0.5, %v1668_v36  ;;  %v1671_v17 = vmul.f32 0.5, %v7647_v62  ;;  %v1850_v12 = vadd.f32 0.5, %v1846_v40 }
 0x57d   :  { %v1861_v44 = vadd.f32 %v1857_v51, %v1726_v37  ;;  %v1848_v60 = vadd.f32 0.5, %v1844_v47  ;;  %v1847_v10 = vmul.f32 0.5, %v7649_v7 }
 0x57e   :  { %v7651_v45 = vpop.eup %7650  ;;  %7666 = vtanh.f32 %v1685_v1  ;;  %v1675_v63 = vadd.f32 0.5, %v1671_v17  ;;  %v9728_v17 = vld [vmem:[#allocation2 + $0xd] ss:$0 sm:$0xff] }
 0x57f   :  { %v7653_v61 = vpop.eup %7652  ;;  %v1694_v19 = vsub.f32 %v9421_v11, %v7651_v45  ;;  %7668 = vtanh.f32 %v1861_v44 }
 0x580   :  { %v7655_v56 = vpop.eup %7654  ;;  %v1692_v32 = vsub.f32 %v9423_v33, %v7653_v61 }
 0x581   :  { %v7657_v5 = vpop.eup %7656  ;;  %v1698_v55 = vmul.f32 %v1694_v19, %v1674_v25  ;;  %v1870_v42 = vsub.f32 %v9426_v34, %v7655_v56 }
 0x582   :  { %v7659_v22 = vpop.eup %7658  ;;  %v1696_v0 = vmul.f32 %v1692_v32, %v1672_v35  ;;  %v1868_v39 = vsub.f32 %v9428_v21, %v7657_v5  ;;  %v1851_v21 = vadd.f32 0.5, %v1847_v10  ;;  %v9726_v35 = vld [vmem:[#allocation2 + $0x5] ss:$0 sm:$0xff]  ;;  %v2063_v10 = vmul.f32 %v9519_v31, %v9728_v17 }
 0x583   :  { %v7661_v16 = vpop.eup %7660  ;;  %v9674_v59 = vadd.f32 %v7651_v45, %v1698_v55  ;;  %v1874_v11 = vmul.f32 %v1870_v42, %v1850_v12  ;;  %v1669_v37 = vmul.f32 0.5, %v7659_v22  ;;  %v1883_v32 = vmul.f32 %v9480_v23, %v9726_v35 }
 0x584   :  { %v9676_v28 = vadd.f32 %v7653_v61, %v1696_v0  ;;  %v1872_v33 = vmul.f32 %v1868_v39, %v1848_v60  ;;  %v1695_v48 = vsub.f32 %v9431_v26, %v7661_v16  ;;  %v7663_v29 = vpop.eup %7662  ;;  %v2059_v12 = vmul.f32 %v9480_v23, %v9728_v17 }
 0x585   :  { %v9679_v14 = vadd.f32 %v7655_v56, %v1874_v11  ;;  %v7665_v34 = vpop.eup %7664  ;;  %v1845_v41 = vmul.f32 0.5, %v7663_v29  ;;  %v1673_v40 = vadd.f32 0.5, %v1669_v37  ;;  %v1884_v55 = vmul.f32 %v9496_v24, %v9726_v35 }
 0x586   :  { %v9681_v50 = vadd.f32 %v7657_v5, %v1872_v33  ;;  %v1699_v2 = vmul.f32 %v1695_v48, %v1675_v63  ;;  %v1871_v27 = vsub.f32 %v9434_v53, %v7665_v34  ;;  %v1881_v5 = vmul.f32 %v9487_v49, %v9726_v35  ;;  %v13376_v63 = vld [vmem:[#allocation16_spill] sm:$0xff] }
 0x587   :  { %v1849_v45 = vadd.f32 0.5, %v1845_v41  ;;  %v2057_v42 = vmul.f32 %v9487_v49, %v9728_v17  ;;  %v2060_v22 = vmul.f32 %v9496_v24, %v9728_v17  ;;  %v1882_v60 = vmul.f32 %v9507_v52, %v9726_v35 }
 0x588   :  { %v9684_v62 = vadd.f32 %v7661_v16, %v1699_v2  ;;  %v7667_v36 = vpop.eup %7666  ;;  %v1875_v7 = vmul.f32 %v1871_v27, %v1851_v21  ;;  %v1895_v0 = vadd.f32 %v9511_v3, %v1883_v32  ;;  %v2058_v39 = vmul.f32 %v9507_v52, %v9728_v17  ;;  %v13377_v52 = vld [vmem:[#allocation17_spill] sm:$0xff]  ;;  %v13378_v2 = vld [vmem:[#allocation18_spill] sm:$0xff] }
 0x589   :  { %v1693_v1 = vsub.f32 %v9437_v38, %v7667_v36  ;;  %v7669_v26 = vpop.eup %7668  ;;  %v1887_v23 = vmul.f32 %v9519_v31, %v9726_v35  ;;  %v1893_v16 = vadd.f32 %v9523_v54, %v1881_v5  ;;  %v1885_v49 = vmul.f32 %v9531_v58, %v9726_v35 }
 0x58a   :  { %v9687_v51 = vadd.f32 %v7665_v34, %v1875_v7  ;;  %v1869_v61 = vsub.f32 %v9441_v43, %v7669_v26  ;;  %v1906_v38 = vpack.c.bf16 %v9684_v62, %v9674_v59  ;;  %v2061_v24 = vmul.f32 %v9531_v58, %v9728_v17 }
 0x58b   :  { %v1697_v47 = vmul.f32 %v1693_v1, %v1673_v40  ;;  %v2071_v11 = vadd.f32 %v9511_v3, %v2059_v12  ;;  %v1896_v33 = vadd.f32 %v13376_v63, %v1884_v55  ;;  %v1888_v48 = vmul.f32 %v13377_v52, %v9726_v35 }
 0x58c   :  { %v1873_v44 = vmul.f32 %v1869_v61, %v1849_v45  ;;  %v2082_v43 = vpack.c.bf16 %v9687_v51, %v9679_v14  ;;  %v2069_v34 = vadd.f32 %v9523_v54, %v2057_v42  ;;  %v2072_v37 = vadd.f32 %v13376_v63, %v2060_v22  ;;  %v13380_v45 = vld [vmem:[#allocation19_spill] sm:$0xff]  ;;  %v13382_v22 = vld [vmem:[#allocation21_spill] sm:$0xff] }
 0x58d   :  { %v9690_v25 = vadd.f32 %v7667_v36, %v1697_v47  ;;  %v1894_v31 = vadd.f32 %v13378_v2, %v1882_v60  ;;  %v2070_v41 = vadd.f32 %v13378_v2, %v2058_v39  ;;  %v13379_v36 = vld [vmem:[#allocation15_spill] sm:$0xff]  ;;  %v2064_v3 = vmul.f32 %v13377_v52, %v9728_v17 }
 0x58e   :  { %v9694_v19 = vadd.f32 %v7669_v26, %v1873_v44  ;;  %v1899_v58 = vadd.f32 %v13379_v36, %v1887_v23  ;;  %v2075_v26 = vadd.f32 %v13379_v36, %v2063_v10  ;;  %v1897_v54 = vadd.f32 %v13380_v45, %v1885_v49 }
 0x58f   :  { %v1905_v53 = vpack.c.bf16 %v9690_v25, %v9676_v28  ;;  %v2073_v47 = vadd.f32 %v13380_v45, %v2061_v24  ;;  %v1886_v60 = vmul.f32 %v13382_v22, %v9726_v35  ;;  %v13386_v45 = vld [vmem:[#allocation25_spill] sm:$0xff] }
 0x590   :  { %v2081_v56 = vpack.c.bf16 %v9694_v19, %v9681_v50 }
 0x591   :  { %6746 = vmatprep.subr.bf16.mxu1 %v1905_v53 }
 0x592   :  { %6747 = vmatpush3.bf16.msra.mxu1 %v1905_v53  ;;  %6762 = vmatprep.subr.bf16.mxu0 %v2081_v56 }
 0x593   :  { %6748 = vmatprep.subr.bf16.mxu1 %v1906_v38  ;;  %6763 = vmatpush3.bf16.msra.mxu0 %v2081_v56 }
 0x594   :  { %6764 = vmatprep.subr.bf16.mxu0 %v2082_v43 }
 0x596   :  { %6749 = vmatpush3.bf16.msra.mxu1 %v1906_v38 }
 0x597   :  { %6765 = vmatpush3.bf16.msra.mxu0 %v2082_v43  ;;  %v13381_v43 = vld [vmem:[#allocation20_spill] sm:$0xff] }
 0x598   :  { %v1900_v32 = vadd.f32 %v13381_v43, %v1888_v48  ;;  %v2076_v24 = vadd.f32 %v13381_v43, %v2064_v3  ;;  %v13383_v48 = vld [vmem:[#allocation22_spill] sm:$0xff] }
 0x599   :  { %6751 = vmatmul.mubr.msk.bf16.vlgmr.msra.gmra.mrb[56].mxu1 %vm215_vm0, %v8649_v8 }
 0x59a   :  { %6754 = vmatprep.mubr.msk.bf16.mxu1 %vm215_vm0, %v8651_v9  ;;  %6767 = vmatmul.mubr.msk.bf16.vlgmr.msra.gmra.mrb[52].mxu0 %vm215_vm0, %v8649_v8 }
 0x59b   :  { %6770 = vmatprep.mubr.msk.bf16.mxu0 %vm215_vm0, %v8651_v9 }
 0x5a1   :  { %6755 = vmatmul.mubr.msk.bf16.gmra.mrb[60].mxu1 %vm215_vm0, %v8664_v13 }
 0x5a2   :  { %6758 = vmatprep.mubr.msk.bf16.mxu1 %vm215_vm0, %v8673_v15  ;;  %6771 = vmatmul.mubr.msk.bf16.gmra.mrb[56].mxu0 %vm215_vm0, %v8664_v13 }
 0x5a3   :  { %6774 = vmatprep.mubr.msk.bf16.mxu0 %vm215_vm0, %v8673_v15 }
 0x5a9   :  { %6759 = vmatmul.mubr.msk.bf16.gmra.mrb[64].mxu1 %vm215_vm0, %v8687_v18 }
 0x5aa   :  { %6782 = vmatprep.mubr.msk.bf16.mxu1 %vm215_vm0, %v8638_v4  ;;  %6775 = vmatmul.mubr.msk.bf16.gmra.mrb[60].mxu0 %vm215_vm0, %v8687_v18 }
 0x5ab   :  { %6798 = vmatprep.mubr.msk.bf16.mxu0 %vm215_vm0, %v8638_v4 }
 0x66c   :  { %v6752_v29 = vpop.f32.mrb[56].mxu1 }
 0x66d   :  { %v1990_v21 = vadd.f32 %v6752_v29, %v1895_v0  ;;  %v1941_v27 = vpop.f32.mrb[57].mxu1  ;;  %v6768_v7 = vpop.f32.mrb[52].mxu0  ;;  %v1898_v29 = vadd.f32 %v13383_v48, %v1886_v60  ;;  %v13387_v60 = vld [vmem:[#allocation26_spill] sm:$0xff] }
 0x66e   :  { %v1988_v40 = vadd.f32 %v1941_v27, %v1893_v16  ;;  %v6753_v1 = vpop.f32.mrb[58].mxu1  ;;  %v2166_v44 = vadd.f32 %v6768_v7, %v2071_v11  ;;  %v2117_v53 = vpop.f32.mrb[53].mxu0 }
 0x66f   :  { %v1994_v61 = vmul.f32 0.5, %v1990_v21  ;;  %v1991_v56 = vadd.f32 %v6753_v1, %v1896_v33  ;;  %v1944_v38 = vpop.f32.mrb[59].mxu1  ;;  %v2164_v12 = vadd.f32 %v2117_v53, %v2069_v34  ;;  %v6769_v55 = vpop.f32.mrb[54].mxu0  ;;  %v2062_v33 = vmul.f32 %v13382_v22, %v9728_v17  ;;  %v13384_v34 = vld [vmem:[#allocation23_spill] sm:$0xff] }
 0x670   :  { %v1992_v5 = vmul.f32 0.5, %v1988_v40  ;;  %v1989_v42 = vadd.f32 %v1944_v38, %v1894_v31  ;;  %v2170_v0 = vmul.f32 0.5, %v2166_v44  ;;  %v2167_v23 = vadd.f32 %v6769_v55, %v2072_v37  ;;  %v2120_v16 = vpop.f32.mrb[55].mxu0 }
 0x671   :  { %7670 = vtanh.f32 %v1994_v61  ;;  %v1995_v39 = vmul.f32 0.5, %v1991_v56  ;;  %v2168_v10 = vmul.f32 0.5, %v2164_v12  ;;  %v2165_v49 = vadd.f32 %v2120_v16, %v2070_v41  ;;  %v13385_v41 = vld [vmem:[#allocation24_spill] sm:$0xff] }
 0x672   :  { %7672 = vtanh.f32 %v1992_v5  ;;  %v2171_v11 = vmul.f32 0.5, %v2167_v23  ;;  %v1993_v63 = vmul.f32 0.5, %v1989_v42  ;;  %v1891_v2 = vmul.f32 %v13384_v34, %v9726_v35 }
 0x673   :  { %7674 = vtanh.f32 %v2170_v0  ;;  %v2067_v37 = vmul.f32 %v13384_v34, %v9728_v17  ;;  %v2169_v31 = vmul.f32 0.5, %v2165_v49  ;;  %v1889_v36 = vmul.f32 %v13385_v41, %v9726_v35 }
 0x674   :  { %7676 = vtanh.f32 %v2168_v10  ;;  %v6756_v52 = vpop.f32.mrb[60].mxu1  ;;  %v2065_v1 = vmul.f32 %v13385_v41, %v9728_v17  ;;  %v1892_v61 = vmul.f32 %v13386_v45, %v9726_v35  ;;  %v2074_v42 = vadd.f32 %v13383_v48, %v2062_v33 }
 0x675   :  { %7678 = vtanh.f32 %v1995_v39  ;;  %v2010_v21 = vadd.f32 %v6756_v52, %v1899_v58  ;;  %v1957_v27 = vpop.f32.mrb[61].mxu1  ;;  %v6772_v3 = vpop.f32.mrb[56].mxu0  ;;  %v2068_v58 = vmul.f32 %v13386_v45, %v9728_v17  ;;  %v1903_v0 = vadd.f32 %v13387_v60, %v1891_v2 }
 0x676   :  { %7680 = vtanh.f32 %v2171_v11  ;;  %v2008_v7 = vadd.f32 %v1957_v27, %v1897_v54  ;;  %v6757_v40 = vpop.f32.mrb[62].mxu1  ;;  %v2186_v53 = vadd.f32 %v6772_v3, %v2075_v26  ;;  %v2133_v56 = vpop.f32.mrb[57].mxu0  ;;  %v2079_v23 = vadd.f32 %v13387_v60, %v2067_v37  ;;  %v13388_v26 = vld [vmem:[#allocation27_spill] sm:$0xff]  ;;  %v13390_v27 = vld [vmem:[#allocation29_spill] sm:$0xff] }
 0x677   :  { %7682 = vtanh.f32 %v1993_v63  ;;  %v2014_v44 = vmul.f32 0.5, %v2010_v21  ;;  %v1960_v38 = vpop.f32.mrb[63].mxu1  ;;  %v2184_v5 = vadd.f32 %v2133_v56, %v2073_v47  ;;  %v2011_v12 = vadd.f32 %v6757_v40, %v1900_v32  ;;  %v6773_v55 = vpop.f32.mrb[58].mxu0  ;;  %v13389_v47 = vld [vmem:[#allocation28_spill] sm:$0xff] }
 0x678   :  { %v2012_v43 = vmul.f32 0.5, %v2008_v7  ;;  %7684 = vtanh.f32 %v2169_v31  ;;  %v2009_v54 = vadd.f32 %v1960_v38, %v1898_v29  ;;  %v2136_v22 = vpop.f32.mrb[59].mxu0  ;;  %v2190_v39 = vmul.f32 0.5, %v2186_v53 }
 0x679   :  { %v1901_v16 = vadd.f32 %v13388_v26, %v1889_v36  ;;  %v2077_v10 = vadd.f32 %v13388_v26, %v2065_v1  ;;  %7686 = vtanh.f32 %v2014_v44  ;;  %v2187_v11 = vadd.f32 %v6773_v55, %v2076_v24 }
 0x67a   :  { %v9795_v32 = vadd.f32 %v13389_v47, %v1892_v61  ;;  %v9798_v63 = vadd.f32 %v13389_v47, %v2068_v58  ;;  %7688 = vtanh.f32 %v2012_v43  ;;  %v2188_v48 = vmul.f32 0.5, %v2184_v5 }
 0x67b   :  { %v7671_v49 = vpop.eup %7670  ;;  %v2015_v29 = vmul.f32 0.5, %v2011_v12  ;;  %v2013_v31 = vmul.f32 0.5, %v2009_v54  ;;  %v2185_v21 = vadd.f32 %v2136_v22, %v2074_v42  ;;  %7690 = vtanh.f32 %v2190_v39 }
 0x67c   :  { %v7673_v33 = vpop.eup %7672  ;;  %v2002_v52 = vmul.f32 0.5, %v7671_v49  ;;  %v6760_v34 = vpop.f32.mrb[64].mxu1  ;;  %v2191_v53 = vmul.f32 0.5, %v2187_v11  ;;  %7692 = vtanh.f32 %v2188_v48 }
 0x67d   :  { %v7675_v2 = vpop.eup %7674  ;;  %v2000_v37 = vmul.f32 0.5, %v7673_v33  ;;  %v2030_v41 = vadd.f32 %v13390_v27, %v6760_v34  ;;  %v1973_v36 = vpop.f32.mrb[65].mxu1  ;;  %7694 = vtanh.f32 %v2015_v29 }
 0x67e   :  { %v7677_v24 = vpop.eup %7676  ;;  %v2178_v3 = vmul.f32 0.5, %v7675_v2  ;;  %v2006_v7 = vadd.f32 0.5, %v2002_v52  ;;  %v6776_v40 = vpop.f32.mrb[60].mxu0  ;;  %v2028_v1 = vadd.f32 %v9635_v6, %v1973_v36  ;;  %7696 = vtanh.f32 %v2191_v53 }
 0x67f   :  { %v6761_v45 = vpop.f32.mrb[66].mxu1  ;;  %v7679_v61 = vpop.eup %7678  ;;  %v2176_v44 = vmul.f32 0.5, %v7677_v24  ;;  %v2206_v56 = vadd.f32 %v13390_v27, %v6776_v40  ;;  %v2004_v38 = vadd.f32 0.5, %v2000_v37 }
 0x680   :  { %v2149_v58 = vpop.f32.mrb[61].mxu0  ;;  %v1976_v43 = vpop.f32.mrb[67].mxu1  ;;  %v2003_v12 = vmul.f32 0.5, %v7679_v61  ;;  %v2034_v55 = vmul.f32 %v2030_v41, %v2006_v7  ;;  %v2182_v54 = vadd.f32 0.5, %v2178_v3  ;;  %v2031_v48 = vadd.f32 %v9643_v46, %v6761_v45 }
 0x681   :  { %v7681_v5 = vpop.eup %7680  ;;  %v6777_v42 = vpop.f32.mrb[62].mxu0  ;;  %v2032_v39 = vmul.f32 %v2028_v1, %v2004_v38  ;;  %v2180_v26 = vadd.f32 0.5, %v2176_v44  ;;  %v2204_v49 = vadd.f32 %v9635_v6, %v2149_v58  ;;  %v1890_v6 = vmul.f32 %v9650_v20, %v9726_v35 }
 0x682   :  { %v7683_v22 = vpop.eup %7682  ;;  %v2179_v60 = vmul.f32 0.5, %v7681_v5  ;;  %v2152_v47 = vpop.f32.mrb[63].mxu0  ;;  %v2038_v11 = vadd.f32 %v2034_v55, %v1903_v0  ;;  %v2210_v33 = vmul.f32 %v2206_v56, %v2182_v54  ;;  %v2007_v52 = vadd.f32 0.5, %v2003_v12 }
 0x683   :  { %v7685_v34 = vpop.eup %7684  ;;  %v2036_v2 = vadd.f32 %v2032_v39, %v1901_v16  ;;  %v2208_v37 = vmul.f32 %v2204_v49, %v2180_v26  ;;  %v2001_v27 = vmul.f32 0.5, %v7683_v22  ;;  %v2207_v40 = vadd.f32 %v9643_v46, %v6777_v42 }
 0x684   :  { %7698 = vtanh.f32 %v2038_v11  ;;  %v2214_v41 = vadd.f32 %v2210_v33, %v2079_v23  ;;  %v2183_v36 = vadd.f32 0.5, %v2179_v60  ;;  %v7687_v24 = vpop.eup %7686  ;;  %v2035_v7 = vmul.f32 %v2031_v48, %v2007_v52 }
 0x685   :  { %7700 = vtanh.f32 %v2036_v2  ;;  %v2212_v3 = vadd.f32 %v2208_v37, %v2077_v10  ;;  %v7689_v0 = vpop.eup %7688  ;;  %v2177_v29 = vmul.f32 0.5, %v7685_v34  ;;  %v2066_v16 = vmul.f32 %v9650_v20, %v9728_v17 }
 0x686   :  { %7702 = vtanh.f32 %v2214_v41  ;;  %v2189_v1 = vmul.f32 0.5, %v2185_v21  ;;  %v2039_v23 = vadd.f32 %v2035_v7, %v9795_v32  ;;  %v7691_v45 = vpop.eup %7690  ;;  %v2211_v61 = vmul.f32 %v2207_v40, %v2183_v36 }
 0x687   :  { %7704 = vtanh.f32 %v2212_v3  ;;  %v2005_v10 = vadd.f32 0.5, %v2001_v27  ;;  %v1902_v44 = vadd.f32 %v9658_v30, %v1890_v6  ;;  %v2029_v35 = vadd.f32 %v9664_v57, %v1976_v43  ;;  %v7693_v53 = vpop.eup %7692 }
 0x688   :  { %7706 = vtanh.f32 %v2013_v31  ;;  %v2215_v56 = vadd.f32 %v2211_v61, %v9798_v63  ;;  %v2078_v46 = vadd.f32 %v9658_v30, %v2066_v16  ;;  %v2181_v38 = vadd.f32 0.5, %v2177_v29  ;;  %v7695_v21 = vpop.eup %7694 }
 0x689   :  { %7708 = vtanh.f32 %v2039_v23  ;;  %v2022_v20 = vmul.f32 0.5, %v7687_v24  ;;  %v2033_v17 = vmul.f32 %v2029_v35, %v2005_v10  ;;  %v2205_v32 = vadd.f32 %v9664_v57, %v2152_v47  ;;  %v7697_v58 = vpop.eup %7696 }
 0x68a   :  { %7710 = vtanh.f32 %v2189_v1  ;;  %v2020_v31 = vmul.f32 0.5, %v7689_v0  ;;  %v2198_v5 = vmul.f32 0.5, %v7691_v45  ;;  %v2196_v43 = vmul.f32 0.5, %v7693_v53 }
 0x68b   :  { %7712 = vtanh.f32 %v2215_v56  ;;  %v2037_v12 = vadd.f32 %v2033_v17, %v1902_v44  ;;  %v2209_v55 = vmul.f32 %v2205_v32, %v2181_v38  ;;  %v2026_v22 = vadd.f32 0.5, %v2022_v20 }
 0x68c   :  { %v2024_v39 = vadd.f32 0.5, %v2020_v31  ;;  %v2023_v26 = vmul.f32 0.5, %v7695_v21  ;;  %v2202_v47 = vadd.f32 0.5, %v2198_v5  ;;  %v2200_v34 = vadd.f32 0.5, %v2196_v43  ;;  %v9872_v21 = vld [vmem:[#allocation2 + $0x6] ss:$0 sm:$0xff] }
 0x68d   :  { %7714 = vtanh.f32 %v2037_v12  ;;  %v2213_v63 = vadd.f32 %v2209_v55, %v2078_v46  ;;  %v2199_v27 = vmul.f32 0.5, %v7697_v58  ;;  %v9874_v31 = vld [vmem:[#allocation2 + $0xe] ss:$0 sm:$0xff]  ;;  %v9879_v58 = vld [vmem:[%s12950_s1 + $0x10] sm:$0xff]  ;;  %v9886_v12 = vld [vmem:[%s12950_s1] sm:$0xff] }
 0x68e   :  { %v7699_v54 = vpop.eup %7698  ;;  %v2027_v36 = vadd.f32 0.5, %v2023_v26  ;;  %v2235_v5 = vmul.f32 %v9879_v58, %v9872_v21  ;;  %v2411_v55 = vmul.f32 %v9879_v58, %v9874_v31 }
 0x68f   :  { %v7701_v42 = vpop.eup %7700  ;;  %v2046_v30 = vsub.f32 %v9674_v59, %v7699_v54  ;;  %7716 = vtanh.f32 %v2213_v63  ;;  %v9906_v63 = vld [vmem:[%s12950_s1 + $0x8] sm:$0xff] }
 0x690   :  { %v7703_v60 = vpop.eup %7702  ;;  %v2044_v57 = vsub.f32 %v9676_v28, %v7701_v42  ;;  %v2410_v26 = vmul.f32 %v9906_v63, %v9874_v31 }
 0x691   :  { %v7705_v49 = vpop.eup %7704  ;;  %v2050_v11 = vmul.f32 %v2046_v30, %v2026_v22  ;;  %v2222_v33 = vsub.f32 %v9679_v14, %v7703_v60  ;;  %v2234_v30 = vmul.f32 %v9906_v63, %v9872_v21 }
 0x692   :  { %v7707_v52 = vpop.eup %7706  ;;  %v2048_v2 = vmul.f32 %v2044_v57, %v2024_v39  ;;  %v2220_v37 = vsub.f32 %v9681_v50, %v7705_v49  ;;  %v2203_v50 = vadd.f32 0.5, %v2199_v27  ;;  %v9918_v57 = vld [vmem:[%s12950_s1 + $0x30] sm:$0xff] }
 0x693   :  { %v7709_v48 = vpop.eup %7708  ;;  %v9820_v41 = vadd.f32 %v7699_v54, %v2050_v11  ;;  %v2226_v59 = vmul.f32 %v2222_v33, %v2202_v47  ;;  %v2021_v0 = vmul.f32 0.5, %v7707_v52  ;;  %v9895_v54 = vld [vmem:[%s12950_s1 + $0x18] sm:$0xff]  ;;  %v9922_v47 = vld [vmem:[#allocation5] sm:$0xff]  ;;  %v2415_v33 = vmul.f32 %v9918_v57, %v9874_v31  ;;  %v9930_v52 = vld [vmem:[%s12950_s1 + $0x20] sm:$0xff] }
 0x694   :  { %v9822_v24 = vadd.f32 %v7701_v42, %v2048_v2  ;;  %v2224_v28 = vmul.f32 %v2220_v37, %v2200_v34  ;;  %v2047_v3 = vsub.f32 %v9684_v62, %v7709_v48  ;;  %v7711_v7 = vpop.eup %7710  ;;  %v2236_v43 = vmul.f32 %v9895_v54, %v9872_v21 }
 0x695   :  { %v9825_v6 = vadd.f32 %v7703_v60, %v2226_v59  ;;  %v7713_v14 = vpop.eup %7712  ;;  %v2197_v1 = vmul.f32 0.5, %v7711_v7  ;;  %v2025_v10 = vadd.f32 0.5, %v2021_v0  ;;  %v2409_v42 = vmul.f32 %v9886_v12, %v9874_v31  ;;  %v9910_v60 = vld [vmem:[#allocation5 + $0x10] sm:$0xff]  ;;  %v9943_v59 = vld [vmem:[%s12950_s1 + $0x38] sm:$0xff] }
 0x696   :  { %v9827_v29 = vadd.f32 %v7705_v49, %v2224_v28  ;;  %v2051_v40 = vmul.f32 %v2047_v3, %v2027_v36  ;;  %v2223_v16 = vsub.f32 %v9687_v51, %v7713_v14  ;;  %v2412_v22 = vmul.f32 %v9895_v54, %v9874_v31  ;;  %13391 = vst [vmem:[#allocation16_spill] sm:$0xff] %v9943_v59 }
 0x697   :  { %v7715_v45 = vpop.eup %7714  ;;  %v2201_v53 = vadd.f32 0.5, %v2197_v1  ;;  %v2247_v39 = vadd.f32 %v9910_v60, %v2235_v5  ;;  %v2239_v49 = vmul.f32 %v9918_v57, %v9872_v21  ;;  %v2237_v34 = vmul.f32 %v9930_v52, %v9872_v21  ;;  %v9953_v1 = vld [vmem:[#allocation5 + $0x30] sm:$0xff] }
 0x698   :  { %v9830_v23 = vadd.f32 %v7709_v48, %v2051_v40  ;;  %v2227_v61 = vmul.f32 %v2223_v16, %v2203_v50  ;;  %v2045_v44 = vsub.f32 %v9690_v25, %v7715_v45  ;;  %v2413_v2 = vmul.f32 %v9930_v52, %v9874_v31  ;;  %v9937_v48 = vld [vmem:[#allocation5 + $0x18] sm:$0xff]  ;;  %13393 = vst [vmem:[#allocation18_spill] sm:$0xff] %v9953_v1 }
 0x699   :  { %v7717_v62 = vpop.eup %7716  ;;  %v2423_v37 = vadd.f32 %v9910_v60, %v2411_v55  ;;  %v2248_v27 = vadd.f32 %v9937_v48, %v2236_v43  ;;  %v2240_v36 = vmul.f32 %v9943_v59, %v9872_v21  ;;  %v2421_v3 = vadd.f32 %v9922_v47, %v2409_v42 }
 0x69a   :  { %v9833_v35 = vadd.f32 %v7713_v14, %v2227_v61  ;;  %v2049_v56 = vmul.f32 %v2045_v44, %v2025_v10  ;;  %v2221_v46 = vsub.f32 %v9694_v19, %v7717_v62  ;;  %v2258_v25 = vpack.c.bf16 %v9830_v23, %v9820_v41  ;;  %v9949_v14 = vld [vmem:[#allocation5 + $0x8] sm:$0xff] }
 0x69b   :  { %v2424_v7 = vadd.f32 %v9937_v48, %v2412_v22  ;;  %13392 = vst [vmem:[#allocation17_spill] sm:$0xff] %v9949_v14  ;;  %v2246_v0 = vadd.f32 %v9949_v14, %v2234_v30  ;;  %v2422_v16 = vadd.f32 %v9949_v14, %v2410_v26  ;;  %v2416_v61 = vmul.f32 %v9943_v59, %v9874_v31 }
 0x69c   :  { %v9836_v38 = vadd.f32 %v7715_v45, %v2049_v56  ;;  %v2225_v20 = vmul.f32 %v2221_v46, %v2201_v53  ;;  %v2434_v19 = vpack.c.bf16 %v9833_v35, %v9825_v6  ;;  %v2251_v45 = vadd.f32 %v9953_v1, %v2239_v49  ;;  %v9959_v56 = vld [vmem:[#allocation5 + $0x20] sm:$0xff] }
 0x69d   :  { %v2427_v53 = vadd.f32 %v9953_v1, %v2415_v33  ;;  %13394 = vst [vmem:[#allocation15_spill] sm:$0xff] %v9959_v56  ;;  %v2249_v46 = vadd.f32 %v9959_v56, %v2237_v34 }
 0x69e   :  { %v2257_v51 = vpack.c.bf16 %v9836_v38, %v9822_v24  ;;  %v9840_v17 = vadd.f32 %v7717_v62, %v2225_v20  ;;  %v2425_v20 = vadd.f32 %v9959_v56, %v2413_v2 }
 0x6a0   :  { %6778 = vmatprep.subr.bf16.mxu1 %v2257_v51  ;;  %v2433_v32 = vpack.c.bf16 %v9840_v17, %v9827_v29 }
 0x6a1   :  { %6779 = vmatpush3.bf16.msra.mxu1 %v2257_v51 }
 0x6a2   :  { %6794 = vmatprep.subr.bf16.mxu0 %v2433_v32  ;;  %6780 = vmatprep.subr.bf16.mxu1 %v2258_v25 }
 0x6a3   :  { %6795 = vmatpush3.bf16.msra.mxu0 %v2433_v32 }
 0x6a4   :  { %6796 = vmatprep.subr.bf16.mxu0 %v2434_v19 }
 0x6a5   :  { %6781 = vmatpush3.bf16.msra.mxu1 %v2258_v25 }
 0x6a7   :  { %6797 = vmatpush3.bf16.msra.mxu0 %v2434_v19 }
 0x6a8   :  { %6783 = vmatmul.mubr.msk.bf16.vlgmr.msra.gmra.mrb[68].mxu1 %vm215_vm0, %v8649_v8 }
 0x6a9   :  { %6786 = vmatprep.mubr.msk.bf16.mxu1 %vm215_vm0, %v8651_v9 }
 0x6aa   :  { %6799 = vmatmul.mubr.msk.bf16.vlgmr.msra.gmra.mrb[64].mxu0 %vm215_vm0, %v8649_v8 }
 0x6ab   :  { %6802 = vmatprep.mubr.msk.bf16.mxu0 %vm215_vm0, %v8651_v9 }
 0x6b0   :  { %6787 = vmatmul.mubr.msk.bf16.gmra.mrb[72].mxu1 %vm215_vm0, %v8664_v13 }
 0x6b1   :  { %6790 = vmatprep.mubr.msk.bf16.mxu1 %vm215_vm0, %v8673_v15 }
 0x6b2   :  { %6803 = vmatmul.mubr.msk.bf16.gmra.mrb[68].mxu0 %vm215_vm0, %v8664_v13 }
 0x6b3   :  { %6806 = vmatprep.mubr.msk.bf16.mxu0 %vm215_vm0, %v8673_v15 }
 0x6b8   :  { %6791 = vmatmul.mubr.msk.bf16.gmra.mrb[76].mxu1 %vm215_vm0, %v8687_v18 }
 0x6b9   :  { %6814 = vmatprep.mubr.msk.bf16.mxu1 %vm215_vm0, %v8638_v4 }
 0x6ba   :  { %6807 = vmatmul.mubr.msk.bf16.gmra.mrb[72].mxu0 %vm215_vm0, %v8687_v18 }
 0x6bb   :  { %6830 = vmatprep.mubr.msk.bf16.mxu0 %vm215_vm0, %v8638_v4  ;;  %v2233_v4 = vmul.f32 %v9886_v12, %v9872_v21 }
 0x6bd   :  { %v2245_v11 = vadd.f32 %v9922_v47, %v2233_v4  ;;  %v9963_v4 = vld [vmem:[#allocation5 + $0x38] sm:$0xff] }
 0x6be   :  { %13395 = vst [vmem:[#allocation19_spill] sm:$0xff] %v9963_v4  ;;  %v2252_v55 = vadd.f32 %v9963_v4, %v2240_v36 }
 0x77b   :  { %v6784_v28 = vpop.f32.mrb[68].mxu1 }
 0x77c   :  { %v2342_v40 = vadd.f32 %v6784_v28, %v2247_v39  ;;  %v2293_v50 = vpop.f32.mrb[69].mxu1  ;;  %v9969_v39 = vld [vmem:[%s12950_s1 + $0x28] sm:$0xff] }
 0x77d   :  { %v6800_v10 = vpop.f32.mrb[64].mxu0  ;;  %v2340_v44 = vadd.f32 %v2293_v50, %v2245_v11  ;;  %v6785_v62 = vpop.f32.mrb[70].mxu1  ;;  %13396 = vst [vmem:[#allocation20_spill] sm:$0xff] %v9969_v39  ;;  %v2238_v26 = vmul.f32 %v9969_v39, %v9872_v21 }
 0x77e   :  { %v2346_v51 = vmul.f32 0.5, %v2342_v40  ;;  %v2518_v32 = vadd.f32 %v6800_v10, %v2423_v37  ;;  %v2469_v25 = vpop.f32.mrb[65].mxu0  ;;  %v2343_v19 = vadd.f32 %v6785_v62, %v2248_v27  ;;  %v2296_v5 = vpop.f32.mrb[71].mxu1  ;;  %v2428_v27 = vadd.f32 %v9963_v4, %v2416_v61  ;;  %v9976_v40 = vld [vmem:[#allocation5 + $0x28] sm:$0xff] }
 0x77f   :  { %v2344_v43 = vmul.f32 0.5, %v2340_v44  ;;  %v2516_v42 = vadd.f32 %v2469_v25, %v2421_v3  ;;  %v6801_v22 = vpop.f32.mrb[66].mxu0  ;;  %v2341_v30 = vadd.f32 %v2296_v5, %v2246_v0  ;;  %v2414_v3 = vmul.f32 %v9969_v39, %v9874_v31  ;;  %13397 = vst [vmem:[#allocation21_spill] sm:$0xff] %v9976_v40 }
 0x780   :  { %7718 = vtanh.f32 %v2346_v51  ;;  %v2522_v49 = vmul.f32 0.5, %v2518_v32  ;;  %v2347_v11 = vmul.f32 0.5, %v2343_v19  ;;  %v2519_v33 = vadd.f32 %v6801_v22, %v2424_v7  ;;  %v2472_v34 = vpop.f32.mrb[67].mxu0  ;;  %v9982_v7 = vld [vmem:[%s12950_s1 + $0x50] sm:$0xff]  ;;  %v9991_v51 = vld [vmem:[%s12950_s1 + $0x40] sm:$0xff] }
 0x781   :  { %7720 = vtanh.f32 %v2344_v43  ;;  %v2520_v2 = vmul.f32 0.5, %v2516_v42  ;;  %v2517_v37 = vadd.f32 %v2472_v34, %v2422_v16  ;;  %v2345_v28 = vmul.f32 0.5, %v2341_v30  ;;  %13398 = vst [vmem:[#allocation22_spill] sm:$0xff] %v9982_v7  ;;  %13399 = vst [vmem:[#allocation23_spill] sm:$0xff] %v9991_v51 }
 0x782   :  { %7722 = vtanh.f32 %v2522_v49  ;;  %v2523_v36 = vmul.f32 0.5, %v2519_v33  ;;  %v2250_v50 = vadd.f32 %v9976_v40, %v2238_v26  ;;  %v2243_v16 = vmul.f32 %v9982_v7, %v9872_v21 }
 0x783   :  { %7724 = vtanh.f32 %v2520_v2  ;;  %v6788_v0 = vpop.f32.mrb[72].mxu1  ;;  %v2419_v61 = vmul.f32 %v9982_v7, %v9874_v31  ;;  %v2521_v10 = vmul.f32 0.5, %v2517_v37  ;;  %v2241_v32 = vmul.f32 %v9991_v51, %v9872_v21 }
 0x784   :  { %7726 = vtanh.f32 %v2347_v11  ;;  %v2362_v44 = vadd.f32 %v6788_v0, %v2251_v45  ;;  %v2309_v62 = vpop.f32.mrb[73].mxu1  ;;  %v2417_v43 = vmul.f32 %v9991_v51, %v9874_v31  ;;  %v10000_v45 = vld [vmem:[%s12950_s1 + $0x58] sm:$0xff] }
 0x785   :  { %7728 = vtanh.f32 %v2523_v36  ;;  %v6804_v25 = vpop.f32.mrb[68].mxu0  ;;  %v2360_v19 = vadd.f32 %v2309_v62, %v2249_v46  ;;  %v6789_v5 = vpop.f32.mrb[74].mxu1  ;;  %13400 = vst [vmem:[#allocation24_spill] sm:$0xff] %v10000_v45  ;;  %v2244_v42 = vmul.f32 %v10000_v45, %v9872_v21  ;;  %v2420_v46 = vmul.f32 %v10000_v45, %v9874_v31  ;;  %v10007_v62 = vld [vmem:[#allocation5 + $0x50] sm:$0xff] }
 0x786   :  { %7730 = vtanh.f32 %v2345_v28  ;;  %v2366_v22 = vmul.f32 0.5, %v2362_v44  ;;  %v2538_v30 = vadd.f32 %v6804_v25, %v2427_v53  ;;  %v2485_v26 = vpop.f32.mrb[69].mxu0  ;;  %v2312_v49 = vpop.f32.mrb[75].mxu1  ;;  %v2363_v34 = vadd.f32 %v6789_v5, %v2252_v55  ;;  %13401 = vst [vmem:[#allocation25_spill] sm:$0xff] %v10007_v62  ;;  %v10011_v25 = vld [vmem:[#allocation5 + $0x40] sm:$0xff] }
 0x787   :  { %v2364_v11 = vmul.f32 0.5, %v2360_v19  ;;  %v2536_v33 = vadd.f32 %v2485_v26, %v2425_v20  ;;  %v6805_v2 = vpop.f32.mrb[70].mxu0  ;;  %7732 = vtanh.f32 %v2521_v10  ;;  %v2361_v37 = vadd.f32 %v2312_v49, %v2250_v50  ;;  %13402 = vst [vmem:[#allocation26_spill] sm:$0xff] %v10011_v25  ;;  %v10017_v10 = vld [vmem:[#allocation5 + $0x58] sm:$0xff] }
 0x788   :  { %v2426_v36 = vadd.f32 %v9976_v40, %v2414_v3  ;;  %v2488_v0 = vpop.f32.mrb[71].mxu0  ;;  %v2255_v28 = vadd.f32 %v10007_v62, %v2243_v16  ;;  %v2542_v44 = vmul.f32 0.5, %v2538_v30  ;;  %v2431_v53 = vadd.f32 %v10007_v62, %v2419_v61  ;;  %13403 = vst [vmem:[#allocation27_spill] sm:$0xff] %v10017_v10 }
 0x789   :  { %v2253_v45 = vadd.f32 %v10011_v25, %v2241_v32  ;;  %v10015_v20 = vadd.f32 %v10011_v25, %v2417_v43  ;;  %7734 = vtanh.f32 %v2366_v22  ;;  %v2539_v50 = vadd.f32 %v6805_v2, %v2428_v27  ;;  %v10028_v27 = vld [vmem:[%s12953_s4 + $0x10] sm:$0xff] }
 0x78a   :  { %v7719_v55 = vpop.eup %7718  ;;  %v10020_v3 = vadd.f32 %v10017_v10, %v2244_v42  ;;  %v10023_v16 = vadd.f32 %v10017_v10, %v2420_v46  ;;  %7736 = vtanh.f32 %v2364_v11  ;;  %v2540_v5 = vmul.f32 0.5, %v2536_v33  ;;  %13404 = vst [vmem:[#allocation28_spill] sm:$0xff] %v10028_v27  ;;  %v10034_v33 = vld [vmem:[%s12953_s4] sm:$0xff] }
 0x78b   :  { %v7721_v19 = vpop.eup %7720  ;;  %v2354_v61 = vmul.f32 0.5, %v7719_v55  ;;  %v2367_v30 = vmul.f32 0.5, %v2363_v34  ;;  %v6792_v32 = vpop.f32.mrb[76].mxu1  ;;  %v2365_v49 = vmul.f32 0.5, %v2361_v37  ;;  %v2537_v25 = vadd.f32 %v2488_v0, %v2426_v36 }
 0x78c   :  { %v7723_v26 = vpop.eup %7722  ;;  %v2352_v43 = vmul.f32 0.5, %v7721_v19  ;;  %v2382_v42 = vadd.f32 %v10028_v27, %v6792_v32  ;;  %v2325_v22 = vpop.f32.mrb[77].mxu1  ;;  %7738 = vtanh.f32 %v2542_v44  ;;  %v2543_v19 = vmul.f32 0.5, %v2539_v50 }
 0x78d   :  { %v7725_v46 = vpop.eup %7724  ;;  %v2530_v2 = vmul.f32 0.5, %v7723_v26  ;;  %v2358_v55 = vadd.f32 0.5, %v2354_v61  ;;  %v6808_v11 = vpop.f32.mrb[72].mxu0  ;;  %v2380_v34 = vadd.f32 %v10034_v33, %v2325_v22  ;;  %7740 = vtanh.f32 %v2540_v5  ;;  %v10042_v5 = vld [vmem:[%s12953_s4 + $0x18] sm:$0xff] }
 0x78e   :  { %v6793_v37 = vpop.f32.mrb[78].mxu1  ;;  %v7727_v36 = vpop.eup %7726  ;;  %v2528_v0 = vmul.f32 0.5, %v7725_v46  ;;  %v2558_v10 = vadd.f32 %v10028_v27, %v6808_v11  ;;  %v2356_v32 = vadd.f32 0.5, %v2352_v43  ;;  %7742 = vtanh.f32 %v2367_v30 }
 0x78f   :  { %v2501_v62 = vpop.f32.mrb[73].mxu0  ;;  %v2328_v51 = vpop.f32.mrb[79].mxu1  ;;  %v2355_v44 = vmul.f32 0.5, %v7727_v36  ;;  %v2386_v61 = vmul.f32 %v2382_v42, %v2358_v55  ;;  %v2534_v7 = vadd.f32 0.5, %v2530_v2  ;;  %7744 = vtanh.f32 %v2543_v19 }
 0x790   :  { %v7729_v26 = vpop.eup %7728  ;;  %v6809_v40 = vpop.f32.mrb[74].mxu0  ;;  %v2384_v56 = vmul.f32 %v2380_v34, %v2356_v32  ;;  %v2532_v1 = vadd.f32 0.5, %v2528_v0  ;;  %v2556_v22 = vadd.f32 %v10034_v33, %v2501_v62  ;;  %v2383_v42 = vadd.f32 %v10042_v5, %v6793_v37  ;;  %v10057_v37 = vld [vmem:[#allocation5 + $0x48] sm:$0xff] }
 0x791   :  { %v7731_v39 = vpop.eup %7730  ;;  %v2531_v4 = vmul.f32 0.5, %v7729_v26  ;;  %v2504_v14 = vpop.f32.mrb[75].mxu0  ;;  %v2390_v50 = vadd.f32 %v2386_v61, %v2255_v28  ;;  %v2562_v46 = vmul.f32 %v2558_v10, %v2534_v7  ;;  %v2359_v11 = vadd.f32 0.5, %v2355_v44 }
 0x792   :  { %v7733_v43 = vpop.eup %7732  ;;  %v2388_v27 = vadd.f32 %v2384_v56, %v2253_v45  ;;  %v2560_v59 = vmul.f32 %v2556_v22, %v2532_v1  ;;  %v2353_v2 = vmul.f32 0.5, %v7731_v39  ;;  %v10049_v1 = vld [vmem:[%s12950_s1 + $0x48] sm:$0xff]  ;;  %v2559_v39 = vadd.f32 %v10042_v5, %v6809_v40 }
 0x793   :  { %7746 = vtanh.f32 %v2390_v50  ;;  %v2566_v55 = vadd.f32 %v2562_v46, %v2431_v53  ;;  %v2535_v62 = vadd.f32 0.5, %v2531_v4  ;;  %v7735_v34 = vpop.eup %7734  ;;  %v2387_v28 = vmul.f32 %v2383_v42, %v2359_v11  ;;  %v10063_v40 = vld [vmem:[%s12953_s4 + $0x8] sm:$0xff] }
 0x794   :  { %7748 = vtanh.f32 %v2388_v27  ;;  %v2564_v7 = vadd.f32 %v2560_v59, %v10015_v20  ;;  %v2242_v56 = vmul.f32 %v10049_v1, %v9872_v21  ;;  %v7737_v45 = vpop.eup %7736  ;;  %v2529_v10 = vmul.f32 0.5, %v7733_v43 }
 0x795   :  { %7750 = vtanh.f32 %v2566_v55  ;;  %v2418_v4 = vmul.f32 %v10049_v1, %v9874_v31  ;;  %v2541_v53 = vmul.f32 0.5, %v2537_v25  ;;  %v2391_v59 = vadd.f32 %v2387_v28, %v10020_v3 }
 0x796   :  { %7752 = vtanh.f32 %v2564_v7  ;;  %v7739_v20 = vpop.eup %7738  ;;  %v2563_v30 = vmul.f32 %v2559_v39, %v2535_v62  ;;  %v2357_v27 = vadd.f32 0.5, %v2353_v2  ;;  %v2254_v21 = vadd.f32 %v10057_v37, %v2242_v56 }
 0x797   :  { %7754 = vtanh.f32 %v2365_v49  ;;  %v2381_v31 = vadd.f32 %v10063_v40, %v2328_v51  ;;  %v7741_v25 = vpop.eup %7740  ;;  %v2430_v3 = vadd.f32 %v10057_v37, %v2418_v4  ;;  %v2533_v49 = vadd.f32 0.5, %v2529_v10 }
 0x798   :  { %7756 = vtanh.f32 %v2391_v59  ;;  %v2567_v36 = vadd.f32 %v2563_v30, %v10023_v16  ;;  %v2374_v0 = vmul.f32 0.5, %v7735_v34  ;;  %v2557_v32 = vadd.f32 %v10063_v40, %v2504_v14  ;;  %v7743_v26 = vpop.eup %7742 }
 0x799   :  { %7758 = vtanh.f32 %v2541_v53  ;;  %v2385_v19 = vmul.f32 %v2381_v31, %v2357_v27  ;;  %v2372_v44 = vmul.f32 0.5, %v7737_v45  ;;  %v7745_v61 = vpop.eup %7744  ;;  %v2550_v22 = vmul.f32 0.5, %v7739_v20 }
 0x79a   :  { %7760 = vtanh.f32 %v2567_v36  ;;  %v2561_v46 = vmul.f32 %v2557_v32, %v2533_v49  ;;  %v2548_v51 = vmul.f32 0.5, %v7741_v25  ;;  %v2378_v42 = vadd.f32 0.5, %v2374_v0 }
 0x79b   :  { %v2389_v50 = vadd.f32 %v2385_v19, %v2254_v21  ;;  %v2376_v62 = vadd.f32 0.5, %v2372_v44  ;;  %v2375_v34 = vmul.f32 0.5, %v7743_v26  ;;  %v2554_v28 = vadd.f32 0.5, %v2550_v22 }
 0x79c   :  { %v2565_v16 = vadd.f32 %v2561_v46, %v2430_v3  ;;  %v2552_v39 = vadd.f32 0.5, %v2548_v51  ;;  %v2551_v20 = vmul.f32 0.5, %v7745_v61 }
 0x79d   :  { %v7747_v11 = vpop.eup %7746  ;;  %7762 = vtanh.f32 %v2389_v50  ;;  %v2379_v27 = vadd.f32 0.5, %v2375_v34 }
 0x79e   :  { %v7749_v43 = vpop.eup %7748  ;;  %v2398_v2 = vsub.f32 %v9820_v41, %v7747_v11  ;;  %7764 = vtanh.f32 %v2565_v16 }
 0x79f   :  { %v7751_v55 = vpop.eup %7750  ;;  %v2396_v14 = vsub.f32 %v9822_v24, %v7749_v43 }
 0x7a0   :  { %v7753_v7 = vpop.eup %7752  ;;  %v2402_v56 = vmul.f32 %v2398_v2, %v2378_v42  ;;  %v2574_v45 = vsub.f32 %v9825_v6, %v7751_v55 }
 0x7a1   :  { %v7755_v10 = vpop.eup %7754  ;;  %v2400_v4 = vmul.f32 %v2396_v14, %v2376_v62  ;;  %v2572_v53 = vsub.f32 %v9827_v29, %v7753_v7  ;;  %v2555_v29 = vadd.f32 0.5, %v2551_v20 }
 0x7a2   :  { %v7757_v59 = vpop.eup %7756  ;;  %v10073_v30 = vadd.f32 %v7747_v11, %v2402_v56  ;;  %v2578_v41 = vmul.f32 %v2574_v45, %v2554_v28  ;;  %v2373_v3 = vmul.f32 0.5, %v7755_v10 }
 0x7a3   :  { %v10075_v21 = vadd.f32 %v7749_v43, %v2400_v4  ;;  %v2576_v24 = vmul.f32 %v2572_v53, %v2552_v39  ;;  %v2399_v31 = vsub.f32 %v9830_v23, %v7757_v59  ;;  %v7759_v25 = vpop.eup %7758 }
 0x7a4   :  { %v10078_v36 = vadd.f32 %v7751_v55, %v2578_v41  ;;  %v7761_v6 = vpop.eup %7760  ;;  %v2549_v32 = vmul.f32 0.5, %v7759_v25  ;;  %v2377_v22 = vadd.f32 0.5, %v2373_v3  ;;  %v13407_v3 = vld [vmem:[#allocation18_spill] sm:$0xff] }
 0x7a5   :  { %v10080_v49 = vadd.f32 %v7753_v7, %v2576_v24  ;;  %v2403_v0 = vmul.f32 %v2399_v31, %v2379_v27  ;;  %v2575_v19 = vsub.f32 %v9833_v35, %v7761_v6  ;;  %v13406_v24 = vld [vmem:[#allocation17_spill] sm:$0xff] }
 0x7a6   :  { %v2553_v11 = vadd.f32 0.5, %v2549_v32 }
 0x7a7   :  { %v10083_v26 = vadd.f32 %v7757_v59, %v2403_v0  ;;  %v7763_v44 = vpop.eup %7762  ;;  %v2579_v61 = vmul.f32 %v2575_v19, %v2555_v29 }
 0x7a8   :  { %v2397_v50 = vsub.f32 %v9836_v38, %v7763_v44  ;;  %v7765_v23 = vpop.eup %7764 }
 0x7a9   :  { %v10086_v46 = vadd.f32 %v7761_v6, %v2579_v61  ;;  %v2573_v43 = vsub.f32 %v9840_v17, %v7765_v23  ;;  %v2610_v38 = vpack.c.bf16 %v10083_v26, %v10073_v30 }
 0x7aa   :  { %v2401_v51 = vmul.f32 %v2397_v50, %v2377_v22 }
 0x7ab   :  { %v2577_v16 = vmul.f32 %v2573_v43, %v2553_v11  ;;  %v2786_v17 = vpack.c.bf16 %v10086_v46, %v10078_v36 }
 0x7ac   :  { %v10089_v42 = vadd.f32 %v7763_v44, %v2401_v51  ;;  %v13408_v44 = vld [vmem:[#allocation15_spill] sm:$0xff] }
 0x7ad   :  { %v10093_v2 = vadd.f32 %v7765_v23, %v2577_v16  ;;  %v13409_v51 = vld [vmem:[#allocation19_spill] sm:$0xff] }
 0x7ae   :  { %v2609_v35 = vpack.c.bf16 %v10089_v42, %v10075_v21 }
 0x7af   :  { %v2785_v55 = vpack.c.bf16 %v10093_v2, %v10080_v49 }
 0x7b0   :  { %6810 = vmatprep.subr.bf16.mxu1 %v2609_v35 }
 0x7b1   :  { %6811 = vmatpush3.bf16.msra.mxu1 %v2609_v35  ;;  %6826 = vmatprep.subr.bf16.mxu0 %v2785_v55 }
 0x7b2   :  { %6812 = vmatprep.subr.bf16.mxu1 %v2610_v38  ;;  %6827 = vmatpush3.bf16.msra.mxu0 %v2785_v55 }
 0x7b3   :  { %6828 = vmatprep.subr.bf16.mxu0 %v2786_v17 }
 0x7b5   :  { %6813 = vmatpush3.bf16.msra.mxu1 %v2610_v38 }
 0x7b6   :  { %6829 = vmatpush3.bf16.msra.mxu0 %v2786_v17  ;;  %v13410_v17 = vld [vmem:[#allocation20_spill] sm:$0xff] }
 0x7b8   :  { %6815 = vmatmul.mubr.msk.bf16.vlgmr.msra.gmra.mrb[80].mxu1 %vm215_vm0, %v8649_v8 }
 0x7b9   :  { %6818 = vmatprep.mubr.msk.bf16.mxu1 %vm215_vm0, %v8651_v9  ;;  %6831 = vmatmul.mubr.msk.bf16.vlgmr.msra.gmra.mrb[76].mxu0 %vm215_vm0, %v8649_v8  ;;  %v13055_v8 = vmov 0.0  }
 0x7ba   :  { %6834 = vmatprep.mubr.msk.bf16.mxu0 %vm215_vm0, %v8651_v9  ;;  %6842 = vmatprep.subr.bf16.mxu1 %v13055_v8  ;;  %v10127_v9 = vld [vmem:[#allocation2 + $0x7] ss:$0 sm:$0xff] }
 0x7bb   :  { %6874 = vmatprep.subr.bf16.mxu0 %v13055_v8  ;;  %v2588_v34 = vmul.f32 %v9895_v54, %v10127_v9  ;;  %v2586_v28 = vmul.f32 %v9906_v63, %v10127_v9 }
 0x7bd   :  { %v2600_v53 = vadd.f32 %v9937_v48, %v2588_v34 }
 0x7c0   :  { %6819 = vmatmul.mubr.msk.bf16.gmra.mrb[84].mxu1 %vm215_vm0, %v8664_v13 }
 0x7c1   :  { %6822 = vmatprep.mubr.msk.bf16.mxu1 %vm215_vm0, %v8673_v15  ;;  %6835 = vmatmul.mubr.msk.bf16.gmra.mrb[80].mxu0 %vm215_vm0, %v8664_v13  ;;  %v10129_v13 = vld [vmem:[#allocation2 + $0xf] ss:$0 sm:$0xff] }
 0x7c2   :  { %6838 = vmatprep.mubr.msk.bf16.mxu0 %vm215_vm0, %v8673_v15  ;;  %v2587_v15 = vmul.f32 %v9879_v58, %v10127_v9  ;;  %v2763_v62 = vmul.f32 %v9879_v58, %v10129_v13  ;;  %v2761_v14 = vmul.f32 %v9886_v12, %v10129_v13  ;;  %v2764_v7 = vmul.f32 %v9895_v54, %v10129_v13 }
 0x7c3   :  { %v2762_v45 = vmul.f32 %v9906_v63, %v10129_v13  ;;  %v2591_v58 = vmul.f32 %v9918_v57, %v10127_v9  ;;  %v2767_v39 = vmul.f32 %v9918_v57, %v10129_v13  ;;  %v2765_v54 = vmul.f32 %v9930_v52, %v10129_v13  ;;  %v13405_v63 = vld [vmem:[#allocation16_spill] sm:$0xff] }
 0x7c4   :  { %v2599_v56 = vadd.f32 %v9910_v60, %v2587_v15  ;;  %v2775_v4 = vadd.f32 %v9910_v60, %v2763_v62  ;;  %v2592_v59 = vmul.f32 %v13405_v63, %v10127_v9  ;;  %v2773_v41 = vadd.f32 %v9922_v47, %v2761_v14 }
 0x7c5   :  { %v2776_v27 = vadd.f32 %v9937_v48, %v2764_v7  ;;  %v2598_v57 = vadd.f32 %v13406_v24, %v2586_v28  ;;  %v2774_v6 = vadd.f32 %v13406_v24, %v2762_v45  ;;  %v2768_v60 = vmul.f32 %v13405_v63, %v10129_v13 }
 0x7c6   :  { %v2779_v32 = vadd.f32 %v13407_v3, %v2767_v39  ;;  %v2777_v48 = vadd.f32 %v13408_v44, %v2765_v54  ;;  %v2604_v43 = vadd.f32 %v13409_v51, %v2592_v59  ;;  %v2590_v15 = vmul.f32 %v13410_v17, %v10127_v9 }
 0x7c8   :  { %6823 = vmatmul.mubr.msk.bf16.gmra.mrb[88].mxu1 %vm215_vm0, %v8687_v18 }
 0x7c9   :  { %6839 = vmatmul.mubr.msk.bf16.gmra.mrb[84].mxu0 %vm215_vm0, %v8687_v18  ;;  %6846 = vmatprep.mubr.msk.bf16.mxu1 %vm8520_vm1, %v13055_v8  ;;  %v2585_v18 = vmul.f32 %v9886_v12, %v10127_v9  ;;  %v2589_v12 = vmul.f32 %v9930_v52, %v10127_v9  ;;  %v2603_v52 = vadd.f32 %v13407_v3, %v2591_v58  ;;  %v13414_v3 = vld [vmem:[#allocation24_spill] sm:$0xff] }
 0x7ca   :  { %6878 = vmatprep.mubr.msk.bf16.mxu0 %vm8520_vm1, %v13055_v8 }
 0x7cb   :  { %v2597_v10 = vadd.f32 %v9922_v47, %v2585_v18  ;;  %v2601_v47 = vadd.f32 %v13408_v44, %v2589_v12  ;;  %v13411_v12 = vld [vmem:[#allocation21_spill] sm:$0xff]  ;;  %v2772_v44 = vmul.f32 %v13414_v3, %v10129_v13 }
 0x7cc   :  { %v2602_v54 = vadd.f32 %v13411_v12, %v2590_v15 }
 0x88b   :  { %v6816_v20 = vpop.f32.mrb[80].mxu1 }
 0x88c   :  { %v2694_v31 = vadd.f32 %v6816_v20, %v2599_v56  ;;  %v2645_v25 = vpop.f32.mrb[81].mxu1  ;;  %v6832_v0 = vpop.f32.mrb[76].mxu0  ;;  %v2780_v56 = vadd.f32 %v13409_v51, %v2768_v60  ;;  %v2596_v60 = vmul.f32 %v13414_v3, %v10127_v9 }
 0x88d   :  { %v2692_v29 = vadd.f32 %v2645_v25, %v2597_v10  ;;  %v6817_v19 = vpop.f32.mrb[82].mxu1  ;;  %v2870_v22 = vadd.f32 %v6832_v0, %v2775_v4  ;;  %v2821_v50 = vpop.f32.mrb[77].mxu0  ;;  %v2766_v10 = vmul.f32 %v13410_v17, %v10129_v13  ;;  %v13412_v4 = vld [vmem:[#allocation22_spill] sm:$0xff] }
 0x88e   :  { %v2698_v61 = vmul.f32 0.5, %v2694_v31  ;;  %v2695_v23 = vadd.f32 %v6817_v19, %v2600_v53  ;;  %v2648_v11 = vpop.f32.mrb[83].mxu1  ;;  %v2868_v35 = vadd.f32 %v2821_v50, %v2773_v41  ;;  %v6833_v55 = vpop.f32.mrb[78].mxu0  ;;  %v2595_v53 = vmul.f32 %v13412_v4, %v10127_v9  ;;  %v13413_v41 = vld [vmem:[#allocation23_spill] sm:$0xff]  ;;  %v13416_v17 = vld [vmem:[#allocation26_spill] sm:$0xff] }
 0x88f   :  { %v2696_v16 = vmul.f32 0.5, %v2692_v29  ;;  %v2693_v38 = vadd.f32 %v2648_v11, %v2598_v57  ;;  %v2874_v18 = vmul.f32 0.5, %v2870_v22  ;;  %v2871_v34 = vadd.f32 %v6833_v55, %v2776_v27  ;;  %v2824_v14 = vpop.f32.mrb[79].mxu0 }
 0x890   :  { %7766 = vtanh.f32 %v2698_v61  ;;  %v2699_v62 = vmul.f32 0.5, %v2695_v23  ;;  %v2872_v7 = vmul.f32 0.5, %v2868_v35  ;;  %v2869_v28 = vadd.f32 %v2824_v14, %v2774_v6  ;;  %v13415_v35 = vld [vmem:[#allocation25_spill] sm:$0xff] }
 0x891   :  { %7768 = vtanh.f32 %v2696_v16  ;;  %v2875_v45 = vmul.f32 0.5, %v2871_v34  ;;  %v2697_v58 = vmul.f32 0.5, %v2693_v38  ;;  %v2771_v63 = vmul.f32 %v13412_v4, %v10129_v13 }
 0x892   :  { %7770 = vtanh.f32 %v2874_v18  ;;  %v2593_v27 = vmul.f32 %v13413_v41, %v10127_v9  ;;  %v2769_v24 = vmul.f32 %v13413_v41, %v10129_v13  ;;  %v2873_v57 = vmul.f32 0.5, %v2869_v28 }
 0x893   :  { %7772 = vtanh.f32 %v2872_v7  ;;  %v6820_v39 = vpop.f32.mrb[84].mxu1  ;;  %v2607_v55 = vadd.f32 %v13415_v35, %v2595_v53  ;;  %v2783_v38 = vadd.f32 %v13415_v35, %v2771_v63 }
 0x894   :  { %7774 = vtanh.f32 %v2699_v62  ;;  %v2714_v59 = vadd.f32 %v6820_v39, %v2603_v52  ;;  %v2661_v20 = vpop.f32.mrb[85].mxu1  ;;  %v6836_v31 = vpop.f32.mrb[80].mxu0  ;;  %v2605_v15 = vadd.f32 %v13416_v17, %v2593_v27  ;;  %v2781_v18 = vadd.f32 %v13416_v17, %v2769_v24 }
 0x895   :  { %7776 = vtanh.f32 %v2875_v45  ;;  %v2712_v25 = vadd.f32 %v2661_v20, %v2601_v47  ;;  %v6821_v6 = vpop.f32.mrb[86].mxu1  ;;  %v2890_v29 = vadd.f32 %v6836_v31, %v2779_v32  ;;  %v2837_v19 = vpop.f32.mrb[81].mxu0  ;;  %v2778_v47 = vadd.f32 %v13411_v12, %v2766_v10  ;;  %v13418_v12 = vld [vmem:[#allocation28_spill] sm:$0xff] }
 0x896   :  { %7778 = vtanh.f32 %v2697_v58  ;;  %v2718_v0 = vmul.f32 0.5, %v2714_v59  ;;  %v2664_v52 = vpop.f32.mrb[87].mxu1  ;;  %v2888_v22 = vadd.f32 %v2837_v19, %v2777_v48  ;;  %v2715_v50 = vadd.f32 %v6821_v6, %v2604_v43  ;;  %v6837_v23 = vpop.f32.mrb[82].mxu0  ;;  %v13417_v43 = vld [vmem:[#allocation27_spill] sm:$0xff] }
 0x897   :  { %v2716_v61 = vmul.f32 0.5, %v2712_v25  ;;  %v2713_v11 = vadd.f32 %v2664_v52, %v2602_v54  ;;  %v2894_v51 = vmul.f32 0.5, %v2890_v29  ;;  %v2840_v16 = vpop.f32.mrb[83].mxu0  ;;  %7780 = vtanh.f32 %v2873_v57 }
 0x898   :  { %v2891_v32 = vadd.f32 %v6837_v23, %v2780_v56  ;;  %7782 = vtanh.f32 %v2718_v0  ;;  %v2892_v48 = vmul.f32 0.5, %v2888_v22  ;;  %v10196_v34 = vadd.f32 %v13417_v43, %v2596_v60 }
 0x899   :  { %v10199_v14 = vadd.f32 %v13417_v43, %v2772_v44  ;;  %7784 = vtanh.f32 %v2716_v61  ;;  %v2719_v28 = vmul.f32 0.5, %v2715_v50  ;;  %v2717_v45 = vmul.f32 0.5, %v2713_v11 }
 0x89a   :  { %v7767_v62 = vpop.eup %7766  ;;  %7786 = vtanh.f32 %v2894_v51  ;;  %v2889_v39 = vadd.f32 %v2840_v16, %v2778_v47  ;;  %v2895_v59 = vmul.f32 0.5, %v2891_v32 }
 0x89b   :  { %v7769_v7 = vpop.eup %7768  ;;  %v6824_v58 = vpop.f32.mrb[88].mxu1  ;;  %v2706_v10 = vmul.f32 0.5, %v7767_v62  ;;  %7788 = vtanh.f32 %v2892_v48 }
 0x89c   :  { %v7771_v56 = vpop.eup %7770  ;;  %v2734_v54 = vadd.f32 %v13418_v12, %v6824_v58  ;;  %v2677_v4 = vpop.f32.mrb[89].mxu1  ;;  %v2704_v53 = vmul.f32 0.5, %v7769_v7  ;;  %7790 = vtanh.f32 %v2719_v28 }
 0x89d   :  { %v7773_v63 = vpop.eup %7772  ;;  %v2710_v20 = vadd.f32 0.5, %v2706_v10  ;;  %v6840_v41 = vpop.f32.mrb[84].mxu0  ;;  %v2882_v27 = vmul.f32 0.5, %v7771_v56  ;;  %v2732_v24 = vadd.f32 %v10034_v33, %v2677_v4  ;;  %7792 = vtanh.f32 %v2895_v59 }
 0x89e   :  { %v6825_v57 = vpop.f32.mrb[90].mxu1  ;;  %v7775_v31 = vpop.eup %7774  ;;  %v2910_v25 = vadd.f32 %v13418_v12, %v6840_v41  ;;  %v2708_v6 = vadd.f32 0.5, %v2704_v53  ;;  %v2880_v60 = vmul.f32 0.5, %v7773_v63  ;;  %v2770_v53 = vmul.f32 %v10049_v1, %v10129_v13 }
 0x89f   :  { %v2853_v3 = vpop.f32.mrb[85].mxu0  ;;  %v2680_v0 = vpop.f32.mrb[91].mxu1  ;;  %v2738_v19 = vmul.f32 %v2734_v54, %v2710_v20  ;;  %v2886_v52 = vadd.f32 0.5, %v2882_v27  ;;  %v2707_v11 = vmul.f32 0.5, %v7775_v31  ;;  %v2735_v51 = vadd.f32 %v10042_v5, %v6825_v57 }
 0x8a0   :  { %v7777_v29 = vpop.eup %7776  ;;  %v2908_v44 = vadd.f32 %v10034_v33, %v2853_v3  ;;  %v6841_v61 = vpop.f32.mrb[86].mxu0  ;;  %v2736_v50 = vmul.f32 %v2732_v24, %v2708_v6  ;;  %v2884_v23 = vadd.f32 0.5, %v2880_v60 }
 0x8a1   :  { %v7779_v22 = vpop.eup %7778  ;;  %v2856_v47 = vpop.f32.mrb[87].mxu0  ;;  %v2742_v16 = vadd.f32 %v2738_v19, %v2607_v55  ;;  %v2914_v35 = vmul.f32 %v2910_v25, %v2886_v52  ;;  %v2883_v32 = vmul.f32 0.5, %v7777_v29  ;;  %v2911_v17 = vadd.f32 %v10042_v5, %v6841_v61 }
 0x8a2   :  { %v2740_v62 = vadd.f32 %v2736_v50, %v2605_v15  ;;  %v2912_v48 = vmul.f32 %v2908_v44, %v2884_v23  ;;  %v2711_v43 = vadd.f32 0.5, %v2707_v11  ;;  %v7781_v7 = vpop.eup %7780  ;;  %v2705_v58 = vmul.f32 0.5, %v7779_v22 }
 0x8a3   :  { %7794 = vtanh.f32 %v2742_v16  ;;  %v2918_v33 = vadd.f32 %v2914_v35, %v2783_v38  ;;  %v2887_v28 = vadd.f32 0.5, %v2883_v32  ;;  %v7783_v10 = vpop.eup %7782  ;;  %v2594_v55 = vmul.f32 %v10049_v1, %v10127_v9 }
 0x8a4   :  { %7796 = vtanh.f32 %v2740_v62  ;;  %v2916_v56 = vadd.f32 %v2912_v48, %v2781_v18  ;;  %v2739_v12 = vmul.f32 %v2735_v51, %v2711_v43  ;;  %v7785_v54 = vpop.eup %7784  ;;  %v2893_v38 = vmul.f32 0.5, %v2889_v39 }
 0x8a5   :  { %7798 = vtanh.f32 %v2918_v33  ;;  %v2915_v4 = vmul.f32 %v2911_v17, %v2887_v28  ;;  %v7787_v5 = vpop.eup %7786  ;;  %v2709_v59 = vadd.f32 0.5, %v2705_v58  ;;  %v2606_v20 = vadd.f32 %v10057_v37, %v2594_v55 }
 0x8a6   :  { %7800 = vtanh.f32 %v2916_v56  ;;  %v2743_v15 = vadd.f32 %v2739_v12, %v10196_v34  ;;  %v7789_v18 = vpop.eup %7788  ;;  %v2733_v9 = vadd.f32 %v10063_v40, %v2680_v0  ;;  %v2881_v27 = vmul.f32 0.5, %v7781_v7 }
 0x8a7   :  { %7802 = vtanh.f32 %v2717_v45  ;;  %v2919_v63 = vadd.f32 %v2915_v4, %v10199_v14  ;;  %v7791_v41 = vpop.eup %7790  ;;  %v2726_v24 = vmul.f32 0.5, %v7783_v10  ;;  %v2909_v34 = vadd.f32 %v10063_v40, %v2856_v47 }
 0x8a8   :  { %7804 = vtanh.f32 %v2743_v15  ;;  %v2737_v57 = vmul.f32 %v2733_v9, %v2709_v59  ;;  %v2724_v31 = vmul.f32 0.5, %v7785_v54  ;;  %v2782_v1 = vadd.f32 %v10057_v37, %v2770_v53  ;;  %v7793_v14 = vpop.eup %7792 }
 0x8a9   :  { %7806 = vtanh.f32 %v2919_v63  ;;  %v2885_v13 = vadd.f32 0.5, %v2881_v27  ;;  %v2902_v45 = vmul.f32 0.5, %v7787_v5  ;;  %v2900_v6 = vmul.f32 0.5, %v7789_v18 }
 0x8aa   :  { %7808 = vtanh.f32 %v2893_v38  ;;  %v2741_v39 = vadd.f32 %v2737_v57, %v2606_v20  ;;  %v2730_v0 = vadd.f32 0.5, %v2726_v24  ;;  %v2728_v52 = vadd.f32 0.5, %v2724_v31  ;;  %v173_v31 = vld [vmem:[%s12956_s7 + $0x18] sm:$0xff] }
 0x8ab   :  { %v2913_v3 = vmul.f32 %v2909_v34, %v2885_v13  ;;  %v2727_v44 = vmul.f32 0.5, %v7791_v41  ;;  %v2906_v37 = vadd.f32 0.5, %v2902_v45  ;;  %v2903_v50 = vmul.f32 0.5, %v7793_v14  ;;  %v170_v41 = vld [vmem:[%s12956_s7] sm:$0xff]  ;;  %v172_v34 = vld [vmem:[%s12956_s7 + $0x10] sm:$0xff]  ;;  %v175_v14 = vld [vmem:[%s12956_s7 + $0x28] sm:$0xff] }
 0x8ac   :  { %7810 = vtanh.f32 %v2741_v39  ;;  %v2904_v47 = vadd.f32 0.5, %v2900_v6  ;;  %v174_v13 = vld [vmem:[%s12956_s7 + $0x20] sm:$0xff]  ;;  %v176_v39 = vld [vmem:[%s12956_s7 + $0x30] sm:$0xff] }
 0x8ad   :  { %v7795_v25 = vpop.eup %7794  ;;  %v2917_v40 = vadd.f32 %v2913_v3, %v2782_v1  ;;  %v2731_v48 = vadd.f32 0.5, %v2727_v44  ;;  %v2907_v33 = vadd.f32 0.5, %v2903_v50  ;;  %v10275_v1 = vpack.c.bf16 %v173_v31, %v172_v34  ;;  %v178_v3 = vld [vmem:[%s12956_s7 + $0x40] sm:$0xff] }
 0x8ae   :  { %v7797_v60 = vpop.eup %7796  ;;  %v2750_v29 = vsub.f32 %v10073_v30, %v7795_v25  ;;  %v10291_v45 = vpack.c.bf16 %v175_v14, %v174_v13  ;;  %v182_v44 = vld [vmem:[%s12956_s7 + $0x60] sm:$0xff]  ;;  %v3137_v14 = vlaneseq }
 0x8af   :  { %v7799_v19 = vpop.eup %7798  ;;  %v2748_v61 = vsub.f32 %v10075_v21, %v7797_v60  ;;  %7812 = vtanh.f32 %v2917_v40  ;;  %13420 = vst [vmem:[#allocation16_spill] sm:$0xff] %v10275_v1  ;;  %v10352_v40 = vpack.c.bf16 %v182_v44, %v182_v44 }
 0x8b0   :  { %v7801_v22 = vpop.eup %7800  ;;  %v2754_v23 = vmul.f32 %v2750_v29, %v2730_v0  ;;  %v2926_v11 = vsub.f32 %v10078_v36, %v7799_v19  ;;  %13421 = vst [vmem:[#allocation17_spill] sm:$0xff] %v10291_v45  ;;  %v180_v29 = vld [vmem:[%s12956_s7 + $0x50] sm:$0xff] }
 0x8b1   :  { %v7803_v51 = vpop.eup %7802  ;;  %v2752_v16 = vmul.f32 %v2748_v61, %v2728_v52  ;;  %v2924_v35 = vsub.f32 %v10080_v49, %v7801_v22  ;;  %13425 = vst [vmem:[#allocation20_spill] sm:$0xff] %v10352_v40 }
 0x8b2   :  { %v7805_v32 = vpop.eup %7804  ;;  %v10221_v30 = vadd.f32 %v7795_v25, %v2754_v23  ;;  %v2930_v17 = vmul.f32 %v2926_v11, %v2906_v37  ;;  %v2725_v10 = vmul.f32 0.5, %v7803_v51  ;;  %v177_v25 = vld [vmem:[%s12956_s7 + $0x38] sm:$0xff] }
 0x8b3   :  { %v7807_v62 = vpop.eup %7806  ;;  %v10223_v43 = vadd.f32 %v7797_v60, %v2752_v16  ;;  %v2928_v21 = vmul.f32 %v2924_v35, %v2904_v47  ;;  %v2751_v7 = vsub.f32 %v10083_v26, %v7805_v32  ;;  %v10307_v6 = vpack.c.bf16 %v177_v25, %v176_v39  ;;  %v179_v60 = vld [vmem:[%s12956_s7 + $0x48] sm:$0xff] }
 0x8b4   :  { %v2927_v36 = vsub.f32 %v10086_v46, %v7807_v62  ;;  %v10227_v28 = vadd.f32 %v7799_v19, %v2930_v17  ;;  %v7809_v58 = vpop.eup %7808  ;;  %v2729_v15 = vadd.f32 0.5, %v2725_v10  ;;  %v10323_v0 = vpack.c.bf16 %v179_v60, %v178_v3  ;;  %v181_v19 = vld [vmem:[%s12956_s7 + $0x58] sm:$0xff] }
 0x8b5   :  { %v10229_v56 = vadd.f32 %v7801_v22, %v2928_v21  ;;  %v2755_v49 = vmul.f32 %v2751_v7, %v2731_v48  ;;  %v2901_v4 = vmul.f32 0.5, %v7809_v58  ;;  %13422 = vst [vmem:[#allocation18_spill] sm:$0xff] %v10307_v6  ;;  %v10339_v52 = vpack.c.bf16 %v181_v19, %v180_v29 }
 0x8b6   :  { %v2931_v12 = vmul.f32 %v2927_v36, %v2907_v33  ;;  %v7811_v54 = vpop.eup %7810  ;;  %13423 = vst [vmem:[#allocation15_spill] sm:$0xff] %v10323_v0  ;;  %v3138_v19 = vshrl.u32 %v3137_v14, 7 }
 0x8b7   :  { %v10231_v55 = vadd.f32 %v7805_v32, %v2755_v49  ;;  %v2749_v26 = vsub.f32 %v10089_v42, %v7811_v54  ;;  %v2905_v46 = vadd.f32 0.5, %v2901_v4  ;;  %v171_v42 = vld [vmem:[%s12956_s7 + $0x8] sm:$0xff]  ;;  %13424 = vst [vmem:[#allocation19_spill] sm:$0xff] %v10339_v52 }
 0x8b8   :  { %v10233_v5 = vadd.f32 %v7807_v62, %v2931_v12  ;;  %v10254_v24 = vpack.c.bf16 %v171_v42, %v170_v41 }
 0x8b9   :  { %v7813_v53 = vpop.eup %7812  ;;  %v2753_v38 = vmul.f32 %v2749_v26, %v2729_v15  ;;  %v2937_v27 = vpack.c.bf16 %v10231_v55, %v10221_v30 }
 0x8ba   :  { %v2925_v63 = vsub.f32 %v10093_v2, %v7813_v53  ;;  %13419 = vst [vmem:[#allocation29_spill] sm:$0xff] %v10254_v24  ;;  %v3048_v57 = vpack.c.bf16 %v10233_v5, %v10227_v28 }
 0x8bb   :  { %v10237_v59 = vadd.f32 %v7811_v54, %v2753_v38 }
 0x8bc   :  { %v2929_v18 = vmul.f32 %v2925_v63, %v2905_v46 }
 0x8bd   :  { %v2936_v20 = vpack.c.bf16 %v10237_v59, %v10223_v43 }
 0x8be   :  { %v10241_v9 = vadd.f32 %v7813_v53, %v2929_v18 }
 0x8bf   :  { %6843 = vmatpush3.bf16.msra.mxu1 %v2936_v20 }
 0x8c0   :  { %v3047_v2 = vpack.c.bf16 %v10241_v9, %v10229_v56  ;;  %6844 = vmatprep.subr.bf16.mxu1 %v13055_v8 }
 0x8c2   :  { %6875 = vmatpush3.bf16.msra.mxu0 %v3047_v2 }
 0x8c3   :  { %6876 = vmatprep.subr.bf16.mxu0 %v13055_v8  ;;  %6845 = vmatpush3.bf16.msra.mxu1 %v2937_v27 }
 0x8c4   :  { %6906 = vmatprep.subr.bf16.mxu1 %v13055_v8 }
 0x8c6   :  { %6877 = vmatpush3.bf16.msra.mxu0 %v3048_v57  ;;  %6847 = vmatmul.mubr.msk.bf16.vlgmr.msra.gmra.mrb[92].mxu1 %vm215_vm0, %v10254_v24 }
 0x8c7   :  { %6850 = vmatprep.mubr.msk.bf16.mxu1 %vm8520_vm1, %v13055_v8  ;;  %6938 = vmatprep.subr.bf16.mxu0 %v13055_v8 }
 0x8c9   :  { %6879 = vmatmul.mubr.msk.bf16.vlgmr.msra.gmra.mrb[88].mxu0 %vm215_vm0, %v10254_v24 }
 0x8ca   :  { %6882 = vmatprep.mubr.msk.bf16.mxu0 %vm8520_vm1, %v13055_v8 }
 0x8ce   :  { %6851 = vmatmul.mubr.msk.bf16.gmra.mrb[96].mxu1 %vm215_vm0, %v10275_v1 }
 0x8cf   :  { %6854 = vmatprep.mubr.msk.bf16.mxu1 %vm8520_vm1, %v13055_v8 }
 0x8d1   :  { %6883 = vmatmul.mubr.msk.bf16.gmra.mrb[92].mxu0 %vm215_vm0, %v10275_v1 }
 0x8d2   :  { %6886 = vmatprep.mubr.msk.bf16.mxu0 %vm8520_vm1, %v13055_v8 }
 0x8d6   :  { %6855 = vmatmul.mubr.msk.bf16.gmra.mrb[100].mxu1 %vm215_vm0, %v10291_v45 }
 0x8d7   :  { %6858 = vmatprep.mubr.msk.bf16.mxu1 %vm8520_vm1, %v13055_v8 }
 0x8d9   :  { %6887 = vmatmul.mubr.msk.bf16.gmra.mrb[96].mxu0 %vm215_vm0, %v10291_v45 }
 0x8da   :  { %6890 = vmatprep.mubr.msk.bf16.mxu0 %vm8520_vm1, %v13055_v8 }
 0x8de   :  { %6859 = vmatmul.mubr.msk.bf16.gmra.mrb[104].mxu1 %vm215_vm0, %v10307_v6 }
 0x8df   :  { %6862 = vmatprep.mubr.msk.bf16.mxu1 %vm8520_vm1, %v13055_v8 }
 0x8e1   :  { %6891 = vmatmul.mubr.msk.bf16.gmra.mrb[100].mxu0 %vm215_vm0, %v10307_v6 }
 0x8e2   :  { %6894 = vmatprep.mubr.msk.bf16.mxu0 %vm8520_vm1, %v13055_v8 }
 0x8e6   :  { %6863 = vmatmul.mubr.msk.bf16.gmra.mrb[108].mxu1 %vm215_vm0, %v10323_v0 }
 0x8e7   :  { %6866 = vmatprep.mubr.msk.bf16.mxu1 %vm8520_vm1, %v13055_v8 }
 0x8e9   :  { %6895 = vmatmul.mubr.msk.bf16.gmra.mrb[104].mxu0 %vm215_vm0, %v10323_v0 }
 0x8ea   :  { %6898 = vmatprep.mubr.msk.bf16.mxu0 %vm8520_vm1, %v13055_v8 }
 0x8ee   :  { %6867 = vmatmul.mubr.msk.bf16.gmra.mrb[112].mxu1 %vm215_vm0, %v10339_v52 }
 0x8ef   :  { %6870 = vmatprep.mubr.msk.bf16.mxu1 %vm8520_vm1, %v13055_v8 }
 0x8f1   :  { %6899 = vmatmul.mubr.msk.bf16.gmra.mrb[108].mxu0 %vm215_vm0, %v10339_v52 }
 0x8f2   :  { %6902 = vmatprep.mubr.msk.bf16.mxu0 %vm8520_vm1, %v13055_v8 }
 0x8f6   :  { %6871 = vmatmul.mubr.msk.bf16.gmra.mrb[116].mxu1 %vm215_vm0, %v10352_v40 }
 0x8f7   :  { %6910 = vmatprep.mubr.msk.bf16.mxu1 %vm8520_vm1, %v13055_v8 }
 0x8f9   :  { %6903 = vmatmul.mubr.msk.bf16.gmra.mrb[112].mxu0 %vm215_vm0, %v10352_v40  ;;  %v10485_v40 = vld [vmem:[%s12957_s8 + $0x18] sm:$0xff] }
 0x8fa   :  { %6942 = vmatprep.mubr.msk.bf16.mxu0 %vm8520_vm1, %v13055_v8 }
 0x999   :  { %v10362_v61 = vpop.f32.mrb[92].mxu1 }
 0x99a   :  { %v6848_v22 = vpop.f32.mrb[93].mxu1 }
 0x99b   :  { %v10364_v37 = vpop.f32.mrb[94].mxu1 }
 0x99c   :  { %v10366_v50 = vpop.f32.mrb[88].mxu0  ;;  %v6849_v23 = vpop.f32.mrb[95].mxu1 }
 0x99d   :  { %v6880_v11 = vpop.f32.mrb[89].mxu0 }
 0x99e   :  { %v10368_v51 = vpop.f32.mrb[90].mxu0  ;;  %v10413_v11 = vld [vmem:[%s12957_s8 + $0x60] sm:$0xff] }
 0x99f   :  { %v6881_v47 = vpop.f32.mrb[91].mxu0  ;;  %13426 = vst [vmem:[#allocation21_spill] sm:$0xff] %v10413_v11 }
 0x9a0   :  { %v10415_v47 = vsub.s32 0, %v3138_v19  ;;  %v10454_v19 = vld [vmem:[#allocation8 + $0x8] sm:$0xff] }
 0x9a1   :  { %v10370_v16 = vpop.f32.mrb[96].mxu1  ;;  %13435 = vst [vmem:[#allocation31_spill] sm:$0xff] %v10454_v19 }
 0x9a2   :  { %v6852_v35 = vpop.f32.mrb[97].mxu1  ;;  %13427 = vst [vmem:[#allocation22_spill] sm:$0xff] %v10415_v47 }
 0x9a3   :  { %v10372_v32 = vpop.f32.mrb[98].mxu1 }
 0x9a4   :  { %v10374_v17 = vpop.f32.mrb[92].mxu0  ;;  %v6853_v62 = vpop.f32.mrb[99].mxu1 }
 0x9a5   :  { %v6884_v48 = vpop.f32.mrb[93].mxu0  ;;  %v10420_v62 = vld [vmem:[%s12957_s8] sm:$0xff] }
 0x9a6   :  { %v10376_v21 = vpop.f32.mrb[94].mxu0  ;;  %13428 = vst [vmem:[#allocation23_spill] sm:$0xff] %v10420_v62  ;;  %v10425_v48 = vld [vmem:[%s12957_s8 + $0x8] sm:$0xff]  ;;  %v2994_v14 = vadd.f32 %v10362_v61, %v10420_v62 }
 0x9a7   :  { %v6885_v7 = vpop.f32.mrb[95].mxu0  ;;  %13429 = vst [vmem:[#allocation24_spill] sm:$0xff] %v10425_v48 }
 0x9a9   :  { %v10378_v33 = vpop.f32.mrb[100].mxu1 }
 0x9aa   :  { %v6856_v36 = vpop.f32.mrb[101].mxu1 }
 0x9ab   :  { %v10380_v58 = vpop.f32.mrb[102].mxu1 }
 0x9ac   :  { %v10382_v10 = vpop.f32.mrb[96].mxu0  ;;  %v6857_v49 = vpop.f32.mrb[103].mxu1 }
 0x9ad   :  { %v6888_v12 = vpop.f32.mrb[97].mxu0  ;;  %v10428_v49 = vld [vmem:[#allocation7] sm:$0xff] }
 0x9ae   :  { %v10384_v54 = vpop.f32.mrb[98].mxu0 }
 0x9af   :  { %v6889_v4 = vpop.f32.mrb[99].mxu0 }
 0x9b0   :  { %v10430_v4 = vld [vmem:[#allocation7 + $0x8] sm:$0xff] }
 0x9b1   :  { %v10386_v15 = vpop.f32.mrb[104].mxu1 }
 0x9b2   :  { %v6860_v26 = vpop.f32.mrb[105].mxu1 }
 0x9b3   :  { %v10388_v53 = vpop.f32.mrb[106].mxu1  ;;  %v10432_v26 = vld [vmem:[#allocation7 + $0x20] sm:$0xff] }
 0x9b4   :  { %v10390_v38 = vpop.f32.mrb[100].mxu0  ;;  %v6861_v46 = vpop.f32.mrb[107].mxu1  ;;  %13430 = vst [vmem:[#allocation25_spill] sm:$0xff] %v10432_v26 }
 0x9b5   :  { %v6892_v63 = vpop.f32.mrb[101].mxu0  ;;  %v10434_v46 = vld [vmem:[#allocation7 + $0x28] sm:$0xff] }
 0x9b6   :  { %v10392_v18 = vpop.f32.mrb[102].mxu0  ;;  %13431 = vst [vmem:[#allocation26_spill] sm:$0xff] %v10434_v46  ;;  %v10439_v63 = vld [vmem:[%s12957_s8 + $0x20] sm:$0xff] }
 0x9b7   :  { %v6893_v20 = vpop.f32.mrb[103].mxu0  ;;  %13432 = vst [vmem:[#allocation27_spill] sm:$0xff] %v10439_v63 }
 0x9b8   :  { %v10444_v20 = vld [vmem:[%s12957_s8 + $0x28] sm:$0xff] }
 0x9b9   :  { %v10394_v41 = vpop.f32.mrb[108].mxu1  ;;  %13433 = vst [vmem:[#allocation28_spill] sm:$0xff] %v10444_v20 }
 0x9ba   :  { %v6864_v42 = vpop.f32.mrb[109].mxu1 }
 0x9bb   :  { %v10396_v2 = vpop.f32.mrb[110].mxu1 }
 0x9bc   :  { %v10398_v27 = vpop.f32.mrb[104].mxu0  ;;  %v6865_v57 = vpop.f32.mrb[111].mxu1 }
 0x9bd   :  { %v6896_v34 = vpop.f32.mrb[105].mxu0 }
 0x9be   :  { %v10400_v31 = vpop.f32.mrb[106].mxu0 }
 0x9bf   :  { %v6897_v13 = vpop.f32.mrb[107].mxu0 }
 0x9c0   :  { %v10449_v13 = vld [vmem:[#allocation8] sm:$0xff] }
 0x9c1   :  { %v10402_v39 = vpop.f32.mrb[112].mxu1  ;;  %13434 = vst [vmem:[#allocation30_spill] sm:$0xff] %v10449_v13 }
 0x9c2   :  { %v6868_v25 = vpop.f32.mrb[113].mxu1 }
 0x9c3   :  { %v10404_v3 = vpop.f32.mrb[114].mxu1 }
 0x9c4   :  { %v10406_v60 = vpop.f32.mrb[108].mxu0  ;;  %v6869_v29 = vpop.f32.mrb[115].mxu1 }
 0x9c5   :  { %v6900_v44 = vpop.f32.mrb[109].mxu0 }
 0x9c6   :  { %v10408_v22 = vpop.f32.mrb[110].mxu0  ;;  %v10456_v44 = vld [vmem:[#allocation8 + $0x20] sm:$0xff] }
 0x9c7   :  { %v6901_v23 = vpop.f32.mrb[111].mxu0  ;;  %13436 = vst [vmem:[#allocation32_spill] sm:$0xff] %v10456_v44 }
 0x9c8   :  { %v10458_v23 = vld [vmem:[#allocation8 + $0x28] sm:$0xff] }
 0x9c9   :  { %v3041_v35 = vpop.f32.mrb[116].mxu1  ;;  %13437 = vst [vmem:[#allocation33_spill] sm:$0xff] %v10458_v23 }
 0x9ca   :  { %v3042_v7 = vadd.f32 %v3041_v35, %v10413_v11  ;;  %v6872_v36 = vpop.f32.mrb[117].mxu1 }
 0x9cb   :  { %v3044_v12 = vpop.f32.mrb[118].mxu1 }
 0x9cc   :  { %v10447_v42 = vrot.slane %v3042_v7, %v10415_v47  ;;  %v3131_v57 = vpop.f32.mrb[112].mxu0  ;;  %v6873_v34 = vpop.f32.mrb[119].mxu1 }
 0x9cd   :  { %v3132_v25 = vadd.f32 %v3131_v57, %v10413_v11  ;;  %v6904_v29 = vpop.f32.mrb[113].mxu0  ;;  %v2997_v57 = vadd.f32 %v10364_v37, %v10425_v48  ;;  %v3010_v34 = vadd.f32 %v10378_v33, %v10439_v63  ;;  %v10480_v11 = vld [vmem:[%s12957_s8 + $0x10] sm:$0xff] }
 0x9ce   :  { %v3134_v35 = vpop.f32.mrb[114].mxu0  ;;  %v3141_v7 = vmul.f32 %v10447_v42, %v10428_v49  ;;  %v3142_v36 = vmul.f32 %v10447_v42, %v10430_v4  ;;  %v3145_v12 = vmul.f32 %v10447_v42, %v10432_v26  ;;  %v3146_v61 = vmul.f32 %v10447_v42, %v10434_v46 }
 0x9cf   :  { %v3013_v29 = vadd.f32 %v10380_v58, %v10444_v20  ;;  %v10475_v35 = vrot.slane %v3132_v25, %v10415_v47  ;;  %v6905_v8 = vpop.f32.mrb[115].mxu0  ;;  %v3087_v47 = vadd.f32 %v10368_v51, %v10425_v48  ;;  %v10509_v48 = vld [vmem:[#allocation7 + $0x10] sm:$0xff] }
 0x9d0   :  { %v3153_v37 = vadd.f32 %v3141_v7, %v10449_v13  ;;  %v3154_v33 = vadd.f32 %v3142_v36, %v10454_v19  ;;  %v3157_v58 = vadd.f32 %v3145_v12, %v10456_v44  ;;  %v3158_v25 = vadd.f32 %v3146_v61, %v10458_v23 }
 0x9d1   :  { %v3084_v8 = vadd.f32 %v10366_v50, %v10420_v62  ;;  %v3323_v52 = vmul.f32 %v10475_v35, %v10428_v49  ;;  %v3324_v0 = vmul.f32 %v10475_v35, %v10430_v4  ;;  %v3002_v12 = vadd.f32 %v10370_v16, %v10480_v11  ;;  %v10511_v62 = vld [vmem:[#allocation7 + $0x18] sm:$0xff] }
 0x9d2   :  { %v3165_v6 = vadd.f32 %v3153_v37, %v2994_v14  ;;  %v3166_v7 = vadd.f32 %v3154_v33, %v2997_v57  ;;  %v3185_v45 = vadd.f32 %v3157_v58, %v3010_v34  ;;  %v10499_v36 = vadd.f32 %v3158_v25, %v3013_v29  ;;  %13438 = vst [vmem:[#allocation34_spill] sm:$0xff] %v10511_v62  ;;  %v10523_v58 = vld [vmem:[#allocation7 + $0x30] sm:$0xff]  ;;  %v10525_v25 = vld [vmem:[#allocation7 + $0x38] sm:$0xff] }
 0x9d3   :  { %v3005_v50 = vadd.f32 %v10372_v32, %v10485_v40  ;;  %v3327_v51 = vmul.f32 %v10475_v35, %v10432_v26  ;;  %v3328_v61 = vmul.f32 %v10475_v35, %v10434_v46  ;;  %v10515_v14 = vadd.f32 %v10374_v17, %v10480_v11  ;;  %13439 = vst [vmem:[#allocation35_spill] sm:$0xff] %v10523_v58  ;;  %v10554_v46 = vld [vmem:[#allocation8 + $0x18] sm:$0xff]  ;;  %v10556_v26 = vld [vmem:[#allocation8 + $0x30] sm:$0xff] }
 0x9d4   :  { %v3100_v16 = vadd.f32 %v10382_v10, %v10439_v63  ;;  %v3169_v57 = vmul.f32 0.5, %v3165_v6  ;;  %v3170_v34 = vmul.f32 0.5, %v3166_v7  ;;  %v3335_v32 = vadd.f32 %v3323_v52, %v10449_v13  ;;  %13440 = vst [vmem:[#allocation36_spill] sm:$0xff] %v10525_v25  ;;  %v10532_v6 = vld [vmem:[%s12957_s8 + $0x30] sm:$0xff]  ;;  %13444 = vst [vmem:[#allocation40_spill] sm:$0xff] %v10556_v26 }
 0x9d5   :  { %v3336_v29 = vadd.f32 %v3324_v0, %v10454_v19  ;;  %v3339_v37 = vadd.f32 %v3327_v51, %v10456_v44  ;;  %v3340_v33 = vadd.f32 %v3328_v61, %v10458_v23  ;;  %v3103_v17 = vadd.f32 %v10384_v54, %v10444_v20  ;;  %13441 = vst [vmem:[#allocation37_spill] sm:$0xff] %v10532_v6  ;;  %v10537_v0 = vld [vmem:[%s12957_s8 + $0x38] sm:$0xff]  ;;  %v10546_v54 = vld [vmem:[%s12957_s8 + $0x40] sm:$0xff]  ;;  %v10558_v20 = vld [vmem:[#allocation8 + $0x38] sm:$0xff] }
 0x9d6   :  { %13442 = vst [vmem:[#allocation38_spill] sm:$0xff] %v10537_v0  ;;  %7814 = vtanh.f32 %v3169_v57  ;;  %v3143_v52 = vmul.f32 %v10447_v42, %v10509_v48  ;;  %v3144_v10 = vmul.f32 %v10447_v42, %v10511_v62  ;;  %13443 = vst [vmem:[#allocation39_spill] sm:$0xff] %v10546_v54  ;;  %v3347_v7 = vadd.f32 %v3335_v32, %v3084_v8  ;;  %v10548_v23 = vld [vmem:[#allocation8 + $0x10] sm:$0xff] }
 0x9d7   :  { %7816 = vtanh.f32 %v3170_v34  ;;  %v3348_v51 = vadd.f32 %v3336_v29, %v3087_v47  ;;  %v3367_v61 = vadd.f32 %v3339_v37, %v3100_v16  ;;  %v10552_v57 = vadd.f32 %v10376_v21, %v10485_v40  ;;  %13445 = vst [vmem:[#allocation41_spill] sm:$0xff] %v10558_v20  ;;  %v10571_v16 = vld [vmem:[%s12957_s8 + $0x48] sm:$0xff]  ;;  %v10573_v34 = vld [vmem:[#allocation7 + $0x40] sm:$0xff] }
 0x9d8   :  { %v3368_v44 = vadd.f32 %v3340_v33, %v3103_v17  ;;  %v3147_v63 = vmul.f32 %v10447_v42, %v10523_v58  ;;  %v3148_v47 = vmul.f32 %v10447_v42, %v10525_v25  ;;  %v3018_v8 = vadd.f32 %v10386_v15, %v10532_v6  ;;  %13446 = vst [vmem:[#allocation42_spill] sm:$0xff] %v10573_v34 }
 0x9d9   :  { %v3021_v21 = vadd.f32 %v10388_v53, %v10537_v0  ;;  %v3351_v32 = vmul.f32 0.5, %v3347_v7  ;;  %v3352_v29 = vmul.f32 0.5, %v3348_v51  ;;  %v3108_v37 = vadd.f32 %v10390_v38, %v10532_v6  ;;  %v10587_v51 = vld [vmem:[#allocation7 + $0x48] sm:$0xff] }
 0x9da   :  { %v3111_v33 = vadd.f32 %v10392_v18, %v10537_v0  ;;  %v3026_v15 = vadd.f32 %v10394_v41, %v10546_v54  ;;  %v3155_v53 = vadd.f32 %v3143_v52, %v10548_v23  ;;  %v3156_v17 = vadd.f32 %v3144_v10, %v10554_v46  ;;  %13447 = vst [vmem:[#allocation43_spill] sm:$0xff] %v10587_v51  ;;  %v10595_v52 = vld [vmem:[#allocation8 + $0x40] sm:$0xff] }
 0x9db   :  { %7818 = vtanh.f32 %v3351_v32  ;;  %v3159_v19 = vadd.f32 %v3147_v63, %v10556_v26  ;;  %v3160_v13 = vadd.f32 %v3148_v47, %v10558_v20  ;;  %v3029_v7 = vadd.f32 %v10396_v2, %v10571_v16 }
 0x9dc   :  { %v3149_v38 = vmul.f32 %v10447_v42, %v10573_v34  ;;  %7820 = vtanh.f32 %v3352_v29  ;;  %v3167_v18 = vadd.f32 %v3155_v53, %v3002_v12  ;;  %v10593_v41 = vadd.f32 %v10398_v27, %v10546_v54 }
 0x9dd   :  { %v3168_v10 = vadd.f32 %v3156_v17, %v3005_v50  ;;  %v3187_v63 = vadd.f32 %v3159_v19, %v3018_v8  ;;  %v3188_v32 = vadd.f32 %v3160_v13, %v3021_v21  ;;  %v3189_v47 = vmul.f32 0.5, %v3185_v45  ;;  %v10606_v19 = vld [vmem:[#allocation8 + $0x48] sm:$0xff] }
 0x9de   :  { %v3171_v0 = vmul.f32 0.5, %v3167_v18  ;;  %v3325_v2 = vmul.f32 %v10475_v35, %v10509_v48  ;;  %v3326_v6 = vmul.f32 %v10475_v35, %v10511_v62  ;;  %v3150_v12 = vmul.f32 %v10447_v42, %v10587_v51 }
 0x9df   :  { %v3190_v29 = vmul.f32 0.5, %v10499_v36  ;;  %v3172_v27 = vmul.f32 0.5, %v3168_v10  ;;  %v3329_v53 = vmul.f32 %v10475_v35, %v10523_v58  ;;  %v3161_v45 = vadd.f32 %v3149_v38, %v10595_v52 }
 0x9e0   :  { %v7815_v50 = vpop.eup %7814  ;;  %v3371_v13 = vmul.f32 0.5, %v3367_v61  ;;  %7822 = vtanh.f32 %v3171_v0  ;;  %v3330_v8 = vmul.f32 %v10475_v35, %v10525_v25  ;;  %v3337_v18 = vadd.f32 %v3325_v2, %v10548_v23 }
 0x9e1   :  { %v7817_v21 = vpop.eup %7816  ;;  %v3177_v17 = vmul.f32 0.5, %v7815_v50  ;;  %7824 = vtanh.f32 %v3172_v27  ;;  %v3338_v36 = vadd.f32 %v3326_v6, %v10554_v46  ;;  %v3372_v58 = vmul.f32 0.5, %v3368_v44 }
 0x9e2   :  { %v3178_v10 = vmul.f32 0.5, %v7817_v21  ;;  %7826 = vtanh.f32 %v3189_v47  ;;  %v3341_v54 = vadd.f32 %v3329_v53, %v10556_v26  ;;  %v3162_v62 = vadd.f32 %v3150_v12, %v10606_v19 }
 0x9e3   :  { %v3181_v38 = vadd.f32 0.5, %v3177_v17  ;;  %7828 = vtanh.f32 %v3190_v29  ;;  %v3342_v0 = vadd.f32 %v3330_v8, %v10558_v20  ;;  %v3331_v50 = vmul.f32 %v10475_v35, %v10573_v34 }
 0x9e4   :  { %v3182_v61 = vadd.f32 0.5, %v3178_v10  ;;  %v3332_v2 = vmul.f32 %v10475_v35, %v10587_v51  ;;  %v3349_v6 = vadd.f32 %v3337_v18, %v10515_v14  ;;  %7830 = vtanh.f32 %v3371_v13  ;;  %v10622_v51 = vld [vmem:[#allocation7 + $0x50] sm:$0xff] }
 0x9e5   :  { %v7819_v27 = vpop.eup %7818  ;;  %v3205_v47 = vmul.f32 %v3181_v38, %v3026_v15  ;;  %v3350_v44 = vadd.f32 %v3338_v36, %v10552_v57  ;;  %v3369_v53 = vadd.f32 %v3341_v54, %v3108_v37  ;;  %7832 = vtanh.f32 %v3372_v58  ;;  %v10626_v57 = vld [vmem:[#allocation7 + $0x58] sm:$0xff]  ;;  %v10643_v38 = vld [vmem:[#allocation8 + $0x50] sm:$0xff] }
 0x9e6   :  { %v7821_v12 = vpop.eup %7820  ;;  %v3206_v21 = vmul.f32 %v3182_v61, %v3029_v7  ;;  %v3359_v29 = vmul.f32 0.5, %v7819_v27  ;;  %v3353_v8 = vmul.f32 0.5, %v3349_v6  ;;  %v3370_v34 = vadd.f32 %v3342_v0, %v3111_v33  ;;  %v10631_v7 = vld [vmem:[%s12957_s8 + $0x50] sm:$0xff] }
 0x9e7   :  { %v3209_v17 = vadd.f32 %v3205_v47, %v3161_v45  ;;  %v3360_v10 = vmul.f32 0.5, %v7821_v12  ;;  %v3354_v20 = vmul.f32 0.5, %v3350_v44  ;;  %v3191_v14 = vmul.f32 0.5, %v3187_v63 }
 0x9e8   :  { %v3210_v26 = vadd.f32 %v3206_v21, %v3162_v62  ;;  %v3363_v25 = vadd.f32 0.5, %v3359_v29  ;;  %7834 = vtanh.f32 %v3353_v8  ;;  %v3119_v15 = vadd.f32 %v10400_v31, %v10571_v16  ;;  %v10639_v31 = vld [vmem:[%s12957_s8 + $0x58] sm:$0xff] }
 0x9e9   :  { %7836 = vtanh.f32 %v3209_v17  ;;  %v3364_v54 = vadd.f32 0.5, %v3360_v10  ;;  %v3192_v37 = vmul.f32 0.5, %v3188_v32  ;;  %v3343_v62 = vadd.f32 %v3331_v50, %v10595_v52 }
 0x9ea   :  { %v7823_v58 = vpop.eup %7822  ;;  %7838 = vtanh.f32 %v3210_v26  ;;  %v3344_v33 = vadd.f32 %v3332_v2, %v10606_v19  ;;  %v3387_v63 = vmul.f32 %v3363_v25, %v10593_v41  ;;  %v3151_v13 = vmul.f32 %v10447_v42, %v10622_v51  ;;  %v10649_v2 = vld [vmem:[#allocation8 + $0x58] sm:$0xff] }
 0x9eb   :  { %v7825_v45 = vpop.eup %7824  ;;  %v3388_v32 = vmul.f32 %v3364_v54, %v3119_v15  ;;  %v3179_v18 = vmul.f32 0.5, %v7823_v58  ;;  %7840 = vtanh.f32 %v3354_v20  ;;  %v3152_v0 = vmul.f32 %v10447_v42, %v10626_v57 }
 0x9ec   :  { %v7827_v36 = vpop.eup %7826  ;;  %v3391_v26 = vadd.f32 %v3387_v63, %v3343_v62  ;;  %v3180_v25 = vmul.f32 0.5, %v7825_v45  ;;  %7842 = vtanh.f32 %v3191_v14  ;;  %v3034_v61 = vadd.f32 %v10402_v39, %v10631_v7 }
 0x9ed   :  { %v7829_v41 = vpop.eup %7828  ;;  %v3392_v50 = vadd.f32 %v3388_v32, %v3344_v33  ;;  %v3183_v6 = vadd.f32 0.5, %v3179_v18  ;;  %7844 = vtanh.f32 %v3192_v37  ;;  %v3037_v20 = vadd.f32 %v10404_v3, %v10639_v31 }
 0x9ee   :  { %7846 = vtanh.f32 %v3391_v26  ;;  %v3184_v27 = vadd.f32 0.5, %v3180_v25  ;;  %v7831_v47 = vpop.eup %7830  ;;  %v3197_v44 = vmul.f32 0.5, %v7827_v36  ;;  %v3163_v42 = vadd.f32 %v3151_v13, %v10643_v38 }
 0x9ef   :  { %7848 = vtanh.f32 %v3392_v50  ;;  %v3207_v12 = vmul.f32 %v3183_v6, %v3034_v61  ;;  %v7833_v21 = vpop.eup %7832  ;;  %v3198_v29 = vmul.f32 0.5, %v7829_v41  ;;  %v3164_v39 = vadd.f32 %v3152_v0, %v10649_v2 }
 0x9f0   :  { %v3208_v8 = vmul.f32 %v3184_v27, %v3037_v20  ;;  %v3373_v10 = vmul.f32 0.5, %v3369_v53  ;;  %v3124_v15 = vadd.f32 %v10406_v60, %v10631_v7  ;;  %v3333_v54 = vmul.f32 %v10475_v35, %v10622_v51 }
 0x9f1   :  { %v3211_v17 = vadd.f32 %v3207_v12, %v3163_v42  ;;  %v3201_v58 = vadd.f32 0.5, %v3197_v44  ;;  %v3334_v62 = vmul.f32 %v10475_v35, %v10626_v57  ;;  %v3202_v45 = vadd.f32 0.5, %v3198_v29 }
 0x9f2   :  { %v7835_v14 = vpop.eup %7834  ;;  %v3212_v3 = vadd.f32 %v3208_v8, %v3164_v39  ;;  %v3374_v53 = vmul.f32 0.5, %v3370_v34  ;;  %v3379_v18 = vmul.f32 0.5, %v7831_v47  ;;  %v3380_v25 = vmul.f32 0.5, %v7833_v21 }
 0x9f3   :  { %v7837_v37 = vpop.eup %7836  ;;  %7850 = vtanh.f32 %v3211_v17  ;;  %v3361_v33 = vmul.f32 0.5, %v7835_v14  ;;  %v3127_v35 = vadd.f32 %v10408_v22, %v10639_v31  ;;  %v3345_v6 = vadd.f32 %v3333_v54, %v10643_v38 }
 0x9f4   :  { %v7839_v63 = vpop.eup %7838  ;;  %v3217_v32 = vsub.f32 %v10223_v43, %v7837_v37  ;;  %7852 = vtanh.f32 %v3212_v3  ;;  %v3383_v42 = vadd.f32 0.5, %v3379_v18  ;;  %v3384_v29 = vadd.f32 0.5, %v3380_v25 }
 0x9f5   :  { %v7841_v13 = vpop.eup %7840  ;;  %v3218_v60 = vsub.f32 %v10237_v59, %v7839_v63  ;;  %v3365_v36 = vadd.f32 0.5, %v3361_v33  ;;  %7854 = vtanh.f32 %v3373_v10  ;;  %v3346_v59 = vadd.f32 %v3334_v62, %v10649_v2 }
 0x9f6   :  { %v7843_v26 = vpop.eup %7842  ;;  %v3221_v0 = vmul.f32 %v3217_v32, %v3201_v58  ;;  %v3362_v41 = vmul.f32 0.5, %v7841_v13  ;;  %7856 = vtanh.f32 %v3374_v53  ;;  %v13452_v62 = vmov 0.0  }
 0x9f7   :  { %v7845_v61 = vpop.eup %7844  ;;  %v3222_v50 = vmul.f32 %v3218_v60, %v3202_v45  ;;  %v3389_v43 = vmul.f32 %v3365_v36, %v3124_v15  ;;  %v3199_v39 = vmul.f32 0.5, %v7843_v26 }
 0x9f8   :  { %v7847_v20 = vpop.eup %7846  ;;  %v10666_v34 = vadd.f32 %v7837_v37, %v3221_v0  ;;  %v3366_v27 = vadd.f32 0.5, %v3362_v41  ;;  %v3200_v14 = vmul.f32 0.5, %v7845_v61 }
 0x9f9   :  { %v7849_v47 = vpop.eup %7848  ;;  %v10669_v44 = vadd.f32 %v7839_v63, %v3222_v50  ;;  %v3399_v12 = vsub.f32 %v10229_v56, %v7847_v20  ;;  %v3393_v21 = vadd.f32 %v3389_v43, %v3345_v6 }
 0x9fa   :  { %13448 = vst [vmem:[#allocation44_spill] sm:$0xff] %v10666_v34  ;;  %v3400_v22 = vsub.f32 %v10241_v9, %v7849_v47  ;;  %v3390_v8 = vmul.f32 %v3366_v27, %v3127_v35  ;;  %v3203_v9 = vadd.f32 0.5, %v3199_v39  ;;  %v3204_v45 = vadd.f32 0.5, %v3200_v14 }
 0x9fb   :  { %13449 = vst [vmem:[#allocation45_spill] sm:$0xff] %v10669_v44  ;;  %v3229_v17 = vpack.c.bf16 %v10669_v44, %v10666_v34  ;;  %v3403_v10 = vmul.f32 %v3399_v12, %v3383_v42  ;;  %7858 = vtanh.f32 %v3393_v21  ;;  %v13459_v42 = vld [vmem:[#allocation15_spill] sm:$0xff]  ;;  %v13461_v21 = vld [vmem:[#allocation20_spill] sm:$0xff] }
 0x9fc   :  { %v3404_v15 = vmul.f32 %v3400_v22, %v3384_v29  ;;  %v3394_v3 = vadd.f32 %v3390_v8, %v3346_v59  ;;  %v13460_v12 = vld [vmem:[#allocation19_spill] sm:$0xff] }
 0x9fd   :  { %v7851_v54 = vpop.eup %7850  ;;  %6907 = vmatpush3.bf16.msra.mxu1 %v3229_v17  ;;  %v10675_v37 = vadd.f32 %v7847_v20, %v3403_v10 }
 0x9fe   :  { %v7853_v58 = vpop.eup %7852  ;;  %v10677_v56 = vadd.f32 %v7849_v47, %v3404_v15  ;;  %6908 = vmatprep.subr.bf16.mxu1 %v13452_v62  ;;  %v3219_v33 = vsub.f32 %v10221_v30, %v7851_v54  ;;  %7860 = vtanh.f32 %v3394_v3  ;;  %v13458_v47 = vld [vmem:[#allocation18_spill] sm:$0xff] }
 0x9ff   :  { %13450 = vst [vmem:[#allocation46_spill] sm:$0xff] %v10675_v37  ;;  %v7855_v63 = vpop.eup %7854  ;;  %v3220_v32 = vsub.f32 %v10231_v55, %v7853_v58 }
 0xa00   :  { %13451 = vst [vmem:[#allocation47_spill] sm:$0xff] %v10677_v56  ;;  %v3411_v53 = vpack.c.bf16 %v10677_v56, %v10675_v37  ;;  %v3223_v13 = vmul.f32 %v3219_v33, %v3203_v9  ;;  %v7857_v18 = vpop.eup %7856  ;;  %v3381_v26 = vmul.f32 0.5, %v7855_v63  ;;  %v13473_v37 = vld [vmem:[#allocation34_spill] sm:$0xff] }
 0xa01   :  { %v3224_v60 = vmul.f32 %v3220_v32, %v3204_v45  ;;  %v3382_v41 = vmul.f32 0.5, %v7857_v18 }
 0xa02   :  { %6939 = vmatpush3.bf16.msra.mxu0 %v3411_v53  ;;  %v10684_v36 = vadd.f32 %v7851_v54, %v3223_v13  ;;  %v3385_v55 = vadd.f32 0.5, %v3381_v26 }
 0xa03   :  { %6940 = vmatprep.subr.bf16.mxu0 %v13452_v62  ;;  %v10687_v0 = vadd.f32 %v7853_v58, %v3224_v60  ;;  %v3386_v6 = vadd.f32 0.5, %v3382_v41 }
 0xa04   :  { %13453 = vst [vmem:[#allocation48_spill] sm:$0xff] %v10684_v36 }
 0xa05   :  { %13454 = vst [vmem:[#allocation49_spill] sm:$0xff] %v10687_v0  ;;  %v7859_v30 = vpop.eup %7858  ;;  %v3230_v25 = vpack.c.bf16 %v10687_v0, %v10684_v36  ;;  %v13474_v0 = vld [vmem:[#allocation28_spill] sm:$0xff] }
 0xa06   :  { %v3401_v61 = vsub.f32 %v10227_v28, %v7859_v30 }
 0xa07   :  { %6909 = vmatpush3.bf16.msra.mxu1 %v3230_v25 }
 0xa08   :  { %v7861_v35 = vpop.eup %7860  ;;  %v3405_v50 = vmul.f32 %v3401_v61, %v3385_v55  ;;  %6970 = vmatprep.subr.bf16.mxu1 %v13452_v62 }
 0xa09   :  { %v3402_v43 = vsub.f32 %v10233_v5, %v7861_v35  ;;  %v13457_v5 = vld [vmem:[#allocation17_spill] sm:$0xff] }
 0xa0a   :  { %v10694_v20 = vadd.f32 %v7859_v30, %v3405_v50  ;;  %6911 = vmatmul.mubr.msk.bf16.vlgmr.msra.gmra.mrb[120].mxu1 %vm215_vm0, %v10254_v24 }
 0xa0b   :  { %v3406_v59 = vmul.f32 %v3402_v43, %v3386_v6  ;;  %6914 = vmatprep.mubr.msk.bf16.mxu1 %vm8520_vm1, %v13452_v62 }
 0xa0c   :  { %13455 = vst [vmem:[#allocation50_spill] sm:$0xff] %v10694_v20 }
 0xa0d   :  { %v10700_v27 = vadd.f32 %v7861_v35, %v3406_v59 }
 0xa0f   :  { %13456 = vst [vmem:[#allocation51_spill] sm:$0xff] %v10700_v27  ;;  %v3412_v28 = vpack.c.bf16 %v10700_v27, %v10694_v20  ;;  %v13471_v20 = vld [vmem:[#allocation31_spill] sm:$0xff] }
 0xa11   :  { %6941 = vmatpush3.bf16.msra.mxu0 %v3412_v28 }
 0xa12   :  { %6915 = vmatmul.mubr.msk.bf16.gmra.mrb[124].mxu1 %vm215_vm0, %v10275_v1  ;;  %7002 = vmatprep.subr.bf16.mxu0 %v13452_v62 }
 0xa13   :  { %6918 = vmatprep.mubr.msk.bf16.mxu1 %vm8520_vm1, %v13452_v62 }
 0xa14   :  { %6943 = vmatmul.mubr.msk.bf16.vlgmr.msra.gmra.mrb[116].mxu0 %vm215_vm0, %v10254_v24 }
 0xa15   :  { %6946 = vmatprep.mubr.msk.bf16.mxu0 %vm8520_vm1, %v13452_v62 }
 0xa1a   :  { %6919 = vmatmul.mubr.msk.bf16.gmra.mrb[128].mxu1 %vm215_vm0, %v13457_v5 }
 0xa1b   :  { %6922 = vmatprep.mubr.msk.bf16.mxu1 %vm8520_vm1, %v13452_v62 }
 0xa1c   :  { %6947 = vmatmul.mubr.msk.bf16.gmra.mrb[120].mxu0 %vm215_vm0, %v10275_v1 }
 0xa1d   :  { %6950 = vmatprep.mubr.msk.bf16.mxu0 %vm8520_vm1, %v13452_v62 }
 0xa22   :  { %6923 = vmatmul.mubr.msk.bf16.gmra.mrb[132].mxu1 %vm215_vm0, %v13458_v47 }
 0xa23   :  { %6926 = vmatprep.mubr.msk.bf16.mxu1 %vm8520_vm1, %v13452_v62 }
 0xa24   :  { %6951 = vmatmul.mubr.msk.bf16.gmra.mrb[124].mxu0 %vm215_vm0, %v13457_v5  ;;  %v13469_v5 = vld [vmem:[#allocation24_spill] sm:$0xff] }
 0xa25   :  { %6954 = vmatprep.mubr.msk.bf16.mxu0 %vm8520_vm1, %v13452_v62 }
 0xa2a   :  { %6927 = vmatmul.mubr.msk.bf16.gmra.mrb[136].mxu1 %vm215_vm0, %v13459_v42 }
 0xa2b   :  { %6930 = vmatprep.mubr.msk.bf16.mxu1 %vm8520_vm1, %v13452_v62 }
 0xa2c   :  { %6955 = vmatmul.mubr.msk.bf16.gmra.mrb[128].mxu0 %vm215_vm0, %v13458_v47 }
 0xa2d   :  { %6958 = vmatprep.mubr.msk.bf16.mxu0 %vm8520_vm1, %v13452_v62 }
 0xa32   :  { %6931 = vmatmul.mubr.msk.bf16.gmra.mrb[140].mxu1 %vm215_vm0, %v13460_v12 }
 0xa33   :  { %6934 = vmatprep.mubr.msk.bf16.mxu1 %vm8520_vm1, %v13452_v62 }
 0xa34   :  { %6959 = vmatmul.mubr.msk.bf16.gmra.mrb[132].mxu0 %vm215_vm0, %v13459_v42 }
 0xa35   :  { %6962 = vmatprep.mubr.msk.bf16.mxu0 %vm8520_vm1, %v13452_v62 }
 0xa3a   :  { %6935 = vmatmul.mubr.msk.bf16.gmra.mrb[144].mxu1 %vm215_vm0, %v13461_v21 }
 0xa3b   :  { %6974 = vmatprep.mubr.msk.bf16.mxu1 %vm8520_vm1, %v13452_v62 }
 0xa3c   :  { %6963 = vmatmul.mubr.msk.bf16.gmra.mrb[136].mxu0 %vm215_vm0, %v13460_v12  ;;  %v13466_v12 = vld [vmem:[#allocation22_spill] sm:$0xff] }
 0xa3d   :  { %6966 = vmatprep.mubr.msk.bf16.mxu0 %vm8520_vm1, %v13452_v62 }
 0xa44   :  { %6967 = vmatmul.mubr.msk.bf16.gmra.mrb[140].mxu0 %vm215_vm0, %v13461_v21 }
 0xa45   :  { %7006 = vmatprep.mubr.msk.bf16.mxu0 %vm8520_vm1, %v13452_v62 }
 0xadd   :  { %v3265_v29 = vpop.f32.mrb[120].mxu1 }
 0xade   :  { %v6912_v22 = vpop.f32.mrb[121].mxu1 }
 0xadf   :  { %v3268_v39 = vpop.f32.mrb[122].mxu1 }
 0xae0   :  { %v6913_v8 = vpop.f32.mrb[123].mxu1  ;;  %v3269_v1 = vadd.f32 %v3268_v39, %v13469_v5 }
 0xae5   :  { %v3273_v17 = vpop.f32.mrb[124].mxu1 }
 0xae6   :  { %v6916_v10 = vpop.f32.mrb[125].mxu1 }
 0xae7   :  { %v3447_v14 = vpop.f32.mrb[116].mxu0  ;;  %v3276_v15 = vpop.f32.mrb[126].mxu1 }
 0xae8   :  { %v6944_v3 = vpop.f32.mrb[117].mxu0  ;;  %v6917_v54 = vpop.f32.mrb[127].mxu1 }
 0xae9   :  { %v3450_v58 = vpop.f32.mrb[118].mxu0 }
 0xaea   :  { %v6945_v9 = vpop.f32.mrb[119].mxu0  ;;  %v3451_v56 = vadd.f32 %v3450_v58, %v13469_v5 }
 0xaed   :  { %v3281_v33 = vpop.f32.mrb[128].mxu1 }
 0xaee   :  { %v6920_v63 = vpop.f32.mrb[129].mxu1 }
 0xaef   :  { %v3455_v45 = vpop.f32.mrb[120].mxu0  ;;  %v3284_v32 = vpop.f32.mrb[130].mxu1 }
 0xaf0   :  { %v6948_v53 = vpop.f32.mrb[121].mxu0  ;;  %v6921_v13 = vpop.f32.mrb[131].mxu1  ;;  %v10797_v62 = vadd.f32 %v3455_v45, %v10480_v11  ;;  %v3285_v36 = vadd.f32 %v3284_v32, %v13474_v0 }
 0xaf1   :  { %v3458_v60 = vpop.f32.mrb[122].mxu0 }
 0xaf2   :  { %v6949_v18 = vpop.f32.mrb[123].mxu0 }
 0xaf5   :  { %v3289_v26 = vpop.f32.mrb[132].mxu1 }
 0xaf6   :  { %v6924_v30 = vpop.f32.mrb[133].mxu1 }
 0xaf7   :  { %v3463_v25 = vpop.f32.mrb[124].mxu0  ;;  %v3292_v41 = vpop.f32.mrb[134].mxu1 }
 0xaf8   :  { %v6952_v55 = vpop.f32.mrb[125].mxu0  ;;  %v6925_v61 = vpop.f32.mrb[135].mxu1 }
 0xaf9   :  { %v3466_v35 = vpop.f32.mrb[126].mxu0 }
 0xafa   :  { %v6953_v50 = vpop.f32.mrb[127].mxu0 }
 0xafb   :  { %v13463_v50 = vld [vmem:[#allocation21_spill] sm:$0xff] }
 0xafd   :  { %v3297_v6 = vpop.f32.mrb[136].mxu1 }
 0xafe   :  { %v6928_v43 = vpop.f32.mrb[137].mxu1 }
 0xaff   :  { %v10757_v59 = vpop.f32.mrb[128].mxu0  ;;  %v10759_v28 = vpop.f32.mrb[138].mxu1 }
 0xb00   :  { %v6956_v22 = vpop.f32.mrb[129].mxu0  ;;  %v6929_v8 = vpop.f32.mrb[139].mxu1 }
 0xb01   :  { %v10761_v10 = vpop.f32.mrb[130].mxu0 }
 0xb02   :  { %v6957_v3 = vpop.f32.mrb[131].mxu0 }
 0xb05   :  { %v10763_v54 = vpop.f32.mrb[140].mxu1 }
 0xb06   :  { %v6932_v9 = vpop.f32.mrb[141].mxu1 }
 0xb07   :  { %v10765_v63 = vpop.f32.mrb[132].mxu0  ;;  %v10767_v53 = vpop.f32.mrb[142].mxu1 }
 0xb08   :  { %v6960_v13 = vpop.f32.mrb[133].mxu0  ;;  %v6933_v18 = vpop.f32.mrb[143].mxu1 }
 0xb09   :  { %v10769_v30 = vpop.f32.mrb[134].mxu0 }
 0xb0a   :  { %13462 = vst [vmem:[#allocation52_spill] sm:$0xff] %v10769_v30  ;;  %v6961_v55 = vpop.f32.mrb[135].mxu0 }
 0xb0d   :  { %v3313_v61 = vpop.f32.mrb[144].mxu1 }
 0xb0e   :  { %v10772_v43 = vadd.f32 %v3313_v61, %v13463_v50  ;;  %v6936_v22 = vpop.f32.mrb[145].mxu1  ;;  %v13468_v61 = vld [vmem:[#allocation23_spill] sm:$0xff] }
 0xb0f   :  { %v10774_v8 = vpop.f32.mrb[136].mxu0  ;;  %v3316_v3 = vpop.f32.mrb[146].mxu1  ;;  %v3266_v22 = vadd.f32 %v3265_v29, %v13468_v61  ;;  %v13472_v29 = vld [vmem:[#allocation27_spill] sm:$0xff] }
 0xb10   :  { %13464 = vst [vmem:[#allocation21_spill] sm:$0xff] %v10772_v43  ;;  %13465 = vst [vmem:[#allocation53_spill] sm:$0xff] %v10774_v8  ;;  %v6964_v21 = vpop.f32.mrb[137].mxu0  ;;  %v10778_v9 = vrot.slane %v10772_v43, %v13466_v12  ;;  %v6937_v42 = vpop.f32.mrb[147].mxu1  ;;  %v3277_v43 = vadd.f32 %v3276_v15, %v10485_v40  ;;  %v3282_v39 = vadd.f32 %v3281_v33, %v13472_v29 }
 0xb11   :  { %v10780_v47 = vpop.f32.mrb[138].mxu0  ;;  %v3274_v21 = vadd.f32 %v3273_v17, %v10480_v11  ;;  %v3448_v42 = vadd.f32 %v3447_v14, %v13468_v61  ;;  %v13477_v11 = vld [vmem:[#allocation26_spill] sm:$0xff]  ;;  %v3464_v8 = vadd.f32 %v3463_v25, %v13472_v29  ;;  %v13482_v29 = vld [vmem:[#allocation35_spill] sm:$0xff] }
 0xb12   :  { %13467 = vst [vmem:[#allocation22_spill] sm:$0xff] %v10780_v47  ;;  %v6965_v13 = vpop.f32.mrb[139].mxu0  ;;  %v3505_v18 = vmul.f32 %v10778_v9, %v10428_v49  ;;  %v3506_v55 = vmul.f32 %v10778_v9, %v10430_v4  ;;  %v3507_v3 = vmul.f32 %v10778_v9, %v10509_v48  ;;  %v3508_v17 = vmul.f32 %v10778_v9, %v13473_v37  ;;  %v13475_v47 = vld [vmem:[#allocation25_spill] sm:$0xff] }
 0xb13   :  { %v13470_v13 = vld [vmem:[#allocation30_spill] sm:$0xff]  ;;  %v3509_v14 = vmul.f32 %v10778_v9, %v13475_v47  ;;  %v3510_v45 = vmul.f32 %v10778_v9, %v13477_v11 }
 0xb14   :  { %v3517_v27 = vadd.f32 %v3505_v18, %v13470_v13  ;;  %v3518_v24 = vadd.f32 %v3506_v55, %v13471_v20  ;;  %v10806_v18 = vadd.f32 %v3458_v60, %v10485_v40  ;;  %v13476_v55 = vld [vmem:[#allocation37_spill] sm:$0xff]  ;;  %v3519_v33 = vadd.f32 %v3507_v3, %v10548_v23  ;;  %v13480_v60 = vld [vmem:[#allocation39_spill] sm:$0xff]  ;;  %v13481_v3 = vld [vmem:[#allocation32_spill] sm:$0xff] }
 0xb15   :  { %v3290_v5 = vadd.f32 %v3289_v26, %v13476_v55  ;;  %v10821_v26 = vadd.f32 %v3297_v6, %v13480_v60  ;;  %v3520_v30 = vadd.f32 %v3508_v17, %v10554_v46 }
 0xb16   :  { %v3529_v15 = vadd.f32 %v3517_v27, %v3266_v22  ;;  %v3530_v61 = vadd.f32 %v3518_v24, %v3269_v1  ;;  %v10817_v24 = vadd.f32 %v3466_v35, %v13474_v0  ;;  %v13479_v1 = vld [vmem:[#allocation38_spill] sm:$0xff]  ;;  %v3511_v0 = vmul.f32 %v10778_v9, %v13482_v29  ;;  %v13483_v35 = vld [vmem:[#allocation33_spill] sm:$0xff] }
 0xb17   :  { %v3495_v58 = vpop.f32.mrb[140].mxu0  ;;  %v3293_v40 = vadd.f32 %v3292_v41, %v13479_v1  ;;  %v3531_v41 = vadd.f32 %v3519_v33, %v3274_v21  ;;  %v3532_v6 = vadd.f32 %v3520_v30, %v3277_v43  ;;  %v10846_v21 = vadd.f32 %v10765_v63, %v13480_v60  ;;  %v13485_v43 = vld [vmem:[#allocation40_spill] sm:$0xff] }
 0xb18   :  { %v10814_v32 = vadd.f32 %v3495_v58, %v13463_v50  ;;  %v6968_v44 = vpop.f32.mrb[141].mxu0  ;;  %v3533_v34 = vmul.f32 0.5, %v3529_v15  ;;  %v3534_v27 = vmul.f32 0.5, %v3530_v61  ;;  %v3522_v15 = vadd.f32 %v3510_v45, %v13483_v35 }
 0xb19   :  { %v3498_v22 = vpop.f32.mrb[142].mxu0  ;;  %v3521_v44 = vadd.f32 %v3509_v14, %v13481_v3  ;;  %v10842_v14 = vadd.f32 %v10757_v59, %v13476_v55  ;;  %v3523_v45 = vadd.f32 %v3511_v0, %v13485_v43  ;;  %v3535_v33 = vmul.f32 0.5, %v3531_v41 }
 0xb1a   :  { %13478 = vst [vmem:[#allocation23_spill] sm:$0xff] %v10814_v32  ;;  %v10826_v25 = vrot.slane %v10814_v32, %v13466_v12  ;;  %v6969_v50 = vpop.f32.mrb[143].mxu0  ;;  %7862 = vtanh.f32 %v3533_v34  ;;  %v13484_v22 = vld [vmem:[#allocation36_spill] sm:$0xff]  ;;  %v3550_v55 = vadd.f32 %v3522_v15, %v3285_v36  ;;  %v3536_v63 = vmul.f32 0.5, %v3532_v6  ;;  %v13486_v32 = vld [vmem:[#allocation41_spill] sm:$0xff] }
 0xb1b   :  { %7864 = vtanh.f32 %v3534_v27  ;;  %v3512_v34 = vmul.f32 %v10778_v9, %v13484_v22  ;;  %v3549_v59 = vadd.f32 %v3521_v44, %v3282_v39 }
 0xb1c   :  { %v3687_v61 = vmul.f32 %v10826_v25, %v10428_v49  ;;  %v3688_v17 = vmul.f32 %v10826_v25, %v10430_v4  ;;  %v3691_v58 = vmul.f32 %v10826_v25, %v13475_v47  ;;  %v3301_v49 = vadd.f32 %v10759_v28, %v10571_v16 }
 0xb1d   :  { %v10852_v4 = vadd.f32 %v10763_v54, %v10631_v7  ;;  %v3524_v28 = vadd.f32 %v3512_v34, %v13486_v32  ;;  %7866 = vtanh.f32 %v3535_v33  ;;  %v10861_v54 = vadd.f32 %v10767_v53, %v10639_v31 }
 0xb1e   :  { %v3699_v47 = vadd.f32 %v3687_v61, %v13470_v13  ;;  %v3700_v30 = vadd.f32 %v3688_v17, %v13471_v20  ;;  %v3703_v27 = vadd.f32 %v3691_v58, %v13481_v3  ;;  %v13487_v13 = vld [vmem:[#allocation42_spill] sm:$0xff]  ;;  %v3692_v0 = vmul.f32 %v10826_v25, %v13477_v11 }
 0xb1f   :  { %v3513_v20 = vmul.f32 %v10778_v9, %v13487_v13  ;;  %7868 = vtanh.f32 %v3536_v63  ;;  %v3551_v3 = vadd.f32 %v3523_v45, %v3290_v5  ;;  %v3553_v15 = vmul.f32 0.5, %v3549_v59 }
 0xb20   :  { %v3711_v60 = vadd.f32 %v3699_v47, %v3448_v42  ;;  %v3712_v50 = vadd.f32 %v3700_v30, %v3451_v56  ;;  %v3689_v56 = vmul.f32 %v10826_v25, %v10509_v48  ;;  %v13488_v42 = vld [vmem:[#allocation43_spill] sm:$0xff]  ;;  %v3731_v41 = vadd.f32 %v3703_v27, %v3464_v8 }
 0xb21   :  { %v3514_v44 = vmul.f32 %v10778_v9, %v13488_v42  ;;  %v3690_v53 = vmul.f32 %v10826_v25, %v13473_v37  ;;  %v3554_v61 = vmul.f32 0.5, %v3550_v55  ;;  %v3515_v11 = vmul.f32 %v10778_v9, %v10622_v51 }
 0xb22   :  { %v3715_v36 = vmul.f32 0.5, %v3711_v60  ;;  %v3716_v39 = vmul.f32 0.5, %v3712_v50  ;;  %v3552_v17 = vadd.f32 %v3524_v28, %v3293_v40  ;;  %v3704_v34 = vadd.f32 %v3692_v0, %v13483_v35 }
 0xb23   :  { %v3701_v48 = vadd.f32 %v3689_v56, %v10548_v23  ;;  %v3525_v47 = vadd.f32 %v3513_v20, %v10595_v52  ;;  %v3555_v30 = vmul.f32 0.5, %v3551_v3  ;;  %v3702_v37 = vadd.f32 %v3690_v53, %v10554_v46 }
 0xb24   :  { %v7863_v6 = vpop.eup %7862  ;;  %7870 = vtanh.f32 %v3715_v36  ;;  %v3526_v45 = vadd.f32 %v3514_v44, %v10606_v19  ;;  %v3735_v59 = vmul.f32 0.5, %v3731_v41  ;;  %v3516_v40 = vmul.f32 %v10778_v9, %v10626_v57 }
 0xb25   :  { %v7865_v58 = vpop.eup %7864  ;;  %v3541_v5 = vmul.f32 0.5, %v7863_v6  ;;  %7872 = vtanh.f32 %v3716_v39  ;;  %v3556_v35 = vmul.f32 0.5, %v3552_v17  ;;  %v3732_v23 = vadd.f32 %v3704_v34, %v10817_v24 }
 0xb26   :  { %v3542_v8 = vmul.f32 0.5, %v7865_v58  ;;  %7874 = vtanh.f32 %v3553_v15  ;;  %v3527_v63 = vadd.f32 %v3515_v11, %v10643_v38  ;;  %v3713_v60 = vadd.f32 %v3701_v48, %v10797_v62 }
 0xb27   :  { %v3545_v33 = vadd.f32 0.5, %v3541_v5  ;;  %7876 = vtanh.f32 %v3554_v61  ;;  %v7867_v46 = vpop.eup %7866  ;;  %v3693_v28 = vmul.f32 %v10826_v25, %v13482_v29  ;;  %v3714_v20 = vadd.f32 %v3702_v37, %v10806_v18 }
 0xb28   :  { %v3546_v55 = vadd.f32 0.5, %v3542_v8  ;;  %7878 = vtanh.f32 %v3555_v30  ;;  %v3543_v9 = vmul.f32 0.5, %v7867_v46  ;;  %v3717_v39 = vmul.f32 0.5, %v3713_v60 }
 0xb29   :  { %v3569_v27 = vmul.f32 %v3545_v33, %v10821_v26  ;;  %v7869_v0 = vpop.eup %7868  ;;  %7880 = vtanh.f32 %v3735_v59  ;;  %v3718_v24 = vmul.f32 0.5, %v3714_v20  ;;  %v3736_v56 = vmul.f32 0.5, %v3732_v23 }
 0xb2a   :  { %v3570_v50 = vmul.f32 %v3546_v55, %v3301_v49  ;;  %v3544_v3 = vmul.f32 0.5, %v7869_v0  ;;  %7882 = vtanh.f32 %v3556_v35  ;;  %v3547_v62 = vadd.f32 0.5, %v3543_v9 }
 0xb2b   :  { %v3573_v36 = vadd.f32 %v3569_v27, %v3525_v47  ;;  %v3694_v49 = vmul.f32 %v10826_v25, %v13484_v22  ;;  %v3695_v18 = vmul.f32 %v10826_v25, %v13487_v13  ;;  %v3528_v29 = vadd.f32 %v3516_v40, %v10649_v2  ;;  %v13489_v47 = vld [vmem:[#allocation52_spill] sm:$0xff] }
 0xb2c   :  { %v3574_v26 = vadd.f32 %v3570_v50, %v3526_v45  ;;  %v3548_v15 = vadd.f32 0.5, %v3544_v3  ;;  %v3696_v53 = vmul.f32 %v10826_v25, %v13488_v42  ;;  %v3571_v61 = vmul.f32 %v3547_v62, %v10852_v4 }
 0xb2d   :  { %7884 = vtanh.f32 %v3573_v36  ;;  %v3705_v22 = vadd.f32 %v3693_v28, %v13485_v43  ;;  %v3706_v34 = vadd.f32 %v3694_v49, %v13486_v32  ;;  %v3475_v42 = vadd.f32 %v10761_v10, %v13479_v1  ;;  %v13491_v28 = vld [vmem:[#allocation45_spill] sm:$0xff] }
 0xb2e   :  { %v7871_v44 = vpop.eup %7870  ;;  %7886 = vtanh.f32 %v3574_v26  ;;  %v3572_v17 = vmul.f32 %v3548_v15, %v10861_v54  ;;  %v3575_v13 = vadd.f32 %v3571_v61, %v3527_v63  ;;  %v3483_v4 = vadd.f32 %v13489_v47, %v10571_v16  ;;  %v13490_v63 = vld [vmem:[#allocation44_spill] sm:$0xff] }
 0xb2f   :  { %v7873_v41 = vpop.eup %7872  ;;  %v3723_v6 = vmul.f32 0.5, %v7871_v44  ;;  %7888 = vtanh.f32 %v3717_v39  ;;  %v3707_v54 = vadd.f32 %v3695_v18, %v10595_v52  ;;  %v3708_v43 = vadd.f32 %v3696_v53, %v10606_v19  ;;  %v13492_v39 = vld [vmem:[#allocation53_spill] sm:$0xff] }
 0xb30   :  { %v3724_v11 = vmul.f32 0.5, %v7873_v41  ;;  %7890 = vtanh.f32 %v3718_v24  ;;  %v7875_v58 = vpop.eup %7874  ;;  %v3576_v30 = vadd.f32 %v3572_v17, %v3528_v29  ;;  %v3733_v32 = vadd.f32 %v3705_v22, %v10842_v14  ;;  %v13496_v17 = vld [vmem:[#allocation48_spill] sm:$0xff] }
 0xb31   :  { %v3727_v5 = vadd.f32 0.5, %v3723_v6  ;;  %7892 = vtanh.f32 %v3736_v56  ;;  %v7877_v48 = vpop.eup %7876  ;;  %v3561_v33 = vmul.f32 0.5, %v7875_v58  ;;  %v3734_v40 = vadd.f32 %v3706_v34, %v3475_v42 }
 0xb32   :  { %v3728_v8 = vadd.f32 0.5, %v3724_v11  ;;  %7894 = vtanh.f32 %v3575_v13  ;;  %v7879_v45 = vpop.eup %7878  ;;  %v3562_v10 = vmul.f32 0.5, %v7877_v48  ;;  %v3697_v52 = vmul.f32 %v10826_v25, %v10622_v51  ;;  %v13493_v51 = vld [vmem:[#allocation22_spill] sm:$0xff]  ;;  %v13497_v13 = vld [vmem:[#allocation49_spill] sm:$0xff] }
 0xb33   :  { %v3751_v37 = vmul.f32 %v3727_v5, %v10846_v21  ;;  %7896 = vtanh.f32 %v3576_v30  ;;  %v7881_v55 = vpop.eup %7880  ;;  %v3698_v19 = vmul.f32 %v10826_v25, %v10626_v57  ;;  %v3565_v23 = vadd.f32 0.5, %v3561_v33 }
 0xb34   :  { %v3752_v59 = vmul.f32 %v3728_v8, %v3483_v4  ;;  %v7883_v16 = vpop.eup %7882  ;;  %v3737_v14 = vmul.f32 0.5, %v3733_v32  ;;  %v3566_v50 = vadd.f32 0.5, %v3562_v10  ;;  %v3563_v0 = vmul.f32 0.5, %v7879_v45  ;;  %v13501_v32 = vld [vmem:[#allocation47_spill] sm:$0xff] }
 0xb35   :  { %v3755_v1 = vadd.f32 %v3751_v37, %v3707_v54  ;;  %v3738_v36 = vmul.f32 0.5, %v3734_v40  ;;  %v3488_v26 = vadd.f32 %v13492_v39, %v10631_v7  ;;  %v3491_v3 = vadd.f32 %v13493_v51, %v10639_v31 }
 0xb36   :  { %v3756_v35 = vadd.f32 %v3752_v59, %v3708_v43  ;;  %v3564_v62 = vmul.f32 0.5, %v7883_v16  ;;  %v3709_v49 = vadd.f32 %v3697_v52, %v10643_v38  ;;  %v3710_v29 = vadd.f32 %v3698_v19, %v10649_v2  ;;  %v13498_v43 = vld [vmem:[#allocation46_spill] sm:$0xff] }
 0xb37   :  { %v7885_v27 = vpop.eup %7884  ;;  %7898 = vtanh.f32 %v3755_v1  ;;  %v3567_v7 = vadd.f32 0.5, %v3563_v0  ;;  %v3743_v61 = vmul.f32 0.5, %v7881_v55  ;;  %v13499_v45 = vmov 0.0  }
 0xb38   :  { %v7887_v21 = vpop.eup %7886  ;;  %v3581_v60 = vsub.f32 %v13490_v63, %v7885_v27  ;;  %7900 = vtanh.f32 %v3756_v35  ;;  %v3568_v5 = vadd.f32 0.5, %v3564_v62  ;;  %v13513_v62 = vld [vmem:[#allocation15_spill] sm:$0xff] }
 0xb39   :  { %v7889_v46 = vpop.eup %7888  ;;  %v3582_v20 = vsub.f32 %v13491_v28, %v7887_v21  ;;  %7902 = vtanh.f32 %v3737_v14  ;;  %v3747_v54 = vadd.f32 0.5, %v3743_v61  ;;  %v13506_v28 = vld [vmem:[#allocation50_spill] sm:$0xff] }
 0xb3a   :  { %v7891_v9 = vpop.eup %7890  ;;  %v3585_v57 = vmul.f32 %v3581_v60, %v3565_v23  ;;  %v3725_v25 = vmul.f32 0.5, %v7889_v46  ;;  %7904 = vtanh.f32 %v3738_v36  ;;  %v13505_v60 = vld [vmem:[#allocation29_spill] sm:$0xff]  ;;  %v13507_v36 = vld [vmem:[#allocation51_spill] sm:$0xff] }
 0xb3b   :  { %v7893_v24 = vpop.eup %7892  ;;  %v3586_v56 = vmul.f32 %v3582_v20, %v3566_v50  ;;  %v3726_v44 = vmul.f32 0.5, %v7891_v9 }
 0xb3c   :  { %v10919_v18 = vadd.f32 %v7885_v27, %v3585_v57  ;;  %v3729_v15 = vadd.f32 0.5, %v3725_v25  ;;  %v7895_v41 = vpop.eup %7894  ;;  %v3744_v11 = vmul.f32 0.5, %v7893_v24  ;;  %v13510_v57 = vld [vmem:[#allocation16_spill] sm:$0xff]  ;;  %v13511_v24 = vld [vmem:[#allocation17_spill] sm:$0xff] }
 0xb3d   :  { %v10922_v53 = vadd.f32 %v7887_v21, %v3586_v56  ;;  %v3730_v6 = vadd.f32 0.5, %v3726_v44  ;;  %v7897_v31 = vpop.eup %7896  ;;  %v3583_v22 = vsub.f32 %v13496_v17, %v7895_v41  ;;  %v13512_v56 = vld [vmem:[#allocation18_spill] sm:$0xff]  ;;  %v13515_v44 = vld [vmem:[#allocation20_spill] sm:$0xff] }
 0xb3e   :  { %13494 = vst [vmem:[#allocation24_spill] sm:$0xff] %v10919_v18  ;;  %v3753_v58 = vmul.f32 %v3729_v15, %v3488_v26  ;;  %v3584_v2 = vsub.f32 %v13497_v13, %v7897_v31  ;;  %v3748_v59 = vadd.f32 0.5, %v3744_v11 }
 0xb3f   :  { %13495 = vst [vmem:[#allocation30_spill] sm:$0xff] %v10922_v53  ;;  %v3593_v38 = vpack.c.bf16 %v10922_v53, %v10919_v18  ;;  %v3754_v34 = vmul.f32 %v3730_v6, %v3491_v3  ;;  %v3587_v48 = vmul.f32 %v3583_v22, %v3567_v7 }
 0xb40   :  { %v3757_v42 = vadd.f32 %v3753_v58, %v3709_v49  ;;  %v3588_v4 = vmul.f32 %v3584_v2, %v3568_v5  ;;  %v13514_v49 = vld [vmem:[#allocation19_spill] sm:$0xff] }
 0xb41   :  { %v7899_v47 = vpop.eup %7898  ;;  %6971 = vmatpush3.bf16.msra.mxu1 %v3593_v38  ;;  %v3758_v8 = vadd.f32 %v3754_v34, %v3710_v29  ;;  %v10930_v33 = vadd.f32 %v7895_v41, %v3587_v48 }
 0xb42   :  { %v7901_v30 = vpop.eup %7900  ;;  %v3763_v37 = vsub.f32 %v13498_v43, %v7899_v47  ;;  %6972 = vmatprep.subr.bf16.mxu1 %v13499_v45  ;;  %7906 = vtanh.f32 %v3757_v42  ;;  %v10933_v10 = vadd.f32 %v7897_v31, %v3588_v4 }
 0xb43   :  { %13500 = vst [vmem:[#allocation31_spill] sm:$0xff] %v10930_v33  ;;  %v3764_v55 = vsub.f32 %v13501_v32, %v7901_v30  ;;  %7908 = vtanh.f32 %v3758_v8  ;;  %v7903_v35 = vpop.eup %7902 }
 0xb44   :  { %13502 = vst [vmem:[#allocation27_spill] sm:$0xff] %v10933_v10  ;;  %v3767_v1 = vmul.f32 %v3763_v37, %v3747_v54  ;;  %v3594_v16 = vpack.c.bf16 %v10933_v10, %v10930_v33  ;;  %v7905_v52 = vpop.eup %7904  ;;  %v3745_v23 = vmul.f32 0.5, %v7903_v35 }
 0xb45   :  { %v3768_v40 = vmul.f32 %v3764_v55, %v3748_v59  ;;  %v3746_v63 = vmul.f32 0.5, %v7905_v52 }
 0xb46   :  { %v10937_v27 = vadd.f32 %v7899_v47, %v3767_v1  ;;  %6973 = vmatpush3.bf16.msra.mxu1 %v3594_v16  ;;  %v3749_v50 = vadd.f32 0.5, %v3745_v23 }
 0xb47   :  { %v10939_v19 = vadd.f32 %v7901_v30, %v3768_v40  ;;  %7034 = vmatprep.subr.bf16.mxu1 %v13499_v45  ;;  %v3750_v0 = vadd.f32 0.5, %v3746_v63 }
 0xb48   :  { %13503 = vst [vmem:[#allocation34_spill] sm:$0xff] %v10937_v27 }
 0xb49   :  { %13504 = vst [vmem:[#allocation28_spill] sm:$0xff] %v10939_v19  ;;  %v3775_v21 = vpack.c.bf16 %v10939_v19, %v10937_v27  ;;  %6975 = vmatmul.mubr.msk.bf16.vlgmr.msra.gmra.mrb[148].mxu1 %vm215_vm0, %v13505_v60  ;;  %v11157_v27 = vld [vmem:[#allocation8 + $0x30] sm:$0xff] }
 0xb4a   :  { %6978 = vmatprep.mubr.msk.bf16.mxu1 %vm8520_vm1, %v13499_v45  ;;  %13531 = vst [vmem:[#allocation22_spill] sm:$0xff] %v11157_v27 }
 0xb4b   :  { %7003 = vmatpush3.bf16.msra.mxu0 %v3775_v21 }
 0xb4c   :  { %v7907_v14 = vpop.eup %7906  ;;  %7004 = vmatprep.subr.bf16.mxu0 %v13499_v45 }
 0xb4d   :  { %v7909_v46 = vpop.eup %7908  ;;  %v3765_v20 = vsub.f32 %v13506_v28, %v7907_v14 }
 0xb4e   :  { %v3766_v9 = vsub.f32 %v13507_v36, %v7909_v46 }
 0xb4f   :  { %v3769_v39 = vmul.f32 %v3765_v20, %v3749_v50 }
 0xb50   :  { %v3770_v26 = vmul.f32 %v3766_v9, %v3750_v0 }
 0xb51   :  { %v10951_v51 = vadd.f32 %v7907_v14, %v3769_v39  ;;  %6979 = vmatmul.mubr.msk.bf16.gmra.mrb[152].mxu1 %vm215_vm0, %v13510_v57  ;;  %v11049_v39 = vld [vmem:[%s12957_s8 + $0x60] sm:$0xff] }
 0xb52   :  { %v10953_v3 = vadd.f32 %v7909_v46, %v3770_v26  ;;  %6982 = vmatprep.mubr.msk.bf16.mxu1 %vm8520_vm1, %v13499_v45 }
 0xb53   :  { %13508 = vst [vmem:[#allocation25_spill] sm:$0xff] %v10951_v51 }
 0xb54   :  { %13509 = vst [vmem:[#allocation37_spill] sm:$0xff] %v10953_v3  ;;  %v3776_v25 = vpack.c.bf16 %v10953_v3, %v10951_v51  ;;  %v11126_v51 = vld [vmem:[#allocation7 + $0x38] sm:$0xff] }
 0xb56   :  { %7005 = vmatpush3.bf16.msra.mxu0 %v3776_v25 }
 0xb57   :  { %7066 = vmatprep.subr.bf16.mxu0 %v13499_v45 }
 0xb59   :  { %7007 = vmatmul.mubr.msk.bf16.vlgmr.msra.gmra.mrb[144].mxu0 %vm215_vm0, %v13505_v60  ;;  %6983 = vmatmul.mubr.msk.bf16.gmra.mrb[156].mxu1 %vm215_vm0, %v13511_v24  ;;  %v11133_v60 = vld [vmem:[%s12957_s8 + $0x10] sm:$0xff] }
 0xb5a   :  { %7010 = vmatprep.mubr.msk.bf16.mxu0 %vm8520_vm1, %v13499_v45  ;;  %6986 = vmatprep.mubr.msk.bf16.mxu1 %vm8520_vm1, %v13499_v45  ;;  %13527 = vst [vmem:[#allocation52_spill] sm:$0xff] %v11133_v60 }
 0xb61   :  { %7011 = vmatmul.mubr.msk.bf16.gmra.mrb[148].mxu0 %vm215_vm0, %v13510_v57  ;;  %6987 = vmatmul.mubr.msk.bf16.gmra.mrb[160].mxu1 %vm215_vm0, %v13512_v56 }
 0xb62   :  { %7014 = vmatprep.mubr.msk.bf16.mxu0 %vm8520_vm1, %v13499_v45  ;;  %6990 = vmatprep.mubr.msk.bf16.mxu1 %vm8520_vm1, %v13499_v45 }
 0xb69   :  { %7015 = vmatmul.mubr.msk.bf16.gmra.mrb[152].mxu0 %vm215_vm0, %v13511_v24  ;;  %6991 = vmatmul.mubr.msk.bf16.gmra.mrb[164].mxu1 %vm215_vm0, %v13513_v62 }
 0xb6a   :  { %7018 = vmatprep.mubr.msk.bf16.mxu0 %vm8520_vm1, %v13499_v45  ;;  %6994 = vmatprep.mubr.msk.bf16.mxu1 %vm8520_vm1, %v13499_v45 }
 0xb71   :  { %7019 = vmatmul.mubr.msk.bf16.gmra.mrb[156].mxu0 %vm215_vm0, %v13512_v56  ;;  %6995 = vmatmul.mubr.msk.bf16.gmra.mrb[168].mxu1 %vm215_vm0, %v13514_v49 }
 0xb72   :  { %7022 = vmatprep.mubr.msk.bf16.mxu0 %vm8520_vm1, %v13499_v45  ;;  %6998 = vmatprep.mubr.msk.bf16.mxu1 %vm8520_vm1, %v13499_v45 }
 0xb79   :  { %7023 = vmatmul.mubr.msk.bf16.gmra.mrb[160].mxu0 %vm215_vm0, %v13513_v62  ;;  %6999 = vmatmul.mubr.msk.bf16.gmra.mrb[172].mxu1 %vm215_vm0, %v13515_v44 }
 0xb7a   :  { %7026 = vmatprep.mubr.msk.bf16.mxu0 %vm8520_vm1, %v13499_v45  ;;  %7038 = vmatprep.mubr.msk.bf16.mxu1 %vm8520_vm1, %v13499_v45 }
 0xb81   :  { %7027 = vmatmul.mubr.msk.bf16.gmra.mrb[164].mxu0 %vm215_vm0, %v13514_v49 }
 0xb82   :  { %7030 = vmatprep.mubr.msk.bf16.mxu0 %vm8520_vm1, %v13499_v45 }
 0xb89   :  { %7031 = vmatmul.mubr.msk.bf16.gmra.mrb[168].mxu0 %vm215_vm0, %v13515_v44  ;;  %v11116_v44 = vld [vmem:[#allocation7 + $0x18] sm:$0xff] }
 0xb8a   :  { %7070 = vmatprep.mubr.msk.bf16.mxu0 %vm8520_vm1, %v13499_v45 }
 0xc1c   :  { %v3629_v29 = vpop.f32.mrb[148].mxu1 }
 0xc1d   :  { %v6976_v15 = vpop.f32.mrb[149].mxu1 }
 0xc1e   :  { %v3632_v41 = vpop.f32.mrb[150].mxu1 }
 0xc1f   :  { %v6977_v7 = vpop.f32.mrb[151].mxu1 }
 0xc24   :  { %v11010_v6 = vpop.f32.mrb[152].mxu1 }
 0xc25   :  { %v6980_v31 = vpop.f32.mrb[153].mxu1 }
 0xc26   :  { %v11012_v61 = vpop.f32.mrb[154].mxu1 }
 0xc27   :  { %v6981_v11 = vpop.f32.mrb[155].mxu1 }
 0xc2c   :  { %v11014_v17 = vpop.f32.mrb[144].mxu0  ;;  %v3645_v58 = vpop.f32.mrb[156].mxu1 }
 0xc2d   :  { %v7008_v22 = vpop.f32.mrb[145].mxu0  ;;  %v6984_v5 = vpop.f32.mrb[157].mxu1 }
 0xc2e   :  { %v11016_v38 = vpop.f32.mrb[146].mxu0  ;;  %v3648_v2 = vpop.f32.mrb[158].mxu1  ;;  %v11058_v22 = vld [vmem:[#allocation7] sm:$0xff] }
 0xc2f   :  { %v7009_v13 = vpop.f32.mrb[147].mxu0  ;;  %v6985_v34 = vpop.f32.mrb[159].mxu1 }
 0xc30   :  { %v11062_v13 = vld [vmem:[#allocation7 + $0x8] sm:$0xff] }
 0xc34   :  { %v11018_v48 = vpop.f32.mrb[148].mxu0  ;;  %v11020_v47 = vpop.f32.mrb[160].mxu1 }
 0xc35   :  { %v7012_v42 = vpop.f32.mrb[149].mxu0  ;;  %v6988_v8 = vpop.f32.mrb[161].mxu1 }
 0xc36   :  { %v11022_v4 = vpop.f32.mrb[150].mxu0  ;;  %v11024_v54 = vpop.f32.mrb[162].mxu1  ;;  %v11066_v42 = vld [vmem:[#allocation7 + $0x20] sm:$0xff] }
 0xc37   :  { %v7013_v30 = vpop.f32.mrb[151].mxu0  ;;  %v6989_v43 = vpop.f32.mrb[163].mxu1 }
 0xc38   :  { %v11073_v30 = vld [vmem:[%s12957_s8] sm:$0xff] }
 0xc39   :  { %v3630_v43 = vadd.f32 %v11073_v30, %v3629_v29 }
 0xc3c   :  { %v11026_v37 = vpop.f32.mrb[152].mxu0  ;;  %v11028_v32 = vpop.f32.mrb[164].mxu1 }
 0xc3d   :  { %v7016_v59 = vpop.f32.mrb[153].mxu0  ;;  %v6992_v1 = vpop.f32.mrb[165].mxu1 }
 0xc3e   :  { %v11030_v55 = vpop.f32.mrb[154].mxu0  ;;  %v11032_v16 = vpop.f32.mrb[166].mxu1  ;;  %v11079_v59 = vld [vmem:[%s12957_s8 + $0x8] sm:$0xff] }
 0xc3f   :  { %v7017_v40 = vpop.f32.mrb[155].mxu0  ;;  %v6993_v35 = vpop.f32.mrb[167].mxu1  ;;  %v3633_v1 = vadd.f32 %v11079_v59, %v3632_v41 }
 0xc40   :  { %v11082_v40 = vld [vmem:[#allocation7 + $0x28] sm:$0xff] }
 0xc41   :  { %13518 = vst [vmem:[#allocation39_spill] sm:$0xff] %v11082_v40 }
 0xc44   :  { %v11034_v52 = vpop.f32.mrb[156].mxu0  ;;  %v11036_v23 = vpop.f32.mrb[168].mxu1 }
 0xc45   :  { %v7020_v21 = vpop.f32.mrb[157].mxu0  ;;  %v6996_v14 = vpop.f32.mrb[169].mxu1 }
 0xc46   :  { %v11038_v63 = vpop.f32.mrb[158].mxu0  ;;  %v11040_v50 = vpop.f32.mrb[170].mxu1  ;;  %v11089_v21 = vld [vmem:[%s12957_s8 + $0x20] sm:$0xff] }
 0xc47   :  { %v7021_v46 = vpop.f32.mrb[159].mxu0  ;;  %v6997_v28 = vpop.f32.mrb[171].mxu1  ;;  %13519 = vst [vmem:[#allocation32_spill] sm:$0xff] %v11089_v21  ;;  %v3646_v14 = vadd.f32 %v11089_v21, %v3645_v58 }
 0xc48   :  { %v11094_v46 = vld [vmem:[#allocation8] sm:$0xff] }
 0xc49   :  { %13521 = vst [vmem:[#allocation33_spill] sm:$0xff] %v11094_v46 }
 0xc4c   :  { %v11042_v20 = vpop.f32.mrb[160].mxu0  ;;  %v3677_v36 = vpop.f32.mrb[172].mxu1 }
 0xc4d   :  { %v7024_v0 = vpop.f32.mrb[161].mxu0  ;;  %v11052_v26 = vadd.f32 %v11049_v39, %v3677_v36  ;;  %v7000_v25 = vpop.f32.mrb[173].mxu1  ;;  %v11100_v36 = vld [vmem:[#allocation8 + $0x20] sm:$0xff] }
 0xc4e   :  { %v11044_v9 = vpop.f32.mrb[162].mxu0  ;;  %v3680_v7 = vpop.f32.mrb[174].mxu1  ;;  %v11097_v0 = vld [vmem:[#allocation8 + $0x8] sm:$0xff]  ;;  %13523 = vst [vmem:[#allocation40_spill] sm:$0xff] %v11100_v36 }
 0xc4f   :  { %13516 = vst [vmem:[#allocation26_spill] sm:$0xff] %v11044_v9  ;;  %13517 = vst [vmem:[#allocation38_spill] sm:$0xff] %v11052_v26  ;;  %v7025_v15 = vpop.f32.mrb[163].mxu0  ;;  %v11056_v31 = vrot.slane %v11052_v26, %v13466_v12  ;;  %v7001_v11 = vpop.f32.mrb[175].mxu1  ;;  %v11112_v26 = vld [vmem:[#allocation7 + $0x10] sm:$0xff] }
 0xc50   :  { %13522 = vst [vmem:[#allocation36_spill] sm:$0xff] %v11097_v0  ;;  %v11106_v15 = vld [vmem:[%s12957_s8 + $0x28] sm:$0xff]  ;;  %v11109_v11 = vld [vmem:[#allocation8 + $0x28] sm:$0xff]  ;;  %13525 = vst [vmem:[#allocation42_spill] sm:$0xff] %v11112_v26 }
 0xc51   :  { %v3869_v5 = vmul.f32 %v11058_v22, %v11056_v31  ;;  %v3870_v34 = vmul.f32 %v11062_v13, %v11056_v31  ;;  %v3873_v8 = vmul.f32 %v11066_v42, %v11056_v31  ;;  %v3874_v35 = vmul.f32 %v11082_v40, %v11056_v31  ;;  %13524 = vst [vmem:[#allocation41_spill] sm:$0xff] %v11106_v15 }
 0xc52   :  { %v3649_v58 = vadd.f32 %v11106_v15, %v3648_v2  ;;  %v3876_v57 = vmul.f32 %v11126_v51, %v11056_v31 }
 0xc53   :  { %v3881_v28 = vadd.f32 %v11094_v46, %v3869_v5  ;;  %v3882_v41 = vadd.f32 %v11097_v0, %v3870_v34  ;;  %v3885_v25 = vadd.f32 %v11100_v36, %v3873_v8  ;;  %v3886_v5 = vadd.f32 %v11109_v11, %v3874_v35 }
 0xc54   :  { %v11092_v29 = vpop.f32.mrb[164].mxu0  ;;  %v3871_v34 = vmul.f32 %v11112_v26, %v11056_v31  ;;  %v3872_v8 = vmul.f32 %v11116_v44, %v11056_v31 }
 0xc55   :  { %13520 = vst [vmem:[#allocation35_spill] sm:$0xff] %v11092_v29  ;;  %v7028_v7 = vpop.f32.mrb[165].mxu0  ;;  %v3893_v62 = vadd.f32 %v3881_v28, %v3630_v43  ;;  %v3894_v56 = vadd.f32 %v3882_v41, %v3633_v1  ;;  %v3913_v2 = vadd.f32 %v3885_v25, %v3646_v14  ;;  %v3914_v3 = vadd.f32 %v3886_v5, %v3649_v58  ;;  %v11140_v1 = vld [vmem:[%s12957_s8 + $0x18] sm:$0xff]  ;;  %v11147_v41 = vld [vmem:[%s12957_s8 + $0x30] sm:$0xff]  ;;  %v11151_v58 = vld [vmem:[#allocation8 + $0x10] sm:$0xff] }
 0xc56   :  { %v11120_v49 = vpop.f32.mrb[166].mxu0  ;;  %v11122_v7 = vld [vmem:[#allocation7 + $0x30] sm:$0xff]  ;;  %v3638_v43 = vadd.f32 %v11133_v60, %v11010_v6  ;;  %13528 = vst [vmem:[#allocation44_spill] sm:$0xff] %v11140_v1  ;;  %13529 = vst [vmem:[#allocation45_spill] sm:$0xff] %v11147_v41  ;;  %v3654_v25 = vadd.f32 %v11147_v41, %v11020_v47  ;;  %v3883_v6 = vadd.f32 %v11151_v58, %v3871_v34  ;;  %v11154_v5 = vld [vmem:[#allocation8 + $0x18] sm:$0xff] }
 0xc57   :  { %13526 = vst [vmem:[#allocation43_spill] sm:$0xff] %v11120_v49  ;;  %v3875_v35 = vmul.f32 %v11122_v7, %v11056_v31  ;;  %v7029_v24 = vpop.f32.mrb[167].mxu0  ;;  %v3897_v14 = vmul.f32 0.5, %v3893_v62  ;;  %v3898_v28 = vmul.f32 0.5, %v3894_v56  ;;  %13530 = vst [vmem:[#allocation53_spill] sm:$0xff] %v11154_v5  ;;  %v3884_v19 = vadd.f32 %v11154_v5, %v3872_v8  ;;  %v11163_v62 = vld [vmem:[%s12957_s8 + $0x38] sm:$0xff] }
 0xc58   :  { %v3641_v24 = vadd.f32 %v11140_v1, %v11012_v61  ;;  %v3657_v61 = vadd.f32 %v11163_v62, %v11024_v54  ;;  %v11167_v47 = vld [vmem:[#allocation8 + $0x38] sm:$0xff]  ;;  %v3895_v49 = vadd.f32 %v3883_v6, %v3638_v43  ;;  %v3812_v54 = vadd.f32 %v11073_v30, %v11014_v17 }
 0xc59   :  { %v3887_v56 = vadd.f32 %v11157_v27, %v3875_v35  ;;  %7910 = vtanh.f32 %v3897_v14  ;;  %v3888_v34 = vadd.f32 %v11167_v47, %v3876_v57  ;;  %v3815_v14 = vadd.f32 %v11079_v59, %v11016_v38  ;;  %v11194_v38 = vld [vmem:[%s12957_s8 + $0x40] sm:$0xff] }
 0xc5a   :  { %7912 = vtanh.f32 %v3898_v28  ;;  %v3896_v8 = vadd.f32 %v3884_v19, %v3641_v24  ;;  %v3899_v53 = vmul.f32 0.5, %v3895_v49  ;;  %v11179_v57 = vadd.f32 %v11133_v60, %v11018_v48  ;;  %v11217_v24 = vld [vmem:[#allocation7 + $0x48] sm:$0xff] }
 0xc5b   :  { %v3915_v45 = vadd.f32 %v3887_v56, %v3654_v25  ;;  %v3916_v10 = vadd.f32 %v3888_v34, %v3657_v61  ;;  %v11183_v19 = vadd.f32 %v11140_v1, %v11022_v4  ;;  %v3828_v17 = vadd.f32 %v11089_v21, %v11026_v37 }
 0xc5c   :  { %v3859_v29 = vpop.f32.mrb[168].mxu0  ;;  %v3900_v18 = vmul.f32 0.5, %v3896_v8  ;;  %7914 = vtanh.f32 %v3899_v53  ;;  %v3662_v48 = vadd.f32 %v11194_v38, %v11028_v32  ;;  %v3831_v53 = vadd.f32 %v11106_v15, %v11030_v55  ;;  %v11213_v32 = vld [vmem:[%s12957_s8 + $0x48] sm:$0xff] }
 0xc5d   :  { %v11171_v35 = vadd.f32 %v11049_v39, %v3859_v29  ;;  %v7032_v33 = vpop.f32.mrb[169].mxu0  ;;  %v3878_v55 = vmul.f32 %v11217_v24, %v11056_v31  ;;  %v3917_v28 = vmul.f32 0.5, %v3913_v2  ;;  %v3918_v6 = vmul.f32 0.5, %v3914_v3 }
 0xc5e   :  { %v3862_v9 = vpop.f32.mrb[170].mxu0  ;;  %7916 = vtanh.f32 %v3900_v18  ;;  %v3665_v18 = vadd.f32 %v11213_v32, %v11032_v16  ;;  %v11228_v16 = vadd.f32 %v11147_v41, %v11034_v52  ;;  %v3919_v1 = vmul.f32 0.5, %v3915_v45 }
 0xc5f   :  { %13532 = vst [vmem:[#allocation48_spill] sm:$0xff] %v11171_v35  ;;  %v11187_v33 = vrot.slane %v11171_v35, %v13466_v12  ;;  %v7033_v49 = vpop.f32.mrb[171].mxu0  ;;  %v11198_v9 = vld [vmem:[#allocation7 + $0x40] sm:$0xff]  ;;  %7918 = vtanh.f32 %v3917_v28 }
 0xc60   :  { %v3877_v4 = vmul.f32 %v11198_v9, %v11056_v31  ;;  %v11230_v49 = vld [vmem:[#allocation8 + $0x40] sm:$0xff]  ;;  %7920 = vtanh.f32 %v3918_v6 }
 0xc61   :  { %v4051_v37 = vmul.f32 %v11058_v22, %v11187_v33  ;;  %v4052_v29 = vmul.f32 %v11062_v13, %v11187_v33  ;;  %v4055_v43 = vmul.f32 %v11066_v42, %v11187_v33  ;;  %v4056_v25 = vmul.f32 %v11082_v40, %v11187_v33  ;;  %v11237_v40 = vld [vmem:[#allocation7 + $0x50] sm:$0xff] }
 0xc62   :  { %v3889_v35 = vadd.f32 %v11230_v49, %v3877_v4  ;;  %v3879_v45 = vmul.f32 %v11237_v40, %v11056_v31  ;;  %7922 = vtanh.f32 %v3919_v1  ;;  %v4054_v28 = vmul.f32 %v11116_v44, %v11187_v33 }
 0xc63   :  { %v4063_v56 = vadd.f32 %v11094_v46, %v4051_v37  ;;  %v4064_v61 = vadd.f32 %v11097_v0, %v4052_v29  ;;  %v4067_v34 = vadd.f32 %v11100_v36, %v4055_v43  ;;  %v7911_v8 = vpop.eup %7910  ;;  %v4068_v2 = vadd.f32 %v11109_v11, %v4056_v25  ;;  %v11234_v29 = vld [vmem:[#allocation8 + $0x48] sm:$0xff]  ;;  %v11241_v25 = vld [vmem:[#allocation7 + $0x58] sm:$0xff] }
 0xc64   :  { %v7913_v60 = vpop.eup %7912  ;;  %v3905_v3 = vmul.f32 0.5, %v7911_v8  ;;  %v3890_v43 = vadd.f32 %v11234_v29, %v3878_v55  ;;  %13533 = vst [vmem:[#allocation49_spill] sm:$0xff] %v11241_v25 }
 0xc65   :  { %v4075_v15 = vadd.f32 %v4063_v56, %v3812_v54  ;;  %v4076_v37 = vadd.f32 %v4064_v61, %v3815_v14  ;;  %v4095_v46 = vadd.f32 %v4067_v34, %v3828_v17  ;;  %v3906_v36 = vmul.f32 0.5, %v7913_v60  ;;  %v11268_v34 = vld [vmem:[#allocation8 + $0x50] sm:$0xff] }
 0xc66   :  { %v4096_v52 = vadd.f32 %v4068_v2, %v3831_v53  ;;  %v3909_v41 = vadd.f32 0.5, %v3905_v3  ;;  %v3920_v54 = vmul.f32 0.5, %v3916_v10  ;;  %v7915_v14 = vpop.eup %7914  ;;  %v3880_v60 = vmul.f32 %v11241_v25, %v11056_v31  ;;  %v11256_v31 = vld [vmem:[%s12957_s8 + $0x50] sm:$0xff]  ;;  %13536 = vst [vmem:[#allocation50_spill] sm:$0xff] %v11268_v34  ;;  %v11272_v3 = vld [vmem:[#allocation8 + $0x58] sm:$0xff] }
 0xc67   :  { %v4079_v0 = vmul.f32 0.5, %v4075_v15  ;;  %v4080_v21 = vmul.f32 0.5, %v4076_v37  ;;  %v3910_v4 = vadd.f32 0.5, %v3906_v36  ;;  %v4053_v15 = vmul.f32 %v11112_v26, %v11187_v33  ;;  %13534 = vst [vmem:[#allocation46_spill] sm:$0xff] %v11256_v31  ;;  %13537 = vst [vmem:[#allocation51_spill] sm:$0xff] %v11272_v3 }
 0xc68   :  { %v3933_v17 = vmul.f32 %v3909_v41, %v3662_v48  ;;  %v7917_v53 = vpop.eup %7916  ;;  %v3907_v55 = vmul.f32 0.5, %v7915_v14  ;;  %v4058_v41 = vmul.f32 %v11126_v51, %v11187_v33  ;;  %v4066_v2 = vadd.f32 %v11154_v5, %v4054_v28 }
 0xc69   :  { %7924 = vtanh.f32 %v4079_v0  ;;  %v3934_v36 = vmul.f32 %v3910_v4, %v3665_v18  ;;  %v3908_v1 = vmul.f32 0.5, %v7917_v53  ;;  %v4057_v0 = vmul.f32 %v11122_v7, %v11187_v33 }
 0xc6a   :  { %7926 = vtanh.f32 %v4080_v21  ;;  %v3937_v10 = vadd.f32 %v3933_v17, %v3889_v35  ;;  %v3670_v21 = vadd.f32 %v11256_v31, %v11036_v23  ;;  %v3911_v18 = vadd.f32 0.5, %v3907_v55  ;;  %v11263_v35 = vld [vmem:[%s12957_s8 + $0x58] sm:$0xff] }
 0xc6b   :  { %v3938_v48 = vadd.f32 %v3934_v36, %v3890_v43  ;;  %7928 = vtanh.f32 %v3920_v54  ;;  %13535 = vst [vmem:[#allocation47_spill] sm:$0xff] %v11263_v35  ;;  %v3673_v6 = vadd.f32 %v11263_v35, %v11040_v50  ;;  %v3912_v56 = vadd.f32 0.5, %v3908_v1  ;;  %v7919_v54 = vpop.eup %7918 }
 0xc6c   :  { %7930 = vtanh.f32 %v3937_v10  ;;  %v4065_v61 = vadd.f32 %v11151_v58, %v4053_v15  ;;  %v3891_v23 = vadd.f32 %v11268_v34, %v3879_v45  ;;  %v3935_v8 = vmul.f32 %v3911_v18, %v3670_v21  ;;  %v7921_v53 = vpop.eup %7920 }
 0xc6d   :  { %7932 = vtanh.f32 %v3938_v48  ;;  %v3892_v37 = vadd.f32 %v11272_v3, %v3880_v60  ;;  %v3936_v43 = vmul.f32 %v3912_v56, %v3673_v6  ;;  %v4069_v4 = vadd.f32 %v11157_v27, %v4057_v0  ;;  %v7923_v60 = vpop.eup %7922 }
 0xc6e   :  { %v4070_v50 = vadd.f32 %v11167_v47, %v4058_v41  ;;  %v3839_v14 = vadd.f32 %v11163_v62, %v11038_v63  ;;  %v4099_v17 = vmul.f32 0.5, %v4095_v46  ;;  %v3939_v15 = vadd.f32 %v3935_v8, %v3891_v23  ;;  %v13538_v23 = vld [vmem:[#allocation26_spill] sm:$0xff] }
 0xc6f   :  { %v3940_v45 = vadd.f32 %v3936_v43, %v3892_v37  ;;  %v4077_v36 = vadd.f32 %v4065_v61, %v11179_v57  ;;  %v4078_v55 = vadd.f32 %v4066_v2, %v11183_v19  ;;  %v4097_v28 = vadd.f32 %v4069_v4, %v11228_v16 }
 0xc70   :  { %v4059_v10 = vmul.f32 %v11198_v9, %v11187_v33  ;;  %7934 = vtanh.f32 %v3939_v15  ;;  %v4098_v1 = vadd.f32 %v4070_v50, %v3839_v14  ;;  %v4100_v41 = vmul.f32 0.5, %v4096_v52  ;;  %v13539_v50 = vld [vmem:[#allocation24_spill] sm:$0xff] }
 0xc71   :  { %7936 = vtanh.f32 %v3940_v45  ;;  %v4081_v63 = vmul.f32 0.5, %v4077_v36  ;;  %v4082_v46 = vmul.f32 0.5, %v4078_v55  ;;  %v3925_v48 = vmul.f32 0.5, %v7919_v54 }
 0xc72   :  { %v4060_v57 = vmul.f32 %v11217_v24, %v11187_v33  ;;  %7938 = vtanh.f32 %v4099_v17  ;;  %v3926_v19 = vmul.f32 0.5, %v7921_v53  ;;  %v3844_v56 = vadd.f32 %v11194_v38, %v11042_v20  ;;  %v13540_v53 = vld [vmem:[#allocation30_spill] sm:$0xff] }
 0xc73   :  { %v7925_v0 = vpop.eup %7924  ;;  %7940 = vtanh.f32 %v4081_v63  ;;  %v3847_v8 = vadd.f32 %v11213_v32, %v13538_v23  ;;  %v4071_v2 = vadd.f32 %v11230_v49, %v4059_v10  ;;  %v3929_v4 = vadd.f32 0.5, %v3925_v48  ;;  %v13544_v23 = vld [vmem:[#allocation27_spill] sm:$0xff] }
 0xc74   :  { %v7927_v21 = vpop.eup %7926  ;;  %v4087_v18 = vmul.f32 0.5, %v7925_v0  ;;  %7942 = vtanh.f32 %v4082_v46  ;;  %v4072_v14 = vadd.f32 %v11234_v29, %v4060_v57  ;;  %v3930_v15 = vadd.f32 0.5, %v3926_v19 }
 0xc75   :  { %v4088_v16 = vmul.f32 0.5, %v7927_v21  ;;  %v7929_v6 = vpop.eup %7928  ;;  %7944 = vtanh.f32 %v4100_v41  ;;  %v3927_v36 = vmul.f32 0.5, %v7923_v60 }
 0xc76   :  { %v4091_v61 = vadd.f32 0.5, %v4087_v18  ;;  %v7931_v52 = vpop.eup %7930  ;;  %v3928_v63 = vmul.f32 0.5, %v7929_v6 }
 0xc77   :  { %v4092_v37 = vadd.f32 0.5, %v4088_v16  ;;  %v7933_v43 = vpop.eup %7932  ;;  %v3945_v54 = vsub.f32 %v13539_v50, %v7931_v52  ;;  %v3931_v57 = vadd.f32 0.5, %v3927_v36  ;;  %v13543_v16 = vld [vmem:[#allocation31_spill] sm:$0xff] }
 0xc78   :  { %v4115_v17 = vmul.f32 %v4091_v61, %v3844_v56  ;;  %v3946_v20 = vsub.f32 %v13540_v53, %v7933_v43  ;;  %v3932_v61 = vadd.f32 0.5, %v3928_v63  ;;  %v13546_v53 = vld [vmem:[#allocation35_spill] sm:$0xff] }
 0xc79   :  { %v4116_v45 = vmul.f32 %v4092_v37, %v3847_v8  ;;  %v3949_v55 = vmul.f32 %v3945_v54, %v3929_v4  ;;  %v4101_v8 = vmul.f32 0.5, %v4097_v28 }
 0xc7a   :  { %v4119_v0 = vadd.f32 %v4115_v17, %v4071_v2  ;;  %v3950_v46 = vmul.f32 %v3946_v20, %v3930_v15  ;;  %v7935_v10 = vpop.eup %7934  ;;  %v4062_v15 = vmul.f32 %v11241_v25, %v11187_v33  ;;  %v3852_v20 = vadd.f32 %v11256_v31, %v13546_v53 }
 0xc7b   :  { %v4120_v21 = vadd.f32 %v4116_v45, %v4072_v14  ;;  %v11294_v18 = vadd.f32 %v7931_v52, %v3949_v55  ;;  %v7937_v41 = vpop.eup %7936  ;;  %v3947_v19 = vsub.f32 %v13543_v16, %v7935_v10  ;;  %v4102_v52 = vmul.f32 0.5, %v4098_v1  ;;  %v13549_v55 = vld [vmem:[#allocation43_spill] sm:$0xff] }
 0xc7c   :  { %7946 = vtanh.f32 %v4119_v0  ;;  %v11296_v48 = vadd.f32 %v7933_v43, %v3950_v46  ;;  %v7939_v56 = vpop.eup %7938  ;;  %v3948_v60 = vsub.f32 %v13544_v23, %v7937_v41  ;;  %v4061_v43 = vmul.f32 %v11237_v40, %v11187_v33 }
 0xc7d   :  { %13541 = vst [vmem:[#allocation26_spill] sm:$0xff] %v11294_v18  ;;  %7948 = vtanh.f32 %v4120_v21  ;;  %v7941_v2 = vpop.eup %7940  ;;  %v3951_v37 = vmul.f32 %v3947_v19, %v3931_v57  ;;  %v13547_v45 = vmov 0.0   ;;  %v3855_v0 = vadd.f32 %v11263_v35, %v13549_v55  ;;  %v13555_v55 = vld [vmem:[#allocation16_spill] sm:$0xff] }
 0xc7e   :  { %13542 = vst [vmem:[#allocation24_spill] sm:$0xff] %v11296_v48  ;;  %v3957_v6 = vpack.c.bf16 %v11296_v48, %v11294_v18  ;;  %v7943_v4 = vpop.eup %7942  ;;  %v3952_v50 = vmul.f32 %v3948_v60, %v3932_v61  ;;  %v4089_v54 = vmul.f32 0.5, %v7941_v2  ;;  %7950 = vtanh.f32 %v4101_v8  ;;  %v13550_v8 = vld [vmem:[#allocation34_spill] sm:$0xff]  ;;  %v13577_v18 = vld [vmem:[#allocation36_spill] sm:$0xff] }
 0xc7f   :  { %v7945_v14 = vpop.eup %7944  ;;  %v11304_v17 = vadd.f32 %v7935_v10, %v3951_v37  ;;  %v4090_v28 = vmul.f32 0.5, %v7943_v4  ;;  %v4107_v63 = vmul.f32 0.5, %v7939_v56  ;;  %7952 = vtanh.f32 %v4102_v52  ;;  %v13551_v37 = vld [vmem:[#allocation28_spill] sm:$0xff] }
 0xc80   :  { %7035 = vmatpush3.bf16.msra.mxu1 %v3957_v6  ;;  %v11311_v1 = vadd.f32 %v7937_v41, %v3952_v50  ;;  %v4093_v36 = vadd.f32 0.5, %v4089_v54  ;;  %v4108_v21 = vmul.f32 0.5, %v7945_v14  ;;  %v4073_v10 = vadd.f32 %v11268_v34, %v4061_v43  ;;  %v13552_v50 = vld [vmem:[#allocation29_spill] sm:$0xff] }
 0xc81   :  { %13545 = vst [vmem:[#allocation30_spill] sm:$0xff] %v11304_v17  ;;  %7036 = vmatprep.subr.bf16.mxu1 %v13547_v45  ;;  %v4094_v46 = vadd.f32 0.5, %v4090_v28  ;;  %v4074_v16 = vadd.f32 %v11272_v3, %v4062_v15  ;;  %v4111_v60 = vadd.f32 0.5, %v4107_v63  ;;  %v13579_v34 = vld [vmem:[#allocation41_spill] sm:$0xff] }
 0xc82   :  { %13548 = vst [vmem:[#allocation31_spill] sm:$0xff] %v11311_v1  ;;  %v3958_v33 = vpack.c.bf16 %v11311_v1, %v11304_v17  ;;  %v4117_v57 = vmul.f32 %v4093_v36, %v3852_v20  ;;  %v4112_v6 = vadd.f32 0.5, %v4108_v21  ;;  %v13556_v21 = vld [vmem:[#allocation25_spill] sm:$0xff] }
 0xc83   :  { %v4118_v19 = vmul.f32 %v4094_v46, %v3855_v0 }
 0xc84   :  { %7037 = vmatpush3.bf16.msra.mxu1 %v3958_v33  ;;  %v4121_v61 = vadd.f32 %v4117_v57, %v4073_v10  ;;  %v13557_v57 = vld [vmem:[#allocation37_spill] sm:$0xff] }
 0xc85   :  { %v4122_v56 = vadd.f32 %v4118_v19, %v4074_v16  ;;  %7098 = vmatprep.subr.bf16.mxu1 %v13547_v45 }
 0xc86   :  { %v7947_v41 = vpop.eup %7946  ;;  %7954 = vtanh.f32 %v4121_v61 }
 0xc87   :  { %v7949_v23 = vpop.eup %7948  ;;  %v4127_v2 = vsub.f32 %v13550_v8, %v7947_v41  ;;  %7956 = vtanh.f32 %v4122_v56  ;;  %7039 = vmatmul.mubr.msk.bf16.vlgmr.msra.gmra.mrb[176].mxu1 %vm215_vm0, %v13552_v50  ;;  %v13562_v56 = vld [vmem:[#allocation15_spill] sm:$0xff] }
 0xc88   :  { %v4128_v52 = vsub.f32 %v13551_v37, %v7949_v23  ;;  %7042 = vmatprep.mubr.msk.bf16.mxu1 %vm8520_vm1, %v13547_v45  ;;  %v7951_v14 = vpop.eup %7950  ;;  %v13564_v37 = vld [vmem:[#allocation20_spill] sm:$0xff] }
 0xc89   :  { %v4131_v4 = vmul.f32 %v4127_v2, %v4111_v60  ;;  %v7953_v28 = vpop.eup %7952  ;;  %v4109_v20 = vmul.f32 0.5, %v7951_v14  ;;  %v13560_v60 = vld [vmem:[#allocation17_spill] sm:$0xff]  ;;  %v13561_v2 = vld [vmem:[#allocation18_spill] sm:$0xff] }
 0xc8a   :  { %v4132_v43 = vmul.f32 %v4128_v52, %v4112_v6  ;;  %v4110_v36 = vmul.f32 0.5, %v7953_v28  ;;  %v13563_v6 = vld [vmem:[#allocation19_spill] sm:$0xff] }
 0xc8b   :  { %v11326_v54 = vadd.f32 %v7947_v41, %v4131_v4  ;;  %v4113_v46 = vadd.f32 0.5, %v4109_v20 }
 0xc8c   :  { %v11328_v15 = vadd.f32 %v7949_v23, %v4132_v43  ;;  %v4114_v10 = vadd.f32 0.5, %v4110_v36 }
 0xc8d   :  { %13553 = vst [vmem:[#allocation27_spill] sm:$0xff] %v11326_v54 }
 0xc8e   :  { %13554 = vst [vmem:[#allocation35_spill] sm:$0xff] %v11328_v15  ;;  %v4139_v53 = vpack.c.bf16 %v11328_v15, %v11326_v54 }
 0xc8f   :  { %7043 = vmatmul.mubr.msk.bf16.gmra.mrb[180].mxu1 %vm215_vm0, %v13555_v55 }
 0xc90   :  { %7067 = vmatpush3.bf16.msra.mxu0 %v4139_v53  ;;  %v7955_v0 = vpop.eup %7954  ;;  %7046 = vmatprep.mubr.msk.bf16.mxu1 %vm8520_vm1, %v13547_v45 }
 0xc91   :  { %7068 = vmatprep.subr.bf16.mxu0 %v13547_v45  ;;  %v7957_v63 = vpop.eup %7956  ;;  %v4129_v33 = vsub.f32 %v13556_v21, %v7955_v0 }
 0xc92   :  { %v4130_v16 = vsub.f32 %v13557_v57, %v7957_v63 }
 0xc93   :  { %v4133_v19 = vmul.f32 %v4129_v33, %v4113_v46 }
 0xc94   :  { %v4134_v41 = vmul.f32 %v4130_v16, %v4114_v10 }
 0xc95   :  { %v11339_v61 = vadd.f32 %v7955_v0, %v4133_v19 }
 0xc96   :  { %v11341_v23 = vadd.f32 %v7957_v63, %v4134_v41 }
 0xc97   :  { %13558 = vst [vmem:[#allocation43_spill] sm:$0xff] %v11339_v61  ;;  %7047 = vmatmul.mubr.msk.bf16.gmra.mrb[184].mxu1 %vm215_vm0, %v13560_v60 }
 0xc98   :  { %13559 = vst [vmem:[#allocation34_spill] sm:$0xff] %v11341_v23  ;;  %v4140_v8 = vpack.c.bf16 %v11341_v23, %v11339_v61  ;;  %7050 = vmatprep.mubr.msk.bf16.mxu1 %vm8520_vm1, %v13547_v45 }
 0xc9a   :  { %7069 = vmatpush3.bf16.msra.mxu0 %v4140_v8 }
 0xc9b   :  { %7130 = vmatprep.subr.bf16.mxu0 %v13547_v45 }
 0xc9d   :  { %7071 = vmatmul.mubr.msk.bf16.vlgmr.msra.gmra.mrb[172].mxu0 %vm215_vm0, %v13552_v50 }
 0xc9e   :  { %7074 = vmatprep.mubr.msk.bf16.mxu0 %vm8520_vm1, %v13547_v45 }
 0xc9f   :  { %7051 = vmatmul.mubr.msk.bf16.gmra.mrb[188].mxu1 %vm215_vm0, %v13561_v2 }
 0xca0   :  { %7054 = vmatprep.mubr.msk.bf16.mxu1 %vm8520_vm1, %v13547_v45 }
 0xca5   :  { %7075 = vmatmul.mubr.msk.bf16.gmra.mrb[176].mxu0 %vm215_vm0, %v13555_v55 }
 0xca6   :  { %7078 = vmatprep.mubr.msk.bf16.mxu0 %vm8520_vm1, %v13547_v45 }
 0xca7   :  { %7055 = vmatmul.mubr.msk.bf16.gmra.mrb[192].mxu1 %vm215_vm0, %v13562_v56 }
 0xca8   :  { %7058 = vmatprep.mubr.msk.bf16.mxu1 %vm8520_vm1, %v13547_v45 }
 0xcad   :  { %7079 = vmatmul.mubr.msk.bf16.gmra.mrb[180].mxu0 %vm215_vm0, %v13560_v60 }
 0xcae   :  { %7082 = vmatprep.mubr.msk.bf16.mxu0 %vm8520_vm1, %v13547_v45 }
 0xcaf   :  { %7059 = vmatmul.mubr.msk.bf16.gmra.mrb[196].mxu1 %vm215_vm0, %v13563_v6 }
 0xcb0   :  { %7062 = vmatprep.mubr.msk.bf16.mxu1 %vm8520_vm1, %v13547_v45 }
 0xcb5   :  { %7083 = vmatmul.mubr.msk.bf16.gmra.mrb[184].mxu0 %vm215_vm0, %v13561_v2 }
 0xcb6   :  { %7086 = vmatprep.mubr.msk.bf16.mxu0 %vm8520_vm1, %v13547_v45 }
 0xcb7   :  { %7063 = vmatmul.mubr.msk.bf16.gmra.mrb[200].mxu1 %vm215_vm0, %v13564_v37 }
 0xcb8   :  { %7102 = vmatprep.mubr.msk.bf16.mxu1 %vm8520_vm1, %v13547_v45 }
 0xcbd   :  { %7087 = vmatmul.mubr.msk.bf16.gmra.mrb[188].mxu0 %vm215_vm0, %v13562_v56 }
 0xcbe   :  { %7090 = vmatprep.mubr.msk.bf16.mxu0 %vm8520_vm1, %v13547_v45 }
 0xcc5   :  { %7091 = vmatmul.mubr.msk.bf16.gmra.mrb[192].mxu0 %vm215_vm0, %v13563_v6 }
 0xcc6   :  { %7094 = vmatprep.mubr.msk.bf16.mxu0 %vm8520_vm1, %v13547_v45 }
 0xccd   :  { %7095 = vmatmul.mubr.msk.bf16.gmra.mrb[196].mxu0 %vm215_vm0, %v13564_v37 }
 0xcce   :  { %7134 = vmatprep.mubr.msk.bf16.mxu0 %vm8520_vm1, %v13547_v45  ;;  %v13571_v45 = vld [vmem:[#allocation21_spill] sm:$0xff] }
 0xd5a   :  { %v3993_v52 = vpop.f32.mrb[176].mxu1 }
 0xd5b   :  { %v7040_v4 = vpop.f32.mrb[177].mxu1 }
 0xd5c   :  { %v3996_v43 = vpop.f32.mrb[178].mxu1 }
 0xd5d   :  { %v7041_v14 = vpop.f32.mrb[179].mxu1 }
 0xd62   :  { %v11394_v28 = vpop.f32.mrb[180].mxu1 }
 0xd63   :  { %v7044_v53 = vpop.f32.mrb[181].mxu1 }
 0xd64   :  { %v11396_v20 = vpop.f32.mrb[182].mxu1 }
 0xd65   :  { %v7045_v36 = vpop.f32.mrb[183].mxu1 }
 0xd6a   :  { %v4009_v0 = vpop.f32.mrb[184].mxu1 }
 0xd6b   :  { %v7048_v63 = vpop.f32.mrb[185].mxu1 }
 0xd6c   :  { %v4012_v46 = vpop.f32.mrb[186].mxu1 }
 0xd6d   :  { %v7049_v21 = vpop.f32.mrb[187].mxu1  ;;  %v4013_v35 = vadd.f32 %v13579_v34, %v4012_v46 }
 0xd70   :  { %v11398_v33 = vpop.f32.mrb[172].mxu0 }
 0xd71   :  { %v7072_v10 = vpop.f32.mrb[173].mxu0 }
 0xd72   :  { %v11400_v57 = vpop.f32.mrb[174].mxu0  ;;  %v11402_v16 = vpop.f32.mrb[188].mxu1 }
 0xd73   :  { %v7073_v19 = vpop.f32.mrb[175].mxu0  ;;  %v7052_v41 = vpop.f32.mrb[189].mxu1 }
 0xd74   :  { %v11404_v8 = vpop.f32.mrb[190].mxu1 }
 0xd75   :  { %v7053_v4 = vpop.f32.mrb[191].mxu1 }
 0xd78   :  { %v11406_v14 = vpop.f32.mrb[176].mxu0 }
 0xd79   :  { %v7076_v53 = vpop.f32.mrb[177].mxu0 }
 0xd7a   :  { %v11408_v36 = vpop.f32.mrb[178].mxu0  ;;  %v11410_v63 = vpop.f32.mrb[192].mxu1 }
 0xd7b   :  { %13565 = vst [vmem:[#allocation28_spill] sm:$0xff] %v11408_v36  ;;  %v7077_v21 = vpop.f32.mrb[179].mxu0  ;;  %v7056_v37 = vpop.f32.mrb[193].mxu1 }
 0xd7c   :  { %v11412_v6 = vpop.f32.mrb[194].mxu1  ;;  %v13569_v21 = vld [vmem:[#allocation38_spill] sm:$0xff] }
 0xd7d   :  { %v7057_v10 = vpop.f32.mrb[195].mxu1  ;;  %v6026_v37 = vrot.slane %v13569_v21, 7 }
 0xd80   :  { %v11414_v56 = vpop.f32.mrb[180].mxu0 }
 0xd81   :  { %v7080_v2 = vpop.f32.mrb[181].mxu0 }
 0xd82   :  { %v11416_v19 = vpop.f32.mrb[182].mxu0  ;;  %v11418_v41 = vpop.f32.mrb[196].mxu1 }
 0xd83   :  { %13566 = vst [vmem:[#allocation25_spill] sm:$0xff] %v11418_v41  ;;  %v7081_v4 = vpop.f32.mrb[183].mxu0  ;;  %v7060_v60 = vpop.f32.mrb[197].mxu1 }
 0xd84   :  { %v11420_v23 = vpop.f32.mrb[198].mxu1 }
 0xd85   :  { %13567 = vst [vmem:[#allocation37_spill] sm:$0xff] %v11420_v23  ;;  %v7061_v53 = vpop.f32.mrb[199].mxu1 }
 0xd88   :  { %v11422_v61 = vpop.f32.mrb[184].mxu0 }
 0xd89   :  { %13568 = vst [vmem:[#allocation54_spill] sm:$0xff] %v11422_v61  ;;  %v7084_v55 = vpop.f32.mrb[185].mxu0  ;;  %v13578_v61 = vld [vmem:[#allocation40_spill] sm:$0xff] }
 0xd8a   :  { %v11425_v15 = vpop.f32.mrb[186].mxu0  ;;  %v4041_v10 = vpop.f32.mrb[200].mxu1  ;;  %v6047_v55 = vsel %vm6046_vm2, %v13571_v45, %v6026_v37  ;;  %v13574_v45 = vld [vmem:[#allocation39_spill] sm:$0xff] }
 0xd8b   :  { %13570 = vst [vmem:[#allocation38_spill] sm:$0xff] %v11425_v15  ;;  %v7085_v54 = vpop.f32.mrb[187].mxu0  ;;  %v4042_v2 = vadd.f32 %v11049_v39, %v4041_v10  ;;  %v7064_v50 = vpop.f32.mrb[201].mxu1  ;;  %v3997_v10 = vadd.f32 %v11079_v59, %v3996_v43 }
 0xd8c   :  { %v4044_v1 = vpop.f32.mrb[202].mxu1  ;;  %v3994_v50 = vadd.f32 %v11073_v30, %v3993_v52 }
 0xd8d   :  { %v11429_v60 = vrot.slane %v4042_v2, %v13466_v12  ;;  %v6029_v4 = vrot.slane %v4042_v2, 6  ;;  %v7065_v53 = vpop.f32.mrb[203].mxu1 }
 0xd8f   :  { %v11434_v21 = vsel %vm6048_vm3, %v6047_v55, %v6029_v4  ;;  %v4233_v17 = vmul.f32 %v11058_v22, %v11429_v60  ;;  %v4234_v54 = vmul.f32 %v11062_v13, %v11429_v60  ;;  %v4237_v1 = vmul.f32 %v11066_v42, %v11429_v60  ;;  %v13575_v4 = vld [vmem:[#allocation32_spill] sm:$0xff] }
 0xd90   :  { %13572 = vst [vmem:[#allocation21_spill] sm:$0xff] %v11434_v21  ;;  %v11444_v2 = vpop.f32.mrb[188].mxu0  ;;  %v4238_v37 = vmul.f32 %v13574_v45, %v11429_v60  ;;  %v4010_v53 = vadd.f32 %v13575_v4, %v4009_v0  ;;  %v13576_v21 = vld [vmem:[#allocation33_spill] sm:$0xff]  ;;  %v4235_v43 = vmul.f32 %v11112_v26, %v11429_v60  ;;  %v4240_v46 = vmul.f32 %v11126_v51, %v11429_v60 }
 0xd91   :  { %13573 = vst [vmem:[#allocation55_spill] sm:$0xff] %v11444_v2  ;;  %v7088_v55 = vpop.f32.mrb[189].mxu0  ;;  %v4245_v48 = vadd.f32 %v13576_v21, %v4233_v17  ;;  %v4246_v15 = vadd.f32 %v13577_v18, %v4234_v54  ;;  %v4249_v3 = vadd.f32 %v13578_v61, %v4237_v1  ;;  %v4236_v2 = vmul.f32 %v11116_v44, %v11429_v60  ;;  %v13581_v1 = vld [vmem:[#allocation52_spill] sm:$0xff] }
 0xd92   :  { %v11453_v23 = vpop.f32.mrb[190].mxu0  ;;  %v4250_v52 = vadd.f32 %v11109_v11, %v4238_v37  ;;  %v4239_v54 = vmul.f32 %v11122_v7, %v11429_v60  ;;  %v4002_v37 = vadd.f32 %v13581_v1, %v11394_v28  ;;  %v4252_v28 = vadd.f32 %v11167_v47, %v4240_v46 }
 0xd93   :  { %13580 = vst [vmem:[#allocation39_spill] sm:$0xff] %v11453_v23  ;;  %v7089_v0 = vpop.f32.mrb[191].mxu0  ;;  %v4257_v55 = vadd.f32 %v4245_v48, %v3994_v50  ;;  %v4258_v31 = vadd.f32 %v4246_v15, %v3997_v10  ;;  %v4277_v17 = vadd.f32 %v4249_v3, %v4010_v53  ;;  %v13582_v23 = vld [vmem:[#allocation44_spill] sm:$0xff]  ;;  %v4247_v3 = vadd.f32 %v11151_v58, %v4235_v43 }
 0xd94   :  { %v4278_v41 = vadd.f32 %v4250_v52, %v4013_v35  ;;  %v4005_v26 = vadd.f32 %v13582_v23, %v11396_v20  ;;  %v13583_v0 = vld [vmem:[#allocation45_spill] sm:$0xff]  ;;  %v4248_v35 = vadd.f32 %v11154_v5, %v4236_v2  ;;  %v4251_v15 = vadd.f32 %v11157_v27, %v4239_v54  ;;  %v13585_v54 = vld [vmem:[#allocation48_spill] sm:$0xff] }
 0xd95   :  { %v4261_v36 = vmul.f32 0.5, %v4257_v55  ;;  %v4262_v25 = vmul.f32 0.5, %v4258_v31  ;;  %v4018_v48 = vadd.f32 %v13583_v0, %v11402_v16  ;;  %v4021_v50 = vadd.f32 %v11163_v62, %v11404_v8 }
 0xd96   :  { %v4259_v20 = vadd.f32 %v4247_v3, %v4002_v37  ;;  %v4260_v31 = vadd.f32 %v4248_v35, %v4005_v26  ;;  %v6062_v27 = vrot.slane %v13585_v54, 7  ;;  %v4281_v8 = vmul.f32 0.5, %v4277_v17 }
 0xd97   :  { %7958 = vtanh.f32 %v4261_v36  ;;  %v4279_v53 = vadd.f32 %v4251_v15, %v4018_v48  ;;  %v4280_v16 = vadd.f32 %v4252_v28, %v4021_v50  ;;  %v13586_v36 = vld [vmem:[#allocation23_spill] sm:$0xff]  ;;  %v4176_v26 = vadd.f32 %v11073_v30, %v11398_v33 }
 0xd98   :  { %v11476_v10 = vpop.f32.mrb[192].mxu0  ;;  %7960 = vtanh.f32 %v4262_v25  ;;  %v4263_v43 = vmul.f32 0.5, %v4259_v20  ;;  %v4264_v5 = vmul.f32 0.5, %v4260_v31  ;;  %v6082_v46 = vsel %vm6046_vm2, %v13586_v36, %v6062_v27 }
 0xd99   :  { %13584 = vst [vmem:[#allocation32_spill] sm:$0xff] %v11476_v10  ;;  %v7092_v52 = vpop.f32.mrb[193].mxu0  ;;  %v4282_v25 = vmul.f32 0.5, %v4278_v41  ;;  %v4179_v48 = vadd.f32 %v11079_v59, %v11400_v57  ;;  %v11489_v3 = vadd.f32 %v13581_v1, %v11406_v14  ;;  %v4026_v27 = vadd.f32 %v11194_v38, %v11410_v63 }
 0xd9a   :  { %v11478_v55 = vpop.f32.mrb[194].mxu0  ;;  %7962 = vtanh.f32 %v4263_v43  ;;  %v4241_v41 = vmul.f32 %v11198_v9, %v11429_v60  ;;  %v4242_v30 = vmul.f32 %v11217_v24, %v11429_v60  ;;  %v4029_v63 = vadd.f32 %v11213_v32, %v11412_v6 }
 0xd9b   :  { %v7093_v2 = vpop.f32.mrb[195].mxu0  ;;  %7964 = vtanh.f32 %v4264_v5  ;;  %v4195_v28 = vadd.f32 %v13579_v34, %v11416_v19  ;;  %v4243_v19 = vmul.f32 %v11237_v40, %v11429_v60 }
 0xd9c   :  { %7966 = vtanh.f32 %v4281_v8  ;;  %v4253_v52 = vadd.f32 %v11230_v49, %v4241_v41 }
 0xd9d   :  { %7968 = vtanh.f32 %v4282_v25 }
 0xda0   :  { %v4223_v10 = vpop.f32.mrb[196].mxu0 }
 0xda1   :  { %v7959_v37 = vpop.eup %7958  ;;  %v4224_v35 = vadd.f32 %v11049_v39, %v4223_v10  ;;  %v7096_v17 = vpop.f32.mrb[197].mxu0  ;;  %v4192_v39 = vadd.f32 %v13575_v4, %v11414_v56  ;;  %v4254_v4 = vadd.f32 %v11234_v29, %v4242_v30 }
 0xda2   :  { %v7961_v5 = vpop.eup %7960  ;;  %v4226_v15 = vpop.f32.mrb[198].mxu0  ;;  %v4269_v33 = vmul.f32 0.5, %v7959_v37 }
 0xda3   :  { %v11499_v59 = vrot.slane %v4224_v35, %v13466_v12  ;;  %v6065_v57 = vrot.slane %v4224_v35, 6  ;;  %v7097_v14 = vpop.f32.mrb[199].mxu0  ;;  %v4270_v1 = vmul.f32 0.5, %v7961_v5  ;;  %v4284_v35 = vmul.f32 0.5, %v4280_v16  ;;  %v13587_v5 = vld [vmem:[#allocation49_spill] sm:$0xff]  ;;  %v13590_v16 = vld [vmem:[#allocation46_spill] sm:$0xff] }
 0xda4   :  { %v4273_v50 = vadd.f32 0.5, %v4269_v33  ;;  %v7963_v54 = vpop.eup %7962 }
 0xda5   :  { %v11508_v10 = vsel %vm6048_vm3, %v6082_v46, %v6065_v57  ;;  %v4274_v20 = vadd.f32 0.5, %v4270_v1  ;;  %v4415_v31 = vmul.f32 %v11058_v22, %v11499_v59  ;;  %v4416_v56 = vmul.f32 %v11062_v13, %v11499_v59  ;;  %v7965_v13 = vpop.eup %7964  ;;  %v13588_v57 = vld [vmem:[#allocation28_spill] sm:$0xff]  ;;  %v13591_v1 = vld [vmem:[#allocation37_spill] sm:$0xff] }
 0xda6   :  { %v4297_v43 = vmul.f32 %v4273_v50, %v4026_v27  ;;  %v4419_v6 = vmul.f32 %v11066_v42, %v11499_v59  ;;  %v4420_v34 = vmul.f32 %v13574_v45, %v11499_v59  ;;  %v4283_v46 = vmul.f32 0.5, %v4279_v53  ;;  %v7967_v33 = vpop.eup %7966  ;;  %v13593_v50 = vld [vmem:[#allocation42_spill] sm:$0xff] }
 0xda7   :  { %v4298_v2 = vmul.f32 %v4274_v20, %v4029_v63  ;;  %v4427_v8 = vadd.f32 %v13576_v21, %v4415_v31  ;;  %v4428_v36 = vadd.f32 %v13577_v18, %v4416_v56  ;;  %v4244_v27 = vmul.f32 %v13587_v5, %v11429_v60  ;;  %v13592_v60 = vld [vmem:[#allocation47_spill] sm:$0xff]  ;;  %v13594_v20 = vld [vmem:[#allocation50_spill] sm:$0xff] }
 0xda8   :  { %v4301_v22 = vadd.f32 %v4297_v43, %v4253_v52  ;;  %v4431_v42 = vadd.f32 %v13578_v61, %v4419_v6  ;;  %v4432_v37 = vadd.f32 %v11109_v11, %v4420_v34  ;;  %v4271_v21 = vmul.f32 0.5, %v7963_v54  ;;  %v13589_v11 = vld [vmem:[#allocation25_spill] sm:$0xff]  ;;  %v13595_v43 = vld [vmem:[#allocation51_spill] sm:$0xff]  ;;  %v13596_v34 = vld [vmem:[#allocation54_spill] sm:$0xff] }
 0xda9   :  { %v4302_v25 = vadd.f32 %v4298_v2, %v4254_v4  ;;  %v4439_v17 = vadd.f32 %v4427_v8, %v4176_v26  ;;  %v4440_v45 = vadd.f32 %v4428_v36, %v4179_v48  ;;  %v4272_v53 = vmul.f32 0.5, %v7965_v13  ;;  %v7969_v48 = vpop.eup %7968  ;;  %v13597_v13 = vld [vmem:[#allocation53_spill] sm:$0xff] }
 0xdaa   :  { %7970 = vtanh.f32 %v4301_v22  ;;  %v4459_v15 = vadd.f32 %v4431_v42, %v4192_v39  ;;  %v4460_v41 = vadd.f32 %v4432_v37, %v4195_v28  ;;  %v4187_v61 = vadd.f32 %v13582_v23, %v13588_v57  ;;  %v13599_v37 = vld [vmem:[#allocation38_spill] sm:$0xff]  ;;  %v13601_v57 = vld [vmem:[#allocation24_spill] sm:$0xff] }
 0xdab   :  { %7972 = vtanh.f32 %v4302_v25  ;;  %v4443_v30 = vmul.f32 0.5, %v4439_v17  ;;  %v4444_v18 = vmul.f32 0.5, %v4440_v45  ;;  %v4034_v14 = vadd.f32 %v13590_v16, %v13589_v11  ;;  %v13598_v25 = vld [vmem:[#allocation22_spill] sm:$0xff] }
 0xdac   :  { %7974 = vtanh.f32 %v4283_v46  ;;  %v4275_v26 = vadd.f32 0.5, %v4271_v21  ;;  %v4037_v63 = vadd.f32 %v13592_v60, %v13591_v1  ;;  %v4276_v39 = vadd.f32 0.5, %v4272_v53 }
 0xdad   :  { %7976 = vtanh.f32 %v4284_v35  ;;  %v4417_v28 = vmul.f32 %v13593_v50, %v11499_v59  ;;  %v4255_v31 = vadd.f32 %v13594_v20, %v4243_v19  ;;  %v4418_v23 = vmul.f32 %v11116_v44, %v11499_v59 }
 0xdae   :  { %7978 = vtanh.f32 %v4443_v30  ;;  %v4299_v52 = vmul.f32 %v4275_v26, %v4034_v14  ;;  %v4256_v56 = vadd.f32 %v13595_v43, %v4244_v27  ;;  %v4300_v6 = vmul.f32 %v4276_v39, %v4037_v63  ;;  %v13600_v30 = vld [vmem:[#allocation26_spill] sm:$0xff] }
 0xdaf   :  { %7980 = vtanh.f32 %v4444_v18  ;;  %v4421_v4 = vmul.f32 %v11122_v7, %v11499_v59  ;;  %v4422_v2 = vmul.f32 %v11126_v51, %v11499_v59  ;;  %v4200_v54 = vadd.f32 %v13583_v0, %v13596_v34 }
 0xdb0   :  { %v4289_v22 = vmul.f32 0.5, %v7967_v33  ;;  %v4290_v8 = vmul.f32 0.5, %v7969_v48  ;;  %v4303_v36 = vadd.f32 %v4299_v52, %v4255_v31  ;;  %v4304_v19 = vadd.f32 %v4300_v6, %v4256_v56 }
 0xdb1   :  { %v4429_v46 = vadd.f32 %v11151_v58, %v4417_v28  ;;  %v4430_v44 = vadd.f32 %v13597_v13, %v4418_v23  ;;  %v4433_v42 = vadd.f32 %v13598_v25, %v4421_v4  ;;  %v4203_v35 = vadd.f32 %v11163_v62, %v13599_v37  ;;  %v13606_v13 = vld [vmem:[#allocation30_spill] sm:$0xff]  ;;  %v13608_v37 = vld [vmem:[#allocation31_spill] sm:$0xff] }
 0xdb2   :  { %7982 = vtanh.f32 %v4303_v36  ;;  %v4434_v7 = vadd.f32 %v11167_v47, %v4422_v2  ;;  %v4293_v21 = vadd.f32 0.5, %v4289_v22  ;;  %v4294_v33 = vadd.f32 0.5, %v4290_v8  ;;  %v13605_v2 = vld [vmem:[#allocation39_spill] sm:$0xff] }
 0xdb3   :  { %7984 = vtanh.f32 %v4304_v19  ;;  %v4441_v0 = vadd.f32 %v4429_v46, %v11489_v3  ;;  %v4442_v17 = vadd.f32 %v4430_v44, %v4187_v61  ;;  %v4461_v45 = vadd.f32 %v4433_v42, %v4200_v54 }
 0xdb4   :  { %v7971_v51 = vpop.eup %7970  ;;  %v4462_v18 = vadd.f32 %v4434_v7, %v4203_v35  ;;  %v4463_v47 = vmul.f32 0.5, %v4459_v15  ;;  %v4464_v39 = vmul.f32 0.5, %v4460_v41  ;;  %v4423_v50 = vmul.f32 %v11198_v9, %v11499_v59  ;;  %v13604_v15 = vld [vmem:[#allocation55_spill] sm:$0xff] }
 0xdb5   :  { %v7973_v27 = vpop.eup %7972  ;;  %v4309_v58 = vsub.f32 %v13600_v30, %v7971_v51  ;;  %v4445_v14 = vmul.f32 0.5, %v4441_v0  ;;  %v4446_v62 = vmul.f32 0.5, %v4442_v17  ;;  %v4424_v52 = vmul.f32 %v11217_v24, %v11499_v59 }
 0xdb6   :  { %v7975_v53 = vpop.eup %7974  ;;  %v4310_v11 = vsub.f32 %v13601_v57, %v7973_v27  ;;  %v4208_v6 = vadd.f32 %v11194_v38, %v13604_v15  ;;  %v4211_v34 = vadd.f32 %v11213_v32, %v13605_v2  ;;  %v4435_v8 = vadd.f32 %v11230_v49, %v4423_v50  ;;  %v13612_v50 = vld [vmem:[#allocation29_spill] sm:$0xff] }
 0xdb7   :  { %v7977_v26 = vpop.eup %7976  ;;  %v4313_v48 = vmul.f32 %v4309_v58, %v4293_v21  ;;  %7986 = vtanh.f32 %v4445_v14  ;;  %v4291_v56 = vmul.f32 0.5, %v7975_v53  ;;  %v4436_v19 = vadd.f32 %v11234_v29, %v4424_v52  ;;  %v13611_v14 = vld [vmem:[#allocation32_spill] sm:$0xff] }
 0xdb8   :  { %v7979_v1 = vpop.eup %7978  ;;  %v4314_v63 = vmul.f32 %v4310_v11, %v4294_v33  ;;  %7988 = vtanh.f32 %v4446_v62  ;;  %v4292_v4 = vmul.f32 0.5, %v7977_v26  ;;  %v13607_v42 = vmov 0.0  }
 0xdb9   :  { %v7981_v3 = vpop.eup %7980  ;;  %v11555_v61 = vadd.f32 %v7971_v51, %v4313_v48  ;;  %v4451_v28 = vmul.f32 0.5, %v7979_v1  ;;  %7990 = vtanh.f32 %v4463_v47  ;;  %v4295_v46 = vadd.f32 0.5, %v4291_v56 }
 0xdba   :  { %v11559_v31 = vadd.f32 %v7973_v27, %v4314_v63  ;;  %v4452_v23 = vmul.f32 0.5, %v7981_v3  ;;  %7992 = vtanh.f32 %v4464_v39  ;;  %v4296_v32 = vadd.f32 0.5, %v4292_v4 }
 0xdbb   :  { %13602 = vst [vmem:[#allocation33_spill] sm:$0xff] %v11555_v61  ;;  %v4455_v41 = vadd.f32 0.5, %v4451_v28  ;;  %v4465_v49 = vmul.f32 0.5, %v4461_v45  ;;  %v4466_v29 = vmul.f32 0.5, %v4462_v18  ;;  %v4425_v58 = vmul.f32 %v11237_v40, %v11499_v59 }
 0xdbc   :  { %13603 = vst [vmem:[#allocation36_spill] sm:$0xff] %v11559_v31  ;;  %v4321_v9 = vpack.c.bf16 %v11559_v31, %v11555_v61  ;;  %v4456_v54 = vadd.f32 0.5, %v4452_v23  ;;  %v7983_v22 = vpop.eup %7982  ;;  %v4426_v33 = vmul.f32 %v13587_v5, %v11499_v59  ;;  %v4216_v45 = vadd.f32 %v13590_v16, %v13611_v14  ;;  %v13614_v23 = vld [vmem:[#allocation35_spill] sm:$0xff] }
 0xdbd   :  { %v4479_v24 = vmul.f32 %v4455_v41, %v4208_v6  ;;  %v7985_v36 = vpop.eup %7984  ;;  %v4311_v44 = vsub.f32 %v13606_v13, %v7983_v22  ;;  %v4219_v48 = vadd.f32 %v13592_v60, %v11478_v55  ;;  %v4437_v40 = vadd.f32 %v13594_v20, %v4425_v58  ;;  %v13613_v20 = vld [vmem:[#allocation27_spill] sm:$0xff] }
 0xdbe   :  { %7099 = vmatpush3.bf16.msra.mxu1 %v4321_v9  ;;  %v4480_v38 = vmul.f32 %v4456_v54, %v4211_v34  ;;  %v4312_v35 = vsub.f32 %v13608_v37, %v7985_v36  ;;  %v4438_v1 = vadd.f32 %v13595_v43, %v4426_v33  ;;  %v13617_v54 = vld [vmem:[#allocation16_spill] sm:$0xff] }
 0xdbf   :  { %v4483_v25 = vadd.f32 %v4479_v24, %v4435_v8  ;;  %7100 = vmatprep.subr.bf16.mxu1 %v13607_v42  ;;  %v4315_v51 = vmul.f32 %v4311_v44, %v4295_v46  ;;  %v13619_v44 = vld [vmem:[#allocation34_spill] sm:$0xff] }
 0xdc0   :  { %v4484_v7 = vadd.f32 %v4480_v38, %v4436_v19  ;;  %v4316_v0 = vmul.f32 %v4312_v35, %v4296_v32  ;;  %v13618_v38 = vld [vmem:[#allocation43_spill] sm:$0xff] }
 0xdc1   :  { %7994 = vtanh.f32 %v4483_v25  ;;  %v7987_v17 = vpop.eup %7986  ;;  %v11574_v27 = vadd.f32 %v7983_v22, %v4315_v51 }
 0xdc2   :  { %7996 = vtanh.f32 %v4484_v7  ;;  %v7989_v21 = vpop.eup %7988  ;;  %v11576_v30 = vadd.f32 %v7985_v36, %v4316_v0  ;;  %v4453_v53 = vmul.f32 0.5, %v7987_v17  ;;  %v13621_v7 = vld [vmem:[#allocation17_spill] sm:$0xff]  ;;  %v13624_v17 = vld [vmem:[#allocation15_spill] sm:$0xff] }
 0xdc3   :  { %13609 = vst [vmem:[#allocation40_spill] sm:$0xff] %v11574_v27  ;;  %v4454_v57 = vmul.f32 0.5, %v7989_v21  ;;  %v7991_v11 = vpop.eup %7990  ;;  %7998 = vtanh.f32 %v4465_v49  ;;  %v13623_v49 = vld [vmem:[#allocation18_spill] sm:$0xff]  ;;  %v13626_v21 = vld [vmem:[#allocation20_spill] sm:$0xff] }
 0xdc4   :  { %13610 = vst [vmem:[#allocation41_spill] sm:$0xff] %v11576_v30  ;;  %v4322_v62 = vpack.c.bf16 %v11576_v30, %v11574_v27  ;;  %v4457_v26 = vadd.f32 0.5, %v4453_v53  ;;  %v7993_v18 = vpop.eup %7992  ;;  %8000 = vtanh.f32 %v4466_v29  ;;  %v4471_v5 = vmul.f32 0.5, %v7991_v11  ;;  %v13625_v29 = vld [vmem:[#allocation19_spill] sm:$0xff] }
 0xdc5   :  { %v4458_v47 = vadd.f32 0.5, %v4454_v57  ;;  %v4472_v16 = vmul.f32 0.5, %v7993_v18 }
 0xdc6   :  { %7101 = vmatpush3.bf16.msra.mxu1 %v4322_v62  ;;  %v4481_v59 = vmul.f32 %v4457_v26, %v4216_v45  ;;  %v4475_v60 = vadd.f32 0.5, %v4471_v5 }
 0xdc7   :  { %v4482_v63 = vmul.f32 %v4458_v47, %v4219_v48  ;;  %7162 = vmatprep.subr.bf16.mxu1 %v13607_v42  ;;  %v4476_v43 = vadd.f32 0.5, %v4472_v16 }
 0xdc8   :  { %v4485_v39 = vadd.f32 %v4481_v59, %v4437_v40 }
 0xdc9   :  { %v4486_v3 = vadd.f32 %v4482_v63, %v4438_v1  ;;  %7103 = vmatmul.mubr.msk.bf16.vlgmr.msra.gmra.mrb[204].mxu1 %vm215_vm0, %v13612_v50 }
 0xdca   :  { %8002 = vtanh.f32 %v4485_v39  ;;  %7106 = vmatprep.mubr.msk.bf16.mxu1 %vm8520_vm1, %v13607_v42 }
 0xdcb   :  { %v7995_v28 = vpop.eup %7994  ;;  %8004 = vtanh.f32 %v4486_v3 }
 0xdcc   :  { %v7997_v55 = vpop.eup %7996  ;;  %v4491_v52 = vsub.f32 %v13613_v20, %v7995_v28 }
 0xdcd   :  { %v4492_v56 = vsub.f32 %v13614_v23, %v7997_v55  ;;  %v7999_v6 = vpop.eup %7998 }
 0xdce   :  { %v4495_v15 = vmul.f32 %v4491_v52, %v4475_v60  ;;  %v8001_v4 = vpop.eup %8000  ;;  %v4473_v9 = vmul.f32 0.5, %v7999_v6 }
 0xdcf   :  { %v4496_v41 = vmul.f32 %v4492_v56, %v4476_v43  ;;  %v4474_v8 = vmul.f32 0.5, %v8001_v4 }
 0xdd0   :  { %v11597_v2 = vadd.f32 %v7995_v28, %v4495_v15  ;;  %v4477_v19 = vadd.f32 0.5, %v4473_v9 }
 0xdd1   :  { %v11599_v34 = vadd.f32 %v7997_v55, %v4496_v41  ;;  %7107 = vmatmul.mubr.msk.bf16.gmra.mrb[208].mxu1 %vm215_vm0, %v13617_v54  ;;  %v4478_v13 = vadd.f32 0.5, %v4474_v8 }
 0xdd2   :  { %13615 = vst [vmem:[#allocation52_spill] sm:$0xff] %v11597_v2  ;;  %7110 = vmatprep.mubr.msk.bf16.mxu1 %vm8520_vm1, %v13607_v42 }
 0xdd3   :  { %13616 = vst [vmem:[#allocation44_spill] sm:$0xff] %v11599_v34  ;;  %v4503_v22 = vpack.c.bf16 %v11599_v34, %v11597_v2 }
 0xdd4   :  { %v8003_v24 = vpop.eup %8002 }
 0xdd5   :  { %7131 = vmatpush3.bf16.msra.mxu0 %v4503_v22  ;;  %v8005_v36 = vpop.eup %8004  ;;  %v4493_v46 = vsub.f32 %v13618_v38, %v8003_v24 }
 0xdd6   :  { %7132 = vmatprep.subr.bf16.mxu0 %v13607_v42  ;;  %v4494_v25 = vsub.f32 %v13619_v44, %v8005_v36 }
 0xdd7   :  { %v4497_v32 = vmul.f32 %v4493_v46, %v4477_v19  ;;  %v11698_v46 = vld [vmem:[%s12957_s8 + $0x60] sm:$0xff] }
 0xdd8   :  { %v4498_v37 = vmul.f32 %v4494_v25, %v4478_v13 }
 0xdd9   :  { %v11610_v35 = vadd.f32 %v8003_v24, %v4497_v32  ;;  %7111 = vmatmul.mubr.msk.bf16.gmra.mrb[212].mxu1 %vm215_vm0, %v13621_v7 }
 0xdda   :  { %v11614_v51 = vadd.f32 %v8005_v36, %v4498_v37  ;;  %7114 = vmatprep.mubr.msk.bf16.mxu1 %vm8520_vm1, %v13607_v42 }
 0xddb   :  { %13620 = vst [vmem:[#allocation45_spill] sm:$0xff] %v11610_v35 }
 0xddc   :  { %13622 = vst [vmem:[#allocation48_spill] sm:$0xff] %v11614_v51  ;;  %v4504_v0 = vpack.c.bf16 %v11614_v51, %v11610_v35  ;;  %v11778_v51 = vld [vmem:[#allocation7 + $0x38] sm:$0xff] }
 0xddd   :  { %13637 = vst [vmem:[#allocation51_spill] sm:$0xff] %v11778_v51 }
 0xdde   :  { %7133 = vmatpush3.bf16.msra.mxu0 %v4504_v0 }
 0xddf   :  { %7194 = vmatprep.subr.bf16.mxu0 %v13607_v42 }
 0xde1   :  { %7135 = vmatmul.mubr.msk.bf16.vlgmr.msra.gmra.mrb[200].mxu0 %vm215_vm0, %v13612_v50  ;;  %7115 = vmatmul.mubr.msk.bf16.gmra.mrb[216].mxu1 %vm215_vm0, %v13623_v49 }
 0xde2   :  { %7138 = vmatprep.mubr.msk.bf16.mxu0 %vm8520_vm1, %v13607_v42  ;;  %7118 = vmatprep.mubr.msk.bf16.mxu1 %vm8520_vm1, %v13607_v42 }
 0xde9   :  { %7139 = vmatmul.mubr.msk.bf16.gmra.mrb[204].mxu0 %vm215_vm0, %v13617_v54  ;;  %7119 = vmatmul.mubr.msk.bf16.gmra.mrb[220].mxu1 %vm215_vm0, %v13624_v17  ;;  %v11785_v54 = vld [vmem:[%s12957_s8 + $0x10] sm:$0xff] }
 0xdea   :  { %7142 = vmatprep.mubr.msk.bf16.mxu0 %vm8520_vm1, %v13607_v42  ;;  %7122 = vmatprep.mubr.msk.bf16.mxu1 %vm8520_vm1, %v13607_v42  ;;  %13638 = vst [vmem:[#allocation54_spill] sm:$0xff] %v11785_v54 }
 0xdf1   :  { %7143 = vmatmul.mubr.msk.bf16.gmra.mrb[208].mxu0 %vm215_vm0, %v13621_v7  ;;  %7123 = vmatmul.mubr.msk.bf16.gmra.mrb[224].mxu1 %vm215_vm0, %v13625_v29 }
 0xdf2   :  { %7146 = vmatprep.mubr.msk.bf16.mxu0 %vm8520_vm1, %v13607_v42  ;;  %7126 = vmatprep.mubr.msk.bf16.mxu1 %vm8520_vm1, %v13607_v42 }
 0xdf9   :  { %7147 = vmatmul.mubr.msk.bf16.gmra.mrb[212].mxu0 %vm215_vm0, %v13623_v49  ;;  %7127 = vmatmul.mubr.msk.bf16.gmra.mrb[228].mxu1 %vm215_vm0, %v13626_v21 }
 0xdfa   :  { %7150 = vmatprep.mubr.msk.bf16.mxu0 %vm8520_vm1, %v13607_v42  ;;  %7166 = vmatprep.mubr.msk.bf16.mxu1 %vm8520_vm1, %v13607_v42 }
 0xe01   :  { %7151 = vmatmul.mubr.msk.bf16.gmra.mrb[216].mxu0 %vm215_vm0, %v13624_v17 }
 0xe02   :  { %7154 = vmatprep.mubr.msk.bf16.mxu0 %vm8520_vm1, %v13607_v42 }
 0xe09   :  { %7155 = vmatmul.mubr.msk.bf16.gmra.mrb[220].mxu0 %vm215_vm0, %v13625_v29 }
 0xe0a   :  { %7158 = vmatprep.mubr.msk.bf16.mxu0 %vm8520_vm1, %v13607_v42 }
 0xe11   :  { %7159 = vmatmul.mubr.msk.bf16.gmra.mrb[224].mxu0 %vm215_vm0, %v13626_v21 }
 0xe12   :  { %7198 = vmatprep.mubr.msk.bf16.mxu0 %vm8520_vm1, %v13607_v42 }
 0xe9c   :  { %v4357_v58 = vpop.f32.mrb[204].mxu1 }
 0xe9d   :  { %v7104_v53 = vpop.f32.mrb[205].mxu1 }
 0xe9e   :  { %v4360_v33 = vpop.f32.mrb[206].mxu1 }
 0xe9f   :  { %v7105_v57 = vpop.f32.mrb[207].mxu1 }
 0xea4   :  { %v11665_v11 = vpop.f32.mrb[208].mxu1 }
 0xea5   :  { %v7108_v14 = vpop.f32.mrb[209].mxu1  ;;  %v4366_v34 = vadd.f32 %v11785_v54, %v11665_v11  ;;  %v11803_v11 = vld [vmem:[#allocation8 + $0x10] sm:$0xff] }
 0xea6   :  { %v11667_v45 = vpop.f32.mrb[210].mxu1  ;;  %v13628_v14 = vld [vmem:[#allocation21_spill] sm:$0xff] }
 0xea7   :  { %v7109_v62 = vpop.f32.mrb[211].mxu1 }
 0xeac   :  { %v4373_v26 = vpop.f32.mrb[212].mxu1 }
 0xead   :  { %v7112_v18 = vpop.f32.mrb[213].mxu1 }
 0xeae   :  { %v4376_v48 = vpop.f32.mrb[214].mxu1  ;;  %v11710_v18 = vld [vmem:[#allocation7] sm:$0xff] }
 0xeaf   :  { %v7113_v47 = vpop.f32.mrb[215].mxu1 }
 0xeb4   :  { %v11669_v40 = vpop.f32.mrb[200].mxu0  ;;  %v11671_v59 = vpop.f32.mrb[216].mxu1 }
 0xeb5   :  { %v7136_v5 = vpop.f32.mrb[201].mxu0  ;;  %v7116_v1 = vpop.f32.mrb[217].mxu1 }
 0xeb6   :  { %v11673_v63 = vpop.f32.mrb[202].mxu0  ;;  %v11675_v16 = vpop.f32.mrb[218].mxu1  ;;  %v11714_v5 = vld [vmem:[#allocation7 + $0x8] sm:$0xff] }
 0xeb7   :  { %v7137_v39 = vpop.f32.mrb[203].mxu0  ;;  %v7117_v3 = vpop.f32.mrb[219].mxu1 }
 0xeb8   :  { %v11718_v39 = vld [vmem:[#allocation7 + $0x20] sm:$0xff] }
 0xebc   :  { %v11677_v28 = vpop.f32.mrb[204].mxu0  ;;  %v11679_v55 = vpop.f32.mrb[220].mxu1 }
 0xebd   :  { %v7140_v60 = vpop.f32.mrb[205].mxu0  ;;  %v7120_v20 = vpop.f32.mrb[221].mxu1 }
 0xebe   :  { %v11681_v52 = vpop.f32.mrb[206].mxu0  ;;  %v11683_v43 = vpop.f32.mrb[222].mxu1  ;;  %v11725_v60 = vld [vmem:[%s12957_s8] sm:$0xff] }
 0xebf   :  { %v7141_v23 = vpop.f32.mrb[207].mxu0  ;;  %v7121_v56 = vpop.f32.mrb[223].mxu1  ;;  %v4358_v20 = vadd.f32 %v11725_v60, %v4357_v58  ;;  %v11747_v58 = vld [vmem:[%s12957_s8 + $0x28] sm:$0xff] }
 0xec0   :  { %v11731_v23 = vld [vmem:[%s12957_s8 + $0x8] sm:$0xff] }
 0xec1   :  { %v4361_v56 = vadd.f32 %v11731_v23, %v4360_v33  ;;  %v11750_v33 = vld [vmem:[#allocation8] sm:$0xff] }
 0xec4   :  { %v11685_v15 = vpop.f32.mrb[208].mxu0  ;;  %v11687_v6 = vpop.f32.mrb[224].mxu1 }
 0xec5   :  { %v7144_v41 = vpop.f32.mrb[209].mxu0  ;;  %v7124_v4 = vpop.f32.mrb[225].mxu1 }
 0xec6   :  { %v11689_v9 = vpop.f32.mrb[210].mxu0  ;;  %v11691_v22 = vpop.f32.mrb[226].mxu1  ;;  %v11737_v41 = vld [vmem:[%s12957_s8 + $0x20] sm:$0xff] }
 0xec7   :  { %v7145_v8 = vpop.f32.mrb[211].mxu0  ;;  %v7125_v24 = vpop.f32.mrb[227].mxu1  ;;  %v4374_v4 = vadd.f32 %v11737_v41, %v4373_v26 }
 0xec8   :  { %v11740_v8 = vld [vmem:[#allocation7 + $0x28] sm:$0xff] }
 0xecc   :  { %v11693_v36 = vpop.f32.mrb[212].mxu0  ;;  %v4405_v19 = vpop.f32.mrb[228].mxu1 }
 0xecd   :  { %v7148_v38 = vpop.f32.mrb[213].mxu0  ;;  %v4406_v13 = vadd.f32 %v11698_v46, %v4405_v19  ;;  %v7128_v44 = vpop.f32.mrb[229].mxu1  ;;  %v4377_v19 = vadd.f32 %v11747_v58, %v4376_v48 }
 0xece   :  { %v11701_v25 = vpop.f32.mrb[214].mxu0  ;;  %v4408_v32 = vpop.f32.mrb[230].mxu1  ;;  %v11756_v44 = vld [vmem:[#allocation8 + $0x20] sm:$0xff] }
 0xecf   :  { %13627 = vst [vmem:[#allocation23_spill] sm:$0xff] %v11701_v25  ;;  %v7149_v37 = vpop.f32.mrb[215].mxu0  ;;  %v11704_v0 = vrot.slane %v4406_v13, %v13466_v12  ;;  %v6032_v53 = vrot.slane %v4406_v13, 5  ;;  %v7129_v57 = vpop.f32.mrb[231].mxu1  ;;  %v11753_v13 = vld [vmem:[#allocation8 + $0x8] sm:$0xff]  ;;  %13630 = vst [vmem:[#allocation28_spill] sm:$0xff] %v11756_v44 }
 0xed1   :  { %v11708_v62 = vsel %vm6050_vm4, %v13628_v14, %v6032_v53  ;;  %v4597_v47 = vmul.f32 %v11710_v18, %v11704_v0  ;;  %v4598_v1 = vmul.f32 %v11714_v5, %v11704_v0  ;;  %v4601_v3 = vmul.f32 %v11718_v39, %v11704_v0  ;;  %v11761_v53 = vld [vmem:[#allocation8 + $0x28] sm:$0xff]  ;;  %v11764_v14 = vld [vmem:[#allocation7 + $0x10] sm:$0xff] }
 0xed2   :  { %13629 = vst [vmem:[#allocation49_spill] sm:$0xff] %v11708_v62  ;;  %v4602_v24 = vmul.f32 %v11740_v8, %v11704_v0  ;;  %13632 = vst [vmem:[#allocation46_spill] sm:$0xff] %v11761_v53  ;;  %v4599_v48 = vmul.f32 %v11764_v14, %v11704_v0  ;;  %v11772_v62 = vld [vmem:[#allocation7 + $0x30] sm:$0xff]  ;;  %v4604_v35 = vmul.f32 %v11778_v51, %v11704_v0 }
 0xed3   :  { %v4609_v38 = vadd.f32 %v11750_v33, %v4597_v47  ;;  %v4610_v26 = vadd.f32 %v11753_v13, %v4598_v1  ;;  %v4613_v32 = vadd.f32 %v11756_v44, %v4601_v3  ;;  %13633 = vst [vmem:[#allocation37_spill] sm:$0xff] %v11764_v14  ;;  %v11768_v47 = vld [vmem:[#allocation7 + $0x18] sm:$0xff]  ;;  %13635 = vst [vmem:[#allocation42_spill] sm:$0xff] %v11772_v62 }
 0xed4   :  { %v11759_v37 = vpop.f32.mrb[216].mxu0  ;;  %v4614_v57 = vadd.f32 %v11761_v53, %v4602_v24  ;;  %13634 = vst [vmem:[#allocation47_spill] sm:$0xff] %v11768_v47  ;;  %v4600_v1 = vmul.f32 %v11768_v47, %v11704_v0  ;;  %v4603_v3 = vmul.f32 %v11772_v62, %v11704_v0 }
 0xed5   :  { %13631 = vst [vmem:[#allocation25_spill] sm:$0xff] %v11759_v37  ;;  %v7152_v21 = vpop.f32.mrb[217].mxu0  ;;  %v4621_v29 = vadd.f32 %v4609_v38, %v4358_v20  ;;  %v4622_v17 = vadd.f32 %v4610_v26, %v4361_v56  ;;  %v4641_v49 = vadd.f32 %v4613_v32, %v4374_v4  ;;  %v11799_v38 = vld [vmem:[%s12957_s8 + $0x30] sm:$0xff]  ;;  %v4611_v32 = vadd.f32 %v11803_v11, %v4599_v48 }
 0xed6   :  { %v11776_v24 = vpop.f32.mrb[218].mxu0  ;;  %v4642_v7 = vadd.f32 %v4614_v57, %v4377_v19  ;;  %v11792_v21 = vld [vmem:[%s12957_s8 + $0x18] sm:$0xff]  ;;  %13640 = vst [vmem:[#allocation22_spill] sm:$0xff] %v11799_v38  ;;  %v4382_v26 = vadd.f32 %v11799_v38, %v11671_v59  ;;  %v11806_v57 = vld [vmem:[#allocation8 + $0x18] sm:$0xff] }
 0xed7   :  { %13636 = vst [vmem:[#allocation50_spill] sm:$0xff] %v11776_v24  ;;  %13639 = vst [vmem:[#allocation53_spill] sm:$0xff] %v11792_v21  ;;  %v4369_v20 = vadd.f32 %v11792_v21, %v11667_v45  ;;  %v7153_v56 = vpop.f32.mrb[219].mxu0  ;;  %v4625_v4 = vmul.f32 0.5, %v4621_v29  ;;  %v4626_v19 = vmul.f32 0.5, %v4622_v17  ;;  %v4612_v2 = vadd.f32 %v11806_v57, %v4600_v1  ;;  %v11809_v45 = vld [vmem:[#allocation8 + $0x30] sm:$0xff] }
 0xed8   :  { %13641 = vst [vmem:[#allocation38_spill] sm:$0xff] %v11806_v57  ;;  %13642 = vst [vmem:[#allocation26_spill] sm:$0xff] %v11809_v45  ;;  %v4615_v17 = vadd.f32 %v11809_v45, %v4603_v3  ;;  %v11815_v29 = vld [vmem:[%s12957_s8 + $0x38] sm:$0xff]  ;;  %v11819_v56 = vld [vmem:[#allocation8 + $0x38] sm:$0xff]  ;;  %v4623_v50 = vadd.f32 %v4611_v32, %v4366_v34  ;;  %v4645_v25 = vmul.f32 0.5, %v4641_v49  ;;  %v4540_v34 = vadd.f32 %v11725_v60, %v11669_v40 }
 0xed9   :  { %13643 = vst [vmem:[#allocation24_spill] sm:$0xff] %v11815_v29  ;;  %v4385_v59 = vadd.f32 %v11815_v29, %v11675_v16  ;;  %8006 = vtanh.f32 %v4625_v4  ;;  %13644 = vst [vmem:[#allocation55_spill] sm:$0xff] %v11819_v56  ;;  %v4616_v48 = vadd.f32 %v11819_v56, %v4604_v35  ;;  %v4624_v1 = vadd.f32 %v4612_v2, %v4369_v20  ;;  %v11828_v35 = vld [vmem:[#allocation7 + $0x40] sm:$0xff] }
 0xeda   :  { %8008 = vtanh.f32 %v4626_v19  ;;  %v4643_v30 = vadd.f32 %v4615_v17, %v4382_v26  ;;  %v4627_v24 = vmul.f32 0.5, %v4623_v50  ;;  %v4646_v4 = vmul.f32 0.5, %v4642_v7  ;;  %v11853_v26 = vld [vmem:[%s12957_s8 + $0x48] sm:$0xff] }
 0xedb   :  { %v4644_v27 = vadd.f32 %v4616_v48, %v4385_v59  ;;  %v4628_v31 = vmul.f32 0.5, %v4624_v1  ;;  %v4605_v20 = vmul.f32 %v11828_v35, %v11704_v0  ;;  %v11841_v19 = vadd.f32 %v11785_v54, %v11677_v28  ;;  %v11897_v54 = vld [vmem:[#allocation7 + $0x58] sm:$0xff] }
 0xedc   :  { %v11822_v42 = vpop.f32.mrb[220].mxu0  ;;  %8010 = vtanh.f32 %v4627_v24  ;;  %v11835_v24 = vld [vmem:[#allocation7 + $0x48] sm:$0xff]  ;;  %v4393_v32 = vadd.f32 %v11853_v26, %v11683_v43  ;;  %13646 = vst [vmem:[#allocation30_spill] sm:$0xff] %v11897_v54 }
 0xedd   :  { %v7156_v3 = vpop.f32.mrb[221].mxu0  ;;  %8012 = vtanh.f32 %v4628_v31  ;;  %v4606_v7 = vmul.f32 %v11835_v24, %v11704_v0 }
 0xede   :  { %v11824_v37 = vpop.f32.mrb[222].mxu0  ;;  %8014 = vtanh.f32 %v4645_v25  ;;  %v11846_v25 = vld [vmem:[%s12957_s8 + $0x40] sm:$0xff]  ;;  %v4559_v3 = vadd.f32 %v11747_v58, %v11689_v9 }
 0xedf   :  { %v7157_v61 = vpop.f32.mrb[223].mxu0  ;;  %8016 = vtanh.f32 %v4646_v4 }
 0xee0   :  { %v4543_v61 = vadd.f32 %v11731_v23, %v11673_v63  ;;  %v4390_v63 = vadd.f32 %v11846_v25, %v11679_v55  ;;  %v4556_v55 = vadd.f32 %v11737_v41, %v11685_v15 }
 0xee3   :  { %v8007_v16 = vpop.eup %8006 }
 0xee4   :  { %v8009_v29 = vpop.eup %8008  ;;  %v4587_v2 = vpop.f32.mrb[224].mxu0  ;;  %v4633_v50 = vmul.f32 0.5, %v8007_v16  ;;  %v11864_v16 = vld [vmem:[#allocation8 + $0x40] sm:$0xff] }
 0xee5   :  { %v4588_v49 = vadd.f32 %v11698_v46, %v4587_v2  ;;  %v7160_v31 = vpop.f32.mrb[225].mxu0  ;;  %v4634_v40 = vmul.f32 0.5, %v8009_v29  ;;  %v4617_v2 = vadd.f32 %v11864_v16, %v4605_v20 }
 0xee6   :  { %v4590_v17 = vpop.f32.mrb[226].mxu0  ;;  %v4637_v29 = vadd.f32 0.5, %v4633_v50  ;;  %v11871_v31 = vld [vmem:[#allocation8 + $0x48] sm:$0xff] }
 0xee7   :  { %v11858_v28 = vrot.slane %v4588_v49, %v13466_v12  ;;  %v6068_v59 = vrot.slane %v4588_v49, 5  ;;  %v7161_v48 = vpop.f32.mrb[227].mxu0  ;;  %v4638_v1 = vadd.f32 0.5, %v4634_v40  ;;  %v4618_v49 = vadd.f32 %v11871_v31, %v4606_v7 }
 0xee8   :  { %v4661_v43 = vmul.f32 %v4637_v29, %v4390_v63  ;;  %v4648_v7 = vmul.f32 0.5, %v4644_v27 }
 0xee9   :  { %v11869_v50 = vsel %vm6050_vm4, %v11508_v10, %v6068_v59  ;;  %v4662_v4 = vmul.f32 %v4638_v1, %v4393_v32  ;;  %v4779_v15 = vmul.f32 %v11710_v18, %v11858_v28  ;;  %v4780_v9 = vmul.f32 %v11714_v5, %v11858_v28  ;;  %v8011_v10 = vpop.eup %8010 }
 0xeea   :  { %13645 = vst [vmem:[#allocation39_spill] sm:$0xff] %v11869_v50  ;;  %v4665_v40 = vadd.f32 %v4661_v43, %v4617_v2  ;;  %v4783_v20 = vmul.f32 %v11718_v39, %v11858_v28  ;;  %v4784_v63 = vmul.f32 %v11740_v8, %v11858_v28  ;;  %v4647_v59 = vmul.f32 0.5, %v4643_v30  ;;  %v8013_v32 = vpop.eup %8012  ;;  %v11889_v43 = vld [vmem:[%s12957_s8 + $0x50] sm:$0xff]  ;;  %v11893_v30 = vld [vmem:[#allocation7 + $0x50] sm:$0xff] }
 0xeeb   :  { %v4666_v17 = vadd.f32 %v4662_v4, %v4618_v49  ;;  %v4791_v29 = vadd.f32 %v11750_v33, %v4779_v15  ;;  %v4792_v48 = vadd.f32 %v11753_v13, %v4780_v9  ;;  %v4398_v49 = vadd.f32 %v11889_v43, %v11687_v6  ;;  %v8015_v15 = vpop.eup %8014  ;;  %v11904_v6 = vld [vmem:[%s12957_s8 + $0x58] sm:$0xff] }
 0xeec   :  { %8018 = vtanh.f32 %v4665_v40  ;;  %v4795_v1 = vadd.f32 %v11756_v44, %v4783_v20  ;;  %v4796_v2 = vadd.f32 %v11761_v53, %v4784_v63  ;;  %v4607_v27 = vmul.f32 %v11893_v30, %v11704_v0  ;;  %13647 = vst [vmem:[#allocation31_spill] sm:$0xff] %v11904_v6 }
 0xeed   :  { %8020 = vtanh.f32 %v4666_v17  ;;  %v4803_v4 = vadd.f32 %v4791_v29, %v4540_v34  ;;  %v4804_v40 = vadd.f32 %v4792_v48, %v4543_v61  ;;  %v4635_v63 = vmul.f32 0.5, %v8011_v10  ;;  %v11908_v17 = vld [vmem:[#allocation8 + $0x50] sm:$0xff] }
 0xeee   :  { %v4823_v9 = vadd.f32 %v4795_v1, %v4556_v55  ;;  %v4824_v20 = vadd.f32 %v4796_v2, %v4559_v3  ;;  %v4608_v53 = vmul.f32 %v11897_v54, %v11704_v0  ;;  %v4636_v44 = vmul.f32 0.5, %v8013_v32  ;;  %v8017_v3 = vpop.eup %8016  ;;  %13648 = vst [vmem:[#allocation32_spill] sm:$0xff] %v11908_v17 }
 0xeef   :  { %v4807_v50 = vmul.f32 0.5, %v4803_v4  ;;  %8022 = vtanh.f32 %v4647_v59  ;;  %v4401_v34 = vadd.f32 %v11904_v6, %v11691_v22  ;;  %v4808_v61 = vmul.f32 0.5, %v4804_v40  ;;  %v11915_v22 = vld [vmem:[#allocation8 + $0x58] sm:$0xff] }
 0xef0   :  { %v4639_v55 = vadd.f32 0.5, %v4635_v63  ;;  %8024 = vtanh.f32 %v4648_v7  ;;  %v4653_v10 = vmul.f32 0.5, %v8015_v15  ;;  %v4619_v0 = vadd.f32 %v11908_v17, %v4607_v27  ;;  %13649 = vst [vmem:[#allocation27_spill] sm:$0xff] %v11915_v22 }
 0xef1   :  { %8026 = vtanh.f32 %v4807_v50  ;;  %v4640_v29 = vadd.f32 0.5, %v4636_v44  ;;  %v4781_v32 = vmul.f32 %v11764_v14, %v11858_v28  ;;  %v4782_v48 = vmul.f32 %v11768_v47, %v11858_v28 }
 0xef2   :  { %8028 = vtanh.f32 %v4808_v61  ;;  %v4663_v59 = vmul.f32 %v4639_v55, %v4398_v49  ;;  %v4620_v7 = vadd.f32 %v11915_v22, %v4608_v53  ;;  %v4785_v50 = vmul.f32 %v11772_v62, %v11858_v28  ;;  %v13650_v61 = vld [vmem:[#allocation23_spill] sm:$0xff]  ;;  %v13651_v55 = vld [vmem:[#allocation24_spill] sm:$0xff]  ;;  %v13652_v62 = vld [vmem:[#allocation33_spill] sm:$0xff] }
 0xef3   :  { %v4664_v1 = vmul.f32 %v4640_v29, %v4401_v34  ;;  %v4786_v2 = vmul.f32 %v11778_v51, %v11858_v28  ;;  %v4551_v44 = vadd.f32 %v11792_v21, %v11681_v52  ;;  %v4564_v49 = vadd.f32 %v11799_v38, %v11693_v36 }
 0xef4   :  { %v4654_v4 = vmul.f32 0.5, %v8017_v3  ;;  %v4667_v27 = vadd.f32 %v4663_v59, %v4619_v0  ;;  %v4793_v40 = vadd.f32 %v11803_v11, %v4781_v32  ;;  %v4794_v53 = vadd.f32 %v11806_v57, %v4782_v48  ;;  %v13653_v32 = vld [vmem:[#allocation36_spill] sm:$0xff] }
 0xef5   :  { %v4668_v15 = vadd.f32 %v4664_v1, %v4620_v7  ;;  %v4797_v63 = vadd.f32 %v11809_v45, %v4785_v50  ;;  %v4567_v29 = vadd.f32 %v13651_v55, %v13650_v61  ;;  %v4657_v51 = vadd.f32 0.5, %v4653_v10 }
 0xef6   :  { %v8019_v34 = vpop.eup %8018  ;;  %8030 = vtanh.f32 %v4667_v27  ;;  %v4798_v52 = vadd.f32 %v11819_v56, %v4786_v2  ;;  %v4805_v3 = vadd.f32 %v4793_v40, %v11841_v19  ;;  %v4806_v0 = vadd.f32 %v4794_v53, %v4551_v44 }
 0xef7   :  { %v8021_v21 = vpop.eup %8020  ;;  %v4673_v36 = vsub.f32 %v13652_v62, %v8019_v34  ;;  %8032 = vtanh.f32 %v4668_v15  ;;  %v4658_v59 = vadd.f32 0.5, %v4654_v4  ;;  %v4825_v7 = vadd.f32 %v4797_v63, %v4564_v49  ;;  %v13656_v4 = vld [vmem:[#allocation25_spill] sm:$0xff] }
 0xef8   :  { %v4674_v48 = vsub.f32 %v13653_v32, %v8021_v21  ;;  %v4826_v1 = vadd.f32 %v4798_v52, %v4567_v29  ;;  %v4809_v57 = vmul.f32 0.5, %v4805_v3  ;;  %v4810_v61 = vmul.f32 0.5, %v4806_v0 }
 0xef9   :  { %v8023_v50 = vpop.eup %8022  ;;  %v4677_v45 = vmul.f32 %v4673_v36, %v4657_v51  ;;  %v4827_v55 = vmul.f32 0.5, %v4823_v9  ;;  %v4828_v62 = vmul.f32 0.5, %v4824_v20  ;;  %v4787_v44 = vmul.f32 %v11828_v35, %v11858_v28  ;;  %v13657_v20 = vld [vmem:[#allocation50_spill] sm:$0xff] }
 0xefa   :  { %v8025_v10 = vpop.eup %8024  ;;  %v4678_v27 = vmul.f32 %v4674_v48, %v4658_v59  ;;  %8034 = vtanh.f32 %v4809_v57  ;;  %v4572_v51 = vadd.f32 %v11846_v25, %v13656_v4  ;;  %v4788_v40 = vmul.f32 %v11835_v24, %v11858_v28 }
 0xefb   :  { %v8027_v2 = vpop.eup %8026  ;;  %v11935_v56 = vadd.f32 %v8019_v34, %v4677_v45  ;;  %8036 = vtanh.f32 %v4810_v61  ;;  %v4655_v53 = vmul.f32 0.5, %v8023_v50  ;;  %v4575_v63 = vadd.f32 %v11853_v26, %v13657_v20  ;;  %v13659_v50 = vld [vmem:[#allocation40_spill] sm:$0xff] }
 0xefc   :  { %v8029_v15 = vpop.eup %8028  ;;  %v11937_v19 = vadd.f32 %v8021_v21, %v4678_v27  ;;  %v4815_v49 = vmul.f32 0.5, %v8027_v2  ;;  %8038 = vtanh.f32 %v4827_v55  ;;  %v4656_v21 = vmul.f32 0.5, %v8025_v10  ;;  %v13660_v27 = vld [vmem:[#allocation41_spill] sm:$0xff] }
 0xefd   :  { %13654 = vst [vmem:[#allocation35_spill] sm:$0xff] %v11935_v56  ;;  %v4816_v9 = vmul.f32 0.5, %v8029_v15  ;;  %8040 = vtanh.f32 %v4828_v62  ;;  %v4799_v52 = vadd.f32 %v11864_v16, %v4787_v44  ;;  %v4800_v0 = vadd.f32 %v11871_v31, %v4788_v40 }
 0xefe   :  { %13655 = vst [vmem:[#allocation43_spill] sm:$0xff] %v11937_v19  ;;  %v4685_v45 = vpack.c.bf16 %v11937_v19, %v11935_v56  ;;  %v4819_v57 = vadd.f32 0.5, %v4815_v49  ;;  %v13658_v32 = vmov 0.0   ;;  %v4659_v48 = vadd.f32 0.5, %v4655_v53  ;;  %v13686_v19 = vld [vmem:[#allocation46_spill] sm:$0xff] }
 0xeff   :  { %v4820_v34 = vadd.f32 0.5, %v4816_v9  ;;  %v4660_v10 = vadd.f32 0.5, %v4656_v21  ;;  %v4829_v4 = vmul.f32 0.5, %v4825_v7  ;;  %v4830_v40 = vmul.f32 0.5, %v4826_v1 }
 0xf00   :  { %v8031_v29 = vpop.eup %8030  ;;  %7163 = vmatpush3.bf16.msra.mxu1 %v4685_v45  ;;  %v4843_v36 = vmul.f32 %v4819_v57, %v4572_v51  ;;  %v4789_v53 = vmul.f32 %v11893_v30, %v11858_v28  ;;  %v4790_v21 = vmul.f32 %v11897_v54, %v11858_v28  ;;  %v4580_v7 = vadd.f32 %v11889_v43, %v11822_v42 }
 0xf01   :  { %v8033_v3 = vpop.eup %8032  ;;  %v4844_v59 = vmul.f32 %v4820_v34, %v4575_v63  ;;  %7164 = vmatprep.subr.bf16.mxu1 %v13658_v32  ;;  %v4675_v55 = vsub.f32 %v13659_v50, %v8031_v29 }
 0xf02   :  { %v4847_v61 = vadd.f32 %v4843_v36, %v4799_v52  ;;  %v4676_v2 = vsub.f32 %v13660_v27, %v8033_v3  ;;  %v4583_v52 = vadd.f32 %v11904_v6, %v11824_v37 }
 0xf03   :  { %v4848_v15 = vadd.f32 %v4844_v59, %v4800_v0  ;;  %v4679_v62 = vmul.f32 %v4675_v55, %v4659_v48  ;;  %v4802_v59 = vadd.f32 %v11915_v22, %v4790_v21 }
 0xf04   :  { %8042 = vtanh.f32 %v4847_v61  ;;  %v4680_v49 = vmul.f32 %v4676_v2, %v4660_v10  ;;  %v8035_v44 = vpop.eup %8034  ;;  %v13663_v61 = vld [vmem:[#allocation29_spill] sm:$0xff]  ;;  %v13664_v2 = vld [vmem:[#allocation52_spill] sm:$0xff] }
 0xf05   :  { %8044 = vtanh.f32 %v4848_v15  ;;  %v11954_v51 = vadd.f32 %v8031_v29, %v4679_v62  ;;  %v8037_v9 = vpop.eup %8036  ;;  %v4817_v57 = vmul.f32 0.5, %v8035_v44 }
 0xf06   :  { %v11956_v45 = vadd.f32 %v8033_v3, %v4680_v49  ;;  %v4818_v20 = vmul.f32 0.5, %v8037_v9  ;;  %v8039_v63 = vpop.eup %8038  ;;  %8046 = vtanh.f32 %v4829_v4  ;;  %v4801_v3 = vadd.f32 %v11908_v17, %v4789_v53  ;;  %v13665_v49 = vld [vmem:[#allocation44_spill] sm:$0xff] }
 0xf07   :  { %13661 = vst [vmem:[#allocation34_spill] sm:$0xff] %v11954_v51  ;;  %v4821_v29 = vadd.f32 0.5, %v4817_v57  ;;  %v8041_v1 = vpop.eup %8040  ;;  %8048 = vtanh.f32 %v4830_v40  ;;  %v4835_v0 = vmul.f32 0.5, %v8039_v63  ;;  %v13668_v63 = vld [vmem:[#allocation16_spill] sm:$0xff] }
 0xf08   :  { %13662 = vst [vmem:[#allocation21_spill] sm:$0xff] %v11956_v45  ;;  %v4686_v34 = vpack.c.bf16 %v11956_v45, %v11954_v51  ;;  %v4822_v36 = vadd.f32 0.5, %v4818_v20  ;;  %v4836_v42 = vmul.f32 0.5, %v8041_v1  ;;  %v13682_v45 = vld [vmem:[#allocation49_spill] sm:$0xff] }
 0xf09   :  { %v4845_v28 = vmul.f32 %v4821_v29, %v4580_v7  ;;  %v4839_v27 = vadd.f32 0.5, %v4835_v0  ;;  %v13670_v0 = vld [vmem:[#allocation48_spill] sm:$0xff] }
 0xf0a   :  { %7165 = vmatpush3.bf16.msra.mxu1 %v4686_v34  ;;  %v4846_v48 = vmul.f32 %v4822_v36, %v4583_v52  ;;  %v4840_v62 = vadd.f32 0.5, %v4836_v42  ;;  %v13669_v36 = vld [vmem:[#allocation45_spill] sm:$0xff] }
 0xf0b   :  { %7226 = vmatprep.subr.bf16.mxu1 %v13658_v32  ;;  %v4849_v50 = vadd.f32 %v4845_v28, %v4801_v3 }
 0xf0c   :  { %v4850_v55 = vadd.f32 %v4846_v48, %v4802_v59 }
 0xf0d   :  { %7167 = vmatmul.mubr.msk.bf16.vlgmr.msra.gmra.mrb[232].mxu1 %vm215_vm0, %v13663_v61  ;;  %8050 = vtanh.f32 %v4849_v50 }
 0xf0e   :  { %v8043_v10 = vpop.eup %8042  ;;  %7170 = vmatprep.mubr.msk.bf16.mxu1 %vm8520_vm1, %v13658_v32  ;;  %8052 = vtanh.f32 %v4850_v55  ;;  %v13672_v55 = vld [vmem:[#allocation17_spill] sm:$0xff] }
 0xf0f   :  { %v8045_v37 = vpop.eup %8044  ;;  %v4855_v15 = vsub.f32 %v13664_v2, %v8043_v10  ;;  %v13675_v2 = vld [vmem:[#allocation15_spill] sm:$0xff] }
 0xf10   :  { %v4856_v4 = vsub.f32 %v13665_v49, %v8045_v37  ;;  %v8047_v40 = vpop.eup %8046 }
 0xf11   :  { %v4859_v44 = vmul.f32 %v4855_v15, %v4839_v27  ;;  %v8049_v53 = vpop.eup %8048  ;;  %v4837_v20 = vmul.f32 0.5, %v8047_v40  ;;  %v13674_v27 = vld [vmem:[#allocation18_spill] sm:$0xff]  ;;  %v13676_v15 = vld [vmem:[#allocation19_spill] sm:$0xff] }
 0xf12   :  { %v4860_v9 = vmul.f32 %v4856_v4, %v4840_v62  ;;  %v4838_v34 = vmul.f32 0.5, %v8049_v53  ;;  %v13677_v62 = vld [vmem:[#allocation20_spill] sm:$0xff] }
 0xf13   :  { %v11977_v57 = vadd.f32 %v8043_v10, %v4859_v44  ;;  %v4841_v52 = vadd.f32 0.5, %v4837_v20 }
 0xf14   :  { %v11979_v21 = vadd.f32 %v8045_v37, %v4860_v9  ;;  %v4842_v28 = vadd.f32 0.5, %v4838_v34 }
 0xf15   :  { %13666 = vst [vmem:[#allocation23_spill] sm:$0xff] %v11977_v57  ;;  %7171 = vmatmul.mubr.msk.bf16.gmra.mrb[236].mxu1 %vm215_vm0, %v13668_v63 }
 0xf16   :  { %13667 = vst [vmem:[#allocation33_spill] sm:$0xff] %v11979_v21  ;;  %v4867_v7 = vpack.c.bf16 %v11979_v21, %v11977_v57  ;;  %7174 = vmatprep.mubr.msk.bf16.mxu1 %vm8520_vm1, %v13658_v32 }
 0xf17   :  { %v8051_v29 = vpop.eup %8050 }
 0xf18   :  { %7195 = vmatpush3.bf16.msra.mxu0 %v4867_v7  ;;  %v8053_v1 = vpop.eup %8052  ;;  %v4857_v3 = vsub.f32 %v13669_v36, %v8051_v29 }
 0xf19   :  { %7196 = vmatprep.subr.bf16.mxu0 %v13658_v32  ;;  %v4858_v59 = vsub.f32 %v13670_v0, %v8053_v1 }
 0xf1a   :  { %v4861_v48 = vmul.f32 %v4857_v3, %v4841_v52 }
 0xf1b   :  { %v4862_v42 = vmul.f32 %v4858_v59, %v4842_v28 }
 0xf1c   :  { %v11990_v50 = vadd.f32 %v8051_v29, %v4861_v48 }
 0xf1d   :  { %7175 = vmatmul.mubr.msk.bf16.gmra.mrb[240].mxu1 %vm215_vm0, %v13672_v55  ;;  %v11994_v10 = vadd.f32 %v8053_v1, %v4862_v42 }
 0xf1e   :  { %13671 = vst [vmem:[#allocation36_spill] sm:$0xff] %v11990_v50  ;;  %7178 = vmatprep.mubr.msk.bf16.mxu1 %vm8520_vm1, %v13658_v32 }
 0xf1f   :  { %13673 = vst [vmem:[#allocation25_spill] sm:$0xff] %v11994_v10  ;;  %v4868_v37 = vpack.c.bf16 %v11994_v10, %v11990_v50 }
 0xf21   :  { %7197 = vmatpush3.bf16.msra.mxu0 %v4868_v37 }
 0xf22   :  { %7258 = vmatprep.subr.bf16.mxu0 %v13658_v32 }
 0xf24   :  { %7199 = vmatmul.mubr.msk.bf16.vlgmr.msra.gmra.mrb[228].mxu0 %vm215_vm0, %v13663_v61 }
 0xf25   :  { %7179 = vmatmul.mubr.msk.bf16.gmra.mrb[244].mxu1 %vm215_vm0, %v13674_v27  ;;  %7202 = vmatprep.mubr.msk.bf16.mxu0 %vm8520_vm1, %v13658_v32 }
 0xf26   :  { %7182 = vmatprep.mubr.msk.bf16.mxu1 %vm8520_vm1, %v13658_v32 }
 0xf2c   :  { %7203 = vmatmul.mubr.msk.bf16.gmra.mrb[232].mxu0 %vm215_vm0, %v13668_v63 }
 0xf2d   :  { %7183 = vmatmul.mubr.msk.bf16.gmra.mrb[248].mxu1 %vm215_vm0, %v13675_v2  ;;  %7206 = vmatprep.mubr.msk.bf16.mxu0 %vm8520_vm1, %v13658_v32 }
 0xf2e   :  { %7186 = vmatprep.mubr.msk.bf16.mxu1 %vm8520_vm1, %v13658_v32 }
 0xf34   :  { %7207 = vmatmul.mubr.msk.bf16.gmra.mrb[236].mxu0 %vm215_vm0, %v13672_v55 }
 0xf35   :  { %7187 = vmatmul.mubr.msk.bf16.gmra.mrb[252].mxu1 %vm215_vm0, %v13676_v15  ;;  %7210 = vmatprep.mubr.msk.bf16.mxu0 %vm8520_vm1, %v13658_v32 }
 0xf36   :  { %7190 = vmatprep.mubr.msk.bf16.mxu1 %vm8520_vm1, %v13658_v32 }
 0xf3c   :  { %7211 = vmatmul.mubr.msk.bf16.gmra.mrb[240].mxu0 %vm215_vm0, %v13674_v27 }
 0xf3d   :  { %7191 = vmatmul.mubr.msk.bf16.gmra.mrb[0].mxu1 %vm215_vm0, %v13677_v62  ;;  %7214 = vmatprep.mubr.msk.bf16.mxu0 %vm8520_vm1, %v13658_v32 }
 0xf3e   :  { %7230 = vmatprep.mubr.msk.bf16.mxu1 %vm8520_vm1, %v13658_v32 }
 0xf44   :  { %7215 = vmatmul.mubr.msk.bf16.gmra.mrb[244].mxu0 %vm215_vm0, %v13675_v2 }
 0xf45   :  { %7218 = vmatprep.mubr.msk.bf16.mxu0 %vm8520_vm1, %v13658_v32 }
 0xf4c   :  { %7219 = vmatmul.mubr.msk.bf16.gmra.mrb[248].mxu0 %vm215_vm0, %v13676_v15 }
 0xf4d   :  { %7222 = vmatprep.mubr.msk.bf16.mxu0 %vm8520_vm1, %v13658_v32 }
 0xf54   :  { %7223 = vmatmul.mubr.msk.bf16.gmra.mrb[252].mxu0 %vm215_vm0, %v13677_v62 }
 0xf55   :  { %7262 = vmatprep.mubr.msk.bf16.mxu0 %vm8520_vm1, %v13658_v32 }
 0xfe0   :  { %v4721_v49 = vpop.f32.mrb[232].mxu1 }
 0xfe1   :  { %v7168_v4 = vpop.f32.mrb[233].mxu1 }
 0xfe2   :  { %v4724_v44 = vpop.f32.mrb[234].mxu1 }
 0xfe3   :  { %v7169_v40 = vpop.f32.mrb[235].mxu1 }
 0xfe8   :  { %v12045_v9 = vpop.f32.mrb[236].mxu1 }
 0xfe9   :  { %v7172_v53 = vpop.f32.mrb[237].mxu1 }
 0xfea   :  { %v12047_v20 = vpop.f32.mrb[238].mxu1 }
 0xfeb   :  { %v7173_v7 = vpop.f32.mrb[239].mxu1 }
 0xff0   :  { %v4737_v34 = vpop.f32.mrb[240].mxu1 }
 0xff1   :  { %v7176_v29 = vpop.f32.mrb[241].mxu1 }
 0xff2   :  { %v4740_v1 = vpop.f32.mrb[242].mxu1 }
 0xff3   :  { %v7177_v52 = vpop.f32.mrb[243].mxu1 }
 0xff7   :  { %v12049_v36 = vpop.f32.mrb[228].mxu0 }
 0xff8   :  { %v12051_v3 = vpop.f32.mrb[244].mxu1  ;;  %v7200_v28 = vpop.f32.mrb[229].mxu0 }
 0xff9   :  { %v7180_v0 = vpop.f32.mrb[245].mxu1  ;;  %v12053_v59 = vpop.f32.mrb[230].mxu0 }
 0xffa   :  { %v12055_v48 = vpop.f32.mrb[246].mxu1  ;;  %v7201_v42 = vpop.f32.mrb[231].mxu0 }
 0xffb   :  { %v7181_v37 = vpop.f32.mrb[247].mxu1 }
 0xfff   :  { %v12057_v4 = vpop.f32.mrb[232].mxu0 }
0x1000   :  { %v12059_v40 = vpop.f32.mrb[248].mxu1  ;;  %v7204_v53 = vpop.f32.mrb[233].mxu0 }
0x1001   :  { %v7184_v7 = vpop.f32.mrb[249].mxu1  ;;  %v12061_v29 = vpop.f32.mrb[234].mxu0 }
0x1002   :  { %13678 = vst [vmem:[#allocation50_spill] sm:$0xff] %v12061_v29  ;;  %v12063_v52 = vpop.f32.mrb[250].mxu1  ;;  %v7205_v62 = vpop.f32.mrb[235].mxu0 }
0x1003   :  { %v7185_v15 = vpop.f32.mrb[251].mxu1 }
0x1007   :  { %v12065_v28 = vpop.f32.mrb[236].mxu0 }
0x1008   :  { %v12067_v0 = vpop.f32.mrb[252].mxu1  ;;  %v7208_v2 = vpop.f32.mrb[237].mxu0 }
0x1009   :  { %v7188_v27 = vpop.f32.mrb[253].mxu1  ;;  %v12069_v42 = vpop.f32.mrb[238].mxu0 }
0x100a   :  { %v12071_v37 = vpop.f32.mrb[254].mxu1  ;;  %v7209_v55 = vpop.f32.mrb[239].mxu0 }
0x100b   :  { %13679 = vst [vmem:[#allocation40_spill] sm:$0xff] %v12071_v37  ;;  %v7189_v10 = vpop.f32.mrb[255].mxu1 }
0x100f   :  { %v12073_v53 = vpop.f32.mrb[240].mxu0 }
0x1010   :  { %13680 = vst [vmem:[#allocation41_spill] sm:$0xff] %v12073_v53  ;;  %v4769_v7 = vpop.f32.mrb[0].mxu1  ;;  %v7212_v50 = vpop.f32.mrb[241].mxu0 }
0x1011   :  { %v4770_v63 = vadd.f32 %v11698_v46, %v4769_v7  ;;  %v7192_v62 = vpop.f32.mrb[1].mxu1  ;;  %v12076_v15 = vpop.f32.mrb[242].mxu0 }
0x1012   :  { %13681 = vst [vmem:[#allocation52_spill] sm:$0xff] %v12076_v15  ;;  %v4772_v21 = vpop.f32.mrb[2].mxu1  ;;  %v7213_v57 = vpop.f32.mrb[243].mxu0 }
0x1013   :  { %v12079_v27 = vrot.slane %v4770_v63, %v13466_v12  ;;  %v6035_v2 = vrot.slane %v4770_v63, 4  ;;  %v7193_v61 = vpop.f32.mrb[3].mxu1  ;;  %v4722_v57 = vadd.f32 %v11725_v60, %v4721_v49  ;;  %v4725_v21 = vadd.f32 %v11731_v23, %v4724_v44 }
0x1014   :  { %v4738_v63 = vadd.f32 %v11737_v41, %v4737_v34  ;;  %v13687_v34 = vld [vmem:[#allocation42_spill] sm:$0xff] }
0x1015   :  { %v12083_v55 = vsel %vm6052_vm5, %v13682_v45, %v6035_v2  ;;  %v4961_v50 = vmul.f32 %v11710_v18, %v12079_v27  ;;  %v4962_v10 = vmul.f32 %v11714_v5, %v12079_v27  ;;  %v4965_v7 = vmul.f32 %v11718_v39, %v12079_v27 }
0x1016   :  { %13683 = vst [vmem:[#allocation44_spill] sm:$0xff] %v12083_v55  ;;  %v4966_v61 = vmul.f32 %v11740_v8, %v12079_v27  ;;  %v4741_v45 = vadd.f32 %v11747_v58, %v4740_v1  ;;  %v13684_v55 = vld [vmem:[#allocation28_spill] sm:$0xff]  ;;  %v4963_v49 = vmul.f32 %v11764_v14, %v12079_v27  ;;  %v4964_v44 = vmul.f32 %v11768_v47, %v12079_v27  ;;  %v13691_v14 = vld [vmem:[#allocation53_spill] sm:$0xff] }
0x1017   :  { %v4973_v62 = vadd.f32 %v11750_v33, %v4961_v50  ;;  %v4974_v2 = vadd.f32 %v11753_v13, %v4962_v10  ;;  %v4977_v51 = vadd.f32 %v13684_v55, %v4965_v7  ;;  %v12100_v32 = vpop.f32.mrb[244].mxu0  ;;  %v4967_v15 = vmul.f32 %v13687_v34, %v12079_v27 }
0x1018   :  { %13685 = vst [vmem:[#allocation45_spill] sm:$0xff] %v12100_v32  ;;  %v4978_v56 = vadd.f32 %v13686_v19, %v4966_v61  ;;  %v7216_v1 = vpop.f32.mrb[245].mxu0  ;;  %v13689_v32 = vld [vmem:[#allocation51_spill] sm:$0xff]  ;;  %v13690_v61 = vld [vmem:[#allocation54_spill] sm:$0xff]  ;;  %v4733_v6 = vadd.f32 %v13691_v14, %v12047_v20 }
0x1019   :  { %v4985_v53 = vadd.f32 %v4973_v62, %v4722_v57  ;;  %v4986_v50 = vadd.f32 %v4974_v2, %v4725_v21  ;;  %v5005_v29 = vadd.f32 %v4977_v51, %v4738_v63  ;;  %v12109_v10 = vpop.f32.mrb[246].mxu0  ;;  %v4968_v22 = vmul.f32 %v13689_v32, %v12079_v27  ;;  %v13692_v21 = vld [vmem:[#allocation38_spill] sm:$0xff]  ;;  %v13694_v62 = vld [vmem:[#allocation24_spill] sm:$0xff] }
0x101a   :  { %13688 = vst [vmem:[#allocation48_spill] sm:$0xff] %v12109_v10  ;;  %v5006_v7 = vadd.f32 %v4978_v56, %v4741_v45  ;;  %v4730_v17 = vadd.f32 %v13690_v61, %v12045_v9  ;;  %v7217_v47 = vpop.f32.mrb[247].mxu0  ;;  %v4746_v57 = vadd.f32 %v11799_v38, %v12051_v3  ;;  %v4975_v51 = vadd.f32 %v11803_v11, %v4963_v49  ;;  %v13693_v56 = vld [vmem:[#allocation26_spill] sm:$0xff]  ;;  %v13695_v9 = vld [vmem:[#allocation55_spill] sm:$0xff] }
0x101b   :  { %v4989_v37 = vmul.f32 0.5, %v4985_v53  ;;  %v4990_v54 = vmul.f32 0.5, %v4986_v50  ;;  %v4976_v63 = vadd.f32 %v13692_v21, %v4964_v44  ;;  %v4979_v45 = vadd.f32 %v13693_v56, %v4967_v15 }
0x101c   :  { %v4749_v2 = vadd.f32 %v13694_v62, %v12055_v48  ;;  %v4980_v1 = vadd.f32 %v13695_v9, %v4968_v22  ;;  %v4987_v20 = vadd.f32 %v4975_v51, %v4730_v17  ;;  %v5009_v15 = vmul.f32 0.5, %v5005_v29 }
0x101d   :  { %8054 = vtanh.f32 %v4989_v37  ;;  %v4988_v47 = vadd.f32 %v4976_v63, %v4733_v6  ;;  %v5007_v53 = vadd.f32 %v4979_v45, %v4746_v57  ;;  %v5010_v37 = vmul.f32 0.5, %v5006_v7 }
0x101e   :  { %8056 = vtanh.f32 %v4990_v54  ;;  %v5008_v50 = vadd.f32 %v4980_v1, %v4749_v2  ;;  %v4991_v38 = vmul.f32 0.5, %v4987_v20  ;;  %v4904_v54 = vadd.f32 %v11725_v60, %v12049_v36  ;;  %v13696_v1 = vld [vmem:[#allocation39_spill] sm:$0xff] }
0x101f   :  { %v12125_v10 = vpop.f32.mrb[248].mxu0  ;;  %v4992_v44 = vmul.f32 0.5, %v4988_v47  ;;  %v4969_v17 = vmul.f32 %v11828_v35, %v12079_v27  ;;  %v4907_v57 = vadd.f32 %v11731_v23, %v12053_v59  ;;  %v4754_v60 = vadd.f32 %v11846_v25, %v12059_v40 }
0x1020   :  { %v7220_v3 = vpop.f32.mrb[249].mxu0  ;;  %8058 = vtanh.f32 %v4991_v38  ;;  %v4970_v38 = vmul.f32 %v11835_v24, %v12079_v27  ;;  %v4757_v36 = vadd.f32 %v11853_v26, %v12063_v52 }
0x1021   :  { %v12127_v49 = vpop.f32.mrb[250].mxu0  ;;  %8060 = vtanh.f32 %v4992_v44  ;;  %v4981_v40 = vadd.f32 %v11864_v16, %v4969_v17 }
0x1022   :  { %v7221_v21 = vpop.f32.mrb[251].mxu0  ;;  %8062 = vtanh.f32 %v5009_v15  ;;  %v4982_v20 = vadd.f32 %v11871_v31, %v4970_v38 }
0x1023   :  { %v12140_v21 = vadd.f32 %v13690_v61, %v12057_v4  ;;  %8064 = vtanh.f32 %v5010_v37  ;;  %v4923_v4 = vadd.f32 %v11747_v58, %v12069_v42  ;;  %v5011_v37 = vmul.f32 0.5, %v5007_v53 }
0x1027   :  { %v8055_v48 = vpop.eup %8054  ;;  %v4951_v6 = vpop.f32.mrb[252].mxu0 }
0x1028   :  { %v8057_v62 = vpop.eup %8056  ;;  %v4997_v22 = vmul.f32 0.5, %v8055_v48  ;;  %v4952_v51 = vadd.f32 %v11698_v46, %v4951_v6  ;;  %v7224_v29 = vpop.f32.mrb[253].mxu0  ;;  %v5012_v6 = vmul.f32 0.5, %v5008_v50 }
0x1029   :  { %v4998_v7 = vmul.f32 0.5, %v8057_v62  ;;  %v4954_v63 = vpop.f32.mrb[254].mxu0  ;;  %v4920_v62 = vadd.f32 %v11737_v41, %v12065_v28 }
0x102a   :  { %v5001_v45 = vadd.f32 0.5, %v4997_v22  ;;  %v12147_v23 = vrot.slane %v4952_v51, %v13466_v12  ;;  %v6071_v46 = vrot.slane %v4952_v51, 4  ;;  %v7225_v59 = vpop.f32.mrb[255].mxu0  ;;  %v8059_v42 = vpop.eup %8058 }
0x102b   :  { %v5002_v2 = vadd.f32 0.5, %v4998_v7  ;;  %v8061_v17 = vpop.eup %8060  ;;  %v4999_v38 = vmul.f32 0.5, %v8059_v42  ;;  %v13700_v59 = vld [vmem:[#allocation32_spill] sm:$0xff]  ;;  %v13706_v42 = vld [vmem:[#allocation22_spill] sm:$0xff] }
0x102c   :  { %v5025_v61 = vmul.f32 %v5001_v45, %v4754_v60  ;;  %v12156_v52 = vsel %vm6052_vm5, %v13696_v1, %v6071_v46  ;;  %v5143_v3 = vmul.f32 %v11710_v18, %v12147_v23  ;;  %v5144_v41 = vmul.f32 %v11714_v5, %v12147_v23  ;;  %v8063_v29 = vpop.eup %8062  ;;  %v13703_v1 = vld [vmem:[#allocation27_spill] sm:$0xff] }
0x102d   :  { %v5026_v47 = vmul.f32 %v5002_v2, %v4757_v36  ;;  %v5147_v58 = vmul.f32 %v11718_v39, %v12147_v23  ;;  %v5148_v28 = vmul.f32 %v11740_v8, %v12147_v23  ;;  %v4762_v39 = vadd.f32 %v11889_v43, %v12067_v0  ;;  %v13699_v36 = vld [vmem:[#allocation31_spill] sm:$0xff] }
0x102e   :  { %v5029_v44 = vadd.f32 %v5025_v61, %v4981_v40  ;;  %v5155_v48 = vadd.f32 %v11750_v33, %v5143_v3  ;;  %v5156_v18 = vadd.f32 %v11753_v13, %v5144_v41  ;;  %v4971_v8 = vmul.f32 %v11893_v30, %v12079_v27  ;;  %v13697_v13 = vld [vmem:[#allocation30_spill] sm:$0xff] }
0x102f   :  { %v5030_v15 = vadd.f32 %v5026_v47, %v4982_v20  ;;  %v5159_v22 = vadd.f32 %v13684_v55, %v5147_v58  ;;  %v5160_v5 = vadd.f32 %v13686_v19, %v5148_v28  ;;  %v4972_v60 = vmul.f32 %v13697_v13, %v12079_v27  ;;  %v13698_v19 = vld [vmem:[#allocation40_spill] sm:$0xff]  ;;  %v13702_v27 = vld [vmem:[#allocation47_spill] sm:$0xff]  ;;  %v13704_v41 = vld [vmem:[#allocation50_spill] sm:$0xff] }
0x1030   :  { %8066 = vtanh.f32 %v5029_v44  ;;  %v5167_v51 = vadd.f32 %v5155_v48, %v4904_v54  ;;  %v5168_v33 = vadd.f32 %v5156_v18, %v4907_v57  ;;  %v5000_v55 = vmul.f32 0.5, %v8061_v17  ;;  %v8065_v54 = vpop.eup %8064  ;;  %v13705_v28 = vld [vmem:[#allocation41_spill] sm:$0xff]  ;;  %v13707_v18 = vld [vmem:[#allocation38_spill] sm:$0xff] }
0x1031   :  { %8068 = vtanh.f32 %v5030_v15  ;;  %v5187_v53 = vadd.f32 %v5159_v22, %v4920_v62  ;;  %v5188_v50 = vadd.f32 %v5160_v5, %v4923_v4  ;;  %v4765_v63 = vadd.f32 %v13699_v36, %v13698_v19  ;;  %v13701_v4 = vld [vmem:[#allocation37_spill] sm:$0xff] }
0x1032   :  { %v5171_v7 = vmul.f32 0.5, %v5167_v51  ;;  %8070 = vtanh.f32 %v5011_v37  ;;  %v5172_v0 = vmul.f32 0.5, %v5168_v33  ;;  %v5003_v45 = vadd.f32 0.5, %v4999_v38  ;;  %v13709_v51 = vld [vmem:[#allocation24_spill] sm:$0xff]  ;;  %v13710_v33 = vld [vmem:[#allocation35_spill] sm:$0xff] }
0x1033   :  { %8072 = vtanh.f32 %v5012_v6  ;;  %v5017_v46 = vmul.f32 0.5, %v8063_v29  ;;  %v4983_v57 = vadd.f32 %v13700_v59, %v4971_v8  ;;  %v5004_v2 = vadd.f32 0.5, %v5000_v55  ;;  %v13711_v55 = vld [vmem:[#allocation43_spill] sm:$0xff] }
0x1034   :  { %8074 = vtanh.f32 %v5171_v7  ;;  %v5027_v62 = vmul.f32 %v5003_v45, %v4762_v39  ;;  %v5145_v40 = vmul.f32 %v13701_v4, %v12147_v23  ;;  %v5146_v61 = vmul.f32 %v13702_v27, %v12147_v23 }
0x1035   :  { %8076 = vtanh.f32 %v5172_v0  ;;  %v4984_v20 = vadd.f32 %v13703_v1, %v4972_v60  ;;  %v5028_v47 = vmul.f32 %v5004_v2, %v4765_v63  ;;  %v5149_v3 = vmul.f32 %v13687_v34, %v12147_v23  ;;  %v13708_v34 = vld [vmem:[#allocation52_spill] sm:$0xff] }
0x1036   :  { %v5150_v44 = vmul.f32 %v13689_v32, %v12147_v23  ;;  %v4915_v58 = vadd.f32 %v13691_v14, %v13704_v41  ;;  %v4928_v15 = vadd.f32 %v13706_v42, %v13705_v28  ;;  %v5018_v48 = vmul.f32 0.5, %v8065_v54  ;;  %v13715_v42 = vld [vmem:[#allocation48_spill] sm:$0xff] }
0x1037   :  { %v5031_v37 = vadd.f32 %v5027_v62, %v4983_v57  ;;  %v5032_v6 = vadd.f32 %v5028_v47, %v4984_v20  ;;  %v5157_v17 = vadd.f32 %v11803_v11, %v5145_v40  ;;  %v5158_v22 = vadd.f32 %v13707_v18, %v5146_v61  ;;  %v13714_v47 = vld [vmem:[#allocation45_spill] sm:$0xff] }
0x1038   :  { %v5161_v5 = vadd.f32 %v13693_v56, %v5149_v3  ;;  %v4931_v8 = vadd.f32 %v13709_v51, %v13708_v34  ;;  %v5021_v32 = vadd.f32 0.5, %v5017_v46  ;;  %v5162_v14 = vadd.f32 %v13695_v9, %v5150_v44 }
0x1039   :  { %8078 = vtanh.f32 %v5031_v37  ;;  %v5169_v7 = vadd.f32 %v5157_v17, %v12140_v21  ;;  %v5170_v60 = vadd.f32 %v5158_v22, %v4915_v58  ;;  %v5022_v11 = vadd.f32 0.5, %v5018_v48 }
0x103a   :  { %v8067_v39 = vpop.eup %8066  ;;  %8080 = vtanh.f32 %v5032_v6  ;;  %v5189_v63 = vadd.f32 %v5161_v5, %v4928_v15  ;;  %v5190_v56 = vadd.f32 %v5162_v14, %v4931_v8  ;;  %v5191_v62 = vmul.f32 0.5, %v5187_v53  ;;  %v13717_v5 = vld [vmem:[#allocation34_spill] sm:$0xff]  ;;  %v13718_v8 = vld [vmem:[#allocation21_spill] sm:$0xff] }
0x103b   :  { %v8069_v29 = vpop.eup %8068  ;;  %v5037_v38 = vsub.f32 %v13710_v33, %v8067_v39  ;;  %v5173_v54 = vmul.f32 0.5, %v5169_v7  ;;  %v5174_v57 = vmul.f32 0.5, %v5170_v60  ;;  %v5192_v40 = vmul.f32 0.5, %v5188_v50 }
0x103c   :  { %v5038_v19 = vsub.f32 %v13711_v55, %v8069_v29  ;;  %v8071_v0 = vpop.eup %8070  ;;  %v5151_v61 = vmul.f32 %v11828_v35, %v12147_v23  ;;  %v4936_v3 = vadd.f32 %v11846_v25, %v13714_v47  ;;  %v5152_v44 = vmul.f32 %v11835_v24, %v12147_v23  ;;  %v13723_v47 = vld [vmem:[#allocation33_spill] sm:$0xff] }
0x103d   :  { %v5041_v45 = vmul.f32 %v5037_v38, %v5021_v32  ;;  %v8073_v46 = vpop.eup %8072  ;;  %8082 = vtanh.f32 %v5173_v54  ;;  %v5019_v41 = vmul.f32 0.5, %v8071_v0  ;;  %v4939_v15 = vadd.f32 %v11853_v26, %v13715_v42 }
0x103e   :  { %v5042_v2 = vmul.f32 %v5038_v19, %v5022_v11  ;;  %v8075_v9 = vpop.eup %8074  ;;  %8084 = vtanh.f32 %v5174_v57  ;;  %v5020_v28 = vmul.f32 0.5, %v8073_v46  ;;  %v5163_v25 = vadd.f32 %v11864_v16, %v5151_v61 }
0x103f   :  { %v12202_v4 = vadd.f32 %v8067_v39, %v5041_v45  ;;  %v8077_v27 = vpop.eup %8076  ;;  %v5179_v20 = vmul.f32 0.5, %v8075_v9  ;;  %8086 = vtanh.f32 %v5191_v62  ;;  %v5164_v24 = vadd.f32 %v11871_v31, %v5152_v44 }
0x1040   :  { %v12204_v21 = vadd.f32 %v8069_v29, %v5042_v2  ;;  %v5180_v53 = vmul.f32 0.5, %v8077_v27  ;;  %8088 = vtanh.f32 %v5192_v40  ;;  %v13716_v18 = vmov 0.0   ;;  %v13721_v27 = vld [vmem:[#allocation29_spill] sm:$0xff] }
0x1041   :  { %13712 = vst [vmem:[#allocation49_spill] sm:$0xff] %v12202_v4  ;;  %v5183_v58 = vadd.f32 0.5, %v5179_v20  ;;  %v5023_v22 = vadd.f32 0.5, %v5019_v41  ;;  %v5024_v51 = vadd.f32 0.5, %v5020_v28  ;;  %v5193_v33 = vmul.f32 0.5, %v5189_v63 }
0x1042   :  { %13713 = vst [vmem:[#allocation28_spill] sm:$0xff] %v12204_v21  ;;  %v5049_v50 = vpack.c.bf16 %v12204_v21, %v12202_v4  ;;  %v5184_v35 = vadd.f32 0.5, %v5180_v53  ;;  %v5194_v31 = vmul.f32 0.5, %v5190_v56  ;;  %v5153_v11 = vmul.f32 %v11893_v30, %v12147_v23 }
0x1043   :  { %v8079_v48 = vpop.eup %8078  ;;  %v5207_v37 = vmul.f32 %v5183_v58, %v4936_v3  ;;  %v5154_v19 = vmul.f32 %v13697_v13, %v12147_v23  ;;  %v4944_v63 = vadd.f32 %v11889_v43, %v12125_v10  ;;  %v4947_v46 = vadd.f32 %v13699_v36, %v12127_v49 }
0x1044   :  { %7227 = vmatpush3.bf16.msra.mxu1 %v5049_v50  ;;  %v8081_v6 = vpop.eup %8080  ;;  %v5208_v17 = vmul.f32 %v5184_v35, %v4939_v15  ;;  %v5039_v39 = vsub.f32 %v13717_v5, %v8079_v48  ;;  %v5165_v30 = vadd.f32 %v13700_v59, %v5153_v11  ;;  %v13722_v59 = vld [vmem:[#allocation23_spill] sm:$0xff]  ;;  %v13726_v15 = vld [vmem:[#allocation16_spill] sm:$0xff]  ;;  %v13728_v5 = vld [vmem:[#allocation25_spill] sm:$0xff] }
0x1045   :  { %7228 = vmatprep.subr.bf16.mxu1 %v13716_v18  ;;  %v5211_v34 = vadd.f32 %v5207_v37, %v5163_v25  ;;  %v5040_v26 = vsub.f32 %v13718_v8, %v8081_v6  ;;  %v5166_v62 = vadd.f32 %v13703_v1, %v5154_v19 }
0x1046   :  { %v5212_v32 = vadd.f32 %v5208_v17, %v5164_v24  ;;  %v5043_v14 = vmul.f32 %v5039_v39, %v5023_v22  ;;  %v13727_v24 = vld [vmem:[#allocation36_spill] sm:$0xff] }
0x1047   :  { %8090 = vtanh.f32 %v5211_v34  ;;  %v5044_v29 = vmul.f32 %v5040_v26, %v5024_v51  ;;  %v8083_v16 = vpop.eup %8082  ;;  %v13730_v26 = vld [vmem:[#allocation17_spill] sm:$0xff] }
0x1048   :  { %8092 = vtanh.f32 %v5212_v32  ;;  %v12221_v38 = vadd.f32 %v8079_v48, %v5043_v14  ;;  %v8085_v7 = vpop.eup %8084  ;;  %v5181_v55 = vmul.f32 0.5, %v8083_v16  ;;  %v13734_v16 = vld [vmem:[#allocation19_spill] sm:$0xff] }
0x1049   :  { %v12223_v60 = vadd.f32 %v8081_v6, %v5044_v29  ;;  %v5182_v0 = vmul.f32 0.5, %v8085_v7  ;;  %v8087_v45 = vpop.eup %8086  ;;  %8094 = vtanh.f32 %v5193_v33  ;;  %v13732_v29 = vld [vmem:[#allocation18_spill] sm:$0xff]  ;;  %v13733_v33 = vld [vmem:[#allocation15_spill] sm:$0xff] }
0x104a   :  { %13719 = vst [vmem:[#allocation46_spill] sm:$0xff] %v12221_v38  ;;  %v5185_v57 = vadd.f32 0.5, %v5181_v55  ;;  %v8089_v56 = vpop.eup %8088  ;;  %8096 = vtanh.f32 %v5194_v31  ;;  %v5199_v13 = vmul.f32 0.5, %v8087_v45  ;;  %v13735_v31 = vld [vmem:[#allocation20_spill] sm:$0xff] }
0x104b   :  { %13720 = vst [vmem:[#allocation42_spill] sm:$0xff] %v12223_v60  ;;  %v5050_v54 = vpack.c.bf16 %v12223_v60, %v12221_v38  ;;  %v5186_v2 = vadd.f32 0.5, %v5182_v0  ;;  %v5200_v43 = vmul.f32 0.5, %v8089_v56 }
0x104c   :  { %v5209_v23 = vmul.f32 %v5185_v57, %v4944_v63  ;;  %v5203_v36 = vadd.f32 0.5, %v5199_v13 }
0x104d   :  { %7229 = vmatpush3.bf16.msra.mxu1 %v5050_v54  ;;  %v5210_v9 = vmul.f32 %v5186_v2, %v4947_v46  ;;  %v5204_v1 = vadd.f32 0.5, %v5200_v43 }
0x104e   :  { %7290 = vmatprep.subr.bf16.mxu1 %v13716_v18  ;;  %v5213_v10 = vadd.f32 %v5209_v23, %v5165_v30 }
0x104f   :  { %v5214_v40 = vadd.f32 %v5210_v9, %v5166_v62 }
0x1050   :  { %7231 = vmatmul.mubr.msk.bf16.vlgmr.msra.gmra.mrb[4].mxu1 %vm215_vm0, %v13721_v27  ;;  %8098 = vtanh.f32 %v5213_v10 }
0x1051   :  { %v8091_v61 = vpop.eup %8090  ;;  %7234 = vmatprep.mubr.msk.bf16.mxu1 %vm8520_vm1, %v13716_v18  ;;  %8100 = vtanh.f32 %v5214_v40 }
0x1052   :  { %v8093_v49 = vpop.eup %8092  ;;  %v5219_v20 = vsub.f32 %v13722_v59, %v8091_v61 }
0x1053   :  { %v5220_v3 = vsub.f32 %v13723_v47, %v8093_v49  ;;  %v8095_v53 = vpop.eup %8094 }
0x1054   :  { %v5223_v44 = vmul.f32 %v5219_v20, %v5203_v36  ;;  %v8097_v50 = vpop.eup %8096  ;;  %v5201_v42 = vmul.f32 0.5, %v8095_v53 }
0x1055   :  { %v5224_v41 = vmul.f32 %v5220_v3, %v5204_v1  ;;  %v5202_v48 = vmul.f32 0.5, %v8097_v50 }
0x1056   :  { %v12244_v58 = vadd.f32 %v8091_v61, %v5223_v44  ;;  %v5205_v6 = vadd.f32 0.5, %v5201_v42 }
0x1057   :  { %v12246_v28 = vadd.f32 %v8093_v49, %v5224_v41  ;;  %v5206_v22 = vadd.f32 0.5, %v5202_v48 }
0x1058   :  { %13724 = vst [vmem:[#allocation51_spill] sm:$0xff] %v12244_v58  ;;  %7235 = vmatmul.mubr.msk.bf16.gmra.mrb[8].mxu1 %vm215_vm0, %v13726_v15 }
0x1059   :  { %13725 = vst [vmem:[#allocation54_spill] sm:$0xff] %v12246_v28  ;;  %v5231_v35 = vpack.c.bf16 %v12246_v28, %v12244_v58  ;;  %7238 = vmatprep.mubr.msk.bf16.mxu1 %vm8520_vm1, %v13716_v18 }
0x105a   :  { %v8099_v25 = vpop.eup %8098 }
0x105b   :  { %7259 = vmatpush3.bf16.msra.mxu0 %v5231_v35  ;;  %v8101_v37 = vpop.eup %8100  ;;  %v5221_v17 = vsub.f32 %v13727_v24, %v8099_v25 }
0x105c   :  { %7260 = vmatprep.subr.bf16.mxu0 %v13716_v18  ;;  %v5222_v39 = vsub.f32 %v13728_v5, %v8101_v37 }
0x105d   :  { %v5225_v34 = vmul.f32 %v5221_v17, %v5205_v6  ;;  %v12345_v17 = vld [vmem:[%s12957_s8 + $0x60] sm:$0xff] }
0x105e   :  { %v5226_v51 = vmul.f32 %v5222_v39, %v5206_v22 }
0x105f   :  { %v12257_v8 = vadd.f32 %v8099_v25, %v5225_v34 }
0x1060   :  { %7239 = vmatmul.mubr.msk.bf16.gmra.mrb[12].mxu1 %vm215_vm0, %v13730_v26  ;;  %v12261_v32 = vadd.f32 %v8101_v37, %v5226_v51 }
0x1061   :  { %13729 = vst [vmem:[#allocation53_spill] sm:$0xff] %v12257_v8  ;;  %7242 = vmatprep.mubr.msk.bf16.mxu1 %vm8520_vm1, %v13716_v18 }
0x1062   :  { %13731 = vst [vmem:[#allocation26_spill] sm:$0xff] %v12261_v32  ;;  %v5232_v14 = vpack.c.bf16 %v12261_v32, %v12257_v8  ;;  %v12425_v32 = vld [vmem:[#allocation7 + $0x38] sm:$0xff] }
0x1063   :  { %13748 = vst [vmem:[#allocation22_spill] sm:$0xff] %v12425_v32 }
0x1064   :  { %7261 = vmatpush3.bf16.msra.mxu0 %v5232_v14 }
0x1065   :  { %7322 = vmatprep.subr.bf16.mxu0 %v13716_v18 }
0x1067   :  { %7263 = vmatmul.mubr.msk.bf16.vlgmr.msra.gmra.mrb[0].mxu0 %vm215_vm0, %v13721_v27 }
0x1068   :  { %7243 = vmatmul.mubr.msk.bf16.gmra.mrb[16].mxu1 %vm215_vm0, %v13732_v29  ;;  %7266 = vmatprep.mubr.msk.bf16.mxu0 %vm8520_vm1, %v13716_v18 }
0x1069   :  { %7246 = vmatprep.mubr.msk.bf16.mxu1 %vm8520_vm1, %v13716_v18 }
0x106f   :  { %7267 = vmatmul.mubr.msk.bf16.gmra.mrb[4].mxu0 %vm215_vm0, %v13726_v15  ;;  %v12432_v15 = vld [vmem:[%s12957_s8 + $0x10] sm:$0xff] }
0x1070   :  { %7247 = vmatmul.mubr.msk.bf16.gmra.mrb[20].mxu1 %vm215_vm0, %v13733_v33  ;;  %7270 = vmatprep.mubr.msk.bf16.mxu0 %vm8520_vm1, %v13716_v18  ;;  %13749 = vst [vmem:[#allocation38_spill] sm:$0xff] %v12432_v15 }
0x1071   :  { %7250 = vmatprep.mubr.msk.bf16.mxu1 %vm8520_vm1, %v13716_v18 }
0x1077   :  { %7271 = vmatmul.mubr.msk.bf16.gmra.mrb[8].mxu0 %vm215_vm0, %v13730_v26 }
0x1078   :  { %7251 = vmatmul.mubr.msk.bf16.gmra.mrb[24].mxu1 %vm215_vm0, %v13734_v16  ;;  %7274 = vmatprep.mubr.msk.bf16.mxu0 %vm8520_vm1, %v13716_v18 }
0x1079   :  { %7254 = vmatprep.mubr.msk.bf16.mxu1 %vm8520_vm1, %v13716_v18 }
0x107f   :  { %7275 = vmatmul.mubr.msk.bf16.gmra.mrb[12].mxu0 %vm215_vm0, %v13732_v29 }
0x1080   :  { %7255 = vmatmul.mubr.msk.bf16.gmra.mrb[28].mxu1 %vm215_vm0, %v13735_v31  ;;  %7278 = vmatprep.mubr.msk.bf16.mxu0 %vm8520_vm1, %v13716_v18 }
0x1081   :  { %7294 = vmatprep.mubr.msk.bf16.mxu1 %vm8520_vm1, %v13716_v18 }
0x1087   :  { %7279 = vmatmul.mubr.msk.bf16.gmra.mrb[16].mxu0 %vm215_vm0, %v13733_v33 }
0x1088   :  { %7282 = vmatprep.mubr.msk.bf16.mxu0 %vm8520_vm1, %v13716_v18 }
0x108f   :  { %7283 = vmatmul.mubr.msk.bf16.gmra.mrb[20].mxu0 %vm215_vm0, %v13734_v16 }
0x1090   :  { %7286 = vmatprep.mubr.msk.bf16.mxu0 %vm8520_vm1, %v13716_v18 }
0x1097   :  { %7287 = vmatmul.mubr.msk.bf16.gmra.mrb[24].mxu0 %vm215_vm0, %v13735_v31 }
0x1098   :  { %7326 = vmatprep.mubr.msk.bf16.mxu0 %vm8520_vm1, %v13716_v18 }
0x1123   :  { %v5085_v7 = vpop.f32.mrb[4].mxu1 }
0x1124   :  { %v7232_v11 = vpop.f32.mrb[5].mxu1 }
0x1125   :  { %v5088_v55 = vpop.f32.mrb[6].mxu1 }
0x1126   :  { %v7233_v19 = vpop.f32.mrb[7].mxu1 }
0x112b   :  { %v12312_v0 = vpop.f32.mrb[8].mxu1 }
0x112c   :  { %v7236_v45 = vpop.f32.mrb[9].mxu1  ;;  %v5094_v28 = vadd.f32 %v12432_v15, %v12312_v0  ;;  %v12450_v0 = vld [vmem:[#allocation8 + $0x10] sm:$0xff] }
0x112d   :  { %v12314_v63 = vpop.f32.mrb[10].mxu1  ;;  %v13737_v45 = vld [vmem:[#allocation44_spill] sm:$0xff] }
0x112e   :  { %v7237_v54 = vpop.f32.mrb[11].mxu1 }
0x1133   :  { %v5101_v57 = vpop.f32.mrb[12].mxu1 }
0x1134   :  { %v7240_v56 = vpop.f32.mrb[13].mxu1 }
0x1135   :  { %v5104_v46 = vpop.f32.mrb[14].mxu1  ;;  %v12357_v56 = vld [vmem:[#allocation7] sm:$0xff] }
0x1136   :  { %v7241_v2 = vpop.f32.mrb[15].mxu1 }
0x113a   :  { %v12316_v30 = vpop.f32.mrb[0].mxu0 }
0x113b   :  { %v12318_v23 = vpop.f32.mrb[16].mxu1  ;;  %v7264_v13 = vpop.f32.mrb[1].mxu0 }
0x113c   :  { %v7244_v62 = vpop.f32.mrb[17].mxu1  ;;  %v12320_v9 = vpop.f32.mrb[2].mxu0  ;;  %v12361_v13 = vld [vmem:[#allocation7 + $0x8] sm:$0xff] }
0x113d   :  { %v12322_v43 = vpop.f32.mrb[18].mxu1  ;;  %v7265_v10 = vpop.f32.mrb[3].mxu0 }
0x113e   :  { %v7245_v40 = vpop.f32.mrb[19].mxu1  ;;  %v12365_v10 = vld [vmem:[#allocation7 + $0x20] sm:$0xff] }
0x1142   :  { %v12324_v61 = vpop.f32.mrb[4].mxu0 }
0x1143   :  { %v12326_v49 = vpop.f32.mrb[20].mxu1  ;;  %v7268_v36 = vpop.f32.mrb[5].mxu0 }
0x1144   :  { %v7248_v59 = vpop.f32.mrb[21].mxu1  ;;  %v12328_v20 = vpop.f32.mrb[6].mxu0  ;;  %v12372_v36 = vld [vmem:[%s12957_s8] sm:$0xff] }
0x1145   :  { %v12330_v1 = vpop.f32.mrb[22].mxu1  ;;  %v7269_v47 = vpop.f32.mrb[7].mxu0  ;;  %v5086_v59 = vadd.f32 %v12372_v36, %v5085_v7  ;;  %v12394_v7 = vld [vmem:[%s12957_s8 + $0x28] sm:$0xff] }
0x1146   :  { %v7249_v3 = vpop.f32.mrb[23].mxu1  ;;  %v12378_v47 = vld [vmem:[%s12957_s8 + $0x8] sm:$0xff]  ;;  %13739 = vst [vmem:[#allocation30_spill] sm:$0xff] %v12394_v7 }
0x1147   :  { %v5089_v3 = vadd.f32 %v12378_v47, %v5088_v55  ;;  %v12397_v55 = vld [vmem:[#allocation8] sm:$0xff] }
0x114a   :  { %v12332_v44 = vpop.f32.mrb[8].mxu0 }
0x114b   :  { %v12334_v53 = vpop.f32.mrb[24].mxu1  ;;  %v7272_v41 = vpop.f32.mrb[9].mxu0 }
0x114c   :  { %v7252_v50 = vpop.f32.mrb[25].mxu1  ;;  %v12336_v42 = vpop.f32.mrb[10].mxu0  ;;  %v12384_v41 = vld [vmem:[%s12957_s8 + $0x20] sm:$0xff] }
0x114d   :  { %v12338_v35 = vpop.f32.mrb[26].mxu1  ;;  %v7273_v48 = vpop.f32.mrb[11].mxu0  ;;  %v5102_v50 = vadd.f32 %v12384_v41, %v5101_v57 }
0x114e   :  { %v7253_v25 = vpop.f32.mrb[27].mxu1  ;;  %v12387_v48 = vld [vmem:[#allocation7 + $0x28] sm:$0xff] }
0x1152   :  { %v12340_v37 = vpop.f32.mrb[12].mxu0 }
0x1153   :  { %v5133_v6 = vpop.f32.mrb[28].mxu1  ;;  %v7276_v24 = vpop.f32.mrb[13].mxu0 }
0x1154   :  { %v5134_v22 = vadd.f32 %v12345_v17, %v5133_v6  ;;  %v7256_v5 = vpop.f32.mrb[29].mxu1  ;;  %v12348_v39 = vpop.f32.mrb[14].mxu0  ;;  %v5105_v6 = vadd.f32 %v12394_v7, %v5104_v46 }
0x1155   :  { %13736 = vst [vmem:[#allocation55_spill] sm:$0xff] %v12348_v39  ;;  %v5136_v34 = vpop.f32.mrb[30].mxu1  ;;  %v7277_v51 = vpop.f32.mrb[15].mxu0  ;;  %v12403_v5 = vld [vmem:[#allocation8 + $0x20] sm:$0xff] }
0x1156   :  { %v12351_v14 = vrot.slane %v5134_v22, %v13466_v12  ;;  %v6038_v11 = vrot.slane %v5134_v22, 3  ;;  %v7257_v19 = vpop.f32.mrb[31].mxu1  ;;  %v12400_v22 = vld [vmem:[#allocation8 + $0x8] sm:$0xff]  ;;  %13741 = vst [vmem:[#allocation31_spill] sm:$0xff] %v12403_v5 }
0x1157   :  { %13740 = vst [vmem:[#allocation40_spill] sm:$0xff] %v12400_v22 }
0x1158   :  { %v12355_v54 = vsel %vm6054_vm6, %v13737_v45, %v6038_v11  ;;  %v5325_v2 = vmul.f32 %v12357_v56, %v12351_v14  ;;  %v5326_v62 = vmul.f32 %v12361_v13, %v12351_v14  ;;  %v5329_v40 = vmul.f32 %v12365_v10, %v12351_v14  ;;  %v12408_v11 = vld [vmem:[#allocation8 + $0x28] sm:$0xff]  ;;  %v12411_v45 = vld [vmem:[#allocation7 + $0x10] sm:$0xff] }
0x1159   :  { %13738 = vst [vmem:[#allocation39_spill] sm:$0xff] %v12355_v54  ;;  %v5330_v25 = vmul.f32 %v12387_v48, %v12351_v14  ;;  %13743 = vst [vmem:[#allocation37_spill] sm:$0xff] %v12408_v11  ;;  %v5327_v46 = vmul.f32 %v12411_v45, %v12351_v14  ;;  %v12419_v54 = vld [vmem:[#allocation7 + $0x30] sm:$0xff]  ;;  %v5332_v8 = vmul.f32 %v12425_v32, %v12351_v14 }
0x115a   :  { %v5337_v24 = vadd.f32 %v12397_v55, %v5325_v2  ;;  %v5338_v57 = vadd.f32 %v12400_v22, %v5326_v62  ;;  %v5341_v34 = vadd.f32 %v12403_v5, %v5329_v40  ;;  %v12406_v51 = vpop.f32.mrb[16].mxu0  ;;  %13744 = vst [vmem:[#allocation47_spill] sm:$0xff] %v12411_v45  ;;  %v12415_v2 = vld [vmem:[#allocation7 + $0x18] sm:$0xff]  ;;  %13746 = vst [vmem:[#allocation50_spill] sm:$0xff] %v12419_v54 }
0x115b   :  { %13742 = vst [vmem:[#allocation32_spill] sm:$0xff] %v12406_v51  ;;  %v5342_v19 = vadd.f32 %v12408_v11, %v5330_v25  ;;  %13745 = vst [vmem:[#allocation27_spill] sm:$0xff] %v12415_v2  ;;  %v5328_v62 = vmul.f32 %v12415_v2, %v12351_v14  ;;  %v5331_v40 = vmul.f32 %v12419_v54, %v12351_v14  ;;  %v7280_v31 = vpop.f32.mrb[17].mxu0 }
0x115c   :  { %v5349_v16 = vadd.f32 %v5337_v24, %v5086_v59  ;;  %v5350_v33 = vadd.f32 %v5338_v57, %v5089_v3  ;;  %v5369_v29 = vadd.f32 %v5341_v34, %v5102_v50  ;;  %v12423_v25 = vpop.f32.mrb[18].mxu0  ;;  %v12439_v31 = vld [vmem:[%s12957_s8 + $0x18] sm:$0xff]  ;;  %v12446_v24 = vld [vmem:[%s12957_s8 + $0x30] sm:$0xff]  ;;  %v5339_v34 = vadd.f32 %v12450_v0, %v5327_v46 }
0x115d   :  { %13747 = vst [vmem:[#allocation41_spill] sm:$0xff] %v12423_v25  ;;  %v5370_v26 = vadd.f32 %v5342_v19, %v5105_v6  ;;  %13750 = vst [vmem:[#allocation52_spill] sm:$0xff] %v12439_v31  ;;  %v5097_v59 = vadd.f32 %v12439_v31, %v12314_v63  ;;  %v7281_v3 = vpop.f32.mrb[19].mxu0  ;;  %v5110_v57 = vadd.f32 %v12446_v24, %v12318_v23  ;;  %v12453_v19 = vld [vmem:[#allocation8 + $0x18] sm:$0xff]  ;;  %v12456_v63 = vld [vmem:[#allocation8 + $0x30] sm:$0xff] }
0x115e   :  { %v5353_v50 = vmul.f32 0.5, %v5349_v16  ;;  %v5354_v6 = vmul.f32 0.5, %v5350_v33  ;;  %13751 = vst [vmem:[#allocation24_spill] sm:$0xff] %v12453_v19  ;;  %v5340_v58 = vadd.f32 %v12453_v19, %v5328_v62  ;;  %13752 = vst [vmem:[#allocation35_spill] sm:$0xff] %v12456_v63  ;;  %v5343_v33 = vadd.f32 %v12456_v63, %v5331_v40  ;;  %v12462_v16 = vld [vmem:[%s12957_s8 + $0x38] sm:$0xff]  ;;  %v12466_v3 = vld [vmem:[#allocation8 + $0x38] sm:$0xff] }
0x115f   :  { %13753 = vst [vmem:[#allocation43_spill] sm:$0xff] %v12462_v16  ;;  %v5113_v23 = vadd.f32 %v12462_v16, %v12322_v43  ;;  %13754 = vst [vmem:[#allocation45_spill] sm:$0xff] %v12466_v3  ;;  %v5344_v46 = vadd.f32 %v12466_v3, %v5332_v8  ;;  %v5351_v27 = vadd.f32 %v5339_v34, %v5094_v28  ;;  %v5373_v39 = vmul.f32 0.5, %v5369_v29  ;;  %v12475_v8 = vld [vmem:[#allocation7 + $0x40] sm:$0xff] }
0x1160   :  { %8102 = vtanh.f32 %v5353_v50  ;;  %v5352_v62 = vadd.f32 %v5340_v58, %v5097_v59  ;;  %v5371_v60 = vadd.f32 %v5343_v33, %v5110_v57  ;;  %v5374_v50 = vmul.f32 0.5, %v5370_v26  ;;  %v12500_v57 = vld [vmem:[%s12957_s8 + $0x48] sm:$0xff] }
0x1161   :  { %8104 = vtanh.f32 %v5354_v6  ;;  %v5372_v38 = vadd.f32 %v5344_v46, %v5113_v23  ;;  %v5355_v25 = vmul.f32 0.5, %v5351_v27  ;;  %v5268_v28 = vadd.f32 %v12372_v36, %v12316_v30 }
0x1162   :  { %v12469_v18 = vpop.f32.mrb[20].mxu0  ;;  %v5356_v21 = vmul.f32 0.5, %v5352_v62  ;;  %v5333_v59 = vmul.f32 %v12475_v8, %v12351_v14  ;;  %v12488_v6 = vadd.f32 %v12432_v15, %v12324_v61  ;;  %v5121_v34 = vadd.f32 %v12500_v57, %v12330_v1  ;;  %v12544_v15 = vld [vmem:[#allocation7 + $0x58] sm:$0xff] }
0x1163   :  { %v7284_v40 = vpop.f32.mrb[21].mxu0  ;;  %8106 = vtanh.f32 %v5355_v25  ;;  %v12482_v25 = vld [vmem:[#allocation7 + $0x48] sm:$0xff]  ;;  %13756 = vst [vmem:[#allocation34_spill] sm:$0xff] %v12544_v15 }
0x1164   :  { %v12471_v51 = vpop.f32.mrb[22].mxu0  ;;  %8108 = vtanh.f32 %v5356_v21  ;;  %v5334_v26 = vmul.f32 %v12482_v25, %v12351_v14  ;;  %v5287_v40 = vadd.f32 %v12394_v7, %v12336_v42  ;;  %v5336_v7 = vmul.f32 %v12544_v15, %v12351_v14 }
0x1165   :  { %v7285_v4 = vpop.f32.mrb[23].mxu0  ;;  %8110 = vtanh.f32 %v5373_v39  ;;  %v12493_v39 = vld [vmem:[%s12957_s8 + $0x40] sm:$0xff] }
0x1166   :  { %v5271_v4 = vadd.f32 %v12378_v47, %v12320_v9  ;;  %v5118_v9 = vadd.f32 %v12493_v39, %v12326_v49  ;;  %8112 = vtanh.f32 %v5374_v50  ;;  %v5284_v49 = vadd.f32 %v12384_v41, %v12332_v44 }
0x116a   :  { %v8103_v43 = vpop.eup %8102  ;;  %v5315_v58 = vpop.f32.mrb[24].mxu0 }
0x116b   :  { %v8105_v16 = vpop.eup %8104  ;;  %v5361_v27 = vmul.f32 0.5, %v8103_v43  ;;  %v5316_v29 = vadd.f32 %v12345_v17, %v5315_v58  ;;  %v7288_v21 = vpop.f32.mrb[25].mxu0  ;;  %v12511_v43 = vld [vmem:[#allocation8 + $0x40] sm:$0xff] }
0x116c   :  { %v5362_v30 = vmul.f32 0.5, %v8105_v16  ;;  %v5318_v33 = vpop.f32.mrb[26].mxu0  ;;  %v5345_v58 = vadd.f32 %v12511_v43, %v5333_v59  ;;  %v12518_v21 = vld [vmem:[#allocation8 + $0x48] sm:$0xff] }
0x116d   :  { %v5365_v16 = vadd.f32 0.5, %v5361_v27  ;;  %v12505_v61 = vrot.slane %v5316_v29, %v13466_v12  ;;  %v6074_v23 = vrot.slane %v5316_v29, 3  ;;  %v7289_v46 = vpop.f32.mrb[27].mxu0  ;;  %v5346_v29 = vadd.f32 %v12518_v21, %v5334_v26 }
0x116e   :  { %v5366_v62 = vadd.f32 0.5, %v5362_v30  ;;  %v5376_v26 = vmul.f32 0.5, %v5372_v38 }
0x116f   :  { %v5389_v1 = vmul.f32 %v5365_v16, %v5118_v9  ;;  %v12516_v27 = vsel %vm6054_vm6, %v12156_v52, %v6074_v23  ;;  %v5507_v44 = vmul.f32 %v12357_v56, %v12505_v61  ;;  %v5508_v42 = vmul.f32 %v12361_v13, %v12505_v61  ;;  %v8107_v52 = vpop.eup %8106 }
0x1170   :  { %13755 = vst [vmem:[#allocation48_spill] sm:$0xff] %v12516_v27  ;;  %v5390_v50 = vmul.f32 %v5366_v62, %v5121_v34  ;;  %v5511_v59 = vmul.f32 %v12365_v10, %v12505_v61  ;;  %v5512_v9 = vmul.f32 %v12387_v48, %v12505_v61  ;;  %v5375_v23 = vmul.f32 0.5, %v5371_v60  ;;  %v8109_v34 = vpop.eup %8108  ;;  %v12540_v60 = vld [vmem:[#allocation7 + $0x50] sm:$0xff] }
0x1171   :  { %v5393_v30 = vadd.f32 %v5389_v1, %v5345_v58  ;;  %v5519_v16 = vadd.f32 %v12397_v55, %v5507_v44  ;;  %v5520_v46 = vadd.f32 %v12400_v22, %v5508_v42  ;;  %v12536_v1 = vld [vmem:[%s12957_s8 + $0x50] sm:$0xff]  ;;  %v5335_v38 = vmul.f32 %v12540_v60, %v12351_v14  ;;  %v8111_v44 = vpop.eup %8110 }
0x1172   :  { %v5394_v33 = vadd.f32 %v5390_v50, %v5346_v29  ;;  %v5523_v62 = vadd.f32 %v12403_v5, %v5511_v59  ;;  %v5524_v58 = vadd.f32 %v12408_v11, %v5512_v9  ;;  %v5126_v29 = vadd.f32 %v12536_v1, %v12334_v53  ;;  %v12551_v53 = vld [vmem:[%s12957_s8 + $0x58] sm:$0xff] }
0x1173   :  { %8114 = vtanh.f32 %v5393_v30  ;;  %v5531_v50 = vadd.f32 %v5519_v16, %v5268_v28  ;;  %v5532_v30 = vadd.f32 %v5520_v46, %v5271_v4  ;;  %v5363_v9 = vmul.f32 0.5, %v8107_v52  ;;  %13757 = vst [vmem:[#allocation21_spill] sm:$0xff] %v12551_v53 }
0x1174   :  { %8116 = vtanh.f32 %v5394_v33  ;;  %v5551_v42 = vadd.f32 %v5523_v62, %v5284_v49  ;;  %v5552_v59 = vadd.f32 %v5524_v58, %v5287_v40  ;;  %v5364_v11 = vmul.f32 0.5, %v8109_v34  ;;  %v8113_v40 = vpop.eup %8112  ;;  %v12555_v33 = vld [vmem:[#allocation8 + $0x50] sm:$0xff] }
0x1175   :  { %v5535_v27 = vmul.f32 0.5, %v5531_v50  ;;  %8118 = vtanh.f32 %v5375_v23  ;;  %v5129_v28 = vadd.f32 %v12551_v53, %v12338_v35  ;;  %v5536_v4 = vmul.f32 0.5, %v5532_v30  ;;  %13758 = vst [vmem:[#allocation23_spill] sm:$0xff] %v12555_v33  ;;  %v12562_v35 = vld [vmem:[#allocation8 + $0x58] sm:$0xff] }
0x1176   :  { %v5367_v49 = vadd.f32 0.5, %v5363_v9  ;;  %8120 = vtanh.f32 %v5376_v26  ;;  %v5381_v52 = vmul.f32 0.5, %v8111_v44  ;;  %v5347_v14 = vadd.f32 %v12555_v33, %v5335_v38  ;;  %13759 = vst [vmem:[#allocation33_spill] sm:$0xff] %v12562_v35 }
0x1177   :  { %8122 = vtanh.f32 %v5535_v27  ;;  %v5368_v16 = vadd.f32 0.5, %v5364_v11  ;;  %v5509_v34 = vmul.f32 %v12411_v45, %v12505_v61  ;;  %v5510_v46 = vmul.f32 %v12415_v2, %v12505_v61 }
0x1178   :  { %8124 = vtanh.f32 %v5536_v4  ;;  %v5391_v23 = vmul.f32 %v5367_v49, %v5126_v29  ;;  %v5348_v26 = vadd.f32 %v12562_v35, %v5336_v7  ;;  %v5513_v27 = vmul.f32 %v12419_v54, %v12505_v61  ;;  %v13760_v4 = vld [vmem:[#allocation55_spill] sm:$0xff]  ;;  %v13762_v54 = vld [vmem:[#allocation49_spill] sm:$0xff] }
0x1179   :  { %v5392_v62 = vmul.f32 %v5368_v16, %v5129_v28  ;;  %v5514_v58 = vmul.f32 %v12425_v32, %v12505_v61  ;;  %v5279_v11 = vadd.f32 %v12439_v31, %v12328_v20  ;;  %v5292_v29 = vadd.f32 %v12446_v24, %v12340_v37  ;;  %v13761_v49 = vld [vmem:[#allocation43_spill] sm:$0xff] }
0x117a   :  { %v5382_v50 = vmul.f32 0.5, %v8113_v40  ;;  %v5395_v38 = vadd.f32 %v5391_v23, %v5347_v14  ;;  %v5521_v30 = vadd.f32 %v12450_v0, %v5509_v34  ;;  %v5522_v7 = vadd.f32 %v12453_v19, %v5510_v46  ;;  %v13763_v34 = vld [vmem:[#allocation28_spill] sm:$0xff] }
0x117b   :  { %v5396_v44 = vadd.f32 %v5392_v62, %v5348_v26  ;;  %v5525_v9 = vadd.f32 %v12456_v63, %v5513_v27  ;;  %v5295_v16 = vadd.f32 %v13761_v49, %v13760_v4  ;;  %v5385_v32 = vadd.f32 0.5, %v5381_v52 }
0x117c   :  { %8126 = vtanh.f32 %v5395_v38  ;;  %v5526_v20 = vadd.f32 %v12466_v3, %v5514_v58  ;;  %v5533_v40 = vadd.f32 %v5521_v30, %v12488_v6  ;;  %v5534_v14 = vadd.f32 %v5522_v7, %v5279_v11 }
0x117d   :  { %v8115_v28 = vpop.eup %8114  ;;  %8128 = vtanh.f32 %v5396_v44  ;;  %v5386_v23 = vadd.f32 0.5, %v5382_v50  ;;  %v5553_v26 = vadd.f32 %v5525_v9, %v5292_v29  ;;  %v5555_v49 = vmul.f32 0.5, %v5551_v42  ;;  %v13766_v50 = vld [vmem:[#allocation32_spill] sm:$0xff] }
0x117e   :  { %v8117_v31 = vpop.eup %8116  ;;  %v5401_v37 = vsub.f32 %v13762_v54, %v8115_v28  ;;  %v5554_v62 = vadd.f32 %v5526_v20, %v5295_v16  ;;  %v5537_v19 = vmul.f32 0.5, %v5533_v40  ;;  %v5538_v4 = vmul.f32 0.5, %v5534_v14 }
0x117f   :  { %v5402_v46 = vsub.f32 %v13763_v34, %v8117_v31  ;;  %v8119_v27 = vpop.eup %8118  ;;  %v5556_v54 = vmul.f32 0.5, %v5552_v59  ;;  %v5515_v11 = vmul.f32 %v12475_v8, %v12505_v61  ;;  %v5516_v30 = vmul.f32 %v12482_v25, %v12505_v61  ;;  %v13767_v59 = vld [vmem:[#allocation41_spill] sm:$0xff] }
0x1180   :  { %v5405_v63 = vmul.f32 %v5401_v37, %v5385_v32  ;;  %v8121_v52 = vpop.eup %8120  ;;  %8130 = vtanh.f32 %v5537_v19  ;;  %v5300_v32 = vadd.f32 %v12493_v39, %v13766_v50  ;;  %v5383_v7 = vmul.f32 0.5, %v8119_v27  ;;  %v13769_v27 = vld [vmem:[#allocation46_spill] sm:$0xff] }
0x1181   :  { %v5406_v38 = vmul.f32 %v5402_v46, %v5386_v23  ;;  %v8123_v58 = vpop.eup %8122  ;;  %8132 = vtanh.f32 %v5538_v4  ;;  %v5303_v9 = vadd.f32 %v12500_v57, %v13767_v59  ;;  %v5527_v20 = vadd.f32 %v12511_v43, %v5515_v11 }
0x1182   :  { %v12582_v3 = vadd.f32 %v8115_v28, %v5405_v63  ;;  %v8125_v44 = vpop.eup %8124  ;;  %v5543_v29 = vmul.f32 0.5, %v8123_v58  ;;  %8134 = vtanh.f32 %v5555_v49  ;;  %v5528_v14 = vadd.f32 %v12518_v21, %v5516_v30 }
0x1183   :  { %v12584_v6 = vadd.f32 %v8117_v31, %v5406_v38  ;;  %v5544_v42 = vmul.f32 0.5, %v8125_v44  ;;  %v5384_v31 = vmul.f32 0.5, %v8121_v52  ;;  %8136 = vtanh.f32 %v5556_v54  ;;  %v13770_v38 = vld [vmem:[#allocation42_spill] sm:$0xff] }
0x1184   :  { %13764 = vst [vmem:[#allocation36_spill] sm:$0xff] %v12582_v3  ;;  %v5547_v19 = vadd.f32 0.5, %v5543_v29  ;;  %v13768_v34 = vmov 0.0   ;;  %v5387_v46 = vadd.f32 0.5, %v5383_v7  ;;  %v5557_v50 = vmul.f32 0.5, %v5553_v26 }
0x1185   :  { %13765 = vst [vmem:[#allocation25_spill] sm:$0xff] %v12584_v6  ;;  %v5413_v63 = vpack.c.bf16 %v12584_v6, %v12582_v3  ;;  %v5548_v28 = vadd.f32 0.5, %v5544_v42  ;;  %v5388_v52 = vadd.f32 0.5, %v5384_v31  ;;  %v5558_v30 = vmul.f32 0.5, %v5554_v62  ;;  %v13792_v3 = vld [vmem:[#allocation30_spill] sm:$0xff] }
0x1186   :  { %v8127_v16 = vpop.eup %8126  ;;  %v5571_v37 = vmul.f32 %v5547_v19, %v5300_v32  ;;  %v5517_v7 = vmul.f32 %v12540_v60, %v12505_v61  ;;  %v5518_v31 = vmul.f32 %v12544_v15, %v12505_v61  ;;  %v5308_v26 = vadd.f32 %v12536_v1, %v12469_v18 }
0x1187   :  { %7291 = vmatpush3.bf16.msra.mxu1 %v5413_v63  ;;  %v8129_v40 = vpop.eup %8128  ;;  %v5572_v23 = vmul.f32 %v5548_v28, %v5303_v9  ;;  %v5403_v49 = vsub.f32 %v13769_v27, %v8127_v16 }
0x1188   :  { %7292 = vmatprep.subr.bf16.mxu1 %v13768_v34  ;;  %v5575_v4 = vadd.f32 %v5571_v37, %v5527_v20  ;;  %v5404_v58 = vsub.f32 %v13770_v38, %v8129_v40  ;;  %v5311_v20 = vadd.f32 %v12551_v53, %v12471_v51 }
0x1189   :  { %v5576_v44 = vadd.f32 %v5572_v23, %v5528_v14  ;;  %v5407_v54 = vmul.f32 %v5403_v49, %v5387_v46  ;;  %v5530_v23 = vadd.f32 %v12562_v35, %v5518_v31 }
0x118a   :  { %8138 = vtanh.f32 %v5575_v4  ;;  %v5408_v29 = vmul.f32 %v5404_v58, %v5388_v52  ;;  %v8131_v11 = vpop.eup %8130  ;;  %v13773_v4 = vld [vmem:[#allocation29_spill] sm:$0xff]  ;;  %v13774_v58 = vld [vmem:[#allocation51_spill] sm:$0xff] }
0x118b   :  { %8140 = vtanh.f32 %v5576_v44  ;;  %v12601_v32 = vadd.f32 %v8127_v16, %v5407_v54  ;;  %v8133_v42 = vpop.eup %8132  ;;  %v5545_v19 = vmul.f32 0.5, %v8131_v11 }
0x118c   :  { %v12603_v63 = vadd.f32 %v8129_v40, %v5408_v29  ;;  %v5546_v59 = vmul.f32 0.5, %v8133_v42  ;;  %v8135_v9 = vpop.eup %8134  ;;  %8142 = vtanh.f32 %v5557_v50  ;;  %v5529_v40 = vadd.f32 %v12555_v33, %v5517_v7  ;;  %v13775_v29 = vld [vmem:[#allocation54_spill] sm:$0xff] }
0x118d   :  { %13771 = vst [vmem:[#allocation44_spill] sm:$0xff] %v12601_v32  ;;  %v5549_v16 = vadd.f32 0.5, %v5545_v19  ;;  %v8137_v62 = vpop.eup %8136  ;;  %8144 = vtanh.f32 %v5558_v30  ;;  %v5563_v14 = vmul.f32 0.5, %v8135_v9  ;;  %v13778_v9 = vld [vmem:[#allocation16_spill] sm:$0xff] }
0x118e   :  { %13772 = vst [vmem:[#allocation55_spill] sm:$0xff] %v12603_v63  ;;  %v5414_v28 = vpack.c.bf16 %v12603_v63, %v12601_v32  ;;  %v5550_v37 = vadd.f32 0.5, %v5546_v59  ;;  %v5564_v18 = vmul.f32 0.5, %v8137_v62  ;;  %v13791_v32 = vld [vmem:[#allocation37_spill] sm:$0xff] }
0x118f   :  { %v5573_v61 = vmul.f32 %v5549_v16, %v5308_v26  ;;  %v5567_v38 = vadd.f32 0.5, %v5563_v14  ;;  %v13780_v14 = vld [vmem:[#allocation26_spill] sm:$0xff] }
0x1190   :  { %7293 = vmatpush3.bf16.msra.mxu1 %v5414_v28  ;;  %v5574_v46 = vmul.f32 %v5550_v37, %v5311_v20  ;;  %v5568_v54 = vadd.f32 0.5, %v5564_v18  ;;  %v13779_v37 = vld [vmem:[#allocation53_spill] sm:$0xff] }
0x1191   :  { %7354 = vmatprep.subr.bf16.mxu1 %v13768_v34  ;;  %v5577_v27 = vadd.f32 %v5573_v61, %v5529_v40 }
0x1192   :  { %v5578_v49 = vadd.f32 %v5574_v46, %v5530_v23 }
0x1193   :  { %7295 = vmatmul.mubr.msk.bf16.vlgmr.msra.gmra.mrb[32].mxu1 %vm215_vm0, %v13773_v4  ;;  %8146 = vtanh.f32 %v5577_v27 }
0x1194   :  { %v8139_v52 = vpop.eup %8138  ;;  %7298 = vmatprep.mubr.msk.bf16.mxu1 %vm8520_vm1, %v13768_v34  ;;  %8148 = vtanh.f32 %v5578_v49  ;;  %v13782_v49 = vld [vmem:[#allocation17_spill] sm:$0xff] }
0x1195   :  { %v8141_v51 = vpop.eup %8140  ;;  %v5583_v44 = vsub.f32 %v13774_v58, %v8139_v52  ;;  %v13785_v58 = vld [vmem:[#allocation15_spill] sm:$0xff] }
0x1196   :  { %v5584_v50 = vsub.f32 %v13775_v29, %v8141_v51  ;;  %v8143_v30 = vpop.eup %8142 }
0x1197   :  { %v5587_v11 = vmul.f32 %v5583_v44, %v5567_v38  ;;  %v8145_v7 = vpop.eup %8144  ;;  %v5565_v59 = vmul.f32 0.5, %v8143_v30  ;;  %v13784_v38 = vld [vmem:[#allocation18_spill] sm:$0xff]  ;;  %v13786_v44 = vld [vmem:[#allocation19_spill] sm:$0xff] }
0x1198   :  { %v5588_v42 = vmul.f32 %v5584_v50, %v5568_v54  ;;  %v5566_v28 = vmul.f32 0.5, %v8145_v7  ;;  %v13787_v54 = vld [vmem:[#allocation20_spill] sm:$0xff] }
0x1199   :  { %v12624_v19 = vadd.f32 %v8139_v52, %v5587_v11  ;;  %v5569_v20 = vadd.f32 0.5, %v5565_v59 }
0x119a   :  { %v12626_v31 = vadd.f32 %v8141_v51, %v5588_v42  ;;  %v5570_v61 = vadd.f32 0.5, %v5566_v28 }
0x119b   :  { %13776 = vst [vmem:[#allocation49_spill] sm:$0xff] %v12624_v19  ;;  %7299 = vmatmul.mubr.msk.bf16.gmra.mrb[36].mxu1 %vm215_vm0, %v13778_v9 }
0x119c   :  { %13777 = vst [vmem:[#allocation28_spill] sm:$0xff] %v12626_v31  ;;  %v5595_v26 = vpack.c.bf16 %v12626_v31, %v12624_v19  ;;  %7302 = vmatprep.mubr.msk.bf16.mxu1 %vm8520_vm1, %v13768_v34 }
0x119d   :  { %v8147_v16 = vpop.eup %8146 }
0x119e   :  { %7323 = vmatpush3.bf16.msra.mxu0 %v5595_v26  ;;  %v8149_v62 = vpop.eup %8148  ;;  %v5585_v40 = vsub.f32 %v13779_v37, %v8147_v16 }
0x119f   :  { %7324 = vmatprep.subr.bf16.mxu0 %v13768_v34  ;;  %v5586_v23 = vsub.f32 %v13780_v14, %v8149_v62 }
0x11a0   :  { %v5589_v46 = vmul.f32 %v5585_v40, %v5569_v20 }
0x11a1   :  { %v5590_v18 = vmul.f32 %v5586_v23, %v5570_v61 }
0x11a2   :  { %v12637_v27 = vadd.f32 %v8147_v16, %v5589_v46 }
0x11a3   :  { %7303 = vmatmul.mubr.msk.bf16.gmra.mrb[40].mxu1 %vm215_vm0, %v13782_v49  ;;  %v12641_v52 = vadd.f32 %v8149_v62, %v5590_v18 }
0x11a4   :  { %13781 = vst [vmem:[#allocation32_spill] sm:$0xff] %v12637_v27  ;;  %7306 = vmatprep.mubr.msk.bf16.mxu1 %vm8520_vm1, %v13768_v34 }
0x11a5   :  { %13783 = vst [vmem:[#allocation41_spill] sm:$0xff] %v12641_v52  ;;  %v5596_v51 = vpack.c.bf16 %v12641_v52, %v12637_v27 }
0x11a7   :  { %7325 = vmatpush3.bf16.msra.mxu0 %v5596_v51 }
0x11a8   :  { %7386 = vmatprep.subr.bf16.mxu0 %v13768_v34 }
0x11aa   :  { %7327 = vmatmul.mubr.msk.bf16.vlgmr.msra.gmra.mrb[28].mxu0 %vm215_vm0, %v13773_v4 }
0x11ab   :  { %7307 = vmatmul.mubr.msk.bf16.gmra.mrb[44].mxu1 %vm215_vm0, %v13784_v38  ;;  %7330 = vmatprep.mubr.msk.bf16.mxu0 %vm8520_vm1, %v13768_v34 }
0x11ac   :  { %7310 = vmatprep.mubr.msk.bf16.mxu1 %vm8520_vm1, %v13768_v34 }
0x11b2   :  { %7331 = vmatmul.mubr.msk.bf16.gmra.mrb[32].mxu0 %vm215_vm0, %v13778_v9 }
0x11b3   :  { %7311 = vmatmul.mubr.msk.bf16.gmra.mrb[48].mxu1 %vm215_vm0, %v13785_v58  ;;  %7334 = vmatprep.mubr.msk.bf16.mxu0 %vm8520_vm1, %v13768_v34 }
0x11b4   :  { %7314 = vmatprep.mubr.msk.bf16.mxu1 %vm8520_vm1, %v13768_v34 }
0x11ba   :  { %7335 = vmatmul.mubr.msk.bf16.gmra.mrb[36].mxu0 %vm215_vm0, %v13782_v49 }
0x11bb   :  { %7315 = vmatmul.mubr.msk.bf16.gmra.mrb[52].mxu1 %vm215_vm0, %v13786_v44  ;;  %7338 = vmatprep.mubr.msk.bf16.mxu0 %vm8520_vm1, %v13768_v34 }
0x11bc   :  { %7318 = vmatprep.mubr.msk.bf16.mxu1 %vm8520_vm1, %v13768_v34 }
0x11c2   :  { %7339 = vmatmul.mubr.msk.bf16.gmra.mrb[40].mxu0 %vm215_vm0, %v13784_v38 }
0x11c3   :  { %7319 = vmatmul.mubr.msk.bf16.gmra.mrb[56].mxu1 %vm215_vm0, %v13787_v54  ;;  %7342 = vmatprep.mubr.msk.bf16.mxu0 %vm8520_vm1, %v13768_v34 }
0x11c4   :  { %7358 = vmatprep.mubr.msk.bf16.mxu1 %vm8520_vm1, %v13768_v34 }
0x11ca   :  { %7343 = vmatmul.mubr.msk.bf16.gmra.mrb[44].mxu0 %vm215_vm0, %v13785_v58 }
0x11cb   :  { %7346 = vmatprep.mubr.msk.bf16.mxu0 %vm8520_vm1, %v13768_v34 }
0x11d2   :  { %7347 = vmatmul.mubr.msk.bf16.gmra.mrb[48].mxu0 %vm215_vm0, %v13786_v44 }
0x11d3   :  { %7350 = vmatprep.mubr.msk.bf16.mxu0 %vm8520_vm1, %v13768_v34 }
0x11da   :  { %7351 = vmatmul.mubr.msk.bf16.gmra.mrb[52].mxu0 %vm215_vm0, %v13787_v54 }
0x11db   :  { %7390 = vmatprep.mubr.msk.bf16.mxu0 %vm8520_vm1, %v13768_v34 }
0x1266   :  { %v5449_v29 = vpop.f32.mrb[32].mxu1 }
0x1267   :  { %v7296_v50 = vpop.f32.mrb[33].mxu1 }
0x1268   :  { %v5452_v11 = vpop.f32.mrb[34].mxu1 }
0x1269   :  { %v7297_v30 = vpop.f32.mrb[35].mxu1 }
0x126e   :  { %v12692_v42 = vpop.f32.mrb[36].mxu1 }
0x126f   :  { %v7300_v7 = vpop.f32.mrb[37].mxu1 }
0x1270   :  { %v12694_v59 = vpop.f32.mrb[38].mxu1 }
0x1271   :  { %v7301_v26 = vpop.f32.mrb[39].mxu1 }
0x1276   :  { %v5465_v28 = vpop.f32.mrb[40].mxu1 }
0x1277   :  { %v7304_v16 = vpop.f32.mrb[41].mxu1 }
0x1278   :  { %v5468_v62 = vpop.f32.mrb[42].mxu1 }
0x1279   :  { %v7305_v20 = vpop.f32.mrb[43].mxu1 }
0x127d   :  { %v12696_v37 = vpop.f32.mrb[28].mxu0 }
0x127e   :  { %v5473_v40 = vpop.f32.mrb[44].mxu1  ;;  %v7328_v61 = vpop.f32.mrb[29].mxu0 }
0x127f   :  { %v7308_v14 = vpop.f32.mrb[45].mxu1  ;;  %v12698_v23 = vpop.f32.mrb[30].mxu0 }
0x1280   :  { %v5476_v46 = vpop.f32.mrb[46].mxu1  ;;  %v7329_v18 = vpop.f32.mrb[31].mxu0 }
0x1281   :  { %v7309_v51 = vpop.f32.mrb[47].mxu1 }
0x1285   :  { %v12700_v50 = vpop.f32.mrb[32].mxu0 }
0x1286   :  { %v12702_v30 = vpop.f32.mrb[48].mxu1  ;;  %v7332_v7 = vpop.f32.mrb[33].mxu0 }
0x1287   :  { %v7312_v26 = vpop.f32.mrb[49].mxu1  ;;  %v12704_v54 = vpop.f32.mrb[34].mxu0 }
0x1288   :  { %v12706_v16 = vpop.f32.mrb[50].mxu1  ;;  %v7333_v20 = vpop.f32.mrb[35].mxu0 }
0x1289   :  { %v7313_v44 = vpop.f32.mrb[51].mxu1 }
0x128d   :  { %v12708_v58 = vpop.f32.mrb[36].mxu0 }
0x128e   :  { %v12710_v61 = vpop.f32.mrb[52].mxu1  ;;  %v7336_v14 = vpop.f32.mrb[37].mxu0 }
0x128f   :  { %v7316_v38 = vpop.f32.mrb[53].mxu1  ;;  %v12712_v18 = vpop.f32.mrb[38].mxu0 }
0x1290   :  { %v12714_v51 = vpop.f32.mrb[54].mxu1  ;;  %v7337_v49 = vpop.f32.mrb[39].mxu0 }
0x1291   :  { %13788 = vst [vmem:[#allocation46_spill] sm:$0xff] %v12714_v51  ;;  %v7317_v52 = vpop.f32.mrb[55].mxu1 }
0x1295   :  { %v12716_v7 = vpop.f32.mrb[40].mxu0 }
0x1296   :  { %13789 = vst [vmem:[#allocation42_spill] sm:$0xff] %v12716_v7  ;;  %v5497_v26 = vpop.f32.mrb[56].mxu1  ;;  %v7340_v27 = vpop.f32.mrb[41].mxu0 }
0x1297   :  { %v5498_v9 = vadd.f32 %v12345_v17, %v5497_v26  ;;  %v7320_v20 = vpop.f32.mrb[57].mxu1  ;;  %v12719_v44 = vpop.f32.mrb[42].mxu0  ;;  %v5450_v26 = vadd.f32 %v12372_v36, %v5449_v29 }
0x1298   :  { %13790 = vst [vmem:[#allocation51_spill] sm:$0xff] %v12719_v44  ;;  %v5500_v31 = vpop.f32.mrb[58].mxu1  ;;  %v7341_v19 = vpop.f32.mrb[43].mxu0  ;;  %v5469_v44 = vadd.f32 %v13792_v3, %v5468_v62  ;;  %v13797_v62 = vld [vmem:[#allocation52_spill] sm:$0xff] }
0x1299   :  { %v12722_v14 = vrot.slane %v5498_v9, %v13466_v12  ;;  %v7321_v38 = vpop.f32.mrb[59].mxu1  ;;  %v5453_v19 = vadd.f32 %v12378_v47, %v5452_v11  ;;  %v5466_v31 = vadd.f32 %v12384_v41, %v5465_v28  ;;  %v13794_v11 = vld [vmem:[#allocation50_spill] sm:$0xff] }
0x129b   :  { %v5689_v4 = vmul.f32 %v12357_v56, %v12722_v14  ;;  %v5690_v49 = vmul.f32 %v12361_v13, %v12722_v14  ;;  %v5693_v27 = vmul.f32 %v12365_v10, %v12722_v14  ;;  %v5694_v52 = vmul.f32 %v12387_v48, %v12722_v14 }
0x129c   :  { %v5691_v20 = vmul.f32 %v12411_v45, %v12722_v14  ;;  %v5692_v29 = vmul.f32 %v12415_v2, %v12722_v14  ;;  %v5695_v28 = vmul.f32 %v13794_v11, %v12722_v14  ;;  %v13795_v45 = vld [vmem:[#allocation22_spill] sm:$0xff]  ;;  %v5474_v11 = vadd.f32 %v12446_v24, %v5473_v40  ;;  %v13803_v40 = vld [vmem:[#allocation39_spill] sm:$0xff] }
0x129d   :  { %v5701_v38 = vadd.f32 %v12397_v55, %v5689_v4  ;;  %v5702_v63 = vadd.f32 %v12400_v22, %v5690_v49  ;;  %v5705_v34 = vadd.f32 %v12403_v5, %v5693_v27  ;;  %v5706_v6 = vadd.f32 %v13791_v32, %v5694_v52  ;;  %v12742_v7 = vpop.f32.mrb[44].mxu0  ;;  %v13796_v27 = vld [vmem:[#allocation38_spill] sm:$0xff]  ;;  %v13802_v5 = vld [vmem:[#allocation45_spill] sm:$0xff] }
0x129e   :  { %13793 = vst [vmem:[#allocation54_spill] sm:$0xff] %v12742_v7  ;;  %v5696_v35 = vmul.f32 %v13795_v45, %v12722_v14  ;;  %v7344_v4 = vpop.f32.mrb[45].mxu0  ;;  %v5458_v52 = vadd.f32 %v13796_v27, %v12692_v42  ;;  %v5461_v7 = vadd.f32 %v13797_v62, %v12694_v59  ;;  %v5703_v15 = vadd.f32 %v12450_v0, %v5691_v20 }
0x129f   :  { %v5713_v33 = vadd.f32 %v5701_v38, %v5450_v26  ;;  %v5714_v49 = vadd.f32 %v5702_v63, %v5453_v19  ;;  %v5733_v53 = vadd.f32 %v5705_v34, %v5466_v31  ;;  %v12754_v51 = vpop.f32.mrb[46].mxu0  ;;  %v5734_v2 = vadd.f32 %v5706_v6, %v5469_v44  ;;  %v13799_v63 = vld [vmem:[#allocation43_spill] sm:$0xff]  ;;  %v13800_v19 = vld [vmem:[#allocation24_spill] sm:$0xff] }
0x12a0   :  { %13798 = vst [vmem:[#allocation53_spill] sm:$0xff] %v12754_v51  ;;  %v7345_v32 = vpop.f32.mrb[47].mxu0  ;;  %v6041_v45 = vrot.slane %v5498_v9, 2  ;;  %v5477_v34 = vadd.f32 %v13799_v63, %v5476_v46  ;;  %v5704_v31 = vadd.f32 %v13800_v19, %v5692_v29  ;;  %v13801_v38 = vld [vmem:[#allocation35_spill] sm:$0xff]  ;;  %v5708_v22 = vadd.f32 %v13802_v5, %v5696_v35 }
0x12a1   :  { %v5717_v4 = vmul.f32 0.5, %v5713_v33  ;;  %v5718_v26 = vmul.f32 0.5, %v5714_v49  ;;  %v5707_v42 = vadd.f32 %v13801_v38, %v5695_v28  ;;  %v5715_v59 = vadd.f32 %v5703_v15, %v5458_v52 }
0x12a2   :  { %v5716_v6 = vadd.f32 %v5704_v31, %v5461_v7  ;;  %v5736_v20 = vadd.f32 %v5708_v22, %v5477_v34  ;;  %v12764_v32 = vsel %vm6056_vm7, %v13803_v40, %v6041_v45  ;;  %v5737_v35 = vmul.f32 0.5, %v5733_v53 }
0x12a3   :  { %8150 = vtanh.f32 %v5717_v4  ;;  %v5735_v44 = vadd.f32 %v5707_v42, %v5474_v11  ;;  %v5719_v51 = vmul.f32 0.5, %v5715_v59  ;;  %v5632_v7 = vadd.f32 %v12372_v36, %v12696_v37 }
0x12a4   :  { %8152 = vtanh.f32 %v5718_v26  ;;  %v5720_v46 = vmul.f32 0.5, %v5716_v6  ;;  %v5635_v22 = vadd.f32 %v12378_v47, %v12698_v23  ;;  %v5738_v11 = vmul.f32 0.5, %v5734_v2 }
0x12a5   :  { %v12766_v33 = vpop.f32.mrb[48].mxu0  ;;  %8154 = vtanh.f32 %v5719_v51  ;;  %v5697_v52 = vmul.f32 %v12475_v8, %v12722_v14  ;;  %v5698_v51 = vmul.f32 %v12482_v25, %v12722_v14  ;;  %v12780_v53 = vadd.f32 %v13796_v27, %v12700_v50 }
0x12a6   :  { %v7348_v9 = vpop.f32.mrb[49].mxu0  ;;  %8156 = vtanh.f32 %v5720_v46  ;;  %v5482_v36 = vadd.f32 %v12493_v39, %v12702_v30  ;;  %v12789_v23 = vadd.f32 %v13797_v62, %v12704_v54  ;;  %v5648_v26 = vadd.f32 %v12384_v41, %v12708_v58 }
0x12a7   :  { %v12768_v29 = vpop.f32.mrb[50].mxu0  ;;  %8158 = vtanh.f32 %v5737_v35  ;;  %v5485_v34 = vadd.f32 %v12500_v57, %v12706_v16  ;;  %v5490_v30 = vadd.f32 %v12536_v1, %v12710_v61  ;;  %v5651_v54 = vadd.f32 %v13792_v3, %v12712_v18 }
0x12a8   :  { %v7349_v28 = vpop.f32.mrb[51].mxu0  ;;  %8160 = vtanh.f32 %v5738_v11  ;;  %v5709_v41 = vadd.f32 %v12511_v43, %v5697_v52  ;;  %v5710_v58 = vadd.f32 %v12518_v21, %v5698_v51  ;;  %v5739_v11 = vmul.f32 0.5, %v5735_v44 }
0x12a9   :  { %v5740_v51 = vmul.f32 0.5, %v5736_v20 }
0x12ad   :  { %v8151_v15 = vpop.eup %8150  ;;  %v5679_v49 = vpop.f32.mrb[52].mxu0 }
0x12ae   :  { %v8153_v45 = vpop.eup %8152  ;;  %v5725_v4 = vmul.f32 0.5, %v8151_v15  ;;  %v12785_v47 = vadd.f32 %v12345_v17, %v5679_v49  ;;  %v7352_v2 = vpop.f32.mrb[53].mxu0  ;;  %v13804_v15 = vld [vmem:[#allocation40_spill] sm:$0xff]  ;;  %v13806_v49 = vld [vmem:[#allocation37_spill] sm:$0xff] }
0x12af   :  { %v5726_v37 = vmul.f32 0.5, %v8153_v45  ;;  %v5682_v50 = vpop.f32.mrb[54].mxu0  ;;  %v8155_v31 = vpop.eup %8154 }
0x12b0   :  { %v5729_v27 = vadd.f32 0.5, %v5725_v4  ;;  %v12799_v17 = vrot.slane %v12785_v47, %v13466_v12  ;;  %v7353_v42 = vpop.f32.mrb[55].mxu0  ;;  %v5699_v12 = vmul.f32 %v12540_v60, %v12722_v14  ;;  %v5727_v18 = vmul.f32 0.5, %v8155_v31  ;;  %v8157_v46 = vpop.eup %8156  ;;  %v13809_v31 = vld [vmem:[#allocation21_spill] sm:$0xff] }
0x12b1   :  { %v5730_v59 = vadd.f32 0.5, %v5726_v37  ;;  %v8159_v2 = vpop.eup %8158  ;;  %v5728_v50 = vmul.f32 0.5, %v8157_v46  ;;  %v13816_v46 = vld [vmem:[#allocation50_spill] sm:$0xff] }
0x12b2   :  { %v5753_v16 = vmul.f32 %v5729_v27, %v5482_v36  ;;  %v5859_v6 = vmul.f32 %v12357_v56, %v12799_v17  ;;  %v5860_v61 = vmul.f32 %v12361_v13, %v12799_v17  ;;  %v5863_v9 = vmul.f32 %v12365_v10, %v12799_v17  ;;  %v13805_v13 = vld [vmem:[#allocation31_spill] sm:$0xff]  ;;  %v13807_v36 = vld [vmem:[#allocation34_spill] sm:$0xff] }
0x12b3   :  { %v5754_v62 = vmul.f32 %v5730_v59, %v5485_v34  ;;  %v5864_v3 = vmul.f32 %v12387_v48, %v12799_v17  ;;  %v5700_v48 = vmul.f32 %v13807_v36, %v12722_v14  ;;  %v13808_v27 = vld [vmem:[#allocation46_spill] sm:$0xff]  ;;  %v5732_v20 = vadd.f32 0.5, %v5728_v50  ;;  %v13811_v14 = vld [vmem:[#allocation33_spill] sm:$0xff] }
0x12b4   :  { %v5757_v40 = vadd.f32 %v5753_v16, %v5709_v41  ;;  %v5871_v35 = vadd.f32 %v12397_v55, %v5859_v6  ;;  %v5872_v56 = vadd.f32 %v13804_v15, %v5860_v61  ;;  %v5875_v45 = vadd.f32 %v13805_v13, %v5863_v9  ;;  %v13810_v41 = vld [vmem:[#allocation23_spill] sm:$0xff] }
0x12b5   :  { %v5758_v28 = vadd.f32 %v5754_v62, %v5710_v58  ;;  %v5876_v52 = vadd.f32 %v13806_v49, %v5864_v3  ;;  %v5731_v55 = vadd.f32 0.5, %v5727_v18  ;;  %v5493_v44 = vadd.f32 %v13809_v31, %v13808_v27  ;;  %v13814_v3 = vld [vmem:[#allocation42_spill] sm:$0xff]  ;;  %v13815_v18 = vld [vmem:[#allocation51_spill] sm:$0xff]  ;;  %v13819_v27 = vld [vmem:[#allocation25_spill] sm:$0xff] }
0x12b6   :  { %8162 = vtanh.f32 %v5757_v40  ;;  %v5883_v4 = vadd.f32 %v5871_v35, %v5632_v7  ;;  %v5884_v10 = vadd.f32 %v5872_v56, %v5635_v22  ;;  %v5903_v37 = vadd.f32 %v5875_v45, %v5648_v26  ;;  %v8161_v22 = vpop.eup %8160  ;;  %v13812_v26 = vld [vmem:[#allocation47_spill] sm:$0xff]  ;;  %v13817_v35 = vld [vmem:[#allocation22_spill] sm:$0xff] }
0x12b7   :  { %8164 = vtanh.f32 %v5758_v28  ;;  %v5904_v34 = vadd.f32 %v5876_v52, %v5651_v54  ;;  %v5711_v58 = vadd.f32 %v13810_v41, %v5699_v12  ;;  %v5755_v7 = vmul.f32 %v5731_v55, %v5490_v30  ;;  %v13813_v40 = vld [vmem:[#allocation27_spill] sm:$0xff] }
0x12b8   :  { %v5887_v42 = vmul.f32 0.5, %v5883_v4  ;;  %v5888_v59 = vmul.f32 0.5, %v5884_v10  ;;  %8166 = vtanh.f32 %v5739_v11  ;;  %v5745_v16 = vmul.f32 0.5, %v8159_v2 }
0x12b9   :  { %8168 = vtanh.f32 %v5740_v51  ;;  %v5712_v62 = vadd.f32 %v13811_v14, %v5700_v48  ;;  %v5861_v54 = vmul.f32 %v13812_v26, %v12799_v17  ;;  %v5756_v6 = vmul.f32 %v5732_v20, %v5493_v44  ;;  %v13818_v48 = vld [vmem:[#allocation36_spill] sm:$0xff] }
0x12ba   :  { %8170 = vtanh.f32 %v5887_v42  ;;  %v5759_v61 = vadd.f32 %v5755_v7, %v5711_v58  ;;  %v5862_v9 = vmul.f32 %v13813_v40, %v12799_v17  ;;  %v5656_v12 = vadd.f32 %v12446_v24, %v13814_v3  ;;  %v13820_v42 = vld [vmem:[#allocation48_spill] sm:$0xff] }
0x12bb   :  { %8172 = vtanh.f32 %v5888_v59  ;;  %v5659_v30 = vadd.f32 %v13799_v63, %v13815_v18  ;;  %v5865_v28 = vmul.f32 %v13816_v46, %v12799_v17  ;;  %v5866_v15 = vmul.f32 %v13817_v35, %v12799_v17  ;;  %v13822_v46 = vld [vmem:[#allocation53_spill] sm:$0xff] }
0x12bc   :  { %v6077_v56 = vrot.slane %v12785_v47, 2  ;;  %v5746_v11 = vmul.f32 0.5, %v8161_v22  ;;  %v5760_v13 = vadd.f32 %v5756_v6, %v5712_v62  ;;  %v5873_v45 = vadd.f32 %v12450_v0, %v5861_v54 }
0x12bd   :  { %8174 = vtanh.f32 %v5759_v61  ;;  %v5874_v49 = vadd.f32 %v13800_v19, %v5862_v9  ;;  %v5877_v24 = vadd.f32 %v13801_v38, %v5865_v28  ;;  %v5878_v52 = vadd.f32 %v13802_v5, %v5866_v15 }
0x12be   :  { %v5749_v51 = vadd.f32 0.5, %v5745_v16  ;;  %8176 = vtanh.f32 %v5760_v13  ;;  %v5885_v4 = vadd.f32 %v5873_v45, %v12780_v53  ;;  %v5750_v0 = vadd.f32 0.5, %v5746_v11  ;;  %v13823_v11 = vld [vmem:[#allocation44_spill] sm:$0xff] }
0x12bf   :  { %v5886_v47 = vadd.f32 %v5874_v49, %v12789_v23  ;;  %v5905_v50 = vadd.f32 %v5877_v24, %v5656_v12  ;;  %v5906_v55 = vadd.f32 %v5878_v52, %v5659_v30  ;;  %v12848_v38 = vsel %vm6056_vm7, %v13820_v42, %v6077_v56  ;;  %v13821_v12 = vld [vmem:[#allocation54_spill] sm:$0xff]  ;;  %v13825_v52 = vld [vmem:[#allocation55_spill] sm:$0xff] }
0x12c0   :  { %v8163_v63 = vpop.eup %8162  ;;  %v5889_v19 = vmul.f32 0.5, %v5885_v4  ;;  %v5907_v7 = vmul.f32 0.5, %v5903_v37  ;;  %v5908_v23 = vmul.f32 0.5, %v5904_v34  ;;  %v5867_v54 = vmul.f32 %v12475_v8, %v12799_v17 }
0x12c1   :  { %v8165_v10 = vpop.eup %8164  ;;  %v5765_v2 = vsub.f32 %v13818_v48, %v8163_v63  ;;  %v5890_v58 = vmul.f32 0.5, %v5886_v47  ;;  %v5868_v40 = vmul.f32 %v12482_v25, %v12799_v17  ;;  %v5664_v37 = vadd.f32 %v12493_v39, %v13821_v12 }
0x12c2   :  { %v5766_v44 = vsub.f32 %v13819_v27, %v8165_v10  ;;  %v8167_v5 = vpop.eup %8166  ;;  %8178 = vtanh.f32 %v5889_v19  ;;  %v5667_v28 = vadd.f32 %v12500_v57, %v13822_v46  ;;  %v5879_v15 = vadd.f32 %v12511_v43, %v5867_v54 }
0x12c3   :  { %v5769_v59 = vmul.f32 %v5765_v2, %v5749_v51  ;;  %v8169_v20 = vpop.eup %8168  ;;  %8180 = vtanh.f32 %v5890_v58  ;;  %v5747_v61 = vmul.f32 0.5, %v8167_v5  ;;  %v5880_v45 = vadd.f32 %v12518_v21, %v5868_v40 }
0x12c4   :  { %v5770_v53 = vmul.f32 %v5766_v44, %v5750_v0  ;;  %v8171_v22 = vpop.eup %8170  ;;  %v5748_v3 = vmul.f32 0.5, %v8169_v20  ;;  %8182 = vtanh.f32 %v5907_v7  ;;  %v13824_v49 = vmov 0.0  }
0x12c5   :  { %v5773_v16 = vadd.f32 %v8163_v63, %v5769_v59  ;;  %v8173_v62 = vpop.eup %8172  ;;  %v5895_v6 = vmul.f32 0.5, %v8171_v22  ;;  %8184 = vtanh.f32 %v5908_v23  ;;  %v5751_v25 = vadd.f32 0.5, %v5747_v61  ;;  %v13826_v23 = vld [vmem:[#allocation29_spill] sm:$0xff] }
0x12c6   :  { %v5774_v26 = vadd.f32 %v8165_v10, %v5770_v53  ;;  %v5896_v9 = vmul.f32 0.5, %v8173_v62  ;;  %v5752_v24 = vadd.f32 0.5, %v5748_v3  ;;  %v5909_v48 = vmul.f32 0.5, %v5905_v50 }
0x12c7   :  { %v5899_v30 = vadd.f32 0.5, %v5895_v6  ;;  %v8175_v34 = vpop.eup %8174  ;;  %v5910_v47 = vmul.f32 0.5, %v5906_v55  ;;  %v5869_v21 = vmul.f32 %v12540_v60, %v12799_v17  ;;  %v5870_v19 = vmul.f32 %v13807_v36, %v12799_v17 }
0x12c8   :  { %v5777_v18 = vpack.c.bf16 %v5774_v26, %v5773_v16  ;;  %v5900_v35 = vadd.f32 0.5, %v5896_v9  ;;  %v8177_v8 = vpop.eup %8176  ;;  %v5767_v13 = vsub.f32 %v13823_v11, %v8175_v34  ;;  %v5672_v5 = vadd.f32 %v12536_v1, %v12766_v33  ;;  %v13831_v11 = vld [vmem:[#allocation41_spill] sm:$0xff] }
0x12c9   :  { %v5923_v56 = vmul.f32 %v5899_v30, %v5664_v37  ;;  %v5768_v63 = vsub.f32 %v13825_v52, %v8177_v8  ;;  %v5675_v55 = vadd.f32 %v13809_v31, %v12768_v29  ;;  %v5881_v60 = vadd.f32 %v13810_v41, %v5869_v21  ;;  %v13827_v41 = vld [vmem:[#allocation49_spill] sm:$0xff]  ;;  %v13829_v30 = vld [vmem:[#allocation16_spill] sm:$0xff] }
0x12ca   :  { %7355 = vmatpush3.bf16.msra.mxu1 %v5777_v18  ;;  %v5924_v39 = vmul.f32 %v5900_v35, %v5667_v28  ;;  %v5771_v57 = vmul.f32 %v5767_v13, %v5751_v25  ;;  %v5882_v17 = vadd.f32 %v13811_v14, %v5870_v19  ;;  %v13828_v14 = vld [vmem:[#allocation28_spill] sm:$0xff]  ;;  %v13832_v52 = vld [vmem:[#allocation17_spill] sm:$0xff] }
0x12cb   :  { %7356 = vmatprep.subr.bf16.mxu1 %v13824_v49  ;;  %v5927_v51 = vadd.f32 %v5923_v56, %v5879_v15  ;;  %v5772_v10 = vmul.f32 %v5768_v63, %v5752_v24  ;;  %v13830_v15 = vld [vmem:[#allocation32_spill] sm:$0xff] }
0x12cc   :  { %v5928_v4 = vadd.f32 %v5924_v39, %v5880_v45  ;;  %v8179_v2 = vpop.eup %8178  ;;  %v5775_v43 = vadd.f32 %v8175_v34, %v5771_v57  ;;  %v13833_v57 = vld [vmem:[#allocation18_spill] sm:$0xff] }
0x12cd   :  { %8186 = vtanh.f32 %v5927_v51  ;;  %v8181_v0 = vpop.eup %8180  ;;  %v5776_v27 = vadd.f32 %v8177_v8, %v5772_v10  ;;  %v5897_v44 = vmul.f32 0.5, %v8179_v2  ;;  %v13835_v10 = vld [vmem:[#allocation19_spill] sm:$0xff] }
0x12ce   :  { %8188 = vtanh.f32 %v5928_v4  ;;  %v5898_v42 = vmul.f32 0.5, %v8181_v0  ;;  %v8183_v58 = vpop.eup %8182  ;;  %v13834_v4 = vld [vmem:[#allocation15_spill] sm:$0xff] }
0x12cf   :  { %v5778_v59 = vpack.c.bf16 %v5776_v27, %v5775_v43  ;;  %v5901_v50 = vadd.f32 0.5, %v5897_v44  ;;  %8190 = vtanh.f32 %v5909_v48  ;;  %v8185_v53 = vpop.eup %8184  ;;  %v5915_v22 = vmul.f32 0.5, %v8183_v58  ;;  %v13836_v48 = vld [vmem:[#allocation20_spill] sm:$0xff] }
0x12d0   :  { %v5902_v20 = vadd.f32 0.5, %v5898_v42  ;;  %8192 = vtanh.f32 %v5910_v47  ;;  %v5916_v1 = vmul.f32 0.5, %v8185_v53 }
0x12d1   :  { %7357 = vmatpush3.bf16.msra.mxu1 %v5778_v59  ;;  %v5925_v7 = vmul.f32 %v5901_v50, %v5672_v5  ;;  %v5919_v62 = vadd.f32 0.5, %v5915_v22 }
0x12d2   :  { %v5926_v36 = vmul.f32 %v5902_v20, %v5675_v55  ;;  %v5920_v54 = vadd.f32 0.5, %v5916_v1 }
0x12d3   :  { %v5929_v16 = vadd.f32 %v5925_v7, %v5881_v60 }
0x12d4   :  { %v5930_v33 = vadd.f32 %v5926_v36, %v5882_v17  ;;  %7359 = vmatmul.mubr.msk.bf16.vlgmr.msra.gmra.mrb[60].mxu1 %vm215_vm0, %v13826_v23 }
0x12d5   :  { %8194 = vtanh.f32 %v5929_v16  ;;  %7362 = vmatprep.mubr.msk.bf16.mxu1 %vm8520_vm1, %v13824_v49 }
0x12d6   :  { %8196 = vtanh.f32 %v5930_v33 }
0x12d7   :  { %v8187_v29 = vpop.eup %8186 }
0x12d8   :  { %v8189_v31 = vpop.eup %8188  ;;  %v5935_v26 = vsub.f32 %v13827_v41, %v8187_v29 }
0x12d9   :  { %v5936_v6 = vsub.f32 %v13828_v14, %v8189_v31  ;;  %v8191_v61 = vpop.eup %8190 }
0x12da   :  { %v5939_v40 = vmul.f32 %v5935_v26, %v5919_v62  ;;  %v8193_v9 = vpop.eup %8192  ;;  %v5917_v18 = vmul.f32 0.5, %v8191_v61 }
0x12db   :  { %v5940_v3 = vmul.f32 %v5936_v6, %v5920_v54  ;;  %v5918_v34 = vmul.f32 0.5, %v8193_v9 }
0x12dc   :  { %v5943_v12 = vadd.f32 %v8187_v29, %v5939_v40  ;;  %7363 = vmatmul.mubr.msk.bf16.gmra.mrb[64].mxu1 %vm215_vm0, %v13829_v30  ;;  %v5921_v8 = vadd.f32 0.5, %v5917_v18 }
0x12dd   :  { %v5944_v37 = vadd.f32 %v8189_v31, %v5940_v3  ;;  %7366 = vmatprep.mubr.msk.bf16.mxu1 %vm8520_vm1, %v13824_v49  ;;  %v5922_v25 = vadd.f32 0.5, %v5918_v34 }
0x12df   :  { %v5947_v46 = vpack.c.bf16 %v5944_v37, %v5943_v12  ;;  %v8195_v28 = vpop.eup %8194  ;;  %v8393_v37 = vld [vmem:[%s12957_s8 + $0x60] sm:$0xff]  ;;  %s8521_s8 = smov [#allocation10]  }
0x12e0   :  { %v8197_v35 = vpop.eup %8196  ;;  %v5937_v56 = vsub.f32 %v13830_v15, %v8195_v28  ;;  %s6096_s25 = sshll.u32 %s8521_s8, 4  ;;  %s6097_s25 = int_to_ptr.vmem [resolvable:$true] %s6096_s25 }
0x12e1   :  { %7387 = vmatpush3.bf16.msra.mxu0 %v5947_v46  ;;  %v5938_v13 = vsub.f32 %v13831_v11, %v8197_v35  ;;  %s8482_s0 = scalar_lea.vmem %s6097_s25, 256  ;;  %p8487_p5 = scmp.lt.s32.totalorder %s6097_s25, %s6097_s25 }
0x12e2   :  { %7388 = vmatprep.subr.bf16.mxu0 %v13824_v49  ;;  %v5941_v45 = vmul.f32 %v5937_v56, %v5921_v8  ;;  %p8483_p4 = scmp.ne.s32.totalorder %s6097_s25, %s8482_s0  ;;  %p8488_p6 = scmp.lt.s32.totalorder %s8482_s0, %s8482_s0 }
0x12e3   :  { %v5942_v39 = vmul.f32 %v5938_v13, %v5922_v25 }
0x12e4   :  { %v5945_v24 = vadd.f32 %v8195_v28, %v5941_v45  ;;  %7367 = vmatmul.mubr.msk.bf16.gmra.mrb[68].mxu1 %vm215_vm0, %v13832_v52  ;;  %p8489_p7 = por %p8488_p6, %p8487_p5 }
0x12e5   :  { %v5946_v63 = vadd.f32 %v8197_v35, %v5942_v39  ;;  %7370 = vmatprep.mubr.msk.bf16.mxu1 %vm8520_vm1, %v13824_v49 }
0x12e6   :  { %p8490_p8 = pnand %p8489_p7, %p8483_p4 }
0x12e7   :  { %v5948_v51 = vpack.c.bf16 %v5946_v63, %v5945_v24 }
0x12e9   :  { %7389 = vmatpush3.bf16.msra.mxu0 %v5948_v51 }
0x12ec   :  { %7391 = vmatmul.mubr.msk.bf16.vlgmr.msra.gmra.mrb[56].mxu0 %vm215_vm0, %v13826_v23  ;;  %7371 = vmatmul.mubr.msk.bf16.gmra.mrb[72].mxu1 %vm215_vm0, %v13833_v57 }
0x12ed   :  { %7394 = vmatprep.mubr.msk.bf16.mxu0 %vm8520_vm1, %v13824_v49  ;;  %7374 = vmatprep.mubr.msk.bf16.mxu1 %vm8520_vm1, %v13824_v49 }
0x12f4   :  { %7395 = vmatmul.mubr.msk.bf16.gmra.mrb[60].mxu0 %vm215_vm0, %v13829_v30  ;;  %7375 = vmatmul.mubr.msk.bf16.gmra.mrb[76].mxu1 %vm215_vm0, %v13834_v4 }
0x12f5   :  { %7398 = vmatprep.mubr.msk.bf16.mxu0 %vm8520_vm1, %v13824_v49  ;;  %7378 = vmatprep.mubr.msk.bf16.mxu1 %vm8520_vm1, %v13824_v49 }
0x12fc   :  { %7399 = vmatmul.mubr.msk.bf16.gmra.mrb[64].mxu0 %vm215_vm0, %v13832_v52  ;;  %7379 = vmatmul.mubr.msk.bf16.gmra.mrb[80].mxu1 %vm215_vm0, %v13835_v10 }
0x12fd   :  { %7402 = vmatprep.mubr.msk.bf16.mxu0 %vm8520_vm1, %v13824_v49  ;;  %7382 = vmatprep.mubr.msk.bf16.mxu1 %vm8520_vm1, %v13824_v49 }
0x1304   :  { %7403 = vmatmul.mubr.msk.bf16.gmra.mrb[68].mxu0 %vm215_vm0, %v13833_v57  ;;  %7383 = vmatmul.mubr.msk.bf16.gmra.mrb[84].mxu1 %vm215_vm0, %v13836_v48 }
0x1305   :  { %7406 = vmatprep.mubr.msk.bf16.mxu0 %vm8520_vm1, %v13824_v49 }
0x130c   :  { %7407 = vmatmul.mubr.msk.bf16.gmra.mrb[72].mxu0 %vm215_vm0, %v13834_v4 }
0x130d   :  { %7410 = vmatprep.mubr.msk.bf16.mxu0 %vm8520_vm1, %v13824_v49 }
0x1314   :  { %7411 = vmatmul.mubr.msk.bf16.gmra.mrb[76].mxu0 %vm215_vm0, %v13835_v10 }
0x1315   :  { %7414 = vmatprep.mubr.msk.bf16.mxu0 %vm8520_vm1, %v13824_v49 }
0x131c   :  { %7415 = vmatmul.mubr.msk.bf16.gmra.mrb[80].mxu0 %vm215_vm0, %v13836_v48 }
0x13a7   :  { %v5813_v2 = vpop.f32.mrb[60].mxu1 }
0x13a8   :  { %v7360_v43 = vpop.f32.mrb[61].mxu1 }
0x13a9   :  { %v5815_v47 = vpop.f32.mrb[62].mxu1 }
0x13aa   :  { %v7361_v0 = vpop.f32.mrb[63].mxu1 }
0x13af   :  { %v5819_v27 = vpop.f32.mrb[64].mxu1 }
0x13b0   :  { %v7364_v21 = vpop.f32.mrb[65].mxu1 }
0x13b1   :  { %v5821_v44 = vpop.f32.mrb[66].mxu1 }
0x13b2   :  { %v7365_v19 = vpop.f32.mrb[67].mxu1 }
0x13b7   :  { %v5825_v42 = vpop.f32.mrb[68].mxu1 }
0x13b8   :  { %v7368_v5 = vpop.f32.mrb[69].mxu1 }
0x13b9   :  { %v5827_v59 = vpop.f32.mrb[70].mxu1 }
0x13ba   :  { %v7369_v50 = vpop.f32.mrb[71].mxu1 }
0x13bf   :  { %v5983_v58 = vpop.f32.mrb[56].mxu0  ;;  %v5831_v55 = vpop.f32.mrb[72].mxu1 }
0x13c0   :  { %v7392_v20 = vpop.f32.mrb[57].mxu0  ;;  %v7372_v53 = vpop.f32.mrb[73].mxu1 }
0x13c1   :  { %v5985_v49 = vpop.f32.mrb[58].mxu0  ;;  %v5833_v60 = vpop.f32.mrb[74].mxu1 }
0x13c2   :  { %v7393_v7 = vpop.f32.mrb[59].mxu0  ;;  %v7373_v17 = vpop.f32.mrb[75].mxu1 }
0x13c7   :  { %v5989_v36 = vpop.f32.mrb[60].mxu0  ;;  %v5837_v22 = vpop.f32.mrb[76].mxu1 }
0x13c8   :  { %v7396_v16 = vpop.f32.mrb[61].mxu0  ;;  %v7376_v1 = vpop.f32.mrb[77].mxu1 }
0x13c9   :  { %v5991_v33 = vpop.f32.mrb[62].mxu0  ;;  %v5839_v23 = vpop.f32.mrb[78].mxu1 }
0x13ca   :  { %v7397_v29 = vpop.f32.mrb[63].mxu0  ;;  %v7377_v31 = vpop.f32.mrb[79].mxu1 }
0x13cf   :  { %v5995_v62 = vpop.f32.mrb[64].mxu0  ;;  %v5843_v41 = vpop.f32.mrb[80].mxu1 }
0x13d0   :  { %v7400_v26 = vpop.f32.mrb[65].mxu0  ;;  %v7380_v54 = vpop.f32.mrb[81].mxu1 }
0x13d1   :  { %v5997_v14 = vpop.f32.mrb[66].mxu0  ;;  %v5845_v6 = vpop.f32.mrb[82].mxu1 }
0x13d2   :  { %v7401_v61 = vpop.f32.mrb[67].mxu0  ;;  %v7381_v40 = vpop.f32.mrb[83].mxu1 }
0x13d7   :  { %v6001_v9 = vpop.f32.mrb[68].mxu0  ;;  %v5849_v3 = vpop.f32.mrb[84].mxu1 }
0x13d8   :  { %v7404_v12 = vpop.f32.mrb[69].mxu0  ;;  %v5850_v18 = vadd.f32 %v8393_v37, %v5849_v3  ;;  %v7384_v30 = vpop.f32.mrb[85].mxu1 }
0x13d9   :  { %v6003_v34 = vpop.f32.mrb[70].mxu0  ;;  %v5852_v46 = vpop.f32.mrb[86].mxu1 }
0x13da   :  { %v7405_v28 = vpop.f32.mrb[71].mxu0  ;;  %v6044_v35 = vrot.slane %v5850_v18, 1  ;;  %v7385_v8 = vpop.f32.mrb[87].mxu1 }
0x13dc   :  { %v6059_v15 = vsel %vm6058_vm8, %v12764_v32, %v6044_v35 }
0x13dd   :  { %6060 = vst [vmem:[#allocation10] sm:$0xff] %v6059_v15 }
0x13df   :  { %v6007_v56 = vpop.f32.mrb[72].mxu0 }
0x13e0   :  { %v7408_v25 = vpop.f32.mrb[73].mxu0 }
0x13e1   :  { %v6009_v11 = vpop.f32.mrb[74].mxu0 }
0x13e2   :  { %v7409_v13 = vpop.f32.mrb[75].mxu0 }
0x13e7   :  { %v6013_v45 = vpop.f32.mrb[76].mxu0 }
0x13e8   :  { %v7412_v39 = vpop.f32.mrb[77].mxu0 }
0x13e9   :  { %v6015_v24 = vpop.f32.mrb[78].mxu0 }
0x13ea   :  { %v7413_v52 = vpop.f32.mrb[79].mxu0 }
0x13ef   :  { %v6019_v63 = vpop.f32.mrb[80].mxu0 }
0x13f0   :  { %v6020_v51 = vadd.f32 %v8393_v37, %v6019_v63  ;;  %v7416_v57 = vpop.f32.mrb[81].mxu0 }
0x13f1   :  { %v6022_v4 = vpop.f32.mrb[82].mxu0 }
0x13f2   :  { %v6080_v10 = vrot.slane %v6020_v51, 1  ;;  %v7417_v48 = vpop.f32.mrb[83].mxu0 }
0x13f4   :  { %v6088_v32 = vsel %vm6058_vm8, %v12848_v38, %v6080_v10 }
0x13f5   :  { %6089 = vst [vmem:[#allocation10 + $0x8] sm:$0xff] %v6088_v32 }
0x13f6   :  { %8493 = shalt.err (!%p8490_p8)
}
0x13f7   :  { %s8494_s28 = scalar_lea.hbm %s12958_s9, 256 }
0x13f8   :  { %p8495_p9 = scmp.ne.s32.totalorder %s12958_s9, %s8494_s28  ;;  %p8498_p10 = scmp.lt.u32.totalorder %s8494_s28, %s12958_s9 }
0x13fa   :  { %p8500_p11 = pnand %p8498_p10, %p8495_p9 }
0x13fc   :  { %8503 = shalt.err (!%p8500_p11)
}
0x13fd   :  { %6099 = dma.vmem_to_hbm [thread:$0]  %s6097_s25, 256, %s12958_s9, [#allocation4]  }
0x13fe   :  { %8510 = dma.done.wait [#allocation4], 256  }
0x13ff   :  { %8511 = vsyncadd [#allocation4], 4294967040 }
0x1400   :  { %6103 = vsyncpa [#allocation3], 1 }
0x1401   :  { %6104 = vsyncpa [#allocation6], 1 }
0x1402   :  { %6105 = vsyncpa [#allocation9], 1 }
0x1403   :  { %6106 = vsyncpa [#allocation4], 1 }

</bundles_post_ra>
